<compile_context>
chip_gen: v5e
topology: v5e:2x2
jax: 0.10.0
libtpu: 0.0.40
codegen_flags: <defaults>
</compile_context>

<pallas_src>
import jax
import jax.numpy as jnp
import numpy as np
from jax import lax
from jax.experimental import pallas as pl
from jax.experimental.pallas import tpu as pltpu


# ----------------------- static geometry helpers (host) ----------------------

# output-row parity of a k=4, s=2, p=1 transposed conv -> kernel rows contributing
_TAPS = {0: (1, 3), 1: (0, 2)}

# 3x3 coarse-tap order shared by the in-kernel LHS concat, the masks and all weight packers
_OFFS = tuple((dh, dw) for dh in (-1, 0, 1) for dw in (-1, 0, 1))


def _tap_index(dh, dw):
    return (dh + 1) * 3 + (dw + 1)


def _make_masks(B, H, W):
    """[M, 9] 0/1 table: column t says whether tap (dh,dw)=_OFFS[t] of each flattened
    row stays inside its own HxW image (implements zero padding and keeps batch
    images from bleeding into each other under the circular row roll)."""
    r = np.arange(B * H * W)
    i = (r // W) % H
    j = r % W
    cols = []
    for dh, dw in _OFFS:
        ok = (i + dh >= 0) & (i + dh < H) & (j + dw >= 0) & (j + dw < W)
        cols.append(ok.astype(np.float32))
    return jnp.asarray(np.stack(cols, axis=1))


def _pack_conv3x3(w_oihw):
    """PyTorch Conv2d weight [Cout, Cin, 3, 3] -> [9*Cin, Cout], tap-major, matching
    the in-kernel tap concatenation order."""
    co, ci = w_oihw.shape[0], w_oihw.shape[1]
    return jnp.transpose(w_oihw, (2, 3, 1, 0)).reshape(9 * ci, co)


def _pack_tconv1(w_iohw):
    """ConvTranspose2d(k=4,s=2,p=1) weight [Cin, Cmid, 4, 4] -> [9*Cin, 4*Cmid].
    One dot yields all 4 output phases (phase p = rh*2+rw packed along lanes);
    taps a phase does not use are zero."""
    ci, cm = w_iohw.shape[0], w_iohw.shape[1]
    wp = jnp.zeros((9 * ci, 4 * cm), jnp.float32)
    for rh in (0, 1):
        for rw in (0, 1):
            p = rh * 2 + rw
            for kh in _TAPS[rh]:
                for kw in _TAPS[rw]:
                    dh, dw = (rh + 1 - kh) // 2, (rw + 1 - kw) // 2
                    t = _tap_index(dh, dw)
                    wp = wp.at[t * ci:(t + 1) * ci, p * cm:(p + 1) * cm].set(
                        w_iohw[:, :, kh, kw])
    return wp


def _pack_tconv2(w_iohw):
    """Second ConvTranspose2d expressed directly on the phase-packed coarse-grid
    intermediate: [Cmid, Cout, 4, 4] -> [9*4*Cmid, 16*Cout].

    Final output pixel (4i+a, 4j+b) of coarse cell (i,j) reads intermediate
    sub-phase (sub_h, sub_w) at coarse offset (di, dj) in {-1,0,+1}^2 -- exactly
    the same 3x3 coarse taps (and masks) used by the other convs."""
    cm, co = w_iohw.shape[0], w_iohw.shape[1]
    wp = jnp.zeros((9 * 4 * cm, 16 * co), jnp.float32)
    for rh in (0, 1):
        for RH in (0, 1):
            for rw in (0, 1):
                for RW in (0, 1):
                    a, b = 2 * rh + RH, 2 * rw + RW
                    col = (a * 4 + b) * co
                    for kh in _TAPS[RH]:
                        for kw in _TAPS[RW]:
                            dH, dW = (RH + 1 - kh) // 2, (RW + 1 - kw) // 2
                            sh, sw = rh + dH, rw + dW
                            di, ph = sh // 2, sh % 2        # floor div / mod
                            dj, pw = sw // 2, sw % 2
                            t = _tap_index(di, dj)
                            row = t * (4 * cm) + (ph * 2 + pw) * cm
                            wp = wp.at[row:row + cm, col:col + co].set(
                                w_iohw[:, :, kh, kw])
    return wp


# --------------------------------- kernel ------------------------------------

def _make_decoder_kernel(n_res, B, H, W):
    M = B * H * W

    def kernel(*refs):
        it = iter(refs)
        x_ref, m_ref = next(it), next(it)
        res_refs = [(next(it), next(it)) for _ in range(n_res)]
        upw_ref, upb_ref, t1w_ref, t1b_ref, t2w_ref, t2b_ref, out_ref = (
            next(it) for _ in range(7))

        masks = m_ref[...]                                   # [M, 9] f32, static geometry
        mask_cols = [masks[:, t:t + 1] for t in range(9)]    # hoisted once, reused 5x

        def neighborhood(v):
            """[M, C] -> [M, 9*C]: the 9 zero-padded 3x3 taps concatenated along
            channels, so each conv layer becomes one K-deep MXU dot."""
            cols = []
            for dh, dw in _OFFS:
                d = dh * W + dw
                if d == 0:
                    cols.append(v)
                else:
                    r = pltpu.roll(v, (-d) % M, axis=0)      # XLU rotate over rows
                    cols.append(r * mask_cols[_tap_index(dh, dw)])
            return jnp.concatenate(cols, axis=1)

        def mxu(lhs, w_ref, bias_ref=None):
            # bf16 inputs, f32 accumulation; shifts/masks/activations stay f32.
            o = jnp.dot(lhs.astype(jnp.bfloat16), w_ref[...],
                        preferred_element_type=jnp.float32)
            return o if bias_ref is None else o + bias_ref[...]

        leaky = lambda v: jnp.where(v > 0, v, 0.01 * v)      # nn.LeakyReLU default slope

        x = x_ref[...]                                       # [M, C] f32

        # residual blocks: x = x + Conv1x1(ReLU(Conv3x3(ReLU(x))))
        for w1_ref, w2_ref in res_refs:
            h = mxu(neighborhood(jnp.maximum(x, 0.0)), w1_ref)
            x = x + mxu(jnp.maximum(h, 0.0), w2_ref)

        # LeakyReLU -> Conv3x3 + bias
        x = mxu(neighborhood(leaky(x)), upw_ref, upb_ref)

        # LeakyReLU -> ConvTranspose2d #1 (4 output phases packed along lanes)
        y = mxu(neighborhood(leaky(x)), t1w_ref, t1b_ref)    # [M, 4*c_mid]

        # LeakyReLU -> ConvTranspose2d #2 (16 sub-phases packed along lanes) -> tanh
        z = mxu(neighborhood(leaky(y)), t2w_ref, t2b_ref)    # [M, 16*c_out]
        out_ref[...] = jnp.tanh(z)

    return kernel


# ------------------------------ decoder forward ------------------------------

def decoder_forward(x_nchw, params):
    B, C, H, W = x_nchw.shape
    n_res = len(params["res"])
    c_mid = params["t1_w"].shape[1]           # hidden // 2
    c_out = params["t2_w"].shape[1]           # img_channels
    M = B * H * W
    bf16 = jnp.bfloat16

    x2d = jnp.transpose(x_nchw, (0, 2, 3, 1)).reshape(M, C)

    args = [x2d, _make_masks(B, H, W)]
    for w1, w2 in params["res"]:
        args.append(_pack_conv3x3(w1).astype(bf16))                  # [9*C, C]
        args.append(jnp.transpose(w2[:, :, 0, 0]).astype(bf16))      # [C, C]
    args += [
        _pack_conv3x3(params["up_w"]).astype(bf16),                  # [9*C, C]
        params["up_b"].reshape(1, -1),                               # [1, C]
        _pack_tconv1(params["t1_w"]).astype(bf16),                   # [9*C, 4*c_mid]
        jnp.tile(params["t1_b"], 4).reshape(1, -1),                  # [1, 4*c_mid]
        _pack_tconv2(params["t2_w"]).astype(bf16),                   # [9*4*c_mid, 16*c_out]
        jnp.tile(params["t2_b"], 16).reshape(1, -1),                 # [1, 16*c_out]
    ]

    vmem = pl.BlockSpec(memory_space=pltpu.MemorySpace.VMEM)
    out = pl.pallas_call(
        _make_decoder_kernel(n_res, B, H, W),
        out_shape=jax.ShapeDtypeStruct((M, 16 * c_out), jnp.float32),
        in_specs=[vmem] * len(args),
        out_specs=vmem,
    )(*args)

    # depth-to-space on a ~24 KiB tensor: (B,i,j,a,b,c) -> (B,4H,4W,c) -> NCHW
    z = out.reshape(B, H, W, 4, 4, c_out).transpose(0, 1, 3, 2, 4, 5)
    z = z.reshape(B, 4 * H, 4 * W, c_out)
    return jnp.transpose(z, (0, 3, 1, 2))


# ------------------------------- parameters ----------------------------------

def init_params(key, img_channels=3, hidden=32, n_res=2):
    keys = jax.random.split(key, 2 * n_res + 6)
    s = 0.05
    params = {"res": []}
    for i in range(n_res):
        w1 = s * jax.random.normal(keys[2 * i], (hidden, hidden, 3, 3), jnp.float32)
        w2 = s * jax.random.normal(keys[2 * i + 1], (hidden, hidden, 1, 1), jnp.float32)
        params["res"].append((w1, w2))
    k = 2 * n_res
    params["up_w"] = s * jax.random.normal(keys[k + 0], (hidden, hidden, 3, 3), jnp.float32)
    params["up_b"] = 0.01 * jax.random.normal(keys[k + 1], (hidden,), jnp.float32)
    params["t1_w"] = s * jax.random.normal(keys[k + 2], (hidden, hidden // 2, 4, 4), jnp.float32)
    params["t1_b"] = 0.01 * jax.random.normal(keys[k + 3], (hidden // 2,), jnp.float32)
    params["t2_w"] = s * jax.random.normal(keys[k + 4], (hidden // 2, img_channels, 4, 4), jnp.float32)
    params["t2_b"] = 0.01 * jax.random.normal(keys[k + 5], (img_channels,), jnp.float32)
    return params


# ----------------------- pure-JAX reference (checking) -----------------------

def ref_forward(x_nchw, params):
    x = jnp.transpose(x_nchw, (0, 2, 3, 1))

    def conv(v, w_oihw, pad):
        return lax.conv_general_dilated(
            v, jnp.transpose(w_oihw, (2, 3, 1, 0)), (1, 1),
            [(pad, pad), (pad, pad)], dimension_numbers=("NHWC", "HWIO", "NHWC"),
            precision=lax.Precision.HIGHEST)

    def convT(v, w_iohw):
        rhs = jnp.transpose(w_iohw[:, :, ::-1, ::-1], (2, 3, 0, 1))
        return lax.conv_general_dilated(
            v, rhs, (1, 1), [(2, 2), (2, 2)], lhs_dilation=(2, 2),
            dimension_numbers=("NHWC", "HWIO", "NHWC"),
            precision=lax.Precision.HIGHEST)

    leaky = lambda v: jnp.where(v > 0, v, 0.01 * v)
    for (w1, w2) in params["res"]:
        h = conv(jax.nn.relu(x), w1, 1)
        x = x + conv(jax.nn.relu(h), w2, 0)
    x = conv(leaky(x), params["up_w"], 1) + params["up_b"]
    x = convT(leaky(x), params["t1_w"]) + params["t1_b"]
    x = jnp.tanh(convT(leaky(x), params["t2_w"]) + params["t2_b"])
    return jnp.transpose(x, (0, 3, 1, 2))


# ----------------------------------- main -------------------------------------

if __name__ == "__main__":
    key = jax.random.PRNGKey(0)
    kx, kp = jax.random.split(key)

    B, hidden, H, W = 2, 32, 8, 8
    img_channels, n_res = 3, 2

    x = jax.random.normal(kx, (B, hidden, H, W), jnp.float32)   # NCHW, like PyTorch
    params = init_params(kp, img_channels=img_channels, hidden=hidden, n_res=n_res)

    out = jax.jit(lambda xv: decoder_forward(xv, params))(x)
    out = jax.block_until_ready(out)

    assert out.shape == (B, img_channels, 4 * H, 4 * W), out.shape

    ref = jax.block_until_ready(ref_forward(x, params))
    # bf16-input / f32-accumulate MXU dots vs HIGHEST-precision f32 lax reference
    np.testing.assert_allclose(np.asarray(out), np.asarray(ref), atol=2e-2, rtol=2e-2)

    print("KERNEL_OK")
</pallas_src>

<mosaic_0001>
module attributes {stable_mosaic.version = 11 : i64} {
  func.func @kernel(%arg0: memref<128x32xf32, #tpu.memory_space<vmem>>, %arg1: memref<128x9xf32, #tpu.memory_space<vmem>>, %arg2: memref<288x32xbf16, #tpu.memory_space<vmem>>, %arg3: memref<32x32xbf16, #tpu.memory_space<vmem>>, %arg4: memref<288x32xbf16, #tpu.memory_space<vmem>>, %arg5: memref<32x32xbf16, #tpu.memory_space<vmem>>, %arg6: memref<288x32xbf16, #tpu.memory_space<vmem>>, %arg7: memref<1x32xf32, #tpu.memory_space<vmem>>, %arg8: memref<288x64xbf16, #tpu.memory_space<vmem>>, %arg9: memref<1x64xf32, #tpu.memory_space<vmem>>, %arg10: memref<576x48xbf16, #tpu.memory_space<vmem>>, %arg11: memref<1x48xf32, #tpu.memory_space<vmem>>, %arg12: memref<128x48xf32, #tpu.memory_space<vmem>>) attributes {dimension_semantics = [], scalar_prefetch = 0 : i64, scratch_operands = 0 : i64, tpu.core_type = #tpu.core_type<tc>} {
    %c0 = arith.constant 0 : index
    %c0_0 = arith.constant 0 : index
    %0 = vector.load %arg1[%c0, %c0_0] : memref<128x9xf32, #tpu.memory_space<vmem>>, vector<128x9xf32>
    %1 = vector.extract_strided_slice %0 {offsets = [0, 0], sizes = [128, 1], strides = [1, 1]} : vector<128x9xf32> to vector<128x1xf32>
    %2 = vector.extract_strided_slice %0 {offsets = [0, 1], sizes = [128, 1], strides = [1, 1]} : vector<128x9xf32> to vector<128x1xf32>
    %3 = vector.extract_strided_slice %0 {offsets = [0, 2], sizes = [128, 1], strides = [1, 1]} : vector<128x9xf32> to vector<128x1xf32>
    %4 = vector.extract_strided_slice %0 {offsets = [0, 3], sizes = [128, 1], strides = [1, 1]} : vector<128x9xf32> to vector<128x1xf32>
    %5 = vector.extract_strided_slice %0 {offsets = [0, 5], sizes = [128, 1], strides = [1, 1]} : vector<128x9xf32> to vector<128x1xf32>
    %6 = vector.extract_strided_slice %0 {offsets = [0, 6], sizes = [128, 1], strides = [1, 1]} : vector<128x9xf32> to vector<128x1xf32>
    %7 = vector.extract_strided_slice %0 {offsets = [0, 7], sizes = [128, 1], strides = [1, 1]} : vector<128x9xf32> to vector<128x1xf32>
    %8 = vector.extract_strided_slice %0 {offsets = [0, 8], sizes = [128, 1], strides = [1, 1]} : vector<128x9xf32> to vector<128x1xf32>
    %c0_1 = arith.constant 0 : index
    %c0_2 = arith.constant 0 : index
    %9 = vector.load %arg0[%c0_1, %c0_2] : memref<128x32xf32, #tpu.memory_space<vmem>>, vector<128x32xf32>
    %cst = arith.constant 0.000000e+00 : f32
    %10 = vector.broadcast %cst : f32 to vector<128x32xf32>
    %11 = arith.maximumf %9, %10 : vector<128x32xf32>
    %c9_i32 = arith.constant 9 : i32
    %12 = tpu.dynamic_rotate %11 by %c9_i32 dim 0 : vector<128x32xf32>, i32 -> vector<128x32xf32>
    %13 = vector.broadcast %1 : vector<128x1xf32> to vector<128x32xf32>
    %14 = arith.mulf %12, %13 : vector<128x32xf32>
    %c8_i32 = arith.constant 8 : i32
    %15 = tpu.dynamic_rotate %11 by %c8_i32 dim 0 : vector<128x32xf32>, i32 -> vector<128x32xf32>
    %16 = vector.broadcast %2 : vector<128x1xf32> to vector<128x32xf32>
    %17 = arith.mulf %15, %16 : vector<128x32xf32>
    %c7_i32 = arith.constant 7 : i32
    %18 = tpu.dynamic_rotate %11 by %c7_i32 dim 0 : vector<128x32xf32>, i32 -> vector<128x32xf32>
    %19 = vector.broadcast %3 : vector<128x1xf32> to vector<128x32xf32>
    %20 = arith.mulf %18, %19 : vector<128x32xf32>
    %c1_i32 = arith.constant 1 : i32
    %21 = tpu.dynamic_rotate %11 by %c1_i32 dim 0 : vector<128x32xf32>, i32 -> vector<128x32xf32>
    %22 = vector.broadcast %4 : vector<128x1xf32> to vector<128x32xf32>
    %23 = arith.mulf %21, %22 : vector<128x32xf32>
    %c127_i32 = arith.constant 127 : i32
    %24 = tpu.dynamic_rotate %11 by %c127_i32 dim 0 : vector<128x32xf32>, i32 -> vector<128x32xf32>
    %25 = vector.broadcast %5 : vector<128x1xf32> to vector<128x32xf32>
    %26 = arith.mulf %24, %25 : vector<128x32xf32>
    %c121_i32 = arith.constant 121 : i32
    %27 = tpu.dynamic_rotate %11 by %c121_i32 dim 0 : vector<128x32xf32>, i32 -> vector<128x32xf32>
    %28 = vector.broadcast %6 : vector<128x1xf32> to vector<128x32xf32>
    %29 = arith.mulf %27, %28 : vector<128x32xf32>
    %c120_i32 = arith.constant 120 : i32
    %30 = tpu.dynamic_rotate %11 by %c120_i32 dim 0 : vector<128x32xf32>, i32 -> vector<128x32xf32>
    %31 = vector.broadcast %7 : vector<128x1xf32> to vector<128x32xf32>
    %32 = arith.mulf %30, %31 : vector<128x32xf32>
    %c119_i32 = arith.constant 119 : i32
    %33 = tpu.dynamic_rotate %11 by %c119_i32 dim 0 : vector<128x32xf32>, i32 -> vector<128x32xf32>
    %34 = vector.broadcast %8 : vector<128x1xf32> to vector<128x32xf32>
    %35 = arith.mulf %33, %34 : vector<128x32xf32>
    %36 = tpu.concatenate %14, %17, %20, %23, %11, %26, %29, %32, %35 in 1 : vector<128x32xf32>, vector<128x32xf32>, vector<128x32xf32>, vector<128x32xf32>, vector<128x32xf32>, vector<128x32xf32>, vector<128x32xf32>, vector<128x32xf32>, vector<128x32xf32> -> vector<128x288xf32>
    %37 = arith.truncf %36 : vector<128x288xf32> to vector<128x288xbf16>
    %c0_3 = arith.constant 0 : index
    %c0_4 = arith.constant 0 : index
    %38 = vector.load %arg2[%c0_3, %c0_4] : memref<288x32xbf16, #tpu.memory_space<vmem>>, vector<288x32xbf16>
    %cst_5 = arith.constant dense<0.000000e+00> : vector<128x32xf32>
    %39 = tpu.matmul %37, %38, %cst_5 {dimension_numbers = #tpu.dot_dimension_numbers<[1], [0], [0], [1], [0, 0, 1, 1], [], []>} : vector<128x288xbf16>, vector<288x32xbf16>, vector<128x32xf32> -> vector<128x32xf32>
    %cst_6 = arith.constant 0.000000e+00 : f32
    %40 = vector.broadcast %cst_6 : f32 to vector<128x32xf32>
    %41 = arith.maximumf %39, %40 : vector<128x32xf32>
    %42 = arith.truncf %41 : vector<128x32xf32> to vector<128x32xbf16>
    %c0_7 = arith.constant 0 : index
    %c0_8 = arith.constant 0 : index
    %43 = vector.load %arg3[%c0_7, %c0_8] : memref<32x32xbf16, #tpu.memory_space<vmem>>, vector<32x32xbf16>
    %cst_9 = arith.constant dense<0.000000e+00> : vector<128x32xf32>
    %44 = tpu.matmul %42, %43, %cst_9 {dimension_numbers = #tpu.dot_dimension_numbers<[1], [0], [0], [1], [0, 0, 1, 1], [], []>} : vector<128x32xbf16>, vector<32x32xbf16>, vector<128x32xf32> -> vector<128x32xf32>
    %45 = arith.addf %9, %44 : vector<128x32xf32>
    %cst_10 = arith.constant 0.000000e+00 : f32
    %46 = vector.broadcast %cst_10 : f32 to vector<128x32xf32>
    %47 = arith.maximumf %45, %46 : vector<128x32xf32>
    %c9_i32_11 = arith.constant 9 : i32
    %48 = tpu.dynamic_rotate %47 by %c9_i32_11 dim 0 : vector<128x32xf32>, i32 -> vector<128x32xf32>
    %49 = vector.broadcast %1 : vector<128x1xf32> to vector<128x32xf32>
    %50 = arith.mulf %48, %49 : vector<128x32xf32>
    %c8_i32_12 = arith.constant 8 : i32
    %51 = tpu.dynamic_rotate %47 by %c8_i32_12 dim 0 : vector<128x32xf32>, i32 -> vector<128x32xf32>
    %52 = vector.broadcast %2 : vector<128x1xf32> to vector<128x32xf32>
    %53 = arith.mulf %51, %52 : vector<128x32xf32>
    %c7_i32_13 = arith.constant 7 : i32
    %54 = tpu.dynamic_rotate %47 by %c7_i32_13 dim 0 : vector<128x32xf32>, i32 -> vector<128x32xf32>
    %55 = vector.broadcast %3 : vector<128x1xf32> to vector<128x32xf32>
    %56 = arith.mulf %54, %55 : vector<128x32xf32>
    %c1_i32_14 = arith.constant 1 : i32
    %57 = tpu.dynamic_rotate %47 by %c1_i32_14 dim 0 : vector<128x32xf32>, i32 -> vector<128x32xf32>
    %58 = vector.broadcast %4 : vector<128x1xf32> to vector<128x32xf32>
    %59 = arith.mulf %57, %58 : vector<128x32xf32>
    %c127_i32_15 = arith.constant 127 : i32
    %60 = tpu.dynamic_rotate %47 by %c127_i32_15 dim 0 : vector<128x32xf32>, i32 -> vector<128x32xf32>
    %61 = vector.broadcast %5 : vector<128x1xf32> to vector<128x32xf32>
    %62 = arith.mulf %60, %61 : vector<128x32xf32>
    %c121_i32_16 = arith.constant 121 : i32
    %63 = tpu.dynamic_rotate %47 by %c121_i32_16 dim 0 : vector<128x32xf32>, i32 -> vector<128x32xf32>
    %64 = vector.broadcast %6 : vector<128x1xf32> to vector<128x32xf32>
    %65 = arith.mulf %63, %64 : vector<128x32xf32>
    %c120_i32_17 = arith.constant 120 : i32
    %66 = tpu.dynamic_rotate %47 by %c120_i32_17 dim 0 : vector<128x32xf32>, i32 -> vector<128x32xf32>
    %67 = vector.broadcast %7 : vector<128x1xf32> to vector<128x32xf32>
    %68 = arith.mulf %66, %67 : vector<128x32xf32>
    %c119_i32_18 = arith.constant 119 : i32
    %69 = tpu.dynamic_rotate %47 by %c119_i32_18 dim 0 : vector<128x32xf32>, i32 -> vector<128x32xf32>
    %70 = vector.broadcast %8 : vector<128x1xf32> to vector<128x32xf32>
    %71 = arith.mulf %69, %70 : vector<128x32xf32>
    %72 = tpu.concatenate %50, %53, %56, %59, %47, %62, %65, %68, %71 in 1 : vector<128x32xf32>, vector<128x32xf32>, vector<128x32xf32>, vector<128x32xf32>, vector<128x32xf32>, vector<128x32xf32>, vector<128x32xf32>, vector<128x32xf32>, vector<128x32xf32> -> vector<128x288xf32>
    %73 = arith.truncf %72 : vector<128x288xf32> to vector<128x288xbf16>
    %c0_19 = arith.constant 0 : index
    %c0_20 = arith.constant 0 : index
    %74 = vector.load %arg4[%c0_19, %c0_20] : memref<288x32xbf16, #tpu.memory_space<vmem>>, vector<288x32xbf16>
    %cst_21 = arith.constant dense<0.000000e+00> : vector<128x32xf32>
    %75 = tpu.matmul %73, %74, %cst_21 {dimension_numbers = #tpu.dot_dimension_numbers<[1], [0], [0], [1], [0, 0, 1, 1], [], []>} : vector<128x288xbf16>, vector<288x32xbf16>, vector<128x32xf32> -> vector<128x32xf32>
    %cst_22 = arith.constant 0.000000e+00 : f32
    %76 = vector.broadcast %cst_22 : f32 to vector<128x32xf32>
    %77 = arith.maximumf %75, %76 : vector<128x32xf32>
    %78 = arith.truncf %77 : vector<128x32xf32> to vector<128x32xbf16>
    %c0_23 = arith.constant 0 : index
    %c0_24 = arith.constant 0 : index
    %79 = vector.load %arg5[%c0_23, %c0_24] : memref<32x32xbf16, #tpu.memory_space<vmem>>, vector<32x32xbf16>
    %cst_25 = arith.constant dense<0.000000e+00> : vector<128x32xf32>
    %80 = tpu.matmul %78, %79, %cst_25 {dimension_numbers = #tpu.dot_dimension_numbers<[1], [0], [0], [1], [0, 0, 1, 1], [], []>} : vector<128x32xbf16>, vector<32x32xbf16>, vector<128x32xf32> -> vector<128x32xf32>
    %81 = arith.addf %45, %80 : vector<128x32xf32>
    %cst_26 = arith.constant 0.000000e+00 : f32
    %82 = vector.broadcast %cst_26 : f32 to vector<128x32xf32>
    %83 = arith.cmpf ogt, %81, %82 : vector<128x32xf32>
    %cst_27 = arith.constant 0.00999999977 : f32
    %84 = vector.broadcast %cst_27 : f32 to vector<128x32xf32>
    %85 = arith.mulf %84, %81 : vector<128x32xf32>
    %86 = arith.select %83, %81, %85 : vector<128x32xi1>, vector<128x32xf32>
    %c9_i32_28 = arith.constant 9 : i32
    %87 = tpu.dynamic_rotate %86 by %c9_i32_28 dim 0 : vector<128x32xf32>, i32 -> vector<128x32xf32>
    %88 = vector.broadcast %1 : vector<128x1xf32> to vector<128x32xf32>
    %89 = arith.mulf %87, %88 : vector<128x32xf32>
    %c8_i32_29 = arith.constant 8 : i32
    %90 = tpu.dynamic_rotate %86 by %c8_i32_29 dim 0 : vector<128x32xf32>, i32 -> vector<128x32xf32>
    %91 = vector.broadcast %2 : vector<128x1xf32> to vector<128x32xf32>
    %92 = arith.mulf %90, %91 : vector<128x32xf32>
    %c7_i32_30 = arith.constant 7 : i32
    %93 = tpu.dynamic_rotate %86 by %c7_i32_30 dim 0 : vector<128x32xf32>, i32 -> vector<128x32xf32>
    %94 = vector.broadcast %3 : vector<128x1xf32> to vector<128x32xf32>
    %95 = arith.mulf %93, %94 : vector<128x32xf32>
    %c1_i32_31 = arith.constant 1 : i32
    %96 = tpu.dynamic_rotate %86 by %c1_i32_31 dim 0 : vector<128x32xf32>, i32 -> vector<128x32xf32>
    %97 = vector.broadcast %4 : vector<128x1xf32> to vector<128x32xf32>
    %98 = arith.mulf %96, %97 : vector<128x32xf32>
    %c127_i32_32 = arith.constant 127 : i32
    %99 = tpu.dynamic_rotate %86 by %c127_i32_32 dim 0 : vector<128x32xf32>, i32 -> vector<128x32xf32>
    %100 = vector.broadcast %5 : vector<128x1xf32> to vector<128x32xf32>
    %101 = arith.mulf %99, %100 : vector<128x32xf32>
    %c121_i32_33 = arith.constant 121 : i32
    %102 = tpu.dynamic_rotate %86 by %c121_i32_33 dim 0 : vector<128x32xf32>, i32 -> vector<128x32xf32>
    %103 = vector.broadcast %6 : vector<128x1xf32> to vector<128x32xf32>
    %104 = arith.mulf %102, %103 : vector<128x32xf32>
    %c120_i32_34 = arith.constant 120 : i32
    %105 = tpu.dynamic_rotate %86 by %c120_i32_34 dim 0 : vector<128x32xf32>, i32 -> vector<128x32xf32>
    %106 = vector.broadcast %7 : vector<128x1xf32> to vector<128x32xf32>
    %107 = arith.mulf %105, %106 : vector<128x32xf32>
    %c119_i32_35 = arith.constant 119 : i32
    %108 = tpu.dynamic_rotate %86 by %c119_i32_35 dim 0 : vector<128x32xf32>, i32 -> vector<128x32xf32>
    %109 = vector.broadcast %8 : vector<128x1xf32> to vector<128x32xf32>
    %110 = arith.mulf %108, %109 : vector<128x32xf32>
    %111 = tpu.concatenate %89, %92, %95, %98, %86, %101, %104, %107, %110 in 1 : vector<128x32xf32>, vector<128x32xf32>, vector<128x32xf32>, vector<128x32xf32>, vector<128x32xf32>, vector<128x32xf32>, vector<128x32xf32>, vector<128x32xf32>, vector<128x32xf32> -> vector<128x288xf32>
    %112 = arith.truncf %111 : vector<128x288xf32> to vector<128x288xbf16>
    %c0_36 = arith.constant 0 : index
    %c0_37 = arith.constant 0 : index
    %113 = vector.load %arg6[%c0_36, %c0_37] : memref<288x32xbf16, #tpu.memory_space<vmem>>, vector<288x32xbf16>
    %cst_38 = arith.constant dense<0.000000e+00> : vector<128x32xf32>
    %114 = tpu.matmul %112, %113, %cst_38 {dimension_numbers = #tpu.dot_dimension_numbers<[1], [0], [0], [1], [0, 0, 1, 1], [], []>} : vector<128x288xbf16>, vector<288x32xbf16>, vector<128x32xf32> -> vector<128x32xf32>
    %c0_39 = arith.constant 0 : index
    %c0_40 = arith.constant 0 : index
    %115 = vector.load %arg7[%c0_39, %c0_40] : memref<1x32xf32, #tpu.memory_space<vmem>>, vector<1x32xf32>
    %116 = vector.broadcast %115 : vector<1x32xf32> to vector<128x32xf32>
    %117 = arith.addf %114, %116 : vector<128x32xf32>
    %cst_41 = arith.constant 0.000000e+00 : f32
    %118 = vector.broadcast %cst_41 : f32 to vector<128x32xf32>
    %119 = arith.cmpf ogt, %117, %118 : vector<128x32xf32>
    %cst_42 = arith.constant 0.00999999977 : f32
    %120 = vector.broadcast %cst_42 : f32 to vector<128x32xf32>
    %121 = arith.mulf %120, %117 : vector<128x32xf32>
    %122 = arith.select %119, %117, %121 : vector<128x32xi1>, vector<128x32xf32>
    %c9_i32_43 = arith.constant 9 : i32
    %123 = tpu.dynamic_rotate %122 by %c9_i32_43 dim 0 : vector<128x32xf32>, i32 -> vector<128x32xf32>
    %124 = vector.broadcast %1 : vector<128x1xf32> to vector<128x32xf32>
    %125 = arith.mulf %123, %124 : vector<128x32xf32>
    %c8_i32_44 = arith.constant 8 : i32
    %126 = tpu.dynamic_rotate %122 by %c8_i32_44 dim 0 : vector<128x32xf32>, i32 -> vector<128x32xf32>
    %127 = vector.broadcast %2 : vector<128x1xf32> to vector<128x32xf32>
    %128 = arith.mulf %126, %127 : vector<128x32xf32>
    %c7_i32_45 = arith.constant 7 : i32
    %129 = tpu.dynamic_rotate %122 by %c7_i32_45 dim 0 : vector<128x32xf32>, i32 -> vector<128x32xf32>
    %130 = vector.broadcast %3 : vector<128x1xf32> to vector<128x32xf32>
    %131 = arith.mulf %129, %130 : vector<128x32xf32>
    %c1_i32_46 = arith.constant 1 : i32
    %132 = tpu.dynamic_rotate %122 by %c1_i32_46 dim 0 : vector<128x32xf32>, i32 -> vector<128x32xf32>
    %133 = vector.broadcast %4 : vector<128x1xf32> to vector<128x32xf32>
    %134 = arith.mulf %132, %133 : vector<128x32xf32>
    %c127_i32_47 = arith.constant 127 : i32
    %135 = tpu.dynamic_rotate %122 by %c127_i32_47 dim 0 : vector<128x32xf32>, i32 -> vector<128x32xf32>
    %136 = vector.broadcast %5 : vector<128x1xf32> to vector<128x32xf32>
    %137 = arith.mulf %135, %136 : vector<128x32xf32>
    %c121_i32_48 = arith.constant 121 : i32
    %138 = tpu.dynamic_rotate %122 by %c121_i32_48 dim 0 : vector<128x32xf32>, i32 -> vector<128x32xf32>
    %139 = vector.broadcast %6 : vector<128x1xf32> to vector<128x32xf32>
    %140 = arith.mulf %138, %139 : vector<128x32xf32>
    %c120_i32_49 = arith.constant 120 : i32
    %141 = tpu.dynamic_rotate %122 by %c120_i32_49 dim 0 : vector<128x32xf32>, i32 -> vector<128x32xf32>
    %142 = vector.broadcast %7 : vector<128x1xf32> to vector<128x32xf32>
    %143 = arith.mulf %141, %142 : vector<128x32xf32>
    %c119_i32_50 = arith.constant 119 : i32
    %144 = tpu.dynamic_rotate %122 by %c119_i32_50 dim 0 : vector<128x32xf32>, i32 -> vector<128x32xf32>
    %145 = vector.broadcast %8 : vector<128x1xf32> to vector<128x32xf32>
    %146 = arith.mulf %144, %145 : vector<128x32xf32>
    %147 = tpu.concatenate %125, %128, %131, %134, %122, %137, %140, %143, %146 in 1 : vector<128x32xf32>, vector<128x32xf32>, vector<128x32xf32>, vector<128x32xf32>, vector<128x32xf32>, vector<128x32xf32>, vector<128x32xf32>, vector<128x32xf32>, vector<128x32xf32> -> vector<128x288xf32>
    %148 = arith.truncf %147 : vector<128x288xf32> to vector<128x288xbf16>
    %c0_51 = arith.constant 0 : index
    %c0_52 = arith.constant 0 : index
    %149 = vector.load %arg8[%c0_51, %c0_52] : memref<288x64xbf16, #tpu.memory_space<vmem>>, vector<288x64xbf16>
    %cst_53 = arith.constant dense<0.000000e+00> : vector<128x64xf32>
    %150 = tpu.matmul %148, %149, %cst_53 {dimension_numbers = #tpu.dot_dimension_numbers<[1], [0], [0], [1], [0, 0, 1, 1], [], []>} : vector<128x288xbf16>, vector<288x64xbf16>, vector<128x64xf32> -> vector<128x64xf32>
    %c0_54 = arith.constant 0 : index
    %c0_55 = arith.constant 0 : index
    %151 = vector.load %arg9[%c0_54, %c0_55] : memref<1x64xf32, #tpu.memory_space<vmem>>, vector<1x64xf32>
    %152 = vector.broadcast %151 : vector<1x64xf32> to vector<128x64xf32>
    %153 = arith.addf %150, %152 : vector<128x64xf32>
    %cst_56 = arith.constant 0.000000e+00 : f32
    %154 = vector.broadcast %cst_56 : f32 to vector<128x64xf32>
    %155 = arith.cmpf ogt, %153, %154 : vector<128x64xf32>
    %cst_57 = arith.constant 0.00999999977 : f32
    %156 = vector.broadcast %cst_57 : f32 to vector<128x64xf32>
    %157 = arith.mulf %156, %153 : vector<128x64xf32>
    %158 = arith.select %155, %153, %157 : vector<128x64xi1>, vector<128x64xf32>
    %c9_i32_58 = arith.constant 9 : i32
    %159 = tpu.dynamic_rotate %158 by %c9_i32_58 dim 0 : vector<128x64xf32>, i32 -> vector<128x64xf32>
    %160 = vector.broadcast %1 : vector<128x1xf32> to vector<128x64xf32>
    %161 = arith.mulf %159, %160 : vector<128x64xf32>
    %c8_i32_59 = arith.constant 8 : i32
    %162 = tpu.dynamic_rotate %158 by %c8_i32_59 dim 0 : vector<128x64xf32>, i32 -> vector<128x64xf32>
    %163 = vector.broadcast %2 : vector<128x1xf32> to vector<128x64xf32>
    %164 = arith.mulf %162, %163 : vector<128x64xf32>
    %c7_i32_60 = arith.constant 7 : i32
    %165 = tpu.dynamic_rotate %158 by %c7_i32_60 dim 0 : vector<128x64xf32>, i32 -> vector<128x64xf32>
    %166 = vector.broadcast %3 : vector<128x1xf32> to vector<128x64xf32>
    %167 = arith.mulf %165, %166 : vector<128x64xf32>
    %c1_i32_61 = arith.constant 1 : i32
    %168 = tpu.dynamic_rotate %158 by %c1_i32_61 dim 0 : vector<128x64xf32>, i32 -> vector<128x64xf32>
    %169 = vector.broadcast %4 : vector<128x1xf32> to vector<128x64xf32>
    %170 = arith.mulf %168, %169 : vector<128x64xf32>
    %c127_i32_62 = arith.constant 127 : i32
    %171 = tpu.dynamic_rotate %158 by %c127_i32_62 dim 0 : vector<128x64xf32>, i32 -> vector<128x64xf32>
    %172 = vector.broadcast %5 : vector<128x1xf32> to vector<128x64xf32>
    %173 = arith.mulf %171, %172 : vector<128x64xf32>
    %c121_i32_63 = arith.constant 121 : i32
    %174 = tpu.dynamic_rotate %158 by %c121_i32_63 dim 0 : vector<128x64xf32>, i32 -> vector<128x64xf32>
    %175 = vector.broadcast %6 : vector<128x1xf32> to vector<128x64xf32>
    %176 = arith.mulf %174, %175 : vector<128x64xf32>
    %c120_i32_64 = arith.constant 120 : i32
    %177 = tpu.dynamic_rotate %158 by %c120_i32_64 dim 0 : vector<128x64xf32>, i32 -> vector<128x64xf32>
    %178 = vector.broadcast %7 : vector<128x1xf32> to vector<128x64xf32>
    %179 = arith.mulf %177, %178 : vector<128x64xf32>
    %c119_i32_65 = arith.constant 119 : i32
    %180 = tpu.dynamic_rotate %158 by %c119_i32_65 dim 0 : vector<128x64xf32>, i32 -> vector<128x64xf32>
    %181 = vector.broadcast %8 : vector<128x1xf32> to vector<128x64xf32>
    %182 = arith.mulf %180, %181 : vector<128x64xf32>
    %183 = tpu.concatenate %161, %164, %167, %170, %158, %173, %176, %179, %182 in 1 : vector<128x64xf32>, vector<128x64xf32>, vector<128x64xf32>, vector<128x64xf32>, vector<128x64xf32>, vector<128x64xf32>, vector<128x64xf32>, vector<128x64xf32>, vector<128x64xf32> -> vector<128x576xf32>
    %184 = arith.truncf %183 : vector<128x576xf32> to vector<128x576xbf16>
    %c0_66 = arith.constant 0 : index
    %c0_67 = arith.constant 0 : index
    %185 = vector.load %arg10[%c0_66, %c0_67] : memref<576x48xbf16, #tpu.memory_space<vmem>>, vector<576x48xbf16>
    %cst_68 = arith.constant dense<0.000000e+00> : vector<128x48xf32>
    %186 = tpu.matmul %184, %185, %cst_68 {dimension_numbers = #tpu.dot_dimension_numbers<[1], [0], [0], [1], [0, 0, 1, 1], [], []>} : vector<128x576xbf16>, vector<576x48xbf16>, vector<128x48xf32> -> vector<128x48xf32>
    %c0_69 = arith.constant 0 : index
    %c0_70 = arith.constant 0 : index
    %187 = vector.load %arg11[%c0_69, %c0_70] : memref<1x48xf32, #tpu.memory_space<vmem>>, vector<1x48xf32>
    %188 = vector.broadcast %187 : vector<1x48xf32> to vector<128x48xf32>
    %189 = arith.addf %186, %188 : vector<128x48xf32>
    %190 = math.tanh %189 : vector<128x48xf32>
    %c0_71 = arith.constant 0 : index
    %c0_72 = arith.constant 0 : index
    %191 = vector.load %arg12[%c0_71, %c0_72] : memref<128x48xf32, #tpu.memory_space<vmem>>, vector<128x48xf32>
    tpu.vector_store %arg12[%c0_71, %c0_72], %190 {strides = array<i32>} : memref<128x48xf32, #tpu.memory_space<vmem>>, vector<128x48xf32>,
    return
  }
}

</mosaic_0001>

<bundles_post_ra>
// kernel: tile.11
= control target key start
LH: loop header
LB: loop body
LE: loop exit
PB: predicated region body
PF: predicated region fallthrough
CT: control target
= control target key end

     0   :  { %s37_s8 = smov 16   ;;  %s38_s9 = smov 32   ;;  %vm7_vm0 = vcmask 130048   ;;  %vm13_vm1 = vcmask 523648   ;;  %vm19_vm2 = vcmask 392448   ;;  %vm25_vm3 = vcmask 261248   ;;  %s55_s0 = inlined_call_operand.vmem [shape: f32[4,16], index: 0, kind: input, shape index: {}]   ;;  %s56_s1 = inlined_call_operand.vmem [shape: f32[1,64], index: 1, kind: output, shape index: {}]  }
   0x1   :  { %v4_v0 = vld [vmem:[%s55_s0] sm:$0xf]  ;;  %s36_s0 = smov 48  }
   0x2   :  { %5 = vst [vmem:[#allocation1] sm:$0xf] %v4_v0 }
   0x9   :  { %v10_v1 = vld [vmem:[#allocation1 + $0x3] sm:$0x1]   ;;  %v22_v2 = vld [vmem:[#allocation1 + $0x1] sm:$0x1]   ;;  %v16_v3 = vld [vmem:[#allocation1 + $0x2] sm:$0x1]  }
   0xa   :  { %11 = vrot.lane.b32.xlu0 %v10_v1, %s36_s0  ;;  %23 = vrot.lane.b32.xlu1 %v22_v2, %s37_s8  ;;  %v6_v4 = vld [vmem:[#allocation1] sm:$0x1]  }
   0xb   :  { %8 = vst.msk [vmem:[#allocation0] sm:$0x1] %vm7_vm0, %v6_v4  }
  0x12   :  { %17 = vrot.lane.b32.xlu0 %v16_v3, %s38_s9 }
  0x7c   :  { %v12_v5 = vpop.permute.xlu0 %11   ;;  %v24_v6 = vpop.permute.xlu1 %23  }
  0x7d   :  { %14 = vst.msk [vmem:[#allocation0] sm:$0x1] %vm13_vm1, %v12_v5  }
  0x84   :  { %v18_v7 = vpop.permute.xlu0 %17  }
  0x85   :  { %20 = vst.msk [vmem:[#allocation0] sm:$0x1] %vm19_vm2, %v18_v7  }
  0x86   :  { %26 = vst.msk [vmem:[#allocation0] sm:$0x1] %vm25_vm3, %v24_v6  }
  0x8d   :  { %v29_v8 = vld [vmem:[#allocation0] sm:$0x1] }
  0x8e   :  { %32 = vst [vmem:[%s56_s1] sm:$0x1] %v29_v8 }

// kernel: tile.15
= control target key start
LH: loop header
LB: loop body
LE: loop exit
PB: predicated region body
PF: predicated region fallthrough
CT: control target
= control target key end

     0   :  { %s131_s10 = smov 45   ;;  %s132_s11 = smov 39   ;;  %vm3_vm0 = vcmask 23552   ;;  %vm9_vm1 = vcmask 392552   ;;  %vm15_vm2 = vcmask 367952   ;;  %vm21_vm3 = vcmask 343352   ;;  %s207_s0 = inlined_call_operand.vmem [shape: f32[16,3], index: 0, kind: input, shape index: {}]   ;;  %s208_s1 = inlined_call_operand.vmem [shape: f32[1,48], index: 1, kind: output, shape index: {}]  }
   0x1   :  { %v101_v0 = vld [vmem:[%s207_s0 + $0xf] sm:$0x1]   ;;  %v103_v1 = vld [vmem:[%s207_s0 + $0xd] sm:$0x1]   ;;  %v105_v2 = vld [vmem:[%s207_s0 + $0xb] sm:$0x1]  }
   0x2   :  { %7 = vrot.lane.b32.xlu0 %v101_v0, %s131_s10  ;;  %19 = vrot.lane.b32.xlu1 %v103_v1, %s132_s11  ;;  %s133_s14 = smov 33   ;;  %v102_v3 = vld [vmem:[%s207_s0 + $0xe] sm:$0x1]   ;;  %v104_v4 = vld [vmem:[%s207_s0 + $0xc] sm:$0x1]   ;;  %s134_s19 = smov 42  }
   0x3   :  { %31 = vrot.lane.b32.xlu2 %v105_v2, %s133_s14  ;;  %s135_s20 = smov 36   ;;  %v106_v5 = vld [vmem:[%s207_s0 + $0xa] sm:$0x1]   ;;  %s136_s23 = smov 30   ;;  %v107_v6 = vld [vmem:[%s207_s0 + $0x9] sm:$0x1]  }
   0x4   :  { %v108_v7 = vld [vmem:[%s207_s0 + $0x8] sm:$0x1]   ;;  %s137_s28 = smov 27   ;;  %s138_s29 = smov 24   ;;  %v109_v8 = vld [vmem:[%s207_s0 + $0x7] sm:$0x1]  }
   0x5   :  { %s139_s3 = smov 21   ;;  %v110_v9 = vld [vmem:[%s207_s0 + $0x6] sm:$0x1]   ;;  %v111_v10 = vld [vmem:[%s207_s0 + $0x5] sm:$0x1]   ;;  %s140_s8 = smov 18  }
   0x6   :  { %s141_s9 = smov 15   ;;  %v112_v11 = vld [vmem:[%s207_s0 + $0x4] sm:$0x1]   ;;  %s142_s12 = smov 12   ;;  %v113_v12 = vld [vmem:[%s207_s0 + $0x3] sm:$0x1]  }
   0x7   :  { %v114_v13 = vld [vmem:[%s207_s0 + $0x2] sm:$0x1]   ;;  %s143_s17 = smov 9   ;;  %s144_s18 = smov 6   ;;  %v115_v14 = vld [vmem:[%s207_s0 + $0x1] sm:$0x1]  }
   0x8   :  { %s145_s21 = smov 3   ;;  %v2_v15 = vld [vmem:[%s207_s0] sm:$0x1]   ;;  %vm27_vm4 = vcmask 318752   ;;  %vm33_vm5 = vcmask 294152   ;;  %vm39_vm6 = vcmask 269552  }
   0x9   :  { %4 = vst.msk [vmem:[#allocation0] sm:$0x1] %vm3_vm0, %v2_v15   ;;  %vm45_vm7 = vcmask 244952   ;;  %vm51_vm8 = vcmask 220352   ;;  %vm57_vm9 = vcmask 195752   ;;  %vm63_vm10 = vcmask 171152  }
   0xa   :  { %13 = vrot.lane.b32.xlu0 %v102_v3, %s134_s19  ;;  %25 = vrot.lane.b32.xlu1 %v104_v4, %s135_s20  ;;  %vm69_vm11 = vcmask 146552   ;;  %vm75_vm12 = vcmask 121952   ;;  %vm81_vm13 = vcmask 97352   ;;  %vm87_vm14 = vcmask 72752  }
   0xb   :  { %37 = vrot.lane.b32.xlu2 %v106_v5, %s136_s23  ;;  %vm93_vm15 = vcmask 48152  }
  0x12   :  { %43 = vrot.lane.b32.xlu0 %v107_v6, %s137_s28  ;;  %49 = vrot.lane.b32.xlu1 %v108_v7, %s138_s29 }
  0x13   :  { %55 = vrot.lane.b32.xlu2 %v109_v8, %s139_s3 }
  0x1a   :  { %61 = vrot.lane.b32.xlu0 %v110_v9, %s140_s8  ;;  %67 = vrot.lane.b32.xlu1 %v111_v10, %s141_s9 }
  0x1b   :  { %73 = vrot.lane.b32.xlu2 %v112_v11, %s142_s12 }
  0x22   :  { %79 = vrot.lane.b32.xlu0 %v113_v12, %s143_s17  ;;  %85 = vrot.lane.b32.xlu1 %v114_v13, %s144_s18 }
  0x23   :  { %91 = vrot.lane.b32.xlu2 %v115_v14, %s145_s21 }
  0x5d   :  { %v32_v16 = vpop.permute.xlu2 %31  }
  0x65   :  { %v38_v17 = vpop.permute.xlu2 %37  }
  0x6d   :  { %v56_v18 = vpop.permute.xlu2 %55  }
  0x74   :  { %v8_v19 = vpop.permute.xlu0 %7   ;;  %v20_v20 = vpop.permute.xlu1 %19  }
  0x75   :  { %10 = vst.msk [vmem:[#allocation0] sm:$0x1] %vm9_vm1, %v8_v19   ;;  %v74_v21 = vpop.permute.xlu2 %73  }
  0x7c   :  { %v14_v22 = vpop.permute.xlu0 %13   ;;  %v26_v23 = vpop.permute.xlu1 %25  }
  0x7d   :  { %16 = vst.msk [vmem:[#allocation0] sm:$0x1] %vm15_vm2, %v14_v22   ;;  %v92_v24 = vpop.permute.xlu2 %91  }
  0x7e   :  { %22 = vst.msk [vmem:[#allocation0] sm:$0x1] %vm21_vm3, %v20_v20  }
  0x7f   :  { %28 = vst.msk [vmem:[#allocation0] sm:$0x1] %vm27_vm4, %v26_v23  }
  0x80   :  { %34 = vst.msk [vmem:[#allocation0] sm:$0x1] %vm33_vm5, %v32_v16  }
  0x81   :  { %40 = vst.msk [vmem:[#allocation0] sm:$0x1] %vm39_vm6, %v38_v17  }
  0x84   :  { %v44_v25 = vpop.permute.xlu0 %43   ;;  %v50_v26 = vpop.permute.xlu1 %49  }
  0x85   :  { %46 = vst.msk [vmem:[#allocation0] sm:$0x1] %vm45_vm7, %v44_v25  }
  0x86   :  { %52 = vst.msk [vmem:[#allocation0] sm:$0x1] %vm51_vm8, %v50_v26  }
  0x87   :  { %58 = vst.msk [vmem:[#allocation0] sm:$0x1] %vm57_vm9, %v56_v18  }
  0x8c   :  { %v62_v27 = vpop.permute.xlu0 %61   ;;  %v68_v28 = vpop.permute.xlu1 %67  }
  0x8d   :  { %64 = vst.msk [vmem:[#allocation0] sm:$0x1] %vm63_vm10, %v62_v27  }
  0x8e   :  { %70 = vst.msk [vmem:[#allocation0] sm:$0x1] %vm69_vm11, %v68_v28  }
  0x8f   :  { %76 = vst.msk [vmem:[#allocation0] sm:$0x1] %vm75_vm12, %v74_v21  }
  0x94   :  { %v80_v29 = vpop.permute.xlu0 %79   ;;  %v86_v30 = vpop.permute.xlu1 %85  }
  0x95   :  { %82 = vst.msk [vmem:[#allocation0] sm:$0x1] %vm81_vm13, %v80_v29  }
  0x96   :  { %88 = vst.msk [vmem:[#allocation0] sm:$0x1] %vm87_vm14, %v86_v30  }
  0x97   :  { %94 = vst.msk [vmem:[#allocation0] sm:$0x1] %vm93_vm15, %v92_v24  }
  0x9e   :  { %v97_v31 = vld [vmem:[#allocation0] sm:$0x1] }
  0x9f   :  { %100 = vst [vmem:[%s208_s1] sm:$0x1] %v97_v31 }

// kernel: tile.14
= control target key start
LH: loop header
LB: loop body
LE: loop exit
PB: predicated region body
PF: predicated region fallthrough
CT: control target
= control target key end

     0   :  { %s28_s0 = inlined_call_operand.vmem [shape: f32[3], index: 0, kind: input, shape index: {}]   ;;  %s29_s1 = inlined_call_operand.vmem [shape: f32[16,3], index: 1, kind: output, shape index: {}]  }
   0x1   :  { %v4_v0 = vld [vmem:[%s28_s0] ss:$0 sm:$0xff] }
   0x2   :  { %5 = vst [vmem:[%s29_s1] sm:$0xff] %v4_v0 }
   0x3   :  { %8 = vst [vmem:[%s29_s1 + $0x8] sm:$0xff] %v4_v0 }

// kernel: tile.10
= control target key start
LH: loop header
LB: loop body
LE: loop exit
PB: predicated region body
PF: predicated region fallthrough
CT: control target
= control target key end

     0   :  { %s22_s0 = inlined_call_operand.vmem [shape: f32[16], index: 0, kind: input, shape index: {}]   ;;  %s23_s1 = inlined_call_operand.vmem [shape: f32[4,16], index: 1, kind: output, shape index: {}]  }
   0x1   :  { %v4_v0 = vld [vmem:[%s22_s0] ss:$0 sm:$0xff] }
   0x2   :  { %5 = vst [vmem:[%s23_s1] sm:$0xf] %v4_v0 }

// kernel: _lambda_.1
= control target key start
LH: loop header
LB: loop body
LE: loop exit
PB: predicated region body
PF: predicated region fallthrough
CT: control target
= control target key end

     0   :  { %17 = vsyncpa [#allocation3], 0  ;;  %s12932_s0 = inlined_call_operand.hbm [shape: f32[128,32], index: 0, kind: input, shape index: {}]   ;;  %s12933_s1 = inlined_call_operand.hbm [shape: f32[128,9], index: 1, kind: input, shape index: {}]   ;;  %s12934_s2 = inlined_call_operand.hbm [shape: bf16[288,32], index: 2, kind: input, shape index: {}]   ;;  %s12935_s3 = inlined_call_operand.vmem [shape: bf16[32,32], index: 3, kind: input, shape index: {}]   ;;  %s12936_s4 = inlined_call_operand.hbm [shape: bf16[288,32], index: 4, kind: input, shape index: {}]   ;;  %s12937_s5 = inlined_call_operand.vmem [shape: bf16[32,32], index: 5, kind: input, shape index: {}]   ;;  %s12938_s6 = inlined_call_operand.hbm [shape: bf16[288,32], index: 6, kind: input, shape index: {}]   ;;  %s12939_s7 = inlined_call_operand.vmem [shape: f32[1,32], index: 7, kind: input, shape index: {}]   ;;  %s12940_s8 = inlined_call_operand.hbm [shape: bf16[288,64], index: 8, kind: input, shape index: {}]   ;;  %s12941_s9 = inlined_call_operand.vmem [shape: f32[1,64], index: 9, kind: input, shape index: {}]   ;;  %s12942_s10 = inlined_call_operand.hbm [shape: bf16[576,48], index: 10, kind: input, shape index: {}]   ;;  %s12943_s11 = inlined_call_operand.vmem [shape: f32[1,48], index: 11, kind: input, shape index: {}]   ;;  %s12944_s12 = inlined_call_operand.vmem [shape: f32[128,48], index: 12, kind: output, shape index: {}]  }
   0x1   :  { %18 = vsyncpa [#allocation5], 0 }
   0x2   :  { %19 = vsyncpa [#allocation8], 0 }
   0x3   :  { %20 = vsyncpa [#allocation11], 0  ;;  %s38_s23 = sshll.u32 %s12933_s1, 4  ;;  %s8460_s24 = smov [#allocation4]   ;;  %s39_s23 = int_to_ptr.hbm [resolvable:$true] %s38_s23 }
   0x4   :  { %s40_s25 = sshll.u32 %s8460_s24, 4  ;;  %s8461_s26 = smov 128   ;;  %s41_s25 = int_to_ptr.vmem [resolvable:$true] %s40_s25 }
   0x5   :  { %s8462_s27 = smov 8   ;;  %s66_s30 = sshll.u32 %s12936_s4, 4  ;;  %s67_s30 = int_to_ptr.hbm [resolvable:$true] %s66_s30 }
   0x6   :  { %46 = dma.hbm_to_vmem [thread:$0]  %s39_s23, 2048, %s41_s25, [#allocation5], %s8461_s26, %s8461_s26, %s8462_s27  }
   0x7   :  { %s8463_s13 = smov [#allocation7]   ;;  %s96_s17 = sshll.u32 %s12940_s8, 4  ;;  %s97_s17 = int_to_ptr.hbm [resolvable:$true] %s96_s17 }
   0x8   :  { %s68_s14 = sshll.u32 %s8463_s13, 4  ;;  %s8464_s1 = smov 64   ;;  %s69_s14 = int_to_ptr.vmem [resolvable:$true] %s68_s14 }
   0x9   :  { %s8465_s18 = smov 4   ;;  %s25_s21 = sshll.u32 %s12932_s0, 4  ;;  %s26_s21 = int_to_ptr.hbm [resolvable:$true] %s25_s21 }
   0xa   :  { %74 = dma.hbm_to_vmem [thread:$0]  %s67_s30, 2304, %s69_s14, [#allocation8], %s8464_s1, %s8464_s1, %s8465_s18  }
   0xb   :  { %s8466_s4 = smov [#allocation10]   ;;  %s8467_s8 = smov [#allocation2]  }
   0xc   :  { %s98_s22 = sshll.u32 %s8466_s4, 4  ;;  %s27_s23 = sshll.u32 %s8467_s8, 4  ;;  %s99_s22 = int_to_ptr.vmem [resolvable:$true] %s98_s22  ;;  %s28_s23 = int_to_ptr.vmem [resolvable:$true] %s27_s23 }
   0xd   :  { %104 = dma.hbm_to_vmem [thread:$0]  %s97_s17, 2304, %s99_s22, [#allocation11], %s8464_s1, %s8464_s1, %s8465_s18  }
   0xe   :  { %s51_s28 = sshll.u32 %s12934_s2, 4  ;;  %s81_s0 = sshll.u32 %s12938_s6, 4  ;;  %s52_s28 = int_to_ptr.hbm [resolvable:$true] %s51_s28  ;;  %s82_s0 = int_to_ptr.hbm [resolvable:$true] %s81_s0 }
   0xf   :  { %33 = dma.hbm_to_vmem [thread:$0]  %s26_s21, 2048, %s28_s23, [#allocation3], %s8461_s26, %s8461_s26, %s8462_s27  }
  0x10   :  { %s8468_s13 = smov [#allocation6]   ;;  %s8469_s15 = smov [#allocation9]  }
  0x11   :  { %s53_s14 = sshll.u32 %s8468_s13, 4  ;;  %s83_s16 = sshll.u32 %s8469_s15, 4  ;;  %s54_s14 = int_to_ptr.vmem [resolvable:$true] %s53_s14  ;;  %s84_s16 = int_to_ptr.vmem [resolvable:$true] %s83_s16 }
  0x12   :  { %59 = dma.hbm_to_vmem [thread:$0]  %s52_s28, 2304, %s54_s14, [#allocation5], %s8464_s1, %s8464_s1, %s8465_s18  }
  0x13   :  { %s111_s2 = sshll.u32 %s12942_s10, 4  ;;  %s8470_s6 = smov [#allocation12]   ;;  %s112_s2 = int_to_ptr.hbm [resolvable:$true] %s111_s2 }
  0x14   :  { %89 = dma.hbm_to_vmem [thread:$0]  %s82_s0, 2304, %s84_s16, [#allocation8], %s8464_s1, %s8464_s1, %s8465_s18  }
  0x15   :  { %s113_s26 = sshll.u32 %s8470_s6, 4  ;;  %s114_s26 = int_to_ptr.vmem [resolvable:$true] %s113_s26 }
  0x16   :  { %119 = dma.hbm_to_vmem [thread:$0]  %s112_s2, 4608, %s114_s26, [#allocation11], %s8464_s1, %s8464_s1, %s8465_s18  }
  0x17   :  { %8452 = dma.done.wait [#allocation3], 2048  }
  0x18   :  { %8453 = vsyncadd [#allocation3], 4294965248 }
  0x19   :  { %8454 = dma.done.wait [#allocation5], 4352  }
  0x1a   :  { %8455 = vsyncadd [#allocation5], 4294962944 }
  0x1b   :  { %8456 = dma.done.wait [#allocation8], 4608  }
  0x1c   :  { %8457 = vsyncadd [#allocation8], 4294962688 }
  0x1d   :  { %8458 = dma.done.wait [#allocation11], 6912  }
  0x1e   :  { %8459 = vsyncadd [#allocation11], 4294960384  ;;  %v8471_v0 = vmov 0   ;;  %v8582_v1 = vld [vmem:[#allocation4 + $0x20] sm:$0xff]  ;;  %v8584_v2 = vld [vmem:[#allocation4 + $0x10] sm:$0xff]  ;;  %v12955_v17 = vmov 1   ;;  %v215_v44 = vlaneseq }
  0x1f   :  { %7009 = vset.pattern.permute.xlu2 %v8471_v0  ;;  %7008 = vset.pattern.permute.xlu1 %v8471_v0  ;;  %v8586_v3 = vld [vmem:[#allocation4] sm:$0xff]  ;;  %v8591_v4 = vld [vmem:[#allocation4 + $0x28] sm:$0xff]  ;;  %v8593_v5 = vld [vmem:[#allocation4 + $0x18] sm:$0xff]  ;;  %v12957_v18 = vmov 2   ;;  %v12950_v19 = vmov 3   ;;  %v12948_v20 = vmov 6  }
  0x20   :  { %7007 = vset.pattern.permute.xlu0 %v8471_v0  ;;  %256 = vperm.xlu2 %7009, %v8582_v1   ;;  %v8595_v6 = vld [vmem:[#allocation4 + $0x8] sm:$0xff]  ;;  %v8600_v7 = vld [vmem:[#allocation4 + $0x40] sm:$0xff]  ;;  %v8602_v8 = vld [vmem:[#allocation4 + $0x38] sm:$0xff]  ;;  %v12953_v21 = vmov 5   ;;  %v12959_v22 = vmov 7   ;;  %v8730_v49 = vshrl.u32 %v215_v44, 7 }
  0x21   :  { %246 = vperm.xlu1 %7008, %v8584_v2   ;;  %236 = vperm.xlu0 %7007, %v8586_v3   ;;  %v8604_v9 = vld [vmem:[#allocation4 + $0x30] sm:$0xff]  ;;  %v8609_v10 = vld [vmem:[#allocation4 + $0x58] sm:$0xff]  ;;  %v8613_v12 = vld [vmem:[#allocation4 + $0x48] sm:$0xff]  ;;  %s8478_s10 = smov 32   ;;  %s8479_s27 = smov 96   ;;  %vm1307_vm2 = vcmask 261120  }
  0x22   :  { %v8611_v11 = vld [vmem:[#allocation4 + $0x50] sm:$0xff]  ;;  %v8618_v14 = vld [vmem:[#allocation4 + $0x68] sm:$0xff]  ;;  %v8620_v15 = vld [vmem:[#allocation4 + $0x60] sm:$0xff]  ;;  %vm426_vm0 = vcmp.lt.s32.totalorder %v8730_v49, 7  ;;  %vm217_vm1 = vcmp.lt.s32.totalorder %v8730_v49, 1  ;;  %vm1324_vm3 = vcmask 523264  }
  0x23   :  { %v165_v13 = vld [vmem:[#allocation4 + $0x70] sm:$0xff]  ;;  %v8624_v16 = vld [vmem:[#allocation4 + $0x78] sm:$0xff]  ;;  %v179_v42 = vld [vmem:[#allocation2 + $0x60] sm:$0xff]  ;;  %vm1341_vm4 = vcmask 785408  }
  0x24   :  { %v178_v41 = vld [vmem:[#allocation2 + $0x58] sm:$0xff]  ;;  %v180_v43 = vld [vmem:[#allocation2 + $0x68] sm:$0xff]  ;;  %v8726_v47 = vmax.f32 %v179_v42, 0.0 }
  0x25   :  { %v8724_v46 = vmax.f32 %v178_v41, 0.0  ;;  %v8728_v48 = vmax.f32 %v180_v43, 0.0 }
  0x26   :  { %13366 = vst [vmem:[#allocation37_spill] sm:$0xff] %v8726_v47  ;;  %v422_v51 = vrot.slane %v8726_v47, 1  ;;  %v211_v0 = vrot.slane %v8726_v47, 7 }
  0x27   :  { %13365 = vst [vmem:[#allocation36_spill] sm:$0xff] %v8724_v46  ;;  %v12945_v50 = vrot.slane %v8724_v46, 1  ;;  %v12946_v52 = vrot.slane %v8728_v48, 1  ;;  %v12947_v63 = vrot.slane %v8724_v46, 7 }
  0x28   :  { %261 = vperm.xlu2 %7009, %v8591_v4   ;;  %13367 = vst [vmem:[#allocation38_spill] sm:$0xff] %v8728_v48 }
  0x29   :  { %251 = vperm.xlu1 %7008, %v8593_v5   ;;  %241 = vperm.xlu0 %7007, %v8595_v6   ;;  %v8748_v57 = vsel %vm426_vm0, %v422_v51, %v12946_v52  ;;  %v8754_v58 = vsel %vm426_vm0, %v12945_v50, %v422_v51  ;;  %v8779_v42 = vsel %vm217_vm1, %v12947_v63, %v211_v0  ;;  %v181_v51 = vld [vmem:[#allocation2 + $0x70] sm:$0xff] }
  0x2a   :  { %13370 = vst [vmem:[#allocation41_spill] sm:$0xff] %v8748_v57 }
  0x2b   :  { %13371 = vst [vmem:[#allocation42_spill] sm:$0xff] %v8754_v58 }
  0x2c   :  { %13375 = vst [vmem:[#allocation46_spill] sm:$0xff] %v8779_v42 }
  0x30   :  { %276 = vperm.xlu2 %7009, %v8600_v7  }
  0x31   :  { %271 = vperm.xlu1 %7008, %v8602_v8   ;;  %266 = vperm.xlu0 %7007, %v8604_v9  }
  0x38   :  { %291 = vperm.xlu2 %7009, %v8609_v10  }
  0x39   :  { %286 = vperm.xlu1 %7008, %v8611_v11   ;;  %281 = vperm.xlu0 %7007, %v8613_v12  }
  0x40   :  { %306 = vperm.xlu2 %7009, %v165_v13  }
  0x41   :  { %301 = vperm.xlu1 %7008, %v8618_v14   ;;  %296 = vperm.xlu0 %7007, %v8620_v15  }
  0x48   :  { %7011 = vset.pattern.permute.xlu2 %v12955_v17 }
  0x49   :  { %7010 = vset.pattern.permute.xlu1 %v12955_v17  ;;  %311 = vperm.xlu0 %7007, %v8624_v16  }
  0x4a   :  { %379 = vperm.xlu2 %7011, %v8620_v15   ;;  %331 = vperm.xlu1 %7010, %v8586_v3  }
  0x51   :  { %7012 = vset.pattern.permute.xlu0 %v12955_v17 }
  0x52   :  { %7014 = vset.pattern.permute.xlu2 %v12957_v18  ;;  %7013 = vset.pattern.permute.xlu1 %v12957_v18 }
  0x53   :  { %383 = vperm.xlu0 %7012, %v8618_v14   ;;  %496 = vperm.xlu2 %7014, %v8618_v14  }
  0x54   :  { %492 = vperm.xlu1 %7013, %v8620_v15  }
  0x5b   :  { %387 = vperm.xlu0 %7012, %v165_v13   ;;  %7016 = vset.pattern.permute.xlu2 %v12950_v19 }
  0x5c   :  { %7015 = vset.pattern.permute.xlu1 %v12950_v19  ;;  %576 = vperm.xlu2 %7016, %v8618_v14  }
  0x5d   :  { %572 = vperm.xlu1 %7015, %v8620_v15  }
  0x63   :  { %7023 = vset.pattern.permute.xlu0 %v12948_v20 }
  0x64   :  { %7018 = vset.pattern.permute.xlu2 %v12957_v18  ;;  %684 = vperm.xlu0 %7023, %v8586_v3  }
  0x65   :  { %7017 = vset.pattern.permute.xlu1 %v12955_v17  ;;  %500 = vperm.xlu2 %7018, %v165_v13  }
  0x66   :  { %391 = vperm.xlu1 %7017, %v8624_v16  }
  0x6c   :  { %692 = vperm.xlu0 %7023, %v8584_v2  }
  0x6d   :  { %7020 = vset.pattern.permute.xlu2 %v12950_v19 }
  0x6e   :  { %7019 = vset.pattern.permute.xlu1 %v12950_v19  ;;  %584 = vperm.xlu2 %7020, %v8624_v16  }
  0x6f   :  { %580 = vperm.xlu1 %7019, %v165_v13  }
  0x74   :  { %7049 = vset.pattern.permute.xlu0 %v12957_v18 }
  0x76   :  { %7022 = vset.pattern.permute.xlu2 %v12953_v21 }
  0x77   :  { %7021 = vset.pattern.permute.xlu1 %v12953_v21  ;;  %608 = vperm.xlu2 %7022, %v8595_v6  }
  0x78   :  { %604 = vperm.xlu1 %7021, %v8586_v3  }
  0x7a   :  { %v8659_v23 = vpop.permute.xlu2 %256 }
  0x7b   :  { %13346 = vst [vmem:[#allocation17_spill] sm:$0xff] %v8659_v23  ;;  %v13406_v23 = vrot.slane %v8724_v46, 7 }
  0x7f   :  { %7025 = vset.pattern.permute.xlu2 %v12959_v22 }
  0x80   :  { %7024 = vset.pattern.permute.xlu1 %v12948_v20  ;;  %764 = vperm.xlu2 %7025, %v8586_v3  }
  0x81   :  { %688 = vperm.xlu1 %7024, %v8595_v6  }
  0x82   :  { %v8665_v24 = vpop.permute.xlu2 %261 }
  0x83   :  { %13347 = vst [vmem:[#allocation18_spill] sm:$0xff] %v8665_v24 }
  0x88   :  { %7027 = vset.pattern.permute.xlu2 %v12955_v17 }
  0x89   :  { %7026 = vset.pattern.permute.xlu1 %v12959_v22  ;;  %335 = vperm.xlu2 %7027, %v8595_v6  }
  0x8a   :  { %768 = vperm.xlu1 %7026, %v8595_v6   ;;  %v8675_v27 = vpop.permute.xlu2 %276 }
  0x8b   :  { %13350 = vst [vmem:[#allocation21_spill] sm:$0xff] %v8675_v27 }
  0x91   :  { %7029 = vset.pattern.permute.xlu2 %v12957_v18 }
  0x92   :  { %7028 = vset.pattern.permute.xlu1 %v12957_v18  ;;  %448 = vperm.xlu2 %7029, %v8595_v6   ;;  %v8691_v32 = vpop.permute.xlu2 %291 }
  0x93   :  { %v8669_v25 = vpop.permute.xlu1 %246  ;;  %444 = vperm.xlu1 %7028, %v8586_v3   ;;  %v8673_v26 = vpop.permute.xlu0 %236  ;;  %13355 = vst [vmem:[#allocation26_spill] sm:$0xff] %v8691_v32 }
  0x94   :  { %13348 = vst [vmem:[#allocation19_spill] sm:$0xff] %v8669_v25 }
  0x95   :  { %13349 = vst [vmem:[#allocation20_spill] sm:$0xff] %v8673_v26 }
  0x9a   :  { %7031 = vset.pattern.permute.xlu2 %v12950_v19  ;;  %v8703_v35 = vpop.permute.xlu2 %306 }
  0x9b   :  { %v8677_v28 = vpop.permute.xlu1 %251  ;;  %7030 = vset.pattern.permute.xlu1 %v12950_v19  ;;  %v8681_v29 = vpop.permute.xlu0 %241  ;;  %528 = vperm.xlu2 %7031, %v8595_v6   ;;  %13358 = vst [vmem:[#allocation29_spill] sm:$0xff] %v8703_v35 }
  0x9c   :  { %13351 = vst [vmem:[#allocation22_spill] sm:$0xff] %v8677_v28  ;;  %524 = vperm.xlu1 %7030, %v8586_v3   ;;  %v212_v3 = vrot.slane %v8728_v48, 7 }
  0x9d   :  { %13352 = vst [vmem:[#allocation23_spill] sm:$0xff] %v8681_v29 }
  0x9e   :  { %v8773_v41 = vsel %vm217_vm1, %v211_v0, %v212_v3 }
  0x9f   :  { %13374 = vst [vmem:[#allocation45_spill] sm:$0xff] %v8773_v41 }
  0xa3   :  { %v8685_v30 = vpop.permute.xlu1 %271  ;;  %v8687_v31 = vpop.permute.xlu0 %266  ;;  %7033 = vset.pattern.permute.xlu2 %v12953_v21 }
  0xa4   :  { %13353 = vst [vmem:[#allocation24_spill] sm:$0xff] %v8685_v30  ;;  %7032 = vset.pattern.permute.xlu1 %v12953_v21  ;;  %616 = vperm.xlu2 %7033, %v8593_v5   ;;  %v8711_v38 = vpop.permute.xlu2 %379 }
  0xa5   :  { %13354 = vst [vmem:[#allocation25_spill] sm:$0xff] %v8687_v31  ;;  %612 = vperm.xlu1 %7032, %v8584_v2   ;;  %v406_v55 = vmul.f32 %v8711_v38, %v8724_v46  ;;  %v13405_v31 = vmov 2  }
  0xa6   :  { %13361 = vst [vmem:[#allocation32_spill] sm:$0xff] %v8711_v38 }
  0xab   :  { %v8695_v33 = vpop.permute.xlu1 %286  ;;  %v8697_v34 = vpop.permute.xlu0 %281 }
  0xac   :  { %13356 = vst [vmem:[#allocation27_spill] sm:$0xff] %v8695_v33  ;;  %7051 = vset.pattern.permute.xlu2 %v12959_v22 }
  0xad   :  { %13357 = vst [vmem:[#allocation28_spill] sm:$0xff] %v8697_v34  ;;  %7050 = vset.pattern.permute.xlu1 %v12948_v20  ;;  %772 = vperm.xlu2 %7051, %v8584_v2   ;;  %v8722_v45 = vpop.permute.xlu2 %496 }
  0xae   :  { %696 = vperm.xlu1 %7050, %v8593_v5   ;;  %13364 = vst [vmem:[#allocation35_spill] sm:$0xff] %v8722_v45  ;;  %v520_v61 = vmul.f32 %v8722_v45, %v8748_v57  ;;  %v6864_v45 = vld [vmem:[#allocation6 + $0x10] sm:$0xff] }
  0xb3   :  { %v8705_v36 = vpop.permute.xlu0 %296  ;;  %v8707_v37 = vpop.permute.xlu1 %301 }
  0xb4   :  { %13359 = vst [vmem:[#allocation30_spill] sm:$0xff] %v8705_v36 }
  0xb5   :  { %13360 = vst [vmem:[#allocation31_spill] sm:$0xff] %v8707_v37  ;;  %7053 = vset.pattern.permute.xlu2 %v12955_v17 }
  0xb6   :  { %7052 = vset.pattern.permute.xlu1 %v12955_v17  ;;  %343 = vperm.xlu2 %7053, %v8593_v5   ;;  %v8763_v62 = vpop.permute.xlu2 %576 }
  0xb7   :  { %339 = vperm.xlu1 %7052, %v8584_v2   ;;  %13372 = vst [vmem:[#allocation43_spill] sm:$0xff] %v8763_v62  ;;  %v600_v44 = vmul.f32 %v8763_v62, %v8773_v41  ;;  %v6865_v62 = vld [vmem:[#allocation6 + $0x18] sm:$0xff] }
  0xbb   :  { %v8715_v39 = vpop.permute.xlu0 %311 }
  0xbc   :  { %13362 = vst [vmem:[#allocation33_spill] sm:$0xff] %v8715_v39  ;;  %v8717_v40 = vpop.permute.xlu1 %331 }
  0xbd   :  { %13363 = vst [vmem:[#allocation34_spill] sm:$0xff] %v8717_v40 }
  0xbe   :  { %7059 = vset.pattern.permute.xlu2 %v12957_v18 }
  0xbf   :  { %7066 = vset.pattern.permute.xlu1 %v12950_v19  ;;  %452 = vperm.xlu2 %7059, %v8584_v2  }
  0xc5   :  { %v8736_v53 = vpop.permute.xlu0 %383 }
  0xc6   :  { %13368 = vst [vmem:[#allocation39_spill] sm:$0xff] %v8736_v53  ;;  %v8738_v54 = vpop.permute.xlu1 %492  ;;  %v407_v56 = vmul.f32 %v8736_v53, %v8726_v47 }
  0xc7   :  { %13369 = vst [vmem:[#allocation40_spill] sm:$0xff] %v8738_v54  ;;  %7065 = vset.pattern.permute.xlu2 %v12950_v19  ;;  %v519_v60 = vmul.f32 %v8738_v54, %v8754_v58 }
  0xc8   :  { %v7034_v59 = vpack.i.bf16 %v407_v56, %v406_v55  ;;  %532 = vperm.xlu2 %7065, %v8584_v2   ;;  %v182_v55 = vld [vmem:[#allocation2 + $0x78] sm:$0xff]  ;;  %v8787_v56 = vpop.permute.xlu2 %500 }
  0xc9   :  { %v7039_v6 = vpack.i.bf16 %v520_v61, %v519_v60  ;;  %13376 = vst [vmem:[#allocation47_spill] sm:$0xff] %v8787_v56  ;;  %v8791_v61 = vmax.f32 %v181_v51, 0.0  ;;  %v8793_v0 = vmax.f32 %v182_v55, 0.0 }
  0xca   :  { %7035 = vrot.lane.b32.xlu0 %v7034_v59, %s8478_s10 }
  0xcb   :  { %13378 = vst [vmem:[#allocation49_spill] sm:$0xff] %v8791_v61 }
  0xcc   :  { %13379 = vst [vmem:[#allocation50_spill] sm:$0xff] %v8793_v0 }
  0xcd   :  { %v8789_v59 = vpop.permute.xlu0 %387 }
  0xce   :  { %13377 = vst [vmem:[#allocation48_spill] sm:$0xff] %v8789_v59 }
  0xcf   :  { %v8768_v13 = vpop.permute.xlu1 %572 }
  0xd0   :  { %13373 = vst [vmem:[#allocation44_spill] sm:$0xff] %v8768_v13  ;;  %7073 = vset.pattern.permute.xlu2 %v12948_v20  ;;  %v599_v43 = vmul.f32 %v8768_v13, %v8779_v42  ;;  %v213_v20 = vrot.slane %v8791_v61, 7  ;;  %v6866_v13 = vld [vmem:[#allocation6 + $0x20] sm:$0xff] }
  0xd2   :  { %7040 = vrot.lane.b32.xlu0 %v7039_v6, %s8464_s1  ;;  %v7044_v60 = vpack.i.bf16 %v600_v44, %v599_v43  ;;  %v408_v6 = vmul.f32 %v8789_v59, %v8728_v48  ;;  %v12952_v43 = vrot.slane %v8793_v0, 7  ;;  %v8805_v44 = vpop.permute.xlu2 %584  ;;  %v167_v59 = vld [vmem:[#allocation2] sm:$0xff] }
  0xd3   :  { %13381 = vst [vmem:[#allocation52_spill] sm:$0xff] %v8805_v44  ;;  %v8866_v54 = vmax.f32 %v167_v59, 0.0 }
  0xd4   :  { %v8811_v51 = vsel %vm217_vm1, %v213_v20, %v12952_v43 }
  0xd5   :  { %13382 = vst [vmem:[#allocation53_spill] sm:$0xff] %v8811_v51  ;;  %v602_v55 = vmul.f32 %v8805_v44, %v8811_v51  ;;  %v6868_v44 = vld [vmem:[#allocation6 + $0x30] sm:$0xff] }
  0xd6   :  { %13393 = vst [vmem:[#allocation62_spill] sm:$0xff] %v8866_v54  ;;  %v8889_v53 = vpop.permute.xlu0 %684 }
  0xd7   :  { %13399 = vst [vmem:[#allocation67_spill] sm:$0xff] %v8889_v53 }
  0xd8   :  { %v8795_v50 = vpop.permute.xlu1 %391 }
  0xd9   :  { %13380 = vst [vmem:[#allocation51_spill] sm:$0xff] %v8795_v50  ;;  %v409_v52 = vmul.f32 %v8795_v50, %v8791_v61 }
  0xda   :  { %7045 = vrot.lane.b32.xlu0 %v7044_v60, %s8479_s27 }
  0xdb   :  { %v7054_v63 = vpack.i.bf16 %v409_v52, %v408_v6  ;;  %v8819_v52 = vsel %vm217_vm1, %v212_v3, %v213_v20  ;;  %v8837_v20 = vpop.permute.xlu2 %608  ;;  %v6869_v6 = vld [vmem:[#allocation6 + $0x38] sm:$0xff] }
  0xdc   :  { %13384 = vst [vmem:[#allocation55_spill] sm:$0xff] %v8819_v52  ;;  %6974 = vmatpush.bf16.msra.mxu1 %v6869_v6  ;;  %1598 = vmatpush.bf16.msra.mxu0 %v6869_v6  ;;  %v6867_v6 = vld [vmem:[#allocation6 + $0x28] sm:$0xff] }
  0xdd   :  { %7055 = vrot.lane.b32.xlu1 %v7054_v63, %s8478_s10  ;;  %13386 = vst [vmem:[#allocation57_spill] sm:$0xff] %v8837_v20 }
  0xde   :  { %v8901_v32 = vpop.permute.xlu0 %692 }
  0xdf   :  { %13402 = vst [vmem:[#allocation69_spill] sm:$0xff] %v8901_v32 }
  0xe0   :  { %6975 = vmatpush.bf16.msra.mxu1 %v6868_v44  ;;  %1599 = vmatpush.bf16.msra.mxu0 %v6868_v44  ;;  %v12986_v44 = vrot.slane %v8793_v0, 1 }
  0xe1   :  { %v8815_v19 = vpop.permute.xlu1 %580 }
  0xe2   :  { %13383 = vst [vmem:[#allocation54_spill] sm:$0xff] %v8815_v19  ;;  %504 = vperm.xlu0 %7049, %v8624_v16   ;;  %v601_v63 = vmul.f32 %v8815_v19, %v8819_v52 }
  0xe4   :  { %v7067_v60 = vpack.i.bf16 %v602_v55, %v601_v63  ;;  %v168_v55 = vld [vmem:[#allocation2 + $0x8] sm:$0xff]  ;;  %v169_v63 = vld [vmem:[#allocation2 + $0x10] sm:$0xff]  ;;  %6976 = vmatpush.bf16.msra.mxu1 %v6867_v6  ;;  %1600 = vmatpush.bf16.msra.mxu0 %v6867_v6  ;;  %v13394_v6 = vmov 1  }
  0xe5   :  { %v8847_v43 = vmax.f32 %v169_v63, 0.0  ;;  %v13391_v63 = vmov 6  }
  0xe6   :  { %7068 = vrot.lane.b32.xlu2 %v7067_v60, %s8479_s27  ;;  %v8845_v60 = vmax.f32 %v168_v55, 0.0 }
  0xe8   :  { %6977 = vmatpush.bf16.msra.mxu1 %v6866_v13  ;;  %1601 = vmatpush.bf16.msra.mxu0 %v6866_v13  ;;  %v6863_v13 = vld [vmem:[#allocation6 + $0x8] sm:$0xff] }
  0xea   :  { %456 = vperm.xlu0 %7049, %v8593_v5   ;;  %v8832_v16 = vpop.permute.xlu1 %604 }
  0xeb   :  { %13385 = vst [vmem:[#allocation56_spill] sm:$0xff] %v8832_v16 }
  0xec   :  { %6978 = vmatpush.bf16.msra.mxu1 %v6865_v62  ;;  %1602 = vmatpush.bf16.msra.mxu0 %v6865_v62 }
  0xee   :  { %700 = vperm.xlu2 %7073, %v8582_v1  }
  0xf0   :  { %6979 = vmatpush.bf16.msra.mxu1 %v6864_v45  ;;  %1603 = vmatpush.bf16.msra.mxu0 %v6864_v45 }
  0xf2   :  { %464 = vperm.xlu0 %7049, %v8591_v4  }
  0xf3   :  { %v8839_v3 = vpop.permute.xlu1 %688 }
  0xf4   :  { %13387 = vst [vmem:[#allocation58_spill] sm:$0xff] %v8839_v3  ;;  %6980 = vmatpush.bf16.msra.mxu1 %v6863_v13  ;;  %1604 = vmatpush.bf16.msra.mxu0 %v6863_v13  ;;  %v171_v13 = vld [vmem:[#allocation2 + $0x20] sm:$0xff] }
  0xf6   :  { %7075 = vset.pattern.permute.xlu2 %v12959_v22 }
  0xf7   :  { %780 = vperm.xlu2 %7075, %v8582_v1  }
  0xfa   :  { %7084 = vset.pattern.permute.xlu0 %v12953_v21  ;;  %v8849_v21 = vpop.permute.xlu2 %764 }
  0xfb   :  { %620 = vperm.xlu0 %7084, %v8582_v1   ;;  %13388 = vst [vmem:[#allocation59_spill] sm:$0xff] %v8849_v21 }
  0xff   :  { %7077 = vset.pattern.permute.xlu2 %v12955_v17  ;;  %v8851_v17 = vpop.permute.xlu1 %768 }
 0x100   :  { %351 = vperm.xlu2 %7077, %v8591_v4   ;;  %13389 = vst [vmem:[#allocation60_spill] sm:$0xff] %v8851_v17  ;;  %v828_v19 = vmul.f32 %v8851_v17, %v8847_v43  ;;  %v13400_v17 = vmov 7  }
 0x102   :  { %v8863_v50 = vpop.permute.xlu2 %335 }
 0x103   :  { %628 = vperm.xlu0 %7084, %v8604_v9   ;;  %13392 = vst [vmem:[#allocation61_spill] sm:$0xff] %v8863_v50 }
 0x108   :  { %7083 = vset.pattern.permute.xlu2 %v12957_v18  ;;  %v13390_v18 = vmov 3  }
 0x109   :  { %460 = vperm.xlu2 %7083, %v8582_v1  }
 0x10a   :  { %v8887_v38 = vpop.permute.xlu2 %448 }
 0x10b   :  { %7097 = vset.pattern.permute.xlu0 %v12959_v22  ;;  %v827_v22 = vmul.f32 %v8849_v21, %v8845_v60  ;;  %13398 = vst [vmem:[#allocation66_spill] sm:$0xff] %v8887_v38  ;;  %v6862_v21 = vld [vmem:[#allocation6] sm:$0xff] }
 0x10c   :  { %776 = vperm.xlu0 %7097, %v8593_v5   ;;  %6981 = vmatpush.bf16.msra.mxu1 %v6862_v21 }
 0x10d   :  { %v7092_v55 = vpack.i.bf16 %v828_v19, %v827_v22  ;;  %v410_v19 = vrot.slane %v8866_v54, 1  ;;  %v12983_v22 = vrot.slane %v8845_v60, 1  ;;  %1605 = vmatpush.bf16.msra.mxu0 %v6862_v21  ;;  %v177_v21 = vld [vmem:[#allocation2 + $0x50] sm:$0xff] }
 0x10f   :  { %v8879_v62 = vsel %vm426_vm0, %v410_v19, %v12983_v22  ;;  %v8885_v59 = vsel %vm426_vm0, %v12986_v44, %v410_v19 }
 0x110   :  { %13396 = vst [vmem:[#allocation64_spill] sm:$0xff] %v8879_v62  ;;  %v508_v22 = vmul.f32 %v8887_v38, %v8879_v62  ;;  %v170_v38 = vld [vmem:[#allocation2 + $0x18] sm:$0xff] }
 0x111   :  { %7090 = vset.pattern.permute.xlu2 %v13390_v18  ;;  %13397 = vst [vmem:[#allocation65_spill] sm:$0xff] %v8885_v59  ;;  %v8908_v34 = vmax.f32 %v170_v38, 0.0 }
 0x112   :  { %540 = vperm.xlu2 %7090, %v8582_v1  }
 0x114   :  { %784 = vperm.xlu0 %7097, %v8591_v4  }
 0x11a   :  { %7093 = vrot.lane.b32.xlu2 %v7092_v55, %s8479_s27  ;;  %v8872_v55 = vpop.permute.xlu1 %444 }
 0x11b   :  { %7099 = vset.pattern.permute.xlu2 %v13391_v63  ;;  %13395 = vst [vmem:[#allocation63_spill] sm:$0xff] %v8872_v55  ;;  %v507_v45 = vmul.f32 %v8872_v55, %v8885_v59  ;;  %v8917_v59 = vmax.f32 %v177_v21, 0.0 }
 0x11c   :  { %792 = vperm.xlu0 %7097, %v8602_v8  }
 0x11d   :  { %v7107_v44 = vpack.i.bf16 %v508_v22, %v507_v45  ;;  %v8910_v22 = vmax.f32 %v171_v13, 0.0  ;;  %v202_v45 = vrot.slane %v8908_v34, 7 }
 0x11f   :  { %v13003_v27 = vrot.slane %v8910_v22, 7 }
 0x121   :  { %v8927_v13 = vsel %vm217_vm1, %v202_v45, %v13003_v27 }
 0x122   :  { %708 = vperm.xlu2 %7099, %v8604_v9   ;;  %v8898_v19 = vpop.permute.xlu1 %524 }
 0x123   :  { %13401 = vst [vmem:[#allocation68_spill] sm:$0xff] %v8898_v19 }
 0x124   :  { %7118 = vset.pattern.permute.xlu0 %v13394_v6 }
 0x125   :  { %359 = vperm.xlu0 %7118, %v8602_v8  }
 0x12a   :  { %7101 = vset.pattern.permute.xlu2 %v13400_v17  ;;  %v8905_v55 = vpop.permute.xlu1 %612 }
 0x12b   :  { %788 = vperm.xlu2 %7101, %v8604_v9   ;;  %13403 = vst [vmem:[#allocation70_spill] sm:$0xff] %v8905_v55 }
 0x12d   :  { %367 = vperm.xlu0 %7118, %v8613_v12  }
 0x132   :  { %v8919_v30 = vpop.permute.xlu1 %696 }
 0x133   :  { %7108 = vrot.lane.b32.xlu2 %v7107_v44, %s8464_s1  ;;  %v13004_v44 = vrot.slane %v8847_v43, 7  ;;  %13404 = vst [vmem:[#allocation71_spill] sm:$0xff] %v8919_v30  ;;  %v750_v24 = vmul.f32 %v8919_v30, %v8927_v13  ;;  %v327_v30 = vmul.f32 %v8707_v37, %v8779_v42  ;;  %v13408_v42 = vrot.slane %v8728_v48, 1  ;;  %v6878_v48 = vld [vmem:[#allocation6 + $0x80] sm:$0xff] }
 0x134   :  { %7117 = vset.pattern.permute.xlu2 %v13394_v6 }
 0x135   :  { %375 = vperm.xlu0 %7118, %v8609_v10   ;;  %v8933_v57 = vsel %vm217_vm1, %v13004_v44, %v202_v45 }
 0x136   :  { %v749_v21 = vmul.f32 %v8901_v32, %v8933_v57 }
 0x138   :  { %v7126_v32 = vpack.i.bf16 %v750_v24, %v749_v21 }
 0x13b   :  { %355 = vperm.xlu2 %7117, %v8604_v9  }
 0x13c   :  { %v7036_v33 = vpop.permute.xlu0 %7035 }
 0x13d   :  { %7199 = vset.pattern.permute.xlu0 %v13390_v18  ;;  %v7038_v45 = vunpack.i.h.bf16 %v7036_v33  ;;  %v7037_v44 = vunpack.i.l.bf16 %v7036_v33 }
 0x13e   :  { %548 = vperm.xlu0 %7199, %v8604_v9  }
 0x13f   :  { %v1321_v24 = vsel %vm1307_vm2, %v327_v30, %v7038_v45 }
 0x143   :  { %7124 = vset.pattern.permute.xlu2 %v13405_v31 }
 0x144   :  { %468 = vperm.xlu2 %7124, %v8604_v9   ;;  %v7041_v38 = vpop.permute.xlu0 %7040  ;;  %v13016_v9 = vrot.slane %v8917_v59, 7 }
 0x145   :  { %v7043_v58 = vunpack.i.h.bf16 %v7041_v38  ;;  %v7042_v47 = vunpack.i.l.bf16 %v7041_v38 }
 0x146   :  { %556 = vperm.xlu0 %7199, %v8600_v7   ;;  %v8947_v27 = vsel %vm217_vm1, %v13016_v9, %v13406_v23  ;;  %v424_v23 = vrot.slane %v8791_v61, 1 }
 0x147   :  { %13407 = vst [vmem:[#allocation72_spill] sm:$0xff] %v8947_v27  ;;  %v326_v28 = vmul.f32 %v8705_v36, %v8947_v27  ;;  %v1338_v21 = vsel %vm1324_vm3, %v1321_v24, %v7043_v58  ;;  %v8978_v58 = vpop.permute.xlu2 %528 }
 0x148   :  { %13413 = vst [vmem:[#allocation76_spill] sm:$0xff] %v8978_v58 }
 0x149   :  { %v1320_v33 = vsel %vm1307_vm2, %v326_v28, %v7037_v44  ;;  %v13410_v28 = vrot.slane %v8793_v0, 1  ;;  %v13414_v44 = vmov 5  }
 0x14a   :  { %v1337_v38 = vsel %vm1324_vm3, %v1320_v33, %v7042_v47 }
 0x14b   :  { %v8972_v30 = vsel %vm426_vm0, %v424_v23, %v13410_v28 }
 0x14c   :  { %7127 = vrot.lane.b32.xlu2 %v7126_v32, %s8464_s1  ;;  %v7046_v46 = vpop.permute.xlu0 %7045  ;;  %13411 = vst [vmem:[#allocation74_spill] sm:$0xff] %v8972_v30 }
 0x14d   :  { %v7048_v9 = vunpack.i.h.bf16 %v7046_v46  ;;  %v7047_v25 = vunpack.i.l.bf16 %v7046_v46  ;;  %v8966_v46 = vsel %vm426_vm0, %v13408_v42, %v424_v23  ;;  %v13023_v23 = vmov 8  }
 0x14e   :  { %564 = vperm.xlu0 %7199, %v8611_v11   ;;  %13409 = vst [vmem:[#allocation73_spill] sm:$0xff] %v8966_v46  ;;  %v521_v47 = vmul.f32 %v8787_v56, %v8966_v46  ;;  %7138 = vset.pattern.permute.xlu2 %v13023_v23 }
 0x14f   :  { %v1354_v37 = vsel %vm1341_vm4, %v1337_v38, %v7047_v25  ;;  %v1355_v32 = vsel %vm1341_vm4, %v1338_v21, %v7048_v9  ;;  %v8987_v9 = vpop.permute.xlu2 %616 }
 0x150   :  { %v1424_v36 = vpack.c.bf16 %v1355_v32, %v1354_v37  ;;  %13416 = vst [vmem:[#allocation78_spill] sm:$0xff] %v8987_v9 }
 0x152   :  { %1636 = vmatmul.bf16.vlgmr.msra.gmra.mxu1 %v1424_v36 }
 0x154   :  { %v8976_v25 = vpop.permute.xlu0 %504 }
 0x155   :  { %13412 = vst [vmem:[#allocation75_spill] sm:$0xff] %v8976_v25  ;;  %v522_v37 = vmul.f32 %v8976_v25, %v8972_v30  ;;  %v199_v25 = vrot.slane %v8866_v54, 7 }
 0x156   :  { %7212 = vset.pattern.permute.xlu0 %v13414_v44 }
 0x157   :  { %v7060_v42 = vpack.i.bf16 %v522_v37, %v521_v47  ;;  %636 = vperm.xlu0 %7212, %v8600_v7   ;;  %v8995_v33 = vpop.permute.xlu2 %772  ;;  %v13423_v47 = vrot.slane %v8845_v60, 1 }
 0x158   :  { %13418 = vst [vmem:[#allocation80_spill] sm:$0xff] %v8995_v33  ;;  %v829_v28 = vmul.f32 %v8995_v33, %v8908_v34  ;;  %v200_v33 = vrot.slane %v8845_v60, 7 }
 0x159   :  { %7061 = vrot.lane.b32.xlu1 %v7060_v42, %s8464_s1 }
 0x15c   :  { %v8985_v36 = vpop.permute.xlu0 %456 }
 0x15d   :  { %13415 = vst [vmem:[#allocation77_spill] sm:$0xff] %v8985_v36 }
 0x15f   :  { %644 = vperm.xlu0 %7212, %v8611_v11   ;;  %v9004_v38 = vpop.permute.xlu2 %343 }
 0x160   :  { %13420 = vst [vmem:[#allocation82_spill] sm:$0xff] %v9004_v38 }
 0x161   :  { %536 = vperm.xlu1 %7066, %v8593_v5  }
 0x164   :  { %v8991_v45 = vpop.permute.xlu0 %464 }
 0x165   :  { %13417 = vst [vmem:[#allocation79_spill] sm:$0xff] %v8991_v45 }
 0x167   :  { %652 = vperm.xlu0 %7212, %v8620_v15   ;;  %v412_v15 = vrot.slane %v8847_v43, 1  ;;  %v9013_v32 = vpop.permute.xlu2 %452 }
 0x168   :  { %13422 = vst [vmem:[#allocation84_spill] sm:$0xff] %v9013_v32 }
 0x169   :  { %7072 = vset.pattern.permute.xlu1 %v13414_v44  ;;  %v9021_v37 = vsel %vm426_vm0, %v13423_v47, %v412_v15 }
 0x16a   :  { %624 = vperm.xlu1 %7072, %v8591_v4   ;;  %13424 = vst [vmem:[#allocation85_spill] sm:$0xff] %v9021_v37  ;;  %v668_v23 = vmul.f32 %v8837_v20, %v9021_v37 }
 0x16d   :  { %v8999_v24 = vpop.permute.xlu0 %620 }
 0x16e   :  { %13419 = vst [vmem:[#allocation81_spill] sm:$0xff] %v8999_v24 }
 0x16f   :  { %7221 = vset.pattern.permute.xlu0 %v13400_v17 }
 0x170   :  { %800 = vperm.xlu0 %7221, %v8613_v12  }
 0x172   :  { %7074 = vset.pattern.permute.xlu1 %v13391_v63 }
 0x173   :  { %704 = vperm.xlu1 %7074, %v8591_v4  }
 0x175   :  { %v9007_v21 = vpop.permute.xlu0 %628 }
 0x176   :  { %13421 = vst [vmem:[#allocation83_spill] sm:$0xff] %v9007_v21 }
 0x178   :  { %808 = vperm.xlu0 %7221, %v8609_v10   ;;  %v667_v10 = vmul.f32 %v8832_v16, %v8879_v62  ;;  %v13426_v16 = vrot.slane %v8847_v43, 7 }
 0x17a   :  { %v7078_v47 = vpack.i.bf16 %v668_v23, %v667_v10  ;;  %v9040_v20 = vsel %vm217_vm1, %v200_v33, %v13426_v16  ;;  %v9051_v23 = vpop.permute.xlu2 %532 }
 0x17b   :  { %7076 = vset.pattern.permute.xlu1 %v13394_v6  ;;  %13427 = vst [vmem:[#allocation87_spill] sm:$0xff] %v9051_v23 }
 0x17c   :  { %347 = vperm.xlu1 %7076, %v8582_v1  }
 0x17e   :  { %v9023_v42 = vpop.permute.xlu0 %776 }
 0x17f   :  { %13425 = vst [vmem:[#allocation86_spill] sm:$0xff] %v9023_v42  ;;  %v830_v1 = vmul.f32 %v9023_v42, %v8910_v22  ;;  %v9044_v42 = vsel %vm217_vm1, %v199_v25, %v200_v33  ;;  %v413_v33 = vrot.slane %v8908_v34, 1 }
 0x180   :  { %816 = vperm.xlu0 %7221, %v8618_v14   ;;  %v747_v14 = vmul.f32 %v8889_v53, %v9044_v42 }
 0x181   :  { %v7132_v56 = vpack.i.bf16 %v830_v1, %v829_v28  ;;  %v509_v1 = vmul.f32 %v9013_v32, %v9021_v37 }
 0x182   :  { %v9055_v16 = vpop.permute.xlu2 %7068 }
 0x183   :  { %7133 = vrot.lane.b32.xlu2 %v7132_v56, %s8479_s27  ;;  %v748_v56 = vmul.f32 %v8839_v3, %v9040_v20 }
 0x184   :  { %7079 = vrot.lane.b32.xlu1 %v7078_v47, %s8478_s10 }
 0x185   :  { %7091 = vset.pattern.permute.xlu1 %v13390_v18  ;;  %v7085_v28 = vpack.i.bf16 %v748_v56, %v747_v14 }
 0x18a   :  { %v9061_v10 = vpop.permute.xlu2 %700 }
 0x18b   :  { %856 = vperm.xlu2 %7138, %v8593_v5   ;;  %13428 = vst [vmem:[#allocation88_spill] sm:$0xff] %v9061_v10  ;;  %v9067_v5 = vsel %vm426_vm0, %v412_v15, %v413_v33  ;;  %v395_v15 = vmul.f32 %v8863_v50, %v8866_v54 }
 0x18c   :  { %7086 = vrot.lane.b32.xlu1 %v7085_v28, %s8464_s1  ;;  %13429 = vst [vmem:[#allocation89_spill] sm:$0xff] %v9067_v5  ;;  %v510_v47 = vmul.f32 %v8985_v36, %v9067_v5  ;;  %v394_v28 = vmul.f32 %v8717_v40, %v8793_v0  ;;  %v328_v40 = vmul.f32 %v8703_v35, %v8773_v41 }
 0x18e   :  { %v7148_v14 = vpack.i.bf16 %v510_v47, %v509_v1  ;;  %v7102_v32 = vpack.i.bf16 %v395_v15, %v394_v28  ;;  %v13432_v47 = vrot.slane %v8793_v0, 7  ;;  %v588_v15 = vmul.f32 %v8978_v58, %v9044_v42  ;;  %v6874_v0 = vld [vmem:[#allocation6 + $0x60] sm:$0xff] }
 0x18f   :  { %v13047_v28 = vrot.slane %v8910_v22, 1 }
 0x192   :  { %v9075_v56 = vpop.permute.xlu2 %780 }
 0x193   :  { %7140 = vset.pattern.permute.xlu2 %v13391_v63  ;;  %13430 = vst [vmem:[#allocation90_spill] sm:$0xff] %v9075_v56 }
 0x194   :  { %544 = vperm.xlu1 %7091, %v8591_v4   ;;  %716 = vperm.xlu2 %7140, %v8600_v7  }
 0x19a   :  { %v9087_v1 = vpop.permute.xlu2 %351 }
 0x19b   :  { %13431 = vst [vmem:[#allocation91_spill] sm:$0xff] %v9087_v1 }
 0x19c   :  { %7098 = vset.pattern.permute.xlu1 %v13414_v44  ;;  %7142 = vset.pattern.permute.xlu2 %v13400_v17 }
 0x19d   :  { %632 = vperm.xlu1 %7098, %v8602_v8   ;;  %796 = vperm.xlu2 %7142, %v8600_v7  }
 0x1a5   :  { %7100 = vset.pattern.permute.xlu1 %v13391_v63  ;;  %7149 = vrot.lane.b32.xlu2 %v7148_v14, %s8464_s1  ;;  %v9093_v14 = vsel %vm217_vm1, %v13432_v47, %v199_v25  ;;  %v9108_v25 = vsel %vm426_vm0, %v413_v33, %v13047_v28  ;;  %v6877_v33 = vld [vmem:[#allocation6 + $0x78] sm:$0xff]  ;;  %v6876_v28 = vld [vmem:[#allocation6 + $0x70] sm:$0xff] }
 0x1a6   :  { %712 = vperm.xlu1 %7100, %v8602_v8   ;;  %7158 = vset.pattern.permute.xlu2 %v13394_v6  ;;  %13433 = vst [vmem:[#allocation92_spill] sm:$0xff] %v9093_v14  ;;  %v587_v36 = vmul.f32 %v8898_v19, %v9093_v14  ;;  %v670_v47 = vmul.f32 %v8987_v9, %v9108_v25  ;;  %v9114_v19 = vpop.permute.xlu1 %339  ;;  %v6875_v9 = vld [vmem:[#allocation6 + $0x68] sm:$0xff] }
 0x1a7   :  { %13434 = vst [vmem:[#allocation93_spill] sm:$0xff] %v9114_v19  ;;  %1647 = vmatpush.bf16.msrb.mxu1 %v6877_v33 }
 0x1a8   :  { %v7112_v3 = vpack.i.bf16 %v588_v15, %v587_v36  ;;  %v9116_v36 = vpop.permute.xlu2 %460 }
 0x1a9   :  { %13435 = vst [vmem:[#allocation94_spill] sm:$0xff] %v9116_v36 }
 0x1ab   :  { %1648 = vmatpush.bf16.msrb.mxu1 %v6876_v28 }
 0x1ad   :  { %363 = vperm.xlu2 %7158, %v8600_v7  }
 0x1ae   :  { %7103 = vrot.lane.b32.xlu1 %v7102_v32, %s8478_s10  ;;  %v669_v32 = vmul.f32 %v8905_v55, %v9067_v5  ;;  %v7056_v58 = vpop.permute.xlu1 %7055 }
 0x1af   :  { %7125 = vset.pattern.permute.xlu1 %v13405_v31  ;;  %v7058_v55 = vunpack.i.h.bf16 %v7056_v58  ;;  %v7057_v53 = vunpack.i.l.bf16 %v7056_v58  ;;  %1649 = vmatpush.bf16.msrb.mxu1 %v6875_v9 }
 0x1b0   :  { %v7119_v15 = vpack.i.bf16 %v670_v47, %v669_v32  ;;  %v329_v32 = vmul.f32 %v8715_v39, %v8819_v52  ;;  %v7071_v47 = vunpack.i.h.bf16 %v9055_v16 }
 0x1b1   :  { %v1322_v62 = vsel %vm1307_vm2, %v328_v40, %v7057_v53  ;;  %v6873_v40 = vld [vmem:[#allocation6 + $0x58] sm:$0xff] }
 0x1b2   :  { %v1323_v58 = vsel %vm1307_vm2, %v329_v32, %v7058_v55  ;;  %v172_v55 = vld [vmem:[#allocation2 + $0x28] sm:$0xff]  ;;  %v6870_v32 = vld [vmem:[#allocation6 + $0x40] sm:$0xff] }
 0x1b3   :  { %1650 = vmatpush.bf16.msrb.mxu1 %v6874_v0 }
 0x1b5   :  { %7164 = vset.pattern.permute.xlu2 %v13405_v31 }
 0x1b6   :  { %7113 = vrot.lane.b32.xlu1 %v7112_v3, %s8479_s27  ;;  %476 = vperm.xlu2 %7164, %v8600_v7   ;;  %v13436_v7 = vmov 8   ;;  %v9120_v3 = vpop.permute.xlu2 %540 }
 0x1b7   :  { %13437 = vst [vmem:[#allocation95_spill] sm:$0xff] %v9120_v3  ;;  %1651 = vmatpush.bf16.msrb.mxu1 %v6873_v40 }
 0x1be   :  { %7120 = vrot.lane.b32.xlu1 %v7119_v15, %s8478_s10  ;;  %7178 = vset.pattern.permute.xlu2 %v13436_v7  ;;  %v7070_v15 = vunpack.i.l.bf16 %v9055_v16  ;;  %v9129_v50 = vpop.permute.xlu2 %7093 }
 0x1c6   :  { %472 = vperm.xlu1 %7125, %v8602_v8   ;;  %v9141_v53 = vpop.permute.xlu2 %708 }
 0x1c7   :  { %13439 = vst [vmem:[#allocation97_spill] sm:$0xff] %v9141_v53 }
 0x1cb   :  { %v7062_v37 = vpop.permute.xlu1 %7061 }
 0x1cc   :  { %v7064_v5 = vunpack.i.h.bf16 %v7062_v37  ;;  %v7063_v33 = vunpack.i.l.bf16 %v7062_v37 }
 0x1ce   :  { %7131 = vset.pattern.permute.xlu1 %v13390_v18  ;;  %v1339_v28 = vsel %vm1324_vm3, %v1322_v62, %v7063_v33  ;;  %v1340_v35 = vsel %vm1324_vm3, %v1323_v58, %v7064_v5  ;;  %v9145_v62 = vmax.f32 %v172_v55, 0.0 }
 0x1cf   :  { %552 = vperm.xlu1 %7131, %v8602_v8   ;;  %v1356_v16 = vsel %vm1341_vm4, %v1339_v28, %v7070_v15  ;;  %v1357_v39 = vsel %vm1341_vm4, %v1340_v35, %v7071_v47  ;;  %v6872_v8 = vld [vmem:[#allocation6 + $0x50] sm:$0xff]  ;;  %v6871_v35 = vld [vmem:[#allocation6 + $0x48] sm:$0xff]  ;;  %v13442_v47 = vrot.slane %v8910_v22, 7 }
 0x1d0   :  { %v1427_v30 = vpack.c.bf16 %v1357_v39, %v1356_v16  ;;  %1652 = vmatpush.bf16.msrb.mxu1 %v6872_v8  ;;  %v173_v39 = vld [vmem:[#allocation2 + $0x30] sm:$0xff]  ;;  %v204_v5 = vrot.slane %v9145_v62, 7  ;;  %v9177_v8 = vpop.permute.xlu0 %784 }
 0x1d1   :  { %v9151_v0 = vmax.f32 %v173_v39, 0.0  ;;  %13444 = vst [vmem:[#allocation101_spill] sm:$0xff] %v9177_v8 }
 0x1d2   :  { %1641 = vmatmul.bf16.gmra.mxu1 %v1427_v30  ;;  %v9149_v30 = vpop.permute.xlu2 %788  ;;  %v9161_v15 = vsel %vm217_vm1, %v13442_v47, %v204_v5 }
 0x1d3   :  { %v9139_v37 = vpop.permute.xlu1 %536  ;;  %13441 = vst [vmem:[#allocation99_spill] sm:$0xff] %v9149_v30  ;;  %v751_v33 = vmul.f32 %v9061_v10, %v9161_v15  ;;  %v832_v39 = vmul.f32 %v9177_v8, %v9151_v0  ;;  %v13078_v8 = vrot.slane %v9151_v0, 1 }
 0x1d4   :  { %13438 = vst [vmem:[#allocation96_spill] sm:$0xff] %v9139_v37  ;;  %1653 = vmatpush.bf16.msrb.mxu1 %v6871_v35  ;;  %v831_v35 = vmul.f32 %v9075_v56, %v9145_v62  ;;  %v590_v56 = vmul.f32 %v9139_v37, %v8933_v57 }
 0x1d7   :  { %7137 = vset.pattern.permute.xlu1 %v13436_v7 }
 0x1d8   :  { %852 = vperm.xlu1 %7137, %v8584_v2   ;;  %v13069_v2 = vrot.slane %v9151_v0, 7  ;;  %1654 = vmatpush.bf16.msrb.mxu1 %v6870_v32  ;;  %v397_v32 = vmul.f32 %v9004_v38, %v8847_v43  ;;  %v7095_v38 = vunpack.i.l.bf16 %v9129_v50 }
 0x1da   :  { %v9171_v28 = vsel %vm217_vm1, %v204_v5, %v13069_v2  ;;  %v9175_v55 = vpop.permute.xlu2 %7108  ;;  %v396_v5 = vmul.f32 %v9114_v19, %v8845_v60  ;;  %v589_v2 = vmul.f32 %v9051_v23, %v9040_v20 }
 0x1db   :  { %v7110_v41 = vunpack.i.l.bf16 %v9175_v55 }
 0x1dc   :  { %v9147_v9 = vpop.permute.xlu1 %624 }
 0x1dd   :  { %13440 = vst [vmem:[#allocation98_spill] sm:$0xff] %v9147_v9 }
 0x1e0   :  { %7139 = vset.pattern.permute.xlu1 %v13414_v44 }
 0x1e1   :  { %640 = vperm.xlu1 %7139, %v8613_v12  }
 0x1e5   :  { %v9165_v58 = vpop.permute.xlu1 %704 }
 0x1e6   :  { %13443 = vst [vmem:[#allocation100_spill] sm:$0xff] %v9165_v58  ;;  %v752_v16 = vmul.f32 %v9165_v58, %v9171_v28 }
 0x1e8   :  { %v7166_v40 = vpack.i.bf16 %v752_v16, %v751_v33  ;;  %v7172_v33 = vpack.i.bf16 %v832_v39, %v831_v35  ;;  %v7143_v16 = vpack.i.bf16 %v397_v32, %v396_v5  ;;  %v415_v35 = vrot.slane %v9145_v62, 1 }
 0x1e9   :  { %7141 = vset.pattern.permute.xlu1 %v13391_v63  ;;  %v7153_v39 = vpack.i.bf16 %v590_v56, %v589_v2  ;;  %v13447_v32 = vrot.slane %v8910_v22, 1 }
 0x1ea   :  { %720 = vperm.xlu1 %7141, %v8613_v12   ;;  %7167 = vrot.lane.b32.xlu2 %v7166_v40, %s8464_s1  ;;  %v9194_v40 = vpop.permute.xlu2 %355  ;;  %v9207_v5 = vsel %vm426_vm0, %v415_v35, %v13078_v8 }
 0x1eb   :  { %13446 = vst [vmem:[#allocation103_spill] sm:$0xff] %v9194_v40  ;;  %v672_v2 = vmul.f32 %v9147_v9, %v9207_v5 }
 0x1ee   :  { %v9190_v47 = vpop.permute.xlu1 %347 }
 0x1ef   :  { %13445 = vst [vmem:[#allocation102_spill] sm:$0xff] %v9190_v47 }
 0x1f2   :  { %7144 = vrot.lane.b32.xlu1 %v7143_v16, %s8478_s10  ;;  %7173 = vrot.lane.b32.xlu2 %v7172_v33, %s8479_s27  ;;  %v9215_v33 = vsel %vm426_vm0, %v13447_v32, %v415_v35  ;;  %v9221_v8 = vpop.permute.xlu2 %468 }
 0x1f3   :  { %7165 = vset.pattern.permute.xlu1 %v13405_v31  ;;  %v671_v56 = vmul.f32 %v8999_v24, %v9215_v33  ;;  %13448 = vst [vmem:[#allocation104_spill] sm:$0xff] %v9221_v8 }
 0x1f5   :  { %v7159_v32 = vpack.i.bf16 %v672_v2, %v671_v56  ;;  %v174_v2 = vld [vmem:[#allocation2 + $0x38] sm:$0xff] }
 0x1f6   :  { %v7080_v10 = vpop.permute.xlu1 %7079 }
 0x1f7   :  { %v7082_v16 = vunpack.i.h.bf16 %v7080_v10  ;;  %v7081_v58 = vunpack.i.l.bf16 %v7080_v10 }
 0x1f9   :  { %v1359_v35 = vsel %vm1307_vm2, %v8845_v60, %v7082_v16  ;;  %v1358_v10 = vsel %vm1307_vm2, %v8866_v54, %v7081_v58  ;;  %v9253_v16 = vpop.permute.xlu0 %792 }
 0x1fa   :  { %7154 = vrot.lane.b32.xlu1 %v7153_v39, %s8479_s27  ;;  %864 = vperm.xlu2 %7178, %v8591_v4   ;;  %v7096_v39 = vunpack.i.h.bf16 %v9129_v50  ;;  %v9238_v58 = vpop.permute.xlu2 %7127  ;;  %13451 = vst [vmem:[#allocation107_spill] sm:$0xff] %v9253_v16 }
 0x1fe   :  { %v7087_v37 = vpop.permute.xlu1 %7086 }
 0x1ff   :  { %v7089_v4 = vunpack.i.h.bf16 %v7087_v37  ;;  %v7088_v23 = vunpack.i.l.bf16 %v7087_v37 }
 0x201   :  { %v1374_v24 = vsel %vm1324_vm3, %v1358_v10, %v7088_v23  ;;  %v1375_v9 = vsel %vm1324_vm3, %v1359_v35, %v7089_v4  ;;  %v511_v23 = vmul.f32 %v9116_v36, %v9108_v25  ;;  %v8255_v4 = vld [vmem:[#allocation4 + $0x20] sm:$0xff]  ;;  %v9262_v35 = vld [vmem:[#allocation4 + $0x50] sm:$0xff]  ;;  %v9267_v10 = vmax.f32 %v174_v2, 0.0 }
 0x202   :  { %7160 = vrot.lane.b32.xlu1 %v7159_v32, %s8478_s10  ;;  %7180 = vset.pattern.permute.xlu2 %v13391_v63  ;;  %v1390_v19 = vsel %vm1341_vm4, %v1374_v24, %v7095_v38  ;;  %v1391_v37 = vsel %vm1341_vm4, %v1375_v9, %v7096_v39  ;;  %v512_v24 = vmul.f32 %v8991_v45, %v9215_v33  ;;  %v9247_v38 = vpop.permute.xlu2 %7133  ;;  %v175_v39 = vld [vmem:[#allocation2 + $0x40] sm:$0xff]  ;;  %v13458_v45 = vrot.slane %v9151_v0, 7 }
 0x203   :  { %724 = vperm.xlu2 %7180, %v8611_v11   ;;  %v1407_v50 = vpack.c.bf16 %v1391_v37, %v1390_v19  ;;  %v9269_v32 = vmax.f32 %v175_v39, 0.0  ;;  %v206_v37 = vrot.slane %v9267_v10, 7  ;;  %v315_v2 = vmul.f32 %v8681_v29, %v9093_v14  ;;  %v9281_v39 = vld [vmem:[#allocation4 + $0x58] sm:$0xff]  ;;  %v6879_v29 = vld [vmem:[#allocation6 + $0x88] sm:$0xff] }
 0x204   :  { %v7188_v9 = vpack.i.bf16 %v512_v24, %v511_v23  ;;  %6982 = vmatpush.bf16.msra.mxu2 %v6879_v29  ;;  %1702 = vmatpush.bf16.msra.mxu1 %v6879_v29  ;;  %v833_v29 = vmul.f32 %v9149_v30, %v9267_v10 }
 0x205   :  { %1655 = vmatmul.bf16.vlgmr.msrb.gmra.mxu1 %v1407_v50 }
 0x206   :  { %v9236_v60 = vpop.permute.xlu1 %544 }
 0x207   :  { %13449 = vst [vmem:[#allocation105_spill] sm:$0xff] %v9236_v60 }
 0x208   :  { %6983 = vmatpush.bf16.msra.mxu2 %v6878_v48  ;;  %1703 = vmatpush.bf16.msra.mxu1 %v6878_v48 }
 0x20a   :  { %480 = vperm.xlu1 %7165, %v8613_v12   ;;  %v9259_v56 = vpop.permute.xlu2 %856 }
 0x20b   :  { %7182 = vset.pattern.permute.xlu2 %v13400_v17  ;;  %13453 = vst [vmem:[#allocation109_spill] sm:$0xff] %v9259_v56 }
 0x20c   :  { %804 = vperm.xlu2 %7182, %v8611_v11  }
 0x20f   :  { %v9249_v19 = vpop.permute.xlu1 %632 }
 0x210   :  { %13450 = vst [vmem:[#allocation106_spill] sm:$0xff] %v9249_v19 }
 0x212   :  { %7171 = vset.pattern.permute.xlu1 %v13390_v18  ;;  %v9273_v23 = vpop.permute.xlu2 %716 }
 0x213   :  { %560 = vperm.xlu1 %7171, %v8613_v12   ;;  %v9265_v12 = vpop.permute.xlu0 %359  ;;  %13455 = vst [vmem:[#allocation111_spill] sm:$0xff] %v9273_v23 }
 0x214   :  { %7189 = vrot.lane.b32.xlu2 %v7188_v9, %s8464_s1  ;;  %13454 = vst [vmem:[#allocation110_spill] sm:$0xff] %v9265_v12 }
 0x215   :  { %7198 = vset.pattern.permute.xlu2 %v13394_v6 }
 0x218   :  { %v9257_v11 = vpop.permute.xlu1 %712 }
 0x219   :  { %13452 = vst [vmem:[#allocation108_spill] sm:$0xff] %v9257_v11 }
 0x21b   :  { %7177 = vset.pattern.permute.xlu1 %v13436_v7  ;;  %v9285_v50 = vpop.permute.xlu0 %367 }
 0x21c   :  { %860 = vperm.xlu1 %7177, %v8255_v4   ;;  %371 = vperm.xlu2 %7198, %v9262_v35   ;;  %v314_v4 = vmul.f32 %v8673_v26, %v8811_v51  ;;  %13456 = vst [vmem:[#allocation112_spill] sm:$0xff] %v9285_v50  ;;  %v9297_v26 = vsel %vm217_vm1, %v13458_v45, %v206_v37 }
 0x21d   :  { %v753_v54 = vmul.f32 %v9141_v53, %v9297_v26 }
 0x220   :  { %v7104_v6 = vpop.permute.xlu1 %7103 }
 0x221   :  { %v7106_v24 = vunpack.i.h.bf16 %v7104_v6  ;;  %v7105_v9 = vunpack.i.l.bf16 %v7104_v6  ;;  %v13457_v6 = vrot.slane %v9269_v32, 7 }
 0x223   :  { %v9291_v36 = vsel %vm217_vm1, %v206_v37, %v13457_v6  ;;  %v1308_v14 = vsel %vm1307_vm2, %v314_v4, %v7105_v9  ;;  %v1309_v52 = vsel %vm1307_vm2, %v315_v2, %v7106_v24  ;;  %v7111_v6 = vunpack.i.h.bf16 %v9175_v55  ;;  %v9311_v4 = vpop.permute.xlu2 %796 }
 0x224   :  { %7179 = vset.pattern.permute.xlu1 %v13414_v44  ;;  %7205 = vset.pattern.permute.xlu2 %v13405_v31  ;;  %v754_v51 = vmul.f32 %v9257_v11, %v9291_v36  ;;  %v1325_v61 = vsel %vm1324_vm3, %v1308_v14, %v7110_v41  ;;  %13459 = vst [vmem:[#allocation113_spill] sm:$0xff] %v9311_v4  ;;  %v9321_v41 = vpop.permute.xlu0 %375  ;;  %v7129_v14 = vunpack.i.l.bf16 %v9238_v58  ;;  %v7136_v55 = vunpack.i.h.bf16 %v9247_v38 }
 0x225   :  { %648 = vperm.xlu1 %7179, %v9281_v39   ;;  %484 = vperm.xlu2 %7205, %v9262_v35   ;;  %v1326_v53 = vsel %vm1324_vm3, %v1309_v52, %v7111_v6  ;;  %13460 = vst [vmem:[#allocation114_spill] sm:$0xff] %v9321_v41 }
 0x226   :  { %v7207_v27 = vpack.i.bf16 %v754_v51, %v753_v54  ;;  %v834_v54 = vmul.f32 %v9253_v16, %v9269_v32 }
 0x228   :  { %v7114_v46 = vpop.permute.xlu1 %7113 }
 0x229   :  { %v7116_v45 = vunpack.i.h.bf16 %v7114_v46  ;;  %v7115_v37 = vunpack.i.l.bf16 %v7114_v46  ;;  %v7130_v46 = vunpack.i.h.bf16 %v9238_v58 }
 0x22b   :  { %v1342_v11 = vsel %vm1341_vm4, %v1325_v61, %v7115_v37  ;;  %v1343_v9 = vsel %vm1341_vm4, %v1326_v53, %v7116_v45  ;;  %v398_v61 = vmul.f32 %v9190_v47, %v8908_v34  ;;  %v7214_v53 = vpack.i.bf16 %v834_v54, %v833_v29  ;;  %v9341_v29 = vpop.permute.xlu2 %7149 }
 0x22c   :  { %v1406_v24 = vpack.c.bf16 %v1343_v9, %v1342_v11  ;;  %v7135_v11 = vunpack.i.l.bf16 %v9247_v38  ;;  %v592_v54 = vmul.f32 %v9236_v60, %v9161_v15 }
 0x22d   :  { %7181 = vset.pattern.permute.xlu1 %v13391_v63  ;;  %7208 = vrot.lane.b32.xlu2 %v7207_v27, %s8464_s1  ;;  %v399_v27 = vmul.f32 %v9087_v1, %v8910_v22 }
 0x22e   :  { %1606 = vmatmul.bf16.vlgmr.msra.gmra.mxu0 %v1406_v24  ;;  %728 = vperm.xlu1 %7181, %v9281_v39  }
 0x22f   :  { %7220 = vset.pattern.permute.xlu2 %v13436_v7  ;;  %v7183_v45 = vpack.i.bf16 %v399_v27, %v398_v61  ;;  %v9351_v61 = vpop.permute.xlu0 %548  ;;  %v417_v27 = vrot.slane %v9267_v10, 1 }
 0x230   :  { %v7121_v48 = vpop.permute.xlu1 %7120  ;;  %13462 = vst [vmem:[#allocation116_spill] sm:$0xff] %v9351_v61 }
 0x231   :  { %v7123_v51 = vunpack.i.h.bf16 %v7121_v48  ;;  %v7122_v52 = vunpack.i.l.bf16 %v7121_v48  ;;  %v418_v48 = vrot.slane %v9269_v32, 1 }
 0x233   :  { %v1360_v2 = vsel %vm1307_vm2, %v8847_v43, %v7122_v52  ;;  %v1361_v6 = vsel %vm1307_vm2, %v8908_v34, %v7123_v51  ;;  %v591_v34 = vmul.f32 %v9120_v3, %v8927_v13  ;;  %v8258_v52 = vld [vmem:[#allocation4 + $0x38] sm:$0xff] }
 0x234   :  { %v1376_v37 = vsel %vm1324_vm3, %v1360_v2, %v7129_v14  ;;  %v1377_v9 = vsel %vm1324_vm3, %v1361_v6, %v7130_v46  ;;  %v9359_v46 = vpop.permute.xlu2 %363  ;;  %v13464_v14 = vrot.slane %v9151_v0, 1 }
 0x235   :  { %7215 = vrot.lane.b32.xlu2 %v7214_v53, %s8479_s27  ;;  %v1392_v58 = vsel %vm1341_vm4, %v1376_v37, %v7135_v11  ;;  %v1393_v24 = vsel %vm1341_vm4, %v1377_v9, %v7136_v55  ;;  %v7193_v51 = vpack.i.bf16 %v592_v54, %v591_v34  ;;  %13463 = vst [vmem:[#allocation117_spill] sm:$0xff] %v9359_v46  ;;  %v9377_v37 = vld [vmem:[#allocation4 + $0x60] sm:$0xff]  ;;  %v176_v54 = vld [vmem:[#allocation2 + $0x48] sm:$0xff] }
 0x236   :  { %7184 = vrot.lane.b32.xlu1 %v7183_v45, %s8478_s10  ;;  %v1410_v38 = vpack.c.bf16 %v1393_v24, %v1392_v58  ;;  %v9365_v53 = vsel %vm426_vm0, %v13464_v14, %v417_v27  ;;  %v910_v58 = vmul.f32 %v9259_v56, %v9215_v33  ;;  %v513_v33 = vmul.f32 %v9221_v8, %v9207_v5 }
 0x237   :  { %7206 = vset.pattern.permute.xlu1 %v13405_v31  ;;  %v9356_v31 = vsel %vm426_vm0, %v417_v27, %v418_v48  ;;  %v673_v2 = vmul.f32 %v9007_v21, %v9365_v53  ;;  %v9373_v6 = vpop.permute.xlu0 %556  ;;  %v13116_v14 = vrot.slane %v8917_v59, 1 }
 0x238   :  { %v9344_v43 = vpop.permute.xlu1 %472  ;;  %1660 = vmatmul.bf16.gmra.mxu1 %v1410_v38  ;;  %v674_v55 = vmul.f32 %v9249_v19, %v9356_v31  ;;  %13466 = vst [vmem:[#allocation119_spill] sm:$0xff] %v9373_v6  ;;  %v8261_v19 = vld [vmem:[#allocation4 + $0x40] sm:$0xff] }
 0x239   :  { %13461 = vst [vmem:[#allocation115_spill] sm:$0xff] %v9344_v43 }
 0x23a   :  { %v7200_v45 = vpack.i.bf16 %v674_v55, %v673_v2 }
 0x23c   :  { %v9380_v9 = vpop.permute.xlu2 %476 }
 0x23d   :  { %872 = vperm.xlu2 %7220, %v8258_v52   ;;  %13467 = vst [vmem:[#allocation120_spill] sm:$0xff] %v9380_v9 }
 0x23e   :  { %7194 = vrot.lane.b32.xlu1 %v7193_v51, %s8479_s27  ;;  %v9394_v51 = vmax.f32 %v176_v54, 0.0 }
 0x23f   :  { %v9388_v27 = vpop.permute.xlu0 %564 }
 0x240   :  { %13469 = vst [vmem:[#allocation122_spill] sm:$0xff] %v9388_v27  ;;  %v419_v52 = vrot.slane %v9394_v51, 1  ;;  %v208_v54 = vrot.slane %v9394_v51, 7 }
 0x241   :  { %v9369_v11 = vpop.permute.xlu1 %552 }
 0x242   :  { %13465 = vst [vmem:[#allocation118_spill] sm:$0xff] %v9369_v11 }
 0x244   :  { %v9402_v55 = vpop.permute.xlu2 %7167 }
 0x245   :  { %7223 = vset.pattern.permute.xlu2 %v13391_v63 }
 0x246   :  { %7201 = vrot.lane.b32.xlu1 %v7200_v45, %s8478_s10  ;;  %732 = vperm.xlu2 %7223, %v9377_v37  }
 0x24a   :  { %v9384_v24 = vpop.permute.xlu1 %852 }
 0x24b   :  { %13468 = vst [vmem:[#allocation121_spill] sm:$0xff] %v9384_v24  ;;  %v909_v38 = vmul.f32 %v9384_v24, %v9108_v25  ;;  %v514_v25 = vmul.f32 %v9344_v43, %v9365_v53 }
 0x24d   :  { %v1411_v34 = vpack.c.bf16 %v910_v58, %v909_v38  ;;  %v7231_v45 = vpack.i.bf16 %v514_v25, %v513_v33  ;;  %v9411_v58 = vsel %vm426_vm0, %v419_v52, %v13116_v14  ;;  %v9415_v38 = vsel %vm426_vm0, %v418_v48, %v419_v52 }
 0x24e   :  { %488 = vperm.xlu1 %7206, %v9281_v39   ;;  %7225 = vset.pattern.permute.xlu2 %v13400_v17  ;;  %v13472_v25 = vrot.slane %v9269_v32, 7  ;;  %v13474_v14 = vrot.slane %v8917_v59, 7 }
 0x24f   :  { %6431 = vmatmul.msk.bf16.vlgmr.msra.gmra.mxu2 %vm1307_vm2, %v1411_v34  ;;  %812 = vperm.xlu2 %7225, %v9377_v37   ;;  %v9419_v34 = vpop.permute.xlu0 %636 }
 0x250   :  { %13471 = vst [vmem:[#allocation124_spill] sm:$0xff] %v9419_v34  ;;  %v9431_v48 = vsel %vm217_vm1, %v13472_v25, %v208_v54  ;;  %v9441_v30 = vsel %vm217_vm1, %v208_v54, %v13474_v14 }
 0x251   :  { %v755_v52 = vmul.f32 %v9273_v23, %v9431_v48  ;;  %v8260_v23 = vld [vmem:[#allocation4 + $0x30] sm:$0xff] }
 0x253   :  { %v9404_v2 = vpop.permute.xlu1 %640 }
 0x254   :  { %13470 = vst [vmem:[#allocation123_spill] sm:$0xff] %v9404_v2  ;;  %v676_v33 = vmul.f32 %v9404_v2, %v9411_v58 }
 0x256   :  { %7213 = vset.pattern.permute.xlu1 %v13390_v18  ;;  %v675_v18 = vmul.f32 %v9419_v34, %v9415_v38  ;;  %v9443_v34 = vpop.permute.xlu2 %7173 }
 0x257   :  { %568 = vperm.xlu1 %7213, %v9281_v39   ;;  %7232 = vrot.lane.b32.xlu2 %v7231_v45, %s8464_s1 }
 0x258   :  { %7256 = vset.pattern.permute.xlu2 %v13436_v7  ;;  %v7241_v2 = vpack.i.bf16 %v676_v33, %v675_v18  ;;  %v13476_v18 = vld [vmem:[#allocation19_spill] sm:$0xff] }
 0x259   :  { %v316_v33 = vmul.f32 %v13476_v18, %v9044_v42  ;;  %v9467_v18 = vpop.permute.xlu0 %644 }
 0x25a   :  { %13478 = vst [vmem:[#allocation127_spill] sm:$0xff] %v9467_v18 }
 0x25c   :  { %v9435_v45 = vpop.permute.xlu1 %720 }
 0x25d   :  { %13473 = vst [vmem:[#allocation125_spill] sm:$0xff] %v9435_v45  ;;  %v756_v16 = vmul.f32 %v9435_v45, %v9441_v30  ;;  %v13477_v45 = vld [vmem:[#allocation22_spill] sm:$0xff] }
 0x25e   :  { %v9450_v8 = vpop.permute.xlu2 %864 }
 0x25f   :  { %7219 = vset.pattern.permute.xlu1 %v13436_v7  ;;  %7242 = vrot.lane.b32.xlu2 %v7241_v2, %s8478_s10  ;;  %v7246_v25 = vpack.i.bf16 %v756_v16, %v755_v52  ;;  %13475 = vst [vmem:[#allocation126_spill] sm:$0xff] %v9450_v8  ;;  %v317_v2 = vmul.f32 %v13477_v45, %v9040_v20  ;;  %v9457_v16 = vld [vmem:[#allocation4 + $0x68] sm:$0xff]  ;;  %v7152_v52 = vunpack.i.h.bf16 %v9341_v29 }
 0x260   :  { %868 = vperm.xlu1 %7219, %v8260_v23   ;;  %v9460_v23 = vld [vmem:[#allocation4 + $0x70] sm:$0xff] }
 0x261   :  { %7247 = vrot.lane.b32.xlu0 %v7246_v25, %s8464_s1  ;;  %v7151_v25 = vunpack.i.l.bf16 %v9341_v29 }
 0x264   :  { %v7145_v21 = vpop.permute.xlu1 %7144 }
 0x265   :  { %v7147_v14 = vunpack.i.h.bf16 %v7145_v21  ;;  %v7146_v54 = vunpack.i.l.bf16 %v7145_v21 }
 0x266   :  { %v9471_v60 = vpop.permute.xlu2 %724 }
 0x267   :  { %876 = vperm.xlu2 %7256, %v8261_v19   ;;  %v1310_v21 = vsel %vm1307_vm2, %v316_v33, %v7146_v54  ;;  %v1311_v19 = vsel %vm1307_vm2, %v317_v2, %v7147_v14  ;;  %13479 = vst [vmem:[#allocation128_spill] sm:$0xff] %v9471_v60  ;;  %v9476_v33 = vld [vmem:[#allocation4 + $0x78] sm:$0xff]  ;;  %v8265_v2 = vld [vmem:[#allocation4 + $0x48] sm:$0xff] }
 0x268   :  { %7222 = vset.pattern.permute.xlu1 %v13414_v44  ;;  %v1327_v43 = vsel %vm1324_vm3, %v1310_v21, %v7151_v25  ;;  %v1328_v3 = vsel %vm1324_vm3, %v1311_v19, %v7152_v52  ;;  %v7170_v52 = vunpack.i.h.bf16 %v9402_v55  ;;  %v7169_v25 = vunpack.i.l.bf16 %v9402_v55 }
 0x269   :  { %656 = vperm.xlu1 %7222, %v9457_v16   ;;  %820 = vperm.xlu0 %7221, %v9460_v23  }
 0x26c   :  { %v7155_v42 = vpop.permute.xlu1 %7154 }
 0x26d   :  { %v7157_v20 = vunpack.i.h.bf16 %v7155_v42  ;;  %v7156_v45 = vunpack.i.l.bf16 %v7155_v42  ;;  %v7176_v42 = vunpack.i.h.bf16 %v9443_v34 }
 0x26e   :  { %v9499_v55 = vpop.permute.xlu2 %804 }
 0x26f   :  { %7258 = vset.pattern.permute.xlu2 %v13414_v44  ;;  %v1344_v54 = vsel %vm1341_vm4, %v1327_v43, %v7156_v45  ;;  %v1345_v14 = vsel %vm1341_vm4, %v1328_v3, %v7157_v20  ;;  %v400_v43 = vmul.f32 %v9194_v40, %v9145_v62  ;;  %v401_v3 = vmul.f32 %v9265_v12, %v9151_v0 }
 0x270   :  { %664 = vperm.xlu2 %7258, %v9476_v33   ;;  %v1409_v29 = vpack.c.bf16 %v1345_v14, %v1344_v54  ;;  %v7175_v20 = vunpack.i.l.bf16 %v9443_v34  ;;  %v9490_v54 = vpop.permute.xlu0 %652  ;;  %13481 = vst [vmem:[#allocation130_spill] sm:$0xff] %v9499_v55 }
 0x271   :  { %7224 = vset.pattern.permute.xlu1 %v13391_v63  ;;  %7261 = vset.pattern.permute.xlu0 %v13436_v7  ;;  %13480 = vst [vmem:[#allocation129_spill] sm:$0xff] %v9490_v54 }
 0x272   :  { %736 = vperm.xlu1 %7224, %v9457_v16   ;;  %1611 = vmatmul.bf16.gmra.mxu0 %v1409_v29 }
 0x273   :  { %880 = vperm.xlu0 %7261, %v8265_v2   ;;  %v7226_v2 = vpack.i.bf16 %v401_v3, %v400_v43  ;;  %v403_v43 = vmul.f32 %v9285_v50, %v9269_v32 }
 0x274   :  { %v7161_v21 = vpop.permute.xlu1 %7160 }
 0x275   :  { %v7163_v45 = vunpack.i.h.bf16 %v7161_v21  ;;  %v7162_v19 = vunpack.i.l.bf16 %v7161_v21 }
 0x277   :  { %v1362_v14 = vsel %vm1307_vm2, %v8910_v22, %v7162_v19  ;;  %v1363_v29 = vsel %vm1307_vm2, %v9145_v62, %v7163_v45  ;;  %v402_v62 = vmul.f32 %v9359_v46, %v9267_v10  ;;  %v593_v45 = vmul.f32 %v9351_v61, %v9171_v28 }
 0x278   :  { %7260 = vset.pattern.permute.xlu2 %v13391_v63  ;;  %v1378_v21 = vsel %vm1324_vm3, %v1362_v14, %v7169_v25  ;;  %v1379_v40 = vsel %vm1324_vm3, %v1363_v29, %v7170_v52  ;;  %v835_v25 = vmul.f32 %v9311_v4, %v9394_v51  ;;  %v9529_v14 = vpop.f32.mrf.mxu1  ;;  %v595_v29 = vmul.f32 %v9373_v6, %v9291_v36 }
 0x279   :  { %744 = vperm.xlu2 %7260, %v9476_v33   ;;  %v1394_v34 = vsel %vm1341_vm4, %v1378_v21, %v7175_v20  ;;  %v1395_v12 = vsel %vm1341_vm4, %v1379_v40, %v7176_v42  ;;  %v594_v40 = vmul.f32 %v9369_v11, %v9297_v26  ;;  %v7263_v19 = vpack.i.bf16 %v403_v43, %v402_v62  ;;  %v13486_v62 = vld [vmem:[#allocation36_spill] sm:$0xff] }
 0x27a   :  { %7227 = vrot.lane.b32.xlu1 %v7226_v2, %s8478_s10  ;;  %v1413_v22 = vpack.c.bf16 %v1395_v12, %v1394_v34  ;;  %v9516_v12 = vpop.permute.xlu0 %800  ;;  %v837_v43 = vmul.f32 %v9499_v55, %v13486_v62  ;;  %v13494_v55 = vld [vmem:[#allocation42_spill] sm:$0xff] }
 0x27b   :  { %7257 = vset.pattern.permute.xlu1 %v13414_v44  ;;  %v7236_v52 = vpack.i.bf16 %v594_v40, %v593_v45  ;;  %13483 = vst [vmem:[#allocation132_spill] sm:$0xff] %v9516_v12  ;;  %v9521_v44 = vpop.permute.xlu2 %7189  ;;  %v836_v42 = vmul.f32 %v9516_v12, %v8917_v59  ;;  %v13487_v45 = vld [vmem:[#allocation37_spill] sm:$0xff] }
 0x27c   :  { %v9510_v3 = vpop.permute.xlu1 %480  ;;  %1665 = vmatmul.bf16.gmra.mxu1 %v1413_v22 }
 0x27d   :  { %13482 = vst [vmem:[#allocation131_spill] sm:$0xff] %v9510_v3  ;;  %v7251_v34 = vpack.i.bf16 %v836_v42, %v835_v25 }
 0x280   :  { %v9551_v42 = vpop.f32.mrf.mxu1 }
 0x281   :  { %7264 = vrot.lane.b32.xlu2 %v7263_v19, %s8478_s10 }
 0x282   :  { %7237 = vrot.lane.b32.xlu1 %v7236_v52, %s8479_s27  ;;  %7339 = vset.pattern.permute.xlu2 %v13436_v7  ;;  %v9537_v22 = vpop.permute.xlu0 %808  ;;  %v912_v52 = vmul.f32 %v9450_v8, %v9365_v53  ;;  %v13490_v53 = vrot.slane %v13486_v62, 1 }
 0x283   :  { %13485 = vst [vmem:[#allocation134_spill] sm:$0xff] %v9537_v22  ;;  %v838_v40 = vmul.f32 %v9537_v22, %v13487_v45  ;;  %v9543_v19 = vpop.permute.xlu2 %371 }
 0x284   :  { %13488 = vst [vmem:[#allocation36_spill] sm:$0xff] %v9543_v19 }
 0x285   :  { %v9527_v20 = vpop.permute.xlu1 %560 }
 0x286   :  { %13484 = vst [vmem:[#allocation133_spill] sm:$0xff] %v9527_v20  ;;  %v596_v2 = vmul.f32 %v9527_v20, %v9431_v48 }
 0x288   :  { %v7273_v21 = vpack.i.bf16 %v596_v2, %v595_v29  ;;  %v7288_v29 = vpack.i.bf16 %v838_v40, %v837_v43  ;;  %v405_v43 = vmul.f32 %v9321_v41, %v8917_v59  ;;  %v13497_v41 = vld [vmem:[#allocation18_spill] sm:$0xff] }
 0x289   :  { %v319_v12 = vmul.f32 %v13497_v41, %v8927_v13 }
 0x28a   :  { %7274 = vrot.lane.b32.xlu2 %v7273_v21, %s8479_s27  ;;  %7252 = vrot.lane.b32.xlu1 %v7251_v34, %s8479_s27  ;;  %v404_v21 = vmul.f32 %v9543_v19, %v9394_v51  ;;  %v13491_v34 = vrot.slane %v8917_v59, 1 }
 0x28b   :  { %v9568_v40 = vpop.permute.xlu2 %484 }
 0x28c   :  { %13492 = vst [vmem:[#allocation135_spill] sm:$0xff] %v9568_v40 }
 0x28e   :  { %v9547_v6 = vpop.permute.xlu1 %860 }
 0x28f   :  { %13489 = vst [vmem:[#allocation37_spill] sm:$0xff] %v9547_v6  ;;  %v911_v25 = vmul.f32 %v9547_v6, %v9207_v5  ;;  %v9564_v5 = vsel %vm426_vm0, %v13491_v34, %v13490_v53 }
 0x291   :  { %v1414_v2 = vpack.c.bf16 %v912_v52, %v911_v25  ;;  %v9572_v25 = vpop.f32.mrf.mxu1 }
 0x292   :  { %660 = vperm.xlu1 %7257, %v9460_v23   ;;  %7289 = vrot.lane.b32.xlu2 %v7288_v29, %s8479_s27  ;;  %v7294_v29 = vpack.i.bf16 %v405_v43, %v404_v21 }
 0x293   :  { %6432 = vmatmul.msk.bf16.gmra.mxu2 %vm1307_vm2, %v1414_v2  ;;  %v677_v2 = vmul.f32 %v9467_v18, %v9564_v5  ;;  %v7209_v19 = vpop.permute.xlu2 %7208 }
 0x297   :  { %v9570_v52 = vpop.permute.xlu1 %648 }
 0x298   :  { %13493 = vst [vmem:[#allocation136_spill] sm:$0xff] %v9570_v52  ;;  %v678_v22 = vmul.f32 %v9570_v52, %v13494_v55 }
 0x299   :  { %v9584_v4 = vpop.f32.mrf.mxu1 }
 0x29a   :  { %7259 = vset.pattern.permute.xlu1 %v13391_v63  ;;  %7295 = vrot.lane.b32.xlu2 %v7294_v29, %s8478_s10  ;;  %v7278_v53 = vpack.i.bf16 %v678_v22, %v677_v2  ;;  %v515_v63 = vmul.f32 %v9380_v9, %v9356_v31  ;;  %v516_v22 = vmul.f32 %v9510_v3, %v9415_v38  ;;  %v13498_v9 = vld [vmem:[#allocation72_spill] sm:$0xff] }
 0x29b   :  { %740 = vperm.xlu1 %7259, %v9460_v23   ;;  %v7216_v2 = vpop.permute.xlu2 %7215  ;;  %v757_v3 = vmul.f32 %v9471_v60, %v13498_v9 }
 0x29c   :  { %7279 = vrot.lane.b32.xlu0 %v7278_v53, %s8478_s10  ;;  %v7268_v29 = vpack.i.bf16 %v516_v22, %v515_v63  ;;  %v13499_v63 = vld [vmem:[#allocation46_spill] sm:$0xff] }
 0x2a0   :  { %v9582_v34 = vpop.permute.xlu1 %728 }
 0x2a1   :  { %13495 = vst [vmem:[#allocation42_spill] sm:$0xff] %v9582_v34  ;;  %v1656_v43 = vpop.f32.mrf.mxu1  ;;  %v758_v22 = vmul.f32 %v9582_v34, %v13499_v63  ;;  %v7211_v34 = vunpack.i.h.bf16 %v7209_v19 }
 0x2a3   :  { %7262 = vset.pattern.permute.xlu1 %v13400_v17  ;;  %v13496_v17 = vld [vmem:[#allocation17_spill] sm:$0xff]  ;;  %v7283_v13 = vpack.i.bf16 %v758_v22, %v757_v3  ;;  %v9611_v60 = vpop.permute.xlu2 %872  ;;  %v7218_v3 = vunpack.i.h.bf16 %v7216_v2  ;;  %v7217_v22 = vunpack.i.l.bf16 %v7216_v2  ;;  %v517_v2 = vmul.f32 %v9568_v40, %v9411_v58 }
 0x2a4   :  { %824 = vperm.xlu1 %7262, %v9476_v33   ;;  %884 = vperm.xlu0 %7261, %v9262_v35   ;;  %v318_v35 = vmul.f32 %v13496_v17, %v8933_v57  ;;  %13500 = vst [vmem:[#allocation72_spill] sm:$0xff] %v9611_v60 }
 0x2a8   :  { %v7185_v21 = vpop.permute.xlu1 %7184 }
 0x2a9   :  { %v7187_v53 = vunpack.i.h.bf16 %v7185_v21  ;;  %v7186_v18 = vunpack.i.l.bf16 %v7185_v21 }
 0x2ab   :  { %v1607_v52 = vpop.f32.mrf.mxu0  ;;  %v1312_v21 = vsel %vm1307_vm2, %v318_v35, %v7186_v18 }
 0x2ac   :  { %v9593_v20 = vadd.f32 %v1656_v43, %v1607_v52  ;;  %7269 = vrot.lane.b32.xlu1 %v7268_v29, %s8464_s1  ;;  %v1313_v52 = vsel %vm1307_vm2, %v319_v12, %v7187_v53  ;;  %v7192_v43 = vunpack.i.h.bf16 %v9521_v44  ;;  %v7191_v29 = vunpack.i.l.bf16 %v9521_v44 }
 0x2ad   :  { %7293 = vset.pattern.permute.xlu1 %v13436_v7 }
 0x2ae   :  { %v1329_v7 = vsel %vm1324_vm3, %v1312_v21, %v7191_v29  ;;  %v1330_v41 = vsel %vm1324_vm3, %v1313_v52, %v7192_v43 }
 0x2b0   :  { %v7195_v57 = vpop.permute.xlu1 %7194 }
 0x2b1   :  { %v7197_v17 = vunpack.i.h.bf16 %v7195_v57  ;;  %v7196_v46 = vunpack.i.l.bf16 %v7195_v57  ;;  %v7210_v57 = vunpack.i.l.bf16 %v7209_v19 }
 0x2b3   :  { %v1346_v63 = vsel %vm1341_vm4, %v1329_v7, %v7196_v46  ;;  %v1347_v18 = vsel %vm1341_vm4, %v1330_v41, %v7197_v17  ;;  %v9623_v17 = vpop.permute.xlu2 %732  ;;  %v597_v7 = vmul.f32 %v9388_v27, %v9441_v30 }
 0x2b4   :  { %7284 = vrot.lane.b32.xlu1 %v7283_v13, %s8464_s1  ;;  %v1412_v12 = vpack.c.bf16 %v1347_v18, %v1346_v63  ;;  %13501 = vst [vmem:[#allocation46_spill] sm:$0xff] %v9623_v17  ;;  %v9642_v18 = vpop.permute.xlu0 %816 }
 0x2b5   :  { %13505 = vst [vmem:[#allocation140_spill] sm:$0xff] %v9642_v18 }
 0x2b6   :  { %1616 = vmatmul.bf16.gmra.mxu0 %v1412_v12 }
 0x2b8   :  { %v7202_v53 = vpop.permute.xlu1 %7201 }
 0x2b9   :  { %v7204_v44 = vunpack.i.h.bf16 %v7202_v53  ;;  %v7203_v35 = vunpack.i.l.bf16 %v7202_v53  ;;  %v13506_v53 = vld [vmem:[#allocation38_spill] sm:$0xff] }
 0x2bb   :  { %v1364_v21 = vsel %vm1307_vm2, %v9151_v0, %v7203_v35  ;;  %v1365_v52 = vsel %vm1307_vm2, %v9267_v10, %v7204_v44 }
 0x2bc   :  { %888 = vperm.xlu1 %7293, %v9281_v39   ;;  %v1380_v41 = vsel %vm1324_vm3, %v1364_v21, %v7210_v57  ;;  %v1381_v46 = vsel %vm1324_vm3, %v1365_v52, %v7211_v34  ;;  %v9634_v34 = vpop.permute.xlu2 %812  ;;  %v914_v57 = vmul.f32 %v9611_v60, %v9415_v38  ;;  %v6881_v38 = vld [vmem:[%s12935_s3 + $0x8] sm:$0xff] }
 0x2bd   :  { %v1396_v43 = vsel %vm1341_vm4, %v1380_v41, %v7217_v22  ;;  %v1397_v19 = vsel %vm1341_vm4, %v1381_v46, %v7218_v3  ;;  %13503 = vst [vmem:[#allocation138_spill] sm:$0xff] %v9634_v34  ;;  %v839_v44 = vmul.f32 %v9634_v34, %v13506_v53  ;;  %v13508_v22 = vld [vmem:[#allocation49_spill] sm:$0xff]  ;;  %6984 = vmatpush.bf16.msra.mxu3 %v6881_v38 }
 0x2be   :  { %v1416_v29 = vpack.c.bf16 %v1397_v19, %v1396_v43  ;;  %v840_v21 = vmul.f32 %v9642_v18, %v13508_v22  ;;  %1815 = vmatpush.bf16.msrb.mxu1 %v6881_v38 }
 0x2c0   :  { %v9629_v0 = vpop.permute.xlu1 %488  ;;  %1670 = vmatmul.bf16.gmra.mxu1 %v1416_v29  ;;  %v7319_v41 = vpack.i.bf16 %v840_v21, %v839_v44  ;;  %v13510_v29 = vld [vmem:[#allocation41_spill] sm:$0xff]  ;;  %v9682_v21 = vpop.f32.mrf.mxu1 }
 0x2c1   :  { %13502 = vst [vmem:[#allocation137_spill] sm:$0xff] %v9629_v0  ;;  %v518_v10 = vmul.f32 %v9629_v0, %v9564_v5 }
 0x2c3   :  { %v7299_v39 = vpack.i.bf16 %v518_v10, %v517_v2  ;;  %v679_v2 = vmul.f32 %v9490_v54, %v13510_v29 }
 0x2c4   :  { %v7233_v35 = vpop.permute.xlu2 %7232 }
 0x2c5   :  { %7300 = vrot.lane.b32.xlu1 %v7299_v39, %s8464_s1  ;;  %v6880_v39 = vld [vmem:[%s12935_s3] sm:$0xff] }
 0x2c6   :  { %6985 = vmatpush.bf16.msra.mxu3 %v6880_v39  ;;  %1816 = vmatpush.bf16.msrb.mxu1 %v6880_v39  ;;  %v9692_v39 = vpop.f32.mrf.mxu0 }
 0x2c9   :  { %v9636_v13 = vpop.permute.xlu1 %568 }
 0x2ca   :  { %13504 = vst [vmem:[#allocation139_spill] sm:$0xff] %v9636_v13  ;;  %v598_v63 = vmul.f32 %v9636_v13, %v13498_v9 }
 0x2cc   :  { %v7304_v12 = vpack.i.bf16 %v598_v63, %v597_v7  ;;  %v9662_v43 = vpop.permute.xlu2 %7242 }
 0x2ce   :  { %7305 = vrot.lane.b32.xlu2 %v7304_v12, %s8479_s27 }
 0x2d2   :  { %v9649_v3 = vpop.permute.xlu1 %868  ;;  %v1710_v18 = vpop.f32.mrf.mxu2 }
 0x2d3   :  { %13507 = vst [vmem:[#allocation38_spill] sm:$0xff] %v9649_v3  ;;  %v9653_v52 = vpop.permute.xlu0 %7247  ;;  %v913_v9 = vmul.f32 %v9649_v3, %v9356_v31  ;;  %v13511_v31 = vld [vmem:[#allocation73_spill] sm:$0xff] }
 0x2d4   :  { %v9676_v12 = vpop.permute.xlu2 %876 }
 0x2d5   :  { %v1417_v46 = vpack.c.bf16 %v914_v57, %v913_v9  ;;  %13513 = vst [vmem:[#allocation73_spill] sm:$0xff] %v9676_v12  ;;  %v915_v57 = vmul.f32 %v9676_v12, %v9411_v58  ;;  %v13515_v9 = vld [vmem:[#allocation45_spill] sm:$0xff] }
 0x2d6   :  { %7320 = vrot.lane.b32.xlu2 %v7319_v41, %s8479_s27  ;;  %v759_v41 = vmul.f32 %v9623_v17, %v13515_v9  ;;  %v1661_v9 = vpop.f32.mrf.mxu1 }
 0x2d7   :  { %6433 = vmatmul.msk.bf16.gmra.mxu2 %vm1307_vm2, %v1417_v46  ;;  %v13516_v46 = vld [vmem:[#allocation55_spill] sm:$0xff] }
 0x2db   :  { %v9664_v19 = vpop.permute.xlu1 %656  ;;  %v9673_v7 = vpop.permute.xlu0 %820 }
 0x2dc   :  { %13509 = vst [vmem:[#allocation49_spill] sm:$0xff] %v9664_v19  ;;  %v680_v10 = vmul.f32 %v9664_v19, %v13511_v31  ;;  %v13518_v19 = vld [vmem:[#allocation25_spill] sm:$0xff] }
 0x2dd   :  { %13512 = vst [vmem:[#allocation41_spill] sm:$0xff] %v9673_v7 }
 0x2de   :  { %v7309_v63 = vpack.i.bf16 %v680_v10, %v679_v2 }
 0x2e0   :  { %7310 = vrot.lane.b32.xlu0 %v7309_v63, %s8478_s10 }
 0x2e4   :  { %v9678_v44 = vpop.permute.xlu1 %736 }
 0x2e5   :  { %13514 = vst [vmem:[#allocation141_spill] sm:$0xff] %v9678_v44  ;;  %v760_v38 = vmul.f32 %v9678_v44, %v13516_v46  ;;  %v9688_v2 = vpop.permute.xlu0 %880  ;;  %v320_v44 = vmul.f32 %v13518_v19, %v9161_v15  ;;  %v1663_v15 = vpop.f32.mrf.mxu1 }
 0x2e6   :  { %13517 = vst [vmem:[#allocation45_spill] sm:$0xff] %v9688_v2  ;;  %v916_v10 = vmul.f32 %v9688_v2, %v9564_v5  ;;  %v13519_v5 = vld [vmem:[#allocation24_spill] sm:$0xff] }
 0x2e7   :  { %v7314_v63 = vpack.i.bf16 %v760_v38, %v759_v41  ;;  %v321_v27 = vmul.f32 %v13519_v5, %v9171_v28  ;;  %v7235_v41 = vunpack.i.h.bf16 %v7233_v35 }
 0x2e8   :  { %892 = vperm.xlu0 %7261, %v9377_v37   ;;  %v1420_v34 = vpack.c.bf16 %v916_v10, %v915_v57 }
 0x2e9   :  { %7315 = vrot.lane.b32.xlu1 %v7314_v63, %s8464_s1 }
 0x2ea   :  { %6434 = vmatmul.msk.bf16.gmra.mxu2 %vm1307_vm2, %v1420_v34  ;;  %v7234_v34 = vunpack.i.l.bf16 %v7233_v35  ;;  %v7250_v35 = vunpack.i.h.bf16 %v9653_v52 }
 0x2ec   :  { %v7228_v58 = vpop.permute.xlu1 %7227 }
 0x2ed   :  { %v7230_v54 = vunpack.i.h.bf16 %v7228_v58  ;;  %v7229_v46 = vunpack.i.l.bf16 %v7228_v58 }
 0x2ef   :  { %v1612_v17 = vpop.f32.mrf.mxu0  ;;  %v1314_v37 = vsel %vm1307_vm2, %v320_v44, %v7229_v46  ;;  %v1315_v57 = vsel %vm1307_vm2, %v321_v27, %v7230_v54  ;;  %v7245_v27 = vunpack.i.h.bf16 %v9662_v43  ;;  %v7244_v54 = vunpack.i.l.bf16 %v9662_v43 }
 0x2f0   :  { %v1662_v38 = vadd.f32 %v1661_v9, %v1612_v17  ;;  %v1331_v58 = vsel %vm1324_vm3, %v1314_v37, %v7234_v34  ;;  %v1332_v40 = vsel %vm1324_vm3, %v1315_v57, %v7235_v41  ;;  %v1712_v17 = vpop.f32.mrf.mxu2  ;;  %v7249_v9 = vunpack.i.l.bf16 %v9653_v52  ;;  %v9712_v57 = vpop.permute.xlu2 %664 }
 0x2f1   :  { %896 = vperm.xlu1 %7293, %v9457_v16   ;;  %13520 = vst [vmem:[#allocation55_spill] sm:$0xff] %v9712_v57  ;;  %v1367_v43 = vsel %vm1307_vm2, %v9394_v51, %v7245_v27  ;;  %v13525_v27 = vld [vmem:[#allocation92_spill] sm:$0xff] }
 0x2f2   :  { %v1711_v5 = vadd.f32 %v1710_v18, %v1662_v38  ;;  %v1383_v52 = vsel %vm1324_vm3, %v1367_v43, %v7250_v35  ;;  %v13527_v35 = vld [vmem:[#allocation53_spill] sm:$0xff] }
 0x2f4   :  { %v7238_v10 = vpop.permute.xlu1 %7237  ;;  %v1747_v41 = vmax.f32 %v1711_v5, 0.0 }
 0x2f5   :  { %v7240_v63 = vunpack.i.h.bf16 %v7238_v10  ;;  %v7239_v13 = vunpack.i.l.bf16 %v7238_v10 }
 0x2f7   :  { %v1614_v19 = vpop.f32.mrf.mxu0  ;;  %v1348_v28 = vsel %vm1341_vm4, %v1331_v58, %v7239_v13  ;;  %v1349_v16 = vsel %vm1341_vm4, %v1332_v40, %v7240_v63 }
 0x2f8   :  { %v1664_v44 = vadd.f32 %v1663_v15, %v1614_v19  ;;  %v1415_v46 = vpack.c.bf16 %v1349_v16, %v1348_v28  ;;  %v1366_v19 = vsel %vm1307_vm2, %v9269_v32, %v7244_v54  ;;  %v13521_v15 = vld [vmem:[#allocation65_spill] sm:$0xff]  ;;  %v13523_v16 = vld [vmem:[#allocation74_spill] sm:$0xff] }
 0x2f9   :  { %v1382_v10 = vsel %vm1324_vm3, %v1366_v19, %v7249_v9  ;;  %v682_v28 = vmul.f32 %v9712_v57, %v13521_v15 }
 0x2fa   :  { %v1713_v37 = vadd.f32 %v1712_v17, %v1664_v44  ;;  %1621 = vmatmul.bf16.gmra.mxu0 %v1415_v46  ;;  %v9729_v44 = vpop.permute.xlu2 %744 }
 0x2fb   :  { %13524 = vst [vmem:[#allocation74_spill] sm:$0xff] %v9729_v44  ;;  %v762_v54 = vmul.f32 %v9729_v44, %v13525_v27 }
 0x2fc   :  { %v1748_v13 = vmax.f32 %v1713_v37, 0.0  ;;  %v7253_v34 = vpop.permute.xlu1 %7252 }
 0x2fd   :  { %v7255_v40 = vunpack.i.h.bf16 %v7253_v34  ;;  %v7254_v18 = vunpack.i.l.bf16 %v7253_v34  ;;  %v13529_v34 = vld [vmem:[#allocation50_spill] sm:$0xff] }
 0x2fe   :  { %v1762_v38 = vpack.c.bf16 %v1748_v13, %v1747_v41 }
 0x2ff   :  { %v1398_v63 = vsel %vm1341_vm4, %v1382_v10, %v7254_v18  ;;  %v1399_v58 = vsel %vm1341_vm4, %v1383_v52, %v7255_v40  ;;  %v841_v40 = vmul.f32 %v9673_v7, %v13529_v34  ;;  %v13530_v18 = vld [vmem:[#allocation62_spill] sm:$0xff] }
 0x300   :  { %6447 = vmatmul.msk.bf16.vlgmr.msra.gmra.mxu3 %vm1307_vm2, %v1762_v38  ;;  %v1419_v5 = vpack.c.bf16 %v1399_v58, %v1398_v63  ;;  %v8266_v38 = vld [vmem:[#allocation4 + $0x8] sm:$0xff]  ;;  %v13531_v63 = vld [vmem:[#allocation21_spill] sm:$0xff] }
 0x301   :  { %v322_v58 = vmul.f32 %v13531_v63, %v9297_v26  ;;  %v13562_v63 = vld [vmem:[#allocation63_spill] sm:$0xff] }
 0x302   :  { %1675 = vmatmul.bf16.gmra.mxu1 %v1419_v5  ;;  %v7265_v37 = vpop.permute.xlu2 %7264  ;;  %v13532_v5 = vld [vmem:[#allocation28_spill] sm:$0xff] }
 0x303   :  { %v7267_v52 = vunpack.i.h.bf16 %v7265_v37 }
 0x304   :  { %v9725_v32 = vpop.permute.xlu1 %660 }
 0x305   :  { %13522 = vst [vmem:[#allocation65_spill] sm:$0xff] %v9725_v32  ;;  %v681_v51 = vmul.f32 %v9725_v32, %v13523_v16 }
 0x307   :  { %v7324_v46 = vpack.i.bf16 %v682_v28, %v681_v51  ;;  %v323_v28 = vmul.f32 %v13532_v5, %v9291_v36  ;;  %v8275_v5 = vld [vmem:[#allocation2 + $0x28] sm:$0xff] }
 0x309   :  { %7325 = vrot.lane.b32.xlu2 %v7324_v46, %s8478_s10 }
 0x30a   :  { %v7275_v10 = vpop.permute.xlu2 %7274 }
 0x30d   :  { %v9734_v17 = vpop.permute.xlu1 %740 }
 0x30e   :  { %13526 = vst [vmem:[#allocation92_spill] sm:$0xff] %v9734_v17  ;;  %v761_v9 = vmul.f32 %v9734_v17, %v13527_v35  ;;  %v7276_v35 = vunpack.i.l.bf16 %v7275_v10 }
 0x310   :  { %v7329_v41 = vpack.i.bf16 %v762_v54, %v761_v9  ;;  %v7277_v54 = vunpack.i.h.bf16 %v7275_v10 }
 0x311   :  { %900 = vperm.xlu2 %7339, %v9460_v23   ;;  %v7266_v23 = vunpack.i.l.bf16 %v7265_v37 }
 0x312   :  { %7330 = vrot.lane.b32.xlu0 %v7329_v41, %s8464_s1  ;;  %v1317_v41 = vsel %vm1307_vm2, %v323_v28, %v7267_v52 }
 0x313   :  { %v1316_v9 = vsel %vm1307_vm2, %v322_v58, %v7266_v23 }
 0x316   :  { %v9740_v13 = vpop.permute.xlu1 %824 }
 0x317   :  { %13528 = vst [vmem:[#allocation53_spill] sm:$0xff] %v9740_v13  ;;  %v842_v19 = vmul.f32 %v9740_v13, %v13530_v18  ;;  %v13566_v13 = vld [vmem:[#allocation56_spill] sm:$0xff] }
 0x319   :  { %v7334_v43 = vpack.i.bf16 %v842_v19, %v841_v40  ;;  %848 = vperm.xlu2 %7339, %v8266_v38   ;;  %v8267_v19 = vld [vmem:[#allocation4] sm:$0xff] }
 0x31a   :  { %904 = vperm.xlu0 %7261, %v9476_v33   ;;  %v7280_v33 = vpop.permute.xlu0 %7279 }
 0x31b   :  { %7335 = vrot.lane.b32.xlu1 %v7334_v43, %s8479_s27  ;;  %v7290_v43 = vpop.permute.xlu2 %7289  ;;  %v7282_v38 = vunpack.i.h.bf16 %v7280_v33 }
 0x31c   :  { %v7292_v52 = vunpack.i.h.bf16 %v7290_v43  ;;  %v7291_v28 = vunpack.i.l.bf16 %v7290_v43 }
 0x31e   :  { %v7270_v51 = vpop.permute.xlu1 %7269 }
 0x31f   :  { %v7272_v46 = vunpack.i.h.bf16 %v7270_v51  ;;  %v7271_v27 = vunpack.i.l.bf16 %v7270_v51  ;;  %v7281_v51 = vunpack.i.l.bf16 %v7280_v33 }
 0x321   :  { %v1333_v40 = vsel %vm1324_vm3, %v1316_v9, %v7271_v27  ;;  %v1334_v37 = vsel %vm1324_vm3, %v1317_v41, %v7272_v46  ;;  %v1368_v27 = vsel %vm1307_vm2, %v8917_v59, %v7281_v51  ;;  %v1369_v46 = vsel %vm1307_vm2, %v13486_v62, %v7282_v38 }
 0x322   :  { %v1350_v18 = vsel %vm1341_vm4, %v1333_v40, %v7276_v35  ;;  %v1351_v26 = vsel %vm1341_vm4, %v1334_v37, %v7277_v54  ;;  %v9766_v33 = vpop.permute.xlu0 %884 }
 0x323   :  { %844 = vperm.xlu1 %7293, %v8267_v19   ;;  %v1418_v36 = vpack.c.bf16 %v1351_v26, %v1350_v18  ;;  %13533 = vst [vmem:[#allocation50_spill] sm:$0xff] %v9766_v33  ;;  %v917_v37 = vmul.f32 %v9766_v33, %v13494_v55  ;;  %v7296_v18 = vpop.permute.xlu2 %7295  ;;  %v1666_v26 = vpop.f32.mrf.mxu1  ;;  %v13536_v55 = vld [vmem:[#allocation26_spill] sm:$0xff] }
 0x324   :  { %v7298_v38 = vunpack.i.h.bf16 %v7296_v18  ;;  %v7297_v51 = vunpack.i.l.bf16 %v7296_v18 }
 0x325   :  { %1626 = vmatmul.bf16.gmra.mxu0 %v1418_v36  ;;  %v1715_v36 = vpop.f32.mrf.mxu2 }
 0x326   :  { %v7285_v10 = vpop.permute.xlu1 %7284 }
 0x327   :  { %v7287_v23 = vunpack.i.h.bf16 %v7285_v10  ;;  %v7286_v58 = vunpack.i.l.bf16 %v7285_v10 }
 0x329   :  { %v1384_v54 = vsel %vm1324_vm3, %v1368_v27, %v7286_v58  ;;  %v1385_v35 = vsel %vm1324_vm3, %v1369_v46, %v7287_v23  ;;  %v13535_v23 = vld [vmem:[#allocation27_spill] sm:$0xff] }
 0x32a   :  { %v1400_v9 = vsel %vm1341_vm4, %v1384_v54, %v7291_v28  ;;  %v1401_v41 = vsel %vm1341_vm4, %v1385_v35, %v7292_v52  ;;  %v324_v58 = vmul.f32 %v13535_v23, %v9431_v48  ;;  %v325_v52 = vmul.f32 %v13536_v55, %v9441_v30  ;;  %v6888_v23 = vld [vmem:[#allocation7 + $0x30] sm:$0xff] }
 0x32b   :  { %v1422_v40 = vpack.c.bf16 %v1401_v41, %v1400_v9  ;;  %v7306_v10 = vpop.permute.xlu2 %7305  ;;  %v1668_v18 = vpop.f32.mrf.mxu1 }
 0x32c   :  { %v7307_v35 = vunpack.i.l.bf16 %v7306_v10  ;;  %v1318_v9 = vsel %vm1307_vm2, %v324_v58, %v7297_v51  ;;  %v1319_v41 = vsel %vm1307_vm2, %v325_v52, %v7298_v38 }
 0x32d   :  { %1680 = vmatmul.bf16.gmra.mxu1 %v1422_v40 }
 0x32e   :  { %v9770_v59 = vpop.permute.xlu1 %888 }
 0x32f   :  { %13534 = vst [vmem:[#allocation62_spill] sm:$0xff] %v9770_v59  ;;  %v918_v62 = vmul.f32 %v9770_v59, %v13510_v29  ;;  %v7308_v29 = vunpack.i.h.bf16 %v7306_v10 }
 0x331   :  { %v1423_v19 = vpack.c.bf16 %v918_v62, %v917_v37 }
 0x333   :  { %v1617_v43 = vpop.f32.mrf.mxu0  ;;  %6435 = vmatmul.msk.bf16.gmra.mxu2 %vm1307_vm2, %v1423_v19 }
 0x334   :  { %v1667_v27 = vadd.f32 %v1666_v26, %v1617_v43 }
 0x336   :  { %v1716_v19 = vadd.f32 %v1715_v36, %v1667_v27 }
 0x337   :  { %v7301_v28 = vpop.permute.xlu1 %7300 }
 0x338   :  { %v7303_v46 = vunpack.i.h.bf16 %v7301_v28  ;;  %v7302_v54 = vunpack.i.l.bf16 %v7301_v28  ;;  %v1717_v28 = vpop.f32.mrf.mxu2  ;;  %v1749_v10 = vmax.f32 %v1716_v19, 0.0 }
 0x33a   :  { %v1335_v40 = vsel %vm1324_vm3, %v1318_v9, %v7302_v54  ;;  %v1336_v37 = vsel %vm1324_vm3, %v1319_v41, %v7303_v46  ;;  %v7321_v54 = vpop.permute.xlu2 %7320 }
 0x33b   :  { %v1619_v62 = vpop.f32.mrf.mxu0  ;;  %v1352_v48 = vsel %vm1341_vm4, %v1335_v40, %v7307_v35  ;;  %v1353_v30 = vsel %vm1341_vm4, %v1336_v37, %v7308_v29  ;;  %v7323_v40 = vunpack.i.h.bf16 %v7321_v54  ;;  %v7322_v29 = vunpack.i.l.bf16 %v7321_v54 }
 0x33c   :  { %v1669_v26 = vadd.f32 %v1668_v18, %v1619_v62  ;;  %v1421_v43 = vpack.c.bf16 %v1353_v30, %v1352_v48 }
 0x33e   :  { %v1718_v55 = vadd.f32 %v1717_v28, %v1669_v26  ;;  %1631 = vmatmul.bf16.gmra.mxu0 %v1421_v43  ;;  %v1671_v43 = vpop.f32.mrf.mxu1 }
 0x340   :  { %v1750_v51 = vmax.f32 %v1718_v55, 0.0 }
 0x342   :  { %v1763_v58 = vpack.c.bf16 %v1750_v51, %v1749_v10 }
 0x344   :  { %6448 = vmatmul.msk.bf16.gmra.mxu3 %vm1307_vm2, %v1763_v58 }
 0x346   :  { %v1673_v58 = vpop.f32.mrf.mxu1 }
 0x352   :  { %v7311_v38 = vpop.permute.xlu0 %7310 }
 0x353   :  { %v7313_v52 = vunpack.i.h.bf16 %v7311_v38  ;;  %v7312_v46 = vunpack.i.l.bf16 %v7311_v38 }
 0x355   :  { %v1370_v36 = vsel %vm1307_vm2, %v13487_v45, %v7312_v46  ;;  %v1371_v27 = vsel %vm1307_vm2, %v13506_v53, %v7313_v52 }
 0x35a   :  { %v9794_v48 = vpop.permute.xlu0 %892  ;;  %v1720_v28 = vpop.f32.mrf.mxu2 }
 0x35b   :  { %v7316_v9 = vpop.permute.xlu1 %7315  ;;  %13537 = vst [vmem:[#allocation142_spill] sm:$0xff] %v9794_v48  ;;  %v919_v19 = vmul.f32 %v9794_v48, %v13511_v31 }
 0x35c   :  { %v7318_v41 = vunpack.i.h.bf16 %v7316_v9  ;;  %v7317_v35 = vunpack.i.l.bf16 %v7316_v9 }
 0x35e   :  { %v1386_v55 = vsel %vm1324_vm3, %v1370_v36, %v7317_v35  ;;  %v1387_v37 = vsel %vm1324_vm3, %v1371_v27, %v7318_v41 }
 0x35f   :  { %v1402_v18 = vsel %vm1341_vm4, %v1386_v55, %v7322_v29  ;;  %v1403_v62 = vsel %vm1341_vm4, %v1387_v37, %v7323_v40 }
 0x360   :  { %v1425_v30 = vpack.c.bf16 %v1403_v62, %v1402_v18 }
 0x362   :  { %1685 = vmatmul.bf16.gmra.mxu1 %v1425_v30  ;;  %v1722_v54 = vpop.f32.mrf.mxu2 }
 0x363   :  { %v9798_v26 = vpop.permute.xlu1 %896  ;;  %v7326_v9 = vpop.permute.xlu2 %7325 }
 0x364   :  { %13538 = vst [vmem:[#allocation143_spill] sm:$0xff] %v9798_v26  ;;  %v920_v45 = vmul.f32 %v9798_v26, %v13523_v16  ;;  %v7328_v16 = vunpack.i.h.bf16 %v7326_v9  ;;  %v7327_v36 = vunpack.i.l.bf16 %v7326_v9 }
 0x366   :  { %v1426_v53 = vpack.c.bf16 %v920_v45, %v919_v19  ;;  %v13541_v19 = vld [vmem:[#allocation64_spill] sm:$0xff] }
 0x368   :  { %6436 = vmatmul.msk.bf16.gmra.mxu2 %vm1307_vm2, %v1426_v53 }
 0x36b   :  { %v9804_v27 = vpop.permute.xlu2 %900 }
 0x36c   :  { %13539 = vst [vmem:[#allocation144_spill] sm:$0xff] %v9804_v27  ;;  %v921_v18 = vmul.f32 %v9804_v27, %v13521_v15 }
 0x373   :  { %v9823_v9 = vpop.permute.xlu2 %848 }
 0x374   :  { %13543 = vst [vmem:[#allocation146_spill] sm:$0xff] %v9823_v9 }
 0x377   :  { %v1622_v10 = vpop.f32.mrf.mxu0 }
 0x378   :  { %v1672_v51 = vadd.f32 %v1671_v43, %v1622_v10  ;;  %v1373_v10 = vsel %vm1307_vm2, %v13529_v34, %v7328_v16 }
 0x37a   :  { %v1721_v52 = vadd.f32 %v1720_v28, %v1672_v51  ;;  %v1372_v28 = vsel %vm1307_vm2, %v13508_v22, %v7327_v36  ;;  %v13544_v22 = vld [vmem:[#allocation89_spill] sm:$0xff] }
 0x37b   :  { %v908_v34 = vmul.f32 %v9823_v9, %v13544_v22 }
 0x37c   :  { %v1751_v31 = vmax.f32 %v1721_v52, 0.0 }
 0x37f   :  { %v1624_v38 = vpop.f32.mrf.mxu0 }
 0x380   :  { %v1674_v46 = vadd.f32 %v1673_v58, %v1624_v38 }
 0x382   :  { %v1723_v41 = vadd.f32 %v1722_v54, %v1674_v46 }
 0x384   :  { %v1752_v35 = vmax.f32 %v1723_v41, 0.0  ;;  %v7331_v40 = vpop.permute.xlu0 %7330  ;;  %v13545_v41 = vld [vmem:[#allocation85_spill] sm:$0xff] }
 0x385   :  { %v7333_v55 = vunpack.i.h.bf16 %v7331_v40  ;;  %v7332_v37 = vunpack.i.l.bf16 %v7331_v40 }
 0x386   :  { %v1764_v29 = vpack.c.bf16 %v1752_v35, %v1751_v31  ;;  %v1676_v35 = vpop.f32.mrf.mxu1 }
 0x387   :  { %v1388_v58 = vsel %vm1324_vm3, %v1372_v28, %v7332_v37  ;;  %v1389_v38 = vsel %vm1324_vm3, %v1373_v10, %v7333_v55 }
 0x388   :  { %6449 = vmatmul.msk.bf16.gmra.mxu3 %vm1307_vm2, %v1764_v29  ;;  %v1725_v29 = vpop.f32.mrf.mxu2 }
 0x38c   :  { %v9808_v62 = vpop.permute.xlu0 %904 }
 0x38d   :  { %13540 = vst [vmem:[#allocation145_spill] sm:$0xff] %v9808_v62  ;;  %v7336_v30 = vpop.permute.xlu1 %7335  ;;  %v922_v45 = vmul.f32 %v9808_v62, %v13541_v19 }
 0x38e   :  { %v7338_v53 = vunpack.i.h.bf16 %v7336_v30  ;;  %v7337_v43 = vunpack.i.l.bf16 %v7336_v30  ;;  %v1678_v55 = vpop.f32.mrf.mxu1 }
 0x38f   :  { %v1429_v51 = vpack.c.bf16 %v922_v45, %v921_v18 }
 0x390   :  { %v1404_v15 = vsel %vm1341_vm4, %v1388_v58, %v7337_v43  ;;  %v1405_v52 = vsel %vm1341_vm4, %v1389_v38, %v7338_v53  ;;  %v1727_v19 = vpop.f32.mrf.mxu2 }
 0x391   :  { %6437 = vmatmul.msk.bf16.gmra.mxu2 %vm1307_vm2, %v1429_v51  ;;  %v1428_v46 = vpack.c.bf16 %v1405_v52, %v1404_v15 }
 0x393   :  { %1690 = vmatmul.bf16.gmra.mxu1 %v1428_v46 }
 0x395   :  { %v9821_v54 = vpop.permute.xlu1 %844 }
 0x396   :  { %13542 = vst [vmem:[#allocation64_spill] sm:$0xff] %v9821_v54  ;;  %v907_v31 = vmul.f32 %v9821_v54, %v13545_v41 }
 0x398   :  { %v1408_v40 = vpack.c.bf16 %v908_v34, %v907_v31 }
 0x3a2   :  { %v1627_v16 = vpop.f32.mrf.mxu0 }
 0x3a3   :  { %6430 = vmatmul.msk.bf16.vlgmr.msra.gmra.mxu1 %vm1307_vm2, %v1408_v40  ;;  %v1677_v36 = vadd.f32 %v1676_v35, %v1627_v16 }
 0x3a5   :  { %v1726_v18 = vadd.f32 %v1725_v29, %v1677_v36 }
 0x3a7   :  { %v1753_v53 = vmax.f32 %v1726_v18, 0.0 }
 0x3aa   :  { %v1629_v37 = vpop.f32.mrf.mxu0  ;;  %v1681_v10 = vpop.f32.mrf.mxu1 }
 0x3ab   :  { %v1679_v30 = vadd.f32 %v1678_v55, %v1629_v37 }
 0x3ad   :  { %v1728_v45 = vadd.f32 %v1727_v19, %v1679_v30 }
 0x3af   :  { %v1754_v43 = vmax.f32 %v1728_v45, 0.0 }
 0x3b1   :  { %v1765_v28 = vpack.c.bf16 %v1754_v43, %v1753_v53 }
 0x3b2   :  { %v1683_v15 = vpop.f32.mrf.mxu1 }
 0x3b3   :  { %6450 = vmatmul.msk.bf16.gmra.mxu3 %vm1307_vm2, %v1765_v28 }
 0x3b6   :  { %v1730_v51 = vpop.f32.mrf.mxu2 }
 0x3bb   :  { %v1632_v58 = vpop.f32.mrf.mxu0 }
 0x3bc   :  { %v1682_v38 = vadd.f32 %v1681_v10, %v1632_v58 }
 0x3be   :  { %v1732_v46 = vpop.f32.mrf.mxu2  ;;  %v1731_v22 = vadd.f32 %v1730_v51, %v1682_v38 }
 0x3c0   :  { %v1755_v31 = vmax.f32 %v1731_v22, 0.0 }
 0x3c3   :  { %v1634_v52 = vpop.f32.mrf.mxu0 }
 0x3c4   :  { %v1684_v34 = vadd.f32 %v1683_v15, %v1634_v52 }
 0x3c6   :  { %v1733_v41 = vadd.f32 %v1732_v46, %v1684_v34 }
 0x3c8   :  { %v1756_v35 = vmax.f32 %v1733_v41, 0.0  ;;  %v1659_v41 = vadd.f32 %v9682_v21, %v9692_v39 }
 0x3ca   :  { %v1766_v40 = vpack.c.bf16 %v1756_v35, %v1755_v31 }
 0x3cc   :  { %6451 = vmatmul.msk.bf16.gmra.mxu3 %vm1307_vm2, %v1766_v40 }
 0x3df   :  { %v1686_v29 = vpop.f32.mrf.mxu1 }
 0x3e0   :  { %v1687_v55 = vadd.f32 %v1686_v29, %v9529_v14 }
 0x3e7   :  { %v1688_v36 = vpop.f32.mrf.mxu1 }
 0x3e8   :  { %v1689_v37 = vadd.f32 %v1688_v36, %v9551_v42 }
 0x3eb   :  { %v1735_v16 = vpop.f32.mrf.mxu2 }
 0x3ec   :  { %v1736_v18 = vadd.f32 %v1735_v16, %v1687_v55 }
 0x3ee   :  { %v1757_v45 = vmax.f32 %v1736_v18, 0.0 }
 0x3f3   :  { %v1737_v30 = vpop.f32.mrf.mxu2 }
 0x3f4   :  { %v1738_v19 = vadd.f32 %v1737_v30, %v1689_v37 }
 0x3f6   :  { %v1758_v53 = vmax.f32 %v1738_v19, 0.0 }
 0x3f8   :  { %v1767_v43 = vpack.c.bf16 %v1758_v53, %v1757_v45  ;;  %v6899_v53 = vld [vmem:[#allocation7 + $0x88] sm:$0xff] }
 0x3f9   :  { %2858 = vmatpush.bf16.msrb.mxu0 %v6899_v53  ;;  %v13553_v53 = vld [vmem:[#allocation61_spill] sm:$0xff] }
 0x3fa   :  { %6452 = vmatmul.msk.bf16.gmra.mxu3 %vm1307_vm2, %v1767_v43  ;;  %v6898_v43 = vld [vmem:[#allocation7 + $0x80] sm:$0xff] }
 0x3fd   :  { %2859 = vmatpush.bf16.msrb.mxu0 %v6898_v43 }
 0x410   :  { %v1691_v28 = vpop.f32.mrf.mxu1 }
 0x411   :  { %v1692_v58 = vadd.f32 %v1691_v28, %v9572_v25 }
 0x414   :  { %v1740_v10 = vpop.f32.mrf.mxu2 }
 0x415   :  { %v1741_v38 = vadd.f32 %v1740_v10, %v1692_v58  ;;  %v6897_v58 = vld [vmem:[#allocation7 + $0x78] sm:$0xff] }
 0x416   :  { %2803 = vmatpush.bf16.msrb.mxu3 %v6897_v58 }
 0x417   :  { %v1759_v46 = vmax.f32 %v1741_v38, 0.0  ;;  %v8268_v38 = vld [vmem:[#allocation2 + $0x18] sm:$0xff] }
 0x418   :  { %v1693_v51 = vpop.f32.mrf.mxu1 }
 0x419   :  { %v1694_v15 = vadd.f32 %v1693_v51, %v9584_v4  ;;  %v1823_v4 = vpop.f32.mrf.mxu3  ;;  %v6889_v51 = vld [vmem:[#allocation7 + $0x38] sm:$0xff] }
 0x41a   :  { %2754 = vmatpush.bf16.msrb.mxu2 %v6889_v51  ;;  %v13554_v51 = vld [vmem:[#allocation34_spill] sm:$0xff] }
 0x41c   :  { %v1742_v52 = vpop.f32.mrf.mxu2 }
 0x41d   :  { %v1743_v14 = vadd.f32 %v1742_v52, %v1694_v15  ;;  %v8269_v52 = vld [vmem:[#allocation2 + $0x10] sm:$0xff] }
 0x41e   :  { %2755 = vmatpush.bf16.msrb.mxu2 %v6888_v23 }
 0x41f   :  { %v1760_v42 = vmax.f32 %v1743_v14, 0.0  ;;  %v9862_v14 = vadd.f32 %v8269_v52, %v1823_v4 }
 0x420   :  { %v1705_v22 = vpop.f32.mrf.mxu1 }
 0x421   :  { %v1768_v34 = vpack.c.bf16 %v1760_v42, %v1759_v46  ;;  %v1706_v31 = vadd.f32 %v1705_v22, %v9593_v20  ;;  %v1825_v36 = vpop.f32.mrf.mxu3  ;;  %13547 = vst [vmem:[#allocation85_spill] sm:$0xff] %v9862_v14  ;;  %v8270_v46 = vld [vmem:[#allocation2 + $0x70] sm:$0xff] }
 0x422   :  { %v9860_v15 = vadd.f32 %v8268_v38, %v1825_v36 }
 0x423   :  { %6453 = vmatmul.msk.bf16.gmra.mxu3 %vm1307_vm2, %v1768_v34  ;;  %v1745_v29 = vmax.f32 %v1706_v31, 0.0  ;;  %v8271_v34 = vld [vmem:[#allocation2] sm:$0xff] }
 0x424   :  { %13546 = vst [vmem:[#allocation89_spill] sm:$0xff] %v9860_v15  ;;  %v9869_v31 = vmax.f32 %v9860_v15, 0.0 }
 0x428   :  { %v1707_v35 = vpop.f32.mrf.mxu1 }
 0x429   :  { %v1708_v40 = vadd.f32 %v1707_v35, %v1659_v41  ;;  %v1828_v55 = vpop.f32.mrf.mxu3 }
 0x42b   :  { %v1746_v25 = vmax.f32 %v1708_v40, 0.0 }
 0x42d   :  { %v1761_v16 = vpack.c.bf16 %v1746_v25, %v1745_v29  ;;  %v8272_v29 = vld [vmem:[#allocation2 + $0x78] sm:$0xff] }
 0x42f   :  { %6446 = vmatmul.msk.bf16.vlgmr.msrb.gmra.mxu1 %vm1307_vm2, %v1761_v16  ;;  %v9877_v16 = vmax.f32 %v9862_v14, 0.0 }
 0x431   :  { %v9842_v37 = vpop.f32.mrf.mxu3 }
 0x439   :  { %v9844_v18 = vpop.f32.mrf.mxu3 }
 0x441   :  { %v9846_v30 = vpop.f32.mrf.mxu3 }
 0x449   :  { %v9848_v19 = vpop.f32.mrf.mxu3 }
 0x451   :  { %v9850_v21 = vpop.f32.mrf.mxu3 }
 0x459   :  { %v9852_v20 = vpop.f32.mrf.mxu3 }
 0x461   :  { %v9854_v39 = vpop.f32.mrf.mxu3 }
 0x47d   :  { %v9856_v45 = vpop.f32.mrf.mxu3 }
 0x485   :  { %v9858_v28 = vpop.f32.mrf.mxu3 }
 0x4a6   :  { %v1853_v10 = vpop.f32.mrf.mxu3 }
 0x4a7   :  { %v9864_v42 = vadd.f32 %v8270_v46, %v1853_v10 }
 0x4a9   :  { %13548 = vst [vmem:[#allocation147_spill] sm:$0xff] %v9864_v42  ;;  %v9880_v4 = vmax.f32 %v9864_v42, 0.0  ;;  %v13556_v42 = vrot.slane %v9869_v31, 1 }
 0x4ac   :  { %v1818_v22 = vpop.f32.mrf.mxu1 }
 0x4ad   :  { %v9866_v41 = vadd.f32 %v8271_v34, %v1818_v22  ;;  %v1956_v22 = vrot.slane %v9877_v16, 1 }
 0x4ae   :  { %v1855_v35 = vpop.f32.mrf.mxu3 }
 0x4af   :  { %13549 = vst [vmem:[#allocation148_spill] sm:$0xff] %v9866_v41  ;;  %v9872_v40 = vmax.f32 %v9866_v41, 0.0  ;;  %v9874_v25 = vadd.f32 %v8272_v29, %v1855_v35  ;;  %v13197_v35 = vrot.slane %v9880_v4, 7  ;;  %v8273_v29 = vld [vmem:[#allocation2 + $0x8] sm:$0xff]  ;;  %v9906_v15 = vsel %vm426_vm0, %v1956_v22, %v13556_v42 }
 0x4b0   :  { %v2067_v41 = vmul.f32 %v9906_v15, %v9823_v9 }
 0x4b1   :  { %13550 = vst [vmem:[#allocation149_spill] sm:$0xff] %v9872_v40  ;;  %v9883_v36 = vmax.f32 %v9874_v25, 0.0  ;;  %v1939_v43 = vmul.f32 %v9872_v40, %v13553_v53  ;;  %v1890_v52 = vrot.slane %v9872_v40, 7  ;;  %v1954_v10 = vrot.slane %v9872_v40, 1 }
 0x4b2   :  { %13551 = vst [vmem:[#allocation150_spill] sm:$0xff] %v9874_v25 }
 0x4b3   :  { %13552 = vst [vmem:[#allocation151_spill] sm:$0xff] %v9883_v36  ;;  %v1938_v58 = vmul.f32 %v9883_v36, %v13554_v51  ;;  %v1969_v38 = vrot.slane %v9883_v36, 1  ;;  %v1905_v46 = vrot.slane %v9883_v36, 7  ;;  %v13567_v36 = vld [vmem:[#allocation57_spill] sm:$0xff] }
 0x4b4   :  { %v1820_v34 = vpop.f32.mrf.mxu1 }
 0x4b5   :  { %v9895_v25 = vadd.f32 %v8273_v29, %v1820_v34  ;;  %v7340_v53 = vpack.i.bf16 %v1939_v43, %v1938_v58  ;;  %v9900_v51 = vsel %vm217_vm1, %v1905_v46, %v1890_v52  ;;  %v9912_v14 = vsel %vm217_vm1, %v13197_v35, %v1905_v46  ;;  %v8274_v35 = vld [vmem:[#allocation2 + $0x20] sm:$0xff] }
 0x4b6   :  { %13557 = vst [vmem:[#allocation153_spill] sm:$0xff] %v9912_v14  ;;  %v1985_v58 = vsel %vm426_vm0, %v1969_v38, %v1954_v10  ;;  %v9924_v42 = vmul.f32 %v9912_v14, %v9734_v17  ;;  %v9928_v46 = vmul.f32 %v9900_v51, %v9729_v44  ;;  %v6896_v29 = vld [vmem:[#allocation7 + $0x70] sm:$0xff]  ;;  %v9937_v17 = vadd.f32 %v8275_v5, %v9842_v37 }
 0x4b7   :  { %13555 = vst [vmem:[#allocation152_spill] sm:$0xff] %v9895_v25  ;;  %v9915_v43 = vmax.f32 %v9895_v25, 0.0  ;;  %7341 = vrot.lane.b32.xlu0 %v7340_v53, %s8478_s10  ;;  %v9930_v25 = vadd.f32 %v8274_v35, %v1828_v55  ;;  %v1986_v14 = vmul.f32 %v1985_v58, %v13562_v63  ;;  %v13563_v44 = vrot.slane %v9880_v4, 1  ;;  %2804 = vmatpush.bf16.msrb.mxu3 %v6896_v29 }
 0x4b8   :  { %13558 = vst [vmem:[#allocation154_spill] sm:$0xff] %v9924_v42  ;;  %v13564_v5 = vrot.slane %v9877_v16, 7  ;;  %v13569_v42 = vld [vmem:[#allocation58_spill] sm:$0xff]  ;;  %v9971_v23 = vmax.f32 %v9937_v17, 0.0  ;;  %v9983_v29 = vmul.f32 %v1985_v58, %v9804_v27  ;;  %v13574_v27 = vld [vmem:[#allocation68_spill] sm:$0xff] }
 0x4b9   :  { %13559 = vst [vmem:[#allocation155_spill] sm:$0xff] %v9928_v46  ;;  %v1955_v53 = vrot.slane %v9915_v43, 1  ;;  %v1891_v34 = vrot.slane %v9915_v43, 7  ;;  %v9944_v55 = vsel %vm426_vm0, %v13563_v44, %v1969_v38  ;;  %v13565_v44 = vld [vmem:[#allocation66_spill] sm:$0xff] }
 0x4ba   :  { %13560 = vst [vmem:[#allocation156_spill] sm:$0xff] %v9930_v25 }
 0x4bb   :  { %13561 = vst [vmem:[#allocation157_spill] sm:$0xff] %v9937_v17  ;;  %v1984_v9 = vsel %vm426_vm0, %v1954_v10, %v1955_v53  ;;  %v1983_v40 = vsel %vm426_vm0, %v1955_v53, %v1956_v22  ;;  %v9956_v37 = vsel %vm217_vm1, %v1891_v34, %v13564_v5  ;;  %v9960_v63 = vsel %vm217_vm1, %v1890_v52, %v1891_v34  ;;  %v13568_v22 = vld [vmem:[#allocation67_spill] sm:$0xff] }
 0x4bc   :  { %v1987_v38 = vmul.f32 %v1984_v9, %v13565_v44  ;;  %v2066_v35 = vmul.f32 %v1983_v40, %v9821_v54  ;;  %v2018_v10 = vmul.f32 %v1984_v9, %v13566_v13  ;;  %v2019_v7 = vmul.f32 %v1983_v40, %v13567_v36 }
 0x4bd   :  { %v2034_v53 = vmul.f32 %v9960_v63, %v13568_v22  ;;  %v2035_v5 = vmul.f32 %v9956_v37, %v13569_v42  ;;  %v9975_v44 = vmul.f32 %v9944_v55, %v9725_v32  ;;  %v9978_v54 = vmax.f32 %v9930_v25, 0.0 }
 0x4be   :  { %v7350_v46 = vpack.i.bf16 %v1987_v38, %v1986_v14  ;;  %v2564_v48 = vpack.c.bf16 %v2067_v41, %v2066_v35  ;;  %v7345_v52 = vpack.i.bf16 %v2019_v7, %v2018_v10  ;;  %v9986_v7 = vmul.f32 %v1984_v9, %v9808_v62  ;;  %v13570_v41 = vld [vmem:[#allocation59_spill] sm:$0xff]  ;;  %v13572_v10 = vld [vmem:[#allocation93_spill] sm:$0xff] }
 0x4bf   :  { %v7360_v34 = vpack.i.bf16 %v2035_v5, %v2034_v53  ;;  %v9991_v14 = vmul.f32 %v1985_v58, %v9712_v57  ;;  %v2050_v35 = vmul.f32 %v9915_v43, %v13570_v41  ;;  %v1940_v9 = vmul.f32 %v9915_v43, %v13572_v10  ;;  %v13575_v41 = vld [vmem:[#allocation82_spill] sm:$0xff] }
 0x4c0   :  { %7351 = vrot.lane.b32.xlu2 %v7350_v46, %s8464_s1  ;;  %6526 = vmatmul.msk.bf16.vlgmr.msrb.gmra.mxu0 %vm1307_vm2, %v2564_v48  ;;  %v13571_v48 = vld [vmem:[#allocation76_spill] sm:$0xff]  ;;  %v1959_v53 = vrot.slane %v9971_v23, 1  ;;  %v2002_v46 = vmul.f32 %v9900_v51, %v13574_v27  ;;  %v1941_v22 = vmul.f32 %v9877_v16, %v13575_v41  ;;  %v1893_v10 = vrot.slane %v9869_v31, 7  ;;  %v13582_v41 = vld [vmem:[#allocation71_spill] sm:$0xff] }
 0x4c1   :  { %7346 = vrot.lane.b32.xlu1 %v7345_v52, %s8478_s10  ;;  %7361 = vrot.lane.b32.xlu0 %v7360_v34, %s8464_s1  ;;  %v2003_v38 = vmul.f32 %v9960_v63, %v13571_v48  ;;  %v13573_v52 = vld [vmem:[#allocation60_spill] sm:$0xff]  ;;  %v1958_v34 = vrot.slane %v9978_v54, 1  ;;  %v13577_v27 = vrot.slane %v9978_v54, 7 }
 0x4c2   :  { %v2051_v58 = vmul.f32 %v9877_v16, %v13573_v52  ;;  %v7365_v32 = vpack.i.bf16 %v1941_v22, %v1940_v9  ;;  %v13576_v52 = vrot.slane %v9869_v31, 1  ;;  %v6887_v22 = vld [vmem:[#allocation7 + $0x28] sm:$0xff] }
 0x4c3   :  { %v7370_v57 = vpack.i.bf16 %v2003_v38, %v2002_v46  ;;  %v10015_v5 = vsel %vm426_vm0, %v1958_v34, %v1959_v53  ;;  %v6895_v46 = vld [vmem:[#allocation7 + $0x68] sm:$0xff]  ;;  %2756 = vmatpush.bf16.msrb.mxu2 %v6887_v22 }
 0x4c4   :  { %v7355_v42 = vpack.i.bf16 %v2051_v58, %v2050_v35  ;;  %v10022_v62 = vsel %vm426_vm0, %v13576_v52, %v1958_v34  ;;  %v10028_v35 = vsel %vm217_vm1, %v1893_v10, %v13577_v27  ;;  %v13578_v38 = vld [vmem:[#allocation84_spill] sm:$0xff]  ;;  %v13579_v52 = vrot.slane %v9877_v16, 7  ;;  %2805 = vmatpush.bf16.msrb.mxu3 %v6895_v46 }
 0x4c5   :  { %v1988_v9 = vmul.f32 %v1983_v40, %v13578_v38  ;;  %v8276_v34 = vld [vmem:[#allocation2 + $0x38] sm:$0xff]  ;;  %v2037_v48 = vmul.f32 %v10028_v35, %v13582_v41  ;;  %v13586_v38 = vld [vmem:[#allocation69_spill] sm:$0xff] }
 0x4c6   :  { %v10039_v58 = vsel %vm217_vm1, %v13579_v52, %v1893_v10  ;;  %v10042_v27 = vadd.f32 %v8276_v34, %v9846_v30  ;;  %v2068_v10 = vmul.f32 %v10022_v62, %v9384_v24  ;;  %v13584_v52 = vld [vmem:[#allocation77_spill] sm:$0xff]  ;;  %v13585_v30 = vld [vmem:[#allocation70_spill] sm:$0xff] }
 0x4c7   :  { %v1989_v17 = vmul.f32 %v9906_v15, %v13584_v52  ;;  %v2020_v34 = vmul.f32 %v9906_v15, %v13585_v30  ;;  %v13587_v15 = vld [vmem:[#allocation86_spill] sm:$0xff]  ;;  %v13616_v30 = vld [vmem:[#allocation83_spill] sm:$0xff] }
 0x4c8   :  { %7356 = vrot.lane.b32.xlu2 %v7355_v42, %s8479_s27  ;;  %v2069_v42 = vmul.f32 %v10015_v5, %v9259_v56  ;;  %13580 = vst [vmem:[#allocation158_spill] sm:$0xff] %v10042_v27  ;;  %v8277_v56 = vld [vmem:[#allocation2 + $0x30] sm:$0xff]  ;;  %v10060_v22 = vmax.f32 %v10042_v27, 0.0 }
 0x4c9   :  { %7371 = vrot.lane.b32.xlu1 %v7370_v57, %s8479_s27  ;;  %7366 = vrot.lane.b32.xlu0 %v7365_v32, %s8478_s10  ;;  %v13581_v57 = vld [vmem:[#allocation78_spill] sm:$0xff]  ;;  %v10049_v40 = vadd.f32 %v8277_v56, %v9844_v18  ;;  %v7385_v41 = vpack.i.bf16 %v1989_v17, %v1988_v9  ;;  %v13588_v17 = vld [vmem:[#allocation87_spill] sm:$0xff] }
 0x4ca   :  { %v2021_v32 = vmul.f32 %v10022_v62, %v13581_v57  ;;  %v2036_v57 = vmul.f32 %v10039_v58, %v13586_v38  ;;  %v2567_v25 = vpack.c.bf16 %v2069_v42, %v2068_v10  ;;  %v2053_v42 = vmul.f32 %v9978_v54, %v13587_v15 }
 0x4cb   :  { %13583 = vst [vmem:[#allocation159_spill] sm:$0xff] %v10049_v40  ;;  %v10063_v18 = vmax.f32 %v10049_v40, 0.0  ;;  %v2004_v9 = vmul.f32 %v9956_v37, %v13588_v17  ;;  %v1895_v15 = vrot.slane %v9971_v23, 7  ;;  %v13600_v40 = vld [vmem:[#allocation81_spill] sm:$0xff] }
 0x4cc   :  { %v7375_v46 = vpack.i.bf16 %v2021_v32, %v2020_v34  ;;  %v7380_v56 = vpack.i.bf16 %v2037_v48, %v2036_v57  ;;  %v1943_v48 = vmul.f32 %v9978_v54, %v9087_v1  ;;  %v13236_v57 = vrot.slane %v10060_v22, 1  ;;  %v13589_v32 = vld [vmem:[#allocation80_spill] sm:$0xff] }
 0x4cd   :  { %v13590_v34 = vld [vmem:[#allocation96_spill] sm:$0xff] }
 0x4d0   :  { %6527 = vmatmul.msk.bf16.gmra.mxu0 %vm1307_vm2, %v2567_v25  ;;  %7386 = vrot.lane.b32.xlu2 %v7385_v41, %s8464_s1  ;;  %v2052_v25 = vmul.f32 %v9869_v31, %v13589_v32  ;;  %v1960_v41 = vrot.slane %v10063_v18, 1 }
 0x4d1   :  { %7376 = vrot.lane.b32.xlu1 %v7375_v46, %s8478_s10  ;;  %7381 = vrot.lane.b32.xlu0 %v7380_v56, %s8464_s1  ;;  %v2005_v46 = vmul.f32 %v10039_v58, %v13590_v34  ;;  %v1942_v56 = vmul.f32 %v9869_v31, %v9190_v47  ;;  %v13591_v34 = vrot.slane %v10063_v18, 7 }
 0x4d2   :  { %v7390_v38 = vpack.i.bf16 %v2053_v42, %v2052_v25  ;;  %v10089_v32 = vsel %vm426_vm0, %v1960_v41, %v13236_v57  ;;  %v10094_v10 = vsel %vm426_vm0, %v1959_v53, %v1960_v41  ;;  %v13593_v53 = vrot.slane %v9978_v54, 7  ;;  %v13596_v57 = vld [vmem:[#allocation98_spill] sm:$0xff] }
 0x4d3   :  { %v7395_v17 = vpack.i.bf16 %v1943_v48, %v1942_v56  ;;  %v7400_v1 = vpack.i.bf16 %v2005_v46, %v2004_v9  ;;  %v10100_v42 = vsel %vm217_vm1, %v1895_v15, %v13591_v34  ;;  %v6886_v9 = vld [vmem:[#allocation7 + $0x20] sm:$0xff]  ;;  %v2071_v25 = vmul.f32 %v10089_v32, %v9450_v8  ;;  %v8278_v34 = vld [vmem:[#allocation2 + $0x48] sm:$0xff]  ;;  %v8279_v8 = vld [vmem:[#allocation2 + $0x40] sm:$0xff] }
 0x4d4   :  { %v6894_v48 = vld [vmem:[#allocation7 + $0x60] sm:$0xff]  ;;  %v10112_v41 = vsel %vm217_vm1, %v13593_v53, %v1895_v15  ;;  %v10115_v56 = vadd.f32 %v8278_v34, %v9850_v21  ;;  %v2023_v47 = vmul.f32 %v10094_v10, %v13596_v57  ;;  %2757 = vmatpush.bf16.msrb.mxu2 %v6886_v9  ;;  %v10122_v27 = vadd.f32 %v8279_v8, %v9848_v19  ;;  %v13598_v53 = vld [vmem:[#allocation94_spill] sm:$0xff]  ;;  %v13599_v21 = vld [vmem:[#allocation88_spill] sm:$0xff] }
 0x4d5   :  { %2806 = vmatpush.bf16.msrb.mxu3 %v6894_v48  ;;  %v2070_v15 = vmul.f32 %v10094_v10, %v9547_v6  ;;  %v2038_v34 = vmul.f32 %v10112_v41, %v13599_v21 }
 0x4d6   :  { %13594 = vst [vmem:[#allocation160_spill] sm:$0xff] %v10115_v56  ;;  %v10133_v9 = vmax.f32 %v10115_v56, 0.0  ;;  %v10136_v19 = vmax.f32 %v10122_v27, 0.0 }
 0x4d7   :  { %13597 = vst [vmem:[#allocation161_spill] sm:$0xff] %v10122_v27  ;;  %v2570_v24 = vpack.c.bf16 %v2071_v25, %v2070_v15  ;;  %v13601_v25 = vld [vmem:[#allocation101_spill] sm:$0xff] }
 0x4d8   :  { %7391 = vrot.lane.b32.xlu2 %v7390_v38, %s8479_s27  ;;  %v13592_v38 = vld [vmem:[#allocation79_spill] sm:$0xff]  ;;  %v1963_v15 = vrot.slane %v10133_v9, 1 }
 0x4d9   :  { %7396 = vrot.lane.b32.xlu0 %v7395_v17, %s8478_s10  ;;  %7401 = vrot.lane.b32.xlu1 %v7400_v1, %s8479_s27  ;;  %v1991_v46 = vmul.f32 %v10015_v5, %v13592_v38  ;;  %v13595_v17 = vld [vmem:[#allocation100_spill] sm:$0xff]  ;;  %v1990_v38 = vmul.f32 %v10022_v62, %v13598_v53  ;;  %v6885_v62 = vld [vmem:[#allocation7 + $0x18] sm:$0xff] }
 0x4da   :  { %v2039_v1 = vmul.f32 %v10100_v42, %v13595_v17  ;;  %v2022_v17 = vmul.f32 %v10015_v5, %v13600_v40  ;;  %v6893_v5 = vld [vmem:[#allocation7 + $0x58] sm:$0xff]  ;;  %2758 = vmatpush.bf16.msrb.mxu2 %v6885_v62  ;;  %v13614_v40 = vld [vmem:[#allocation104_spill] sm:$0xff] }
 0x4db   :  { %v7410_v57 = vpack.i.bf16 %v1991_v46, %v1990_v38  ;;  %v2055_v38 = vmul.f32 %v10063_v18, %v13601_v25  ;;  %v13602_v46 = vld [vmem:[#allocation105_spill] sm:$0xff]  ;;  %2807 = vmatpush.bf16.msrb.mxu3 %v6893_v5  ;;  %v13606_v25 = vld [vmem:[#allocation103_spill] sm:$0xff]  ;;  %v13607_v5 = vrot.slane %v10060_v22, 1  ;;  %v1992_v53 = vmul.f32 %v10094_v10, %v13614_v40 }
 0x4dc   :  { %v7415_v48 = vpack.i.bf16 %v2039_v1, %v2038_v34  ;;  %v7405_v8 = vpack.i.bf16 %v2023_v47, %v2022_v17  ;;  %v2007_v1 = vmul.f32 %v10112_v41, %v13602_v46  ;;  %v13603_v47 = vld [vmem:[#allocation110_spill] sm:$0xff]  ;;  %v1962_v34 = vrot.slane %v10136_v19, 1  ;;  %v6884_v10 = vld [vmem:[#allocation7 + $0x10] sm:$0xff] }
 0x4dd   :  { %v1945_v17 = vmul.f32 %v10063_v18, %v13603_v47  ;;  %v1944_v46 = vmul.f32 %v9971_v23, %v13606_v25  ;;  %v1897_v47 = vrot.slane %v10060_v22, 7  ;;  %v8281_v25 = vld [vmem:[#allocation2 + $0x50] sm:$0xff] }
 0x4de   :  { %v10160_v62 = vsel %vm426_vm0, %v1962_v34, %v1963_v15  ;;  %2759 = vmatpush.bf16.msrb.mxu2 %v6884_v10 }
 0x4df   :  { %v7430_v27 = vpack.i.bf16 %v1945_v17, %v1944_v46  ;;  %v8280_v17 = vld [vmem:[#allocation2 + $0x58] sm:$0xff] }
 0x4e0   :  { %6528 = vmatmul.msk.bf16.gmra.mxu0 %vm1307_vm2, %v2570_v24  ;;  %7411 = vrot.lane.b32.xlu2 %v7410_v57, %s8464_s1  ;;  %v13604_v24 = vld [vmem:[#allocation90_spill] sm:$0xff] }
 0x4e1   :  { %7416 = vrot.lane.b32.xlu0 %v7415_v48, %s8464_s1  ;;  %7406 = vrot.lane.b32.xlu1 %v7405_v8, %s8478_s10  ;;  %v2054_v57 = vmul.f32 %v9971_v23, %v13604_v24  ;;  %v1898_v48 = vrot.slane %v10136_v19, 7  ;;  %v13605_v8 = vld [vmem:[#allocation95_spill] sm:$0xff]  ;;  %v1977_v24 = vsel %vm426_vm0, %v13607_v5, %v1962_v34  ;;  %v13611_v34 = vld [vmem:[#allocation108_spill] sm:$0xff] }
 0x4e2   :  { %v2006_v21 = vmul.f32 %v10028_v35, %v13605_v8 }
 0x4e3   :  { %v7425_v56 = vpack.i.bf16 %v2055_v38, %v2054_v57  ;;  %v10169_v8 = vsel %vm217_vm1, %v1897_v47, %v1898_v48  ;;  %v13608_v38 = vld [vmem:[#allocation115_spill] sm:$0xff]  ;;  %v10184_v57 = vadd.f32 %v8280_v17, %v9854_v39  ;;  %v2024_v39 = vmul.f32 %v10089_v32, %v13616_v30 }
 0x4e4   :  { %v7420_v6 = vpack.i.bf16 %v2007_v1, %v2006_v21  ;;  %v2073_v21 = vmul.f32 %v10160_v62, %v9611_v60  ;;  %v1993_v46 = vmul.f32 %v10089_v32, %v13608_v38  ;;  %v10190_v60 = vadd.f32 %v8281_v25, %v9852_v20  ;;  %v6892_v32 = vld [vmem:[#allocation7 + $0x50] sm:$0xff]  ;;  %v13617_v25 = vld [vmem:[#allocation107_spill] sm:$0xff] }
 0x4e5   :  { %13610 = vst [vmem:[#allocation162_spill] sm:$0xff] %v10184_v57  ;;  %v2072_v38 = vmul.f32 %v1977_v24, %v9649_v3  ;;  %2808 = vmatpush.bf16.msrb.mxu3 %v6892_v32 }
 0x4e6   :  { %13613 = vst [vmem:[#allocation163_spill] sm:$0xff] %v10190_v60  ;;  %v7440_v52 = vpack.i.bf16 %v1993_v46, %v1992_v53  ;;  %v10203_v20 = vmax.f32 %v10190_v60, 0.0  ;;  %v2057_v53 = vmul.f32 %v10136_v19, %v13617_v25 }
 0x4e7   :  { %v2573_v17 = vpack.c.bf16 %v2073_v21, %v2072_v38  ;;  %v1947_v21 = vmul.f32 %v10136_v19, %v9285_v50  ;;  %v1899_v50 = vrot.slane %v10133_v9, 7 }
 0x4e8   :  { %7426 = vrot.lane.b32.xlu2 %v7425_v56, %s8479_s27  ;;  %v13609_v56 = vrot.slane %v10063_v18, 7 }
 0x4e9   :  { %7431 = vrot.lane.b32.xlu0 %v7430_v27, %s8478_s10  ;;  %7421 = vrot.lane.b32.xlu1 %v7420_v6, %s8479_s27  ;;  %v2041_v27 = vmul.f32 %v10169_v8, %v13611_v34  ;;  %v13612_v6 = vld [vmem:[#allocation106_spill] sm:$0xff]  ;;  %v10200_v34 = vmax.f32 %v10184_v57, 0.0  ;;  %v13626_v57 = vld [vmem:[#allocation111_spill] sm:$0xff] }
 0x4ea   :  { %v10181_v1 = vsel %vm217_vm1, %v13609_v56, %v1897_v47  ;;  %v2025_v5 = vmul.f32 %v1977_v24, %v13612_v6  ;;  %v13615_v47 = vld [vmem:[#allocation97_spill] sm:$0xff] }
 0x4eb   :  { %v2040_v56 = vmul.f32 %v10181_v1, %v13615_v47  ;;  %v2009_v38 = vmul.f32 %v10181_v1, %v9369_v11  ;;  %v1965_v46 = vrot.slane %v10200_v34, 1  ;;  %v13625_v11 = vld [vmem:[#allocation120_spill] sm:$0xff] }
 0x4ec   :  { %v7435_v36 = vpack.i.bf16 %v2025_v5, %v2024_v39  ;;  %v2008_v5 = vmul.f32 %v10100_v42, %v9351_v61 }
 0x4ed   :  { %v7445_v6 = vpack.i.bf16 %v2041_v27, %v2040_v56  ;;  %v13619_v56 = vld [vmem:[#allocation117_spill] sm:$0xff] }
 0x4ee   :  { %v1946_v39 = vmul.f32 %v10060_v22, %v13619_v56  ;;  %v7450_v25 = vpack.i.bf16 %v2009_v38, %v2008_v5  ;;  %v8282_v5 = vld [vmem:[#allocation2 + $0x68] sm:$0xff]  ;;  %v8283_v56 = vld [vmem:[#allocation2 + $0x60] sm:$0xff] }
 0x4f0   :  { %6529 = vmatmul.msk.bf16.gmra.mxu0 %vm1307_vm2, %v2573_v17  ;;  %7441 = vrot.lane.b32.xlu2 %v7440_v52, %s8464_s1  ;;  %v13618_v52 = vld [vmem:[#allocation99_spill] sm:$0xff]  ;;  %v7460_v47 = vpack.i.bf16 %v1947_v21, %v1946_v39 }
 0x4f1   :  { %7446 = vrot.lane.b32.xlu0 %v7445_v6, %s8464_s1  ;;  %7436 = vrot.lane.b32.xlu1 %v7435_v36, %s8478_s10  ;;  %v2056_v27 = vmul.f32 %v10060_v22, %v13618_v52  ;;  %v1964_v36 = vrot.slane %v10203_v20, 1  ;;  %v1900_v6 = vrot.slane %v10203_v20, 7  ;;  %v13620_v21 = vld [vmem:[#allocation131_spill] sm:$0xff] }
 0x4f2   :  { %v1995_v38 = vmul.f32 %v10160_v62, %v13620_v21 }
 0x4f3   :  { %v7455_v17 = vpack.i.bf16 %v2057_v53, %v2056_v27  ;;  %v1974_v10 = vsel %vm426_vm0, %v1964_v36, %v1965_v46  ;;  %v1975_v32 = vsel %vm426_vm0, %v1963_v15, %v1964_v36  ;;  %v10232_v52 = vsel %vm217_vm1, %v1899_v50, %v1900_v6  ;;  %v13622_v36 = vld [vmem:[#allocation125_spill] sm:$0xff] }
 0x4f4   :  { %v2075_v53 = vmul.f32 %v1974_v10, %v9688_v2  ;;  %v10241_v27 = vsel %vm217_vm1, %v1898_v48, %v1899_v50  ;;  %v10244_v15 = vadd.f32 %v8282_v5, %v9858_v28  ;;  %v2043_v39 = vmul.f32 %v10232_v52, %v13622_v36  ;;  %v13627_v48 = vld [vmem:[#allocation124_spill] sm:$0xff] }
 0x4f5   :  { %v2074_v61 = vmul.f32 %v1975_v32, %v9676_v12  ;;  %v1994_v2 = vmul.f32 %v1977_v24, %v13625_v11  ;;  %v2042_v50 = vmul.f32 %v10241_v27, %v13626_v57  ;;  %v2026_v28 = vmul.f32 %v10160_v62, %v13627_v48  ;;  %v13628_v24 = vld [vmem:[#allocation132_spill] sm:$0xff]  ;;  %v13633_v57 = vld [vmem:[#allocation119_spill] sm:$0xff] }
 0x4f6   :  { %13621 = vst [vmem:[#allocation164_spill] sm:$0xff] %v10244_v15  ;;  %v10259_v36 = vmax.f32 %v10244_v15, 0.0 }
 0x4f7   :  { %v2576_v5 = vpack.c.bf16 %v2075_v53, %v2074_v61  ;;  %v7470_v21 = vpack.i.bf16 %v1995_v38, %v1994_v2  ;;  %v2059_v61 = vmul.f32 %v10203_v20, %v13628_v24  ;;  %v13629_v2 = vld [vmem:[#allocation114_spill] sm:$0xff] }
 0x4f8   :  { %7456 = vrot.lane.b32.xlu2 %v7455_v17, %s8479_s27  ;;  %v13623_v17 = vld [vmem:[#allocation123_spill] sm:$0xff]  ;;  %v1949_v62 = vmul.f32 %v10203_v20, %v13629_v2  ;;  %v1967_v38 = vrot.slane %v10259_v36, 1  ;;  %v2010_v2 = vmul.f32 %v10169_v8, %v13633_v57 }
 0x4f9   :  { %7461 = vrot.lane.b32.xlu0 %v7460_v47, %s8478_s10  ;;  %7451 = vrot.lane.b32.xlu1 %v7450_v25, %s8479_s27  ;;  %v2027_v47 = vmul.f32 %v1975_v32, %v13623_v17  ;;  %v10250_v25 = vadd.f32 %v8283_v56, %v9856_v45  ;;  %v7475_v17 = vpack.i.bf16 %v2043_v39, %v2042_v50  ;;  %v13630_v56 = vld [vmem:[#allocation133_spill] sm:$0xff]  ;;  %v6883_v39 = vld [vmem:[#allocation7 + $0x8] sm:$0xff] }
 0x4fa   :  { %v2011_v53 = vmul.f32 %v10241_v27, %v13630_v56  ;;  %v13631_v50 = vld [vmem:[#allocation113_spill] sm:$0xff]  ;;  %2760 = vmatpush.bf16.msrb.mxu2 %v6883_v39  ;;  %v1901_v56 = vrot.slane %v10200_v34, 7 }
 0x4fb   :  { %13624 = vst [vmem:[#allocation165_spill] sm:$0xff] %v10250_v25  ;;  %v7465_v60 = vpack.i.bf16 %v2027_v47, %v2026_v28  ;;  %v10262_v45 = vmax.f32 %v10250_v25, 0.0  ;;  %v6891_v47 = vld [vmem:[#allocation7 + $0x48] sm:$0xff] }
 0x4fc   :  { %v13632_v28 = vld [vmem:[#allocation36_spill] sm:$0xff]  ;;  %2809 = vmatpush.bf16.msrb.mxu3 %v6891_v47  ;;  %v7480_v25 = vpack.i.bf16 %v2011_v53, %v2010_v2  ;;  %v1997_v2 = vmul.f32 %v1974_v10, %v9629_v0 }
 0x500   :  { %6530 = vmatmul.msk.bf16.gmra.mxu0 %vm1307_vm2, %v2576_v5  ;;  %7471 = vrot.lane.b32.xlu2 %v7470_v21, %s8464_s1  ;;  %v2058_v21 = vmul.f32 %v10133_v9, %v13631_v50  ;;  %v1948_v5 = vmul.f32 %v10133_v9, %v13632_v28 }
 0x501   :  { %7476 = vrot.lane.b32.xlu0 %v7475_v17, %s8464_s1  ;;  %7466 = vrot.lane.b32.xlu1 %v7465_v60, %s8478_s10  ;;  %v1966_v17 = vrot.slane %v10262_v45, 1  ;;  %v1902_v60 = vrot.slane %v10262_v45, 7 }
 0x502   :  { %v7485_v24 = vpack.i.bf16 %v2059_v61, %v2058_v21  ;;  %v7490_v15 = vpack.i.bf16 %v1949_v62, %v1948_v5  ;;  %v10299_v62 = vsel %vm217_vm1, %v1900_v6, %v1901_v56  ;;  %v13636_v21 = vld [vmem:[#allocation135_spill] sm:$0xff] }
 0x503   :  { %v1972_v50 = vsel %vm426_vm0, %v1966_v17, %v1967_v38  ;;  %v1973_v12 = vsel %vm426_vm0, %v1965_v46, %v1966_v17  ;;  %v10291_v28 = vsel %vm217_vm1, %v1901_v56, %v1902_v60  ;;  %v13635_v46 = vld [vmem:[#allocation136_spill] sm:$0xff]  ;;  %v1996_v17 = vmul.f32 %v1975_v32, %v13636_v21  ;;  %v13638_v5 = vld [vmem:[#allocation127_spill] sm:$0xff]  ;;  %v13639_v32 = vld [vmem:[#allocation134_spill] sm:$0xff] }
 0x504   :  { %v2077_v61 = vmul.f32 %v1972_v50, %v9770_v59  ;;  %v2029_v39 = vmul.f32 %v1973_v12, %v13635_v46  ;;  %v2076_v47 = vmul.f32 %v1973_v12, %v9766_v33  ;;  %v2028_v57 = vmul.f32 %v1974_v10, %v13638_v5  ;;  %v6882_v6 = vld [vmem:[#allocation7] sm:$0xff] }
 0x505   :  { %v7500_v0 = vpack.i.bf16 %v1997_v2, %v1996_v17  ;;  %v6890_v56 = vld [vmem:[#allocation7 + $0x40] sm:$0xff]  ;;  %2761 = vmatpush.bf16.msrb.mxu2 %v6882_v6 }
 0x506   :  { %v2579_v59 = vpack.c.bf16 %v2077_v61, %v2076_v47  ;;  %v7495_v11 = vpack.i.bf16 %v2029_v39, %v2028_v57  ;;  %v13641_v61 = vld [vmem:[#allocation139_spill] sm:$0xff]  ;;  %2810 = vmatpush.bf16.msrb.mxu3 %v6890_v56  ;;  %v13643_v57 = vld [vmem:[#allocation32_spill] sm:$0xff]  ;;  %v1903_v47 = vrot.slane %v10259_v36, 7  ;;  %v13646_v56 = vrot.slane %v9880_v4, 7 }
 0x507   :  { %v2013_v2 = vmul.f32 %v10299_v62, %v13641_v61  ;;  %v13653_v61 = vld [vmem:[#allocation129_spill] sm:$0xff] }
 0x508   :  { %7486 = vrot.lane.b32.xlu2 %v7485_v24, %s8479_s27  ;;  %v13634_v24 = vld [vmem:[#allocation42_spill] sm:$0xff] }
 0x509   :  { %7491 = vrot.lane.b32.xlu0 %v7490_v15, %s8478_s10  ;;  %7481 = vrot.lane.b32.xlu1 %v7480_v25, %s8479_s27  ;;  %v2045_v53 = vmul.f32 %v10291_v28, %v13634_v24  ;;  %v13637_v15 = vld [vmem:[#allocation128_spill] sm:$0xff]  ;;  %v2061_v24 = vmul.f32 %v10262_v45, %v13639_v32  ;;  %v13652_v32 = vld [vmem:[#allocation46_spill] sm:$0xff] }
 0x50a   :  { %v2044_v25 = vmul.f32 %v10299_v62, %v13637_v15  ;;  %v13640_v15 = vld [vmem:[#allocation39_spill] sm:$0xff] }
 0x50b   :  { %v1951_v10 = vmul.f32 %v10262_v45, %v13640_v15  ;;  %v13645_v15 = vrot.slane %v9880_v4, 1 }
 0x50c   :  { %v7505_v48 = vpack.i.bf16 %v2045_v53, %v2044_v25 }
 0x50d   :  { %v1971_v6 = vsel %vm426_vm0, %v1967_v38, %v13645_v15  ;;  %v10346_v38 = vsel %vm217_vm1, %v1902_v60, %v1903_v47  ;;  %v13648_v15 = vld [vmem:[#allocation141_spill] sm:$0xff] }
 0x510   :  { %6531 = vmatmul.msk.bf16.gmra.mxu0 %vm1307_vm2, %v2579_v59  ;;  %7501 = vrot.lane.b32.xlu2 %v7500_v0, %s8464_s1  ;;  %v13642_v59 = vld [vmem:[#allocation130_spill] sm:$0xff] }
 0x511   :  { %7506 = vrot.lane.b32.xlu0 %v7505_v48, %s8464_s1  ;;  %7496 = vrot.lane.b32.xlu1 %v7495_v11, %s8478_s10  ;;  %v2060_v0 = vmul.f32 %v10200_v34, %v13642_v59  ;;  %v1950_v48 = vmul.f32 %v10200_v34, %v13643_v57  ;;  %v13644_v11 = vld [vmem:[#allocation122_spill] sm:$0xff]  ;;  %v10335_v57 = vsel %vm217_vm1, %v1903_v47, %v13646_v56  ;;  %v13651_v59 = vld [vmem:[#allocation40_spill] sm:$0xff] }
 0x512   :  { %v2012_v53 = vmul.f32 %v10232_v52, %v13644_v11  ;;  %v13650_v56 = vld [vmem:[#allocation142_spill] sm:$0xff]  ;;  %v2046_v11 = vmul.f32 %v10346_v38, %v13652_v32  ;;  %v13654_v47 = vld [vmem:[#allocation140_spill] sm:$0xff] }
 0x513   :  { %v7515_v39 = vpack.i.bf16 %v2061_v24, %v2060_v0  ;;  %v7520_v17 = vpack.i.bf16 %v1951_v10, %v1950_v48  ;;  %v2079_v10 = vmul.f32 %v9944_v55, %v9798_v26  ;;  %v2047_v48 = vmul.f32 %v10335_v57, %v13648_v15  ;;  %v13655_v15 = vld [vmem:[#allocation51_spill] sm:$0xff] }
 0x514   :  { %v7510_v25 = vpack.i.bf16 %v2013_v2, %v2012_v53  ;;  %v13647_v2 = vld [vmem:[#allocation35_spill] sm:$0xff]  ;;  %v13649_v53 = vld [vmem:[#allocation49_spill] sm:$0xff]  ;;  %v2030_v26 = vmul.f32 %v1972_v50, %v13653_v61  ;;  %v1953_v32 = vmul.f32 %v9880_v4, %v13655_v15 }
 0x515   :  { %v1999_v0 = vmul.f32 %v1972_v50, %v13647_v2  ;;  %v7535_v46 = vpack.i.bf16 %v2047_v48, %v2046_v11  ;;  %v13656_v50 = vld [vmem:[#allocation43_spill] sm:$0xff]  ;;  %v13657_v11 = vld [vmem:[#allocation138_spill] sm:$0xff] }
 0x516   :  { %v13660_v15 = vld [vmem:[#allocation75_spill] sm:$0xff] }
 0x518   :  { %7516 = vrot.lane.b32.xlu2 %v7515_v39, %s8479_s27  ;;  %v2031_v39 = vmul.f32 %v1971_v6, %v13649_v53 }
 0x519   :  { %7521 = vrot.lane.b32.xlu0 %v7520_v17, %s8478_s10  ;;  %7511 = vrot.lane.b32.xlu1 %v7510_v25, %s8479_s27  ;;  %v2078_v17 = vmul.f32 %v1971_v6, %v13650_v56  ;;  %v1998_v25 = vmul.f32 %v1973_v12, %v13651_v59  ;;  %v2063_v12 = vmul.f32 %v9880_v4, %v13654_v47  ;;  %v13661_v47 = vld [vmem:[#allocation47_spill] sm:$0xff] }
 0x51a   :  { %v10339_v24 = vpop.permute.xlu2 %7351  ;;  %v7525_v5 = vpack.i.bf16 %v2031_v39, %v2030_v26  ;;  %v2062_v26 = vmul.f32 %v10259_v36, %v13657_v11  ;;  %v2001_v11 = vmul.f32 %v9944_v55, %v13660_v15  ;;  %v13667_v55 = vld [vmem:[#allocation41_spill] sm:$0xff] }
 0x51b   :  { %v2582_v33 = vpack.c.bf16 %v2079_v10, %v2078_v17  ;;  %v7530_v2 = vpack.i.bf16 %v1999_v0, %v1998_v25  ;;  %v2015_v10 = vmul.f32 %v10346_v38, %v13656_v50  ;;  %v13659_v0 = vld [vmem:[#allocation44_spill] sm:$0xff] }
 0x520   :  { %6532 = vmatmul.msk.bf16.gmra.mxu0 %vm1307_vm2, %v2582_v33  ;;  %7531 = vrot.lane.b32.xlu2 %v7530_v2, %s8464_s1  ;;  %v13658_v33 = vld [vmem:[#allocation48_spill] sm:$0xff] }
 0x521   :  { %7536 = vrot.lane.b32.xlu0 %v7535_v46, %s8464_s1  ;;  %7526 = vrot.lane.b32.xlu1 %v7525_v5, %s8478_s10  ;;  %v1952_v2 = vmul.f32 %v10259_v36, %v13658_v33  ;;  %v2014_v46 = vmul.f32 %v10291_v28, %v13659_v0  ;;  %v7545_v5 = vpack.i.bf16 %v2063_v12, %v2062_v26 }
 0x522   :  { %v7357_v60 = vpop.permute.xlu2 %7356  ;;  %v2000_v33 = vmul.f32 %v1971_v6, %v13661_v47  ;;  %v13662_v12 = vpack.c.bf16 %v9986_v7, %v9983_v29  ;;  %v13668_v6 = vld [vmem:[#allocation151_spill] sm:$0xff] }
 0x523   :  { %v7550_v48 = vpack.i.bf16 %v1953_v32, %v1952_v2  ;;  %v7540_v39 = vpack.i.bf16 %v2015_v10, %v2014_v46  ;;  %v13663_v32 = vld [vmem:[#allocation155_spill] sm:$0xff]  ;;  %v13664_v10 = vld [vmem:[#allocation154_spill] sm:$0xff]  ;;  %v13666_v2 = vpack.i.bf16 %v9991_v14, %v9975_v44  ;;  %v13669_v46 = vld [vmem:[#allocation53_spill] sm:$0xff]  ;;  %v7359_v15 = vunpack.i.h.bf16 %v7357_v60 }
 0x524   :  { %v7560_v50 = vpack.i.bf16 %v2001_v11, %v2000_v33  ;;  %v13665_v26 = vpack.i.bf16 %v13663_v32, %v13664_v10  ;;  %v2064_v11 = vmul.f32 %v13668_v6, %v13667_v55  ;;  %v7358_v44 = vunpack.i.l.bf16 %v7357_v60 }
 0x528   :  { %7546 = vrot.lane.b32.xlu2 %v7545_v5, %s8479_s27  ;;  %v13670_v5 = vld [vmem:[#allocation149_spill] sm:$0xff] }
 0x529   :  { %7551 = vrot.lane.b32.xlu0 %v7550_v48, %s8478_s10  ;;  %7541 = vrot.lane.b32.xlu1 %v7540_v39, %s8479_s27  ;;  %v7342_v17 = vpop.permute.xlu0 %7341  ;;  %v13671_v48 = vld [vmem:[#allocation52_spill] sm:$0xff]  ;;  %v13672_v39 = vld [vmem:[#allocation153_spill] sm:$0xff] }
 0x52a   :  { %v10375_v25 = vpop.permute.xlu2 %7386  ;;  %v7344_v47 = vunpack.i.h.bf16 %v7342_v17  ;;  %v7343_v56 = vunpack.i.l.bf16 %v7342_v17 }
 0x530   :  { %6533 = vmatmul.msk.bf16.gmra.mxu0 %vm1307_vm2, %v13662_v12  ;;  %7561 = vrot.lane.b32.xlu2 %v7560_v50, %s8464_s1  ;;  %v2065_v50 = vmul.f32 %v13670_v5, %v13669_v46  ;;  %v2017_v12 = vmul.f32 %v13672_v39, %v13671_v48 }
 0x531   :  { %7566 = vrot.lane.b32.xlu0 %v13665_v26, %s8464_s1  ;;  %7556 = vrot.lane.b32.xlu1 %v13666_v2, %s8478_s10  ;;  %v13673_v2 = vld [vmem:[#allocation54_spill] sm:$0xff] }
 0x532   :  { %v10395_v33 = vpop.permute.xlu2 %7391  ;;  %v7575_v14 = vpack.i.bf16 %v2065_v50, %v2064_v11  ;;  %v2016_v55 = vmul.f32 %v10335_v57, %v13673_v2  ;;  %v13675_v11 = vld [vmem:[#allocation23_spill] sm:$0xff] }
 0x533   :  { %v7347_v29 = vpop.permute.xlu1 %7346  ;;  %v7362_v7 = vpop.permute.xlu0 %7361  ;;  %v1923_v50 = vmul.f32 %v9900_v51, %v13675_v11  ;;  %v13748_v11 = vld [vmem:[#allocation76_spill] sm:$0xff] }
 0x534   :  { %v7349_v32 = vunpack.i.h.bf16 %v7347_v29  ;;  %v7348_v10 = vunpack.i.l.bf16 %v7347_v29  ;;  %v7364_v26 = vunpack.i.h.bf16 %v7362_v7  ;;  %v7363_v0 = vunpack.i.l.bf16 %v7362_v7  ;;  %v13674_v7 = vld [vmem:[#allocation20_spill] sm:$0xff] }
 0x535   :  { %v7570_v61 = vpack.i.bf16 %v2017_v12, %v2016_v55  ;;  %v1922_v60 = vmul.f32 %v13672_v39, %v13674_v7  ;;  %v7353_v39 = vunpack.i.l.bf16 %v10339_v24 }
 0x536   :  { %v2515_v53 = vsel %vm1307_vm2, %v9915_v43, %v7349_v32  ;;  %v2514_v46 = vsel %vm1307_vm2, %v13670_v5, %v7348_v10 }
 0x537   :  { %v2530_v48 = vsel %vm1324_vm3, %v2514_v46, %v7363_v0  ;;  %v2531_v29 = vsel %vm1324_vm3, %v2515_v53, %v7364_v26  ;;  %v2466_v55 = vsel %vm1307_vm2, %v1922_v60, %v7343_v56  ;;  %v2467_v0 = vsel %vm1307_vm2, %v1923_v50, %v7344_v47 }
 0x538   :  { %7576 = vrot.lane.b32.xlu2 %v7575_v14, %s8479_s27  ;;  %v2546_v17 = vsel %vm1341_vm4, %v2530_v48, %v7358_v44  ;;  %v2547_v43 = vsel %vm1341_vm4, %v2531_v29, %v7359_v15  ;;  %v7354_v46 = vunpack.i.h.bf16 %v10339_v24  ;;  %v2482_v15 = vsel %vm1324_vm3, %v2466_v55, %v7353_v39 }
 0x539   :  { %7571 = vrot.lane.b32.xlu1 %v7570_v61, %s8479_s27  ;;  %v2563_v5 = vpack.c.bf16 %v2547_v43, %v2546_v17  ;;  %v7394_v17 = vunpack.i.h.bf16 %v10395_v33  ;;  %v7393_v43 = vunpack.i.l.bf16 %v10395_v33 }
 0x53a   :  { %v10419_v53 = vpop.permute.xlu2 %7411  ;;  %v2483_v61 = vsel %vm1324_vm3, %v2467_v0, %v7354_v46 }
 0x53b   :  { %v7372_v51 = vpop.permute.xlu1 %7371  ;;  %v7367_v12 = vpop.permute.xlu0 %7366  ;;  %2811 = vmatmul.bf16.vlgmr.msrb.gmra.mxu3 %v2563_v5 }
 0x53c   :  { %v7374_v32 = vunpack.i.h.bf16 %v7372_v51  ;;  %v7373_v48 = vunpack.i.l.bf16 %v7372_v51  ;;  %v7369_v5 = vunpack.i.h.bf16 %v7367_v12  ;;  %v7368_v55 = vunpack.i.l.bf16 %v7367_v12 }
 0x53e   :  { %v2498_v10 = vsel %vm1341_vm4, %v2482_v15, %v7373_v48  ;;  %v2499_v56 = vsel %vm1341_vm4, %v2483_v61, %v7374_v32  ;;  %v13676_v32 = vld [vmem:[#allocation19_spill] sm:$0xff]  ;;  %v13677_v15 = vld [vmem:[#allocation22_spill] sm:$0xff] }
 0x53f   :  { %v2562_v47 = vpack.c.bf16 %v2499_v56, %v2498_v10  ;;  %v1924_v48 = vmul.f32 %v9960_v63, %v13676_v32  ;;  %v1925_v61 = vmul.f32 %v9956_v37, %v13677_v15  ;;  %v13747_v32 = vld [vmem:[#allocation66_spill] sm:$0xff] }
 0x541   :  { %2762 = vmatmul.bf16.vlgmr.msrb.gmra.mxu2 %v2562_v47  ;;  %v7389_v47 = vunpack.i.h.bf16 %v10375_v25 }
 0x542   :  { %v7427_v26 = vpop.permute.xlu2 %7426 }
 0x543   :  { %v7377_v44 = vpop.permute.xlu1 %7376  ;;  %v7382_v14 = vpop.permute.xlu0 %7381 }
 0x544   :  { %v7379_v29 = vunpack.i.h.bf16 %v7377_v44  ;;  %v7378_v24 = vunpack.i.l.bf16 %v7377_v44  ;;  %v7384_v60 = vunpack.i.h.bf16 %v7382_v14  ;;  %v7383_v50 = vunpack.i.l.bf16 %v7382_v14 }
 0x545   :  { %v7388_v44 = vunpack.i.l.bf16 %v10375_v25 }
 0x546   :  { %v2516_v0 = vsel %vm1307_vm2, %v9877_v16, %v7378_v24  ;;  %v2517_v46 = vsel %vm1307_vm2, %v9869_v31, %v7379_v29  ;;  %v2468_v16 = vsel %vm1307_vm2, %v1924_v48, %v7368_v55  ;;  %v2469_v31 = vsel %vm1307_vm2, %v1925_v61, %v7369_v5 }
 0x547   :  { %v2532_v39 = vsel %vm1324_vm3, %v2516_v0, %v7383_v50  ;;  %v2533_v51 = vsel %vm1324_vm3, %v2517_v46, %v7384_v60  ;;  %v2484_v24 = vsel %vm1324_vm3, %v2468_v16, %v7388_v44  ;;  %v2485_v60 = vsel %vm1324_vm3, %v2469_v31, %v7389_v47  ;;  %v13678_v44 = vld [vmem:[#allocation17_spill] sm:$0xff] }
 0x548   :  { %v2548_v33 = vsel %vm1341_vm4, %v2532_v39, %v7393_v43  ;;  %v2549_v12 = vsel %vm1341_vm4, %v2533_v51, %v7394_v17  ;;  %v7429_v48 = vunpack.i.h.bf16 %v7427_v26  ;;  %v7428_v61 = vunpack.i.l.bf16 %v7427_v26 }
 0x549   :  { %v2566_v10 = vpack.c.bf16 %v2549_v12, %v2548_v33 }
 0x54a   :  { %v10441_v56 = vpop.permute.xlu2 %7441 }
 0x54b   :  { %v7397_v14 = vpop.permute.xlu0 %7396  ;;  %2816 = vmatmul.bf16.gmra.mxu3 %v2566_v10  ;;  %v7402_v63 = vpop.permute.xlu1 %7401 }
 0x54c   :  { %v7404_v29 = vunpack.i.h.bf16 %v7402_v63  ;;  %v7403_v37 = vunpack.i.l.bf16 %v7402_v63  ;;  %v7399_v33 = vunpack.i.h.bf16 %v7397_v14  ;;  %v7398_v12 = vunpack.i.l.bf16 %v7397_v14 }
 0x54d   :  { %v1926_v63 = vmul.f32 %v10039_v58, %v13678_v44 }
 0x54e   :  { %v2500_v50 = vsel %vm1341_vm4, %v2484_v24, %v7403_v37  ;;  %v2501_v17 = vsel %vm1341_vm4, %v2485_v60, %v7404_v29  ;;  %v13679_v29 = vld [vmem:[#allocation18_spill] sm:$0xff] }
 0x54f   :  { %v2565_v43 = vpack.c.bf16 %v2501_v17, %v2500_v50  ;;  %v1927_v37 = vmul.f32 %v10028_v35, %v13679_v29  ;;  %v7413_v50 = vunpack.i.l.bf16 %v10419_v53 }
 0x551   :  { %2767 = vmatmul.bf16.gmra.mxu2 %v2565_v43  ;;  %v2471_v60 = vsel %vm1307_vm2, %v1927_v37, %v7399_v33 }
 0x552   :  { %v7457_v5 = vpop.permute.xlu2 %7456 }
 0x553   :  { %v7417_v55 = vpop.permute.xlu0 %7416  ;;  %v7407_v0 = vpop.permute.xlu1 %7406 }
 0x554   :  { %v7419_v46 = vunpack.i.h.bf16 %v7417_v55  ;;  %v7418_v25 = vunpack.i.l.bf16 %v7417_v55  ;;  %v7409_v39 = vunpack.i.h.bf16 %v7407_v0  ;;  %v7408_v51 = vunpack.i.l.bf16 %v7407_v0 }
 0x556   :  { %v2518_v10 = vsel %vm1307_vm2, %v9978_v54, %v7408_v51  ;;  %v2519_v16 = vsel %vm1307_vm2, %v9971_v23, %v7409_v39  ;;  %v2470_v54 = vsel %vm1307_vm2, %v1926_v63, %v7398_v12  ;;  %v7414_v23 = vunpack.i.h.bf16 %v10419_v53 }
 0x557   :  { %v2534_v31 = vsel %vm1324_vm3, %v2518_v10, %v7418_v25  ;;  %v2535_v47 = vsel %vm1324_vm3, %v2519_v16, %v7419_v46  ;;  %v2486_v0 = vsel %vm1324_vm3, %v2470_v54, %v7413_v50  ;;  %v7459_v16 = vunpack.i.h.bf16 %v7457_v5  ;;  %v13681_v50 = vld [vmem:[#allocation24_spill] sm:$0xff] }
 0x558   :  { %v2550_v26 = vsel %vm1341_vm4, %v2534_v31, %v7428_v61  ;;  %v2551_v14 = vsel %vm1341_vm4, %v2535_v47, %v7429_v48  ;;  %v2487_v46 = vsel %vm1324_vm3, %v2471_v60, %v7414_v23  ;;  %v7458_v31 = vunpack.i.l.bf16 %v7457_v5  ;;  %v13680_v60 = vld [vmem:[#allocation25_spill] sm:$0xff] }
 0x559   :  { %v2569_v24 = vpack.c.bf16 %v2551_v14, %v2550_v26  ;;  %v1928_v23 = vmul.f32 %v10112_v41, %v13680_v60 }
 0x55a   :  { %v10467_v58 = vpop.permute.xlu2 %7471 }
 0x55b   :  { %v7432_v17 = vpop.permute.xlu0 %7431  ;;  %v7422_v43 = vpop.permute.xlu1 %7421  ;;  %2821 = vmatmul.bf16.gmra.mxu3 %v2569_v24 }
 0x55c   :  { %v7424_v55 = vunpack.i.h.bf16 %v7422_v43  ;;  %v7423_v35 = vunpack.i.l.bf16 %v7422_v43  ;;  %v7434_v47 = vunpack.i.h.bf16 %v7432_v17  ;;  %v7433_v63 = vunpack.i.l.bf16 %v7432_v17 }
 0x55d   :  { %v1929_v43 = vmul.f32 %v10100_v42, %v13681_v50  ;;  %v13750_v50 = vld [vmem:[#allocation63_spill] sm:$0xff] }
 0x55e   :  { %v2502_v25 = vsel %vm1341_vm4, %v2486_v0, %v7423_v35  ;;  %v2503_v39 = vsel %vm1341_vm4, %v2487_v46, %v7424_v55  ;;  %v7443_v0 = vunpack.i.l.bf16 %v10441_v56 }
 0x55f   :  { %v2568_v51 = vpack.c.bf16 %v2503_v39, %v2502_v25  ;;  %v2473_v35 = vsel %vm1307_vm2, %v1929_v43, %v7434_v47 }
 0x561   :  { %2772 = vmatmul.bf16.gmra.mxu2 %v2568_v51 }
 0x562   :  { %v7487_v37 = vpop.permute.xlu2 %7486 }
 0x563   :  { %v7447_v48 = vpop.permute.xlu0 %7446  ;;  %v7437_v61 = vpop.permute.xlu1 %7436 }
 0x564   :  { %v7449_v53 = vunpack.i.h.bf16 %v7447_v48  ;;  %v7448_v33 = vunpack.i.l.bf16 %v7447_v48  ;;  %v7439_v12 = vunpack.i.h.bf16 %v7437_v61  ;;  %v7438_v10 = vunpack.i.l.bf16 %v7437_v61 }
 0x566   :  { %v2520_v26 = vsel %vm1307_vm2, %v10063_v18, %v7438_v10  ;;  %v2521_v14 = vsel %vm1307_vm2, %v10060_v22, %v7439_v12  ;;  %v2472_v18 = vsel %vm1307_vm2, %v1928_v23, %v7433_v63  ;;  %v7444_v22 = vunpack.i.h.bf16 %v10441_v56 }
 0x567   :  { %v2536_v24 = vsel %vm1324_vm3, %v2520_v26, %v7448_v33  ;;  %v2537_v54 = vsel %vm1324_vm3, %v2521_v14, %v7449_v53  ;;  %v2488_v42 = vsel %vm1324_vm3, %v2472_v18, %v7443_v0  ;;  %v7489_v63 = vunpack.i.h.bf16 %v7487_v37  ;;  %v13683_v18 = vld [vmem:[#allocation28_spill] sm:$0xff] }
 0x568   :  { %v2552_v5 = vsel %vm1341_vm4, %v2536_v24, %v7458_v31  ;;  %v2553_v17 = vsel %vm1341_vm4, %v2537_v54, %v7459_v16  ;;  %v2489_v51 = vsel %vm1324_vm3, %v2473_v35, %v7444_v22  ;;  %v7488_v26 = vunpack.i.l.bf16 %v7487_v37 }
 0x569   :  { %v2572_v55 = vpack.c.bf16 %v2553_v17, %v2552_v5  ;;  %v13682_v17 = vld [vmem:[#allocation21_spill] sm:$0xff]  ;;  %v1931_v35 = vmul.f32 %v10169_v8, %v13683_v18  ;;  %v13737_v18 = vld [vmem:[#allocation35_spill] sm:$0xff] }
 0x56a   :  { %v10493_v33 = vpop.permute.xlu2 %7501 }
 0x56b   :  { %v7462_v46 = vpop.permute.xlu0 %7461  ;;  %v7452_v25 = vpop.permute.xlu1 %7451  ;;  %2826 = vmatmul.bf16.gmra.mxu3 %v2572_v55  ;;  %v1930_v55 = vmul.f32 %v10181_v1, %v13682_v17 }
 0x56c   :  { %v7454_v41 = vunpack.i.h.bf16 %v7452_v25  ;;  %v7453_v39 = vunpack.i.l.bf16 %v7452_v25  ;;  %v7464_v14 = vunpack.i.h.bf16 %v7462_v46  ;;  %v7463_v24 = vunpack.i.l.bf16 %v7462_v46 }
 0x56d   :  { %v7474_v25 = vunpack.i.h.bf16 %v10467_v58 }
 0x56e   :  { %v2504_v48 = vsel %vm1341_vm4, %v2488_v42, %v7453_v39  ;;  %v2505_v61 = vsel %vm1341_vm4, %v2489_v51, %v7454_v41  ;;  %v7473_v41 = vunpack.i.l.bf16 %v10467_v58 }
 0x56f   :  { %v2571_v53 = vpack.c.bf16 %v2505_v61, %v2504_v48 }
 0x571   :  { %2777 = vmatmul.bf16.gmra.mxu2 %v2571_v53 }
 0x572   :  { %v7517_v46 = vpop.permute.xlu2 %7516 }
 0x573   :  { %v7477_v12 = vpop.permute.xlu0 %7476  ;;  %v7467_v10 = vpop.permute.xlu1 %7466 }
 0x574   :  { %v7479_v56 = vunpack.i.h.bf16 %v7477_v12  ;;  %v7478_v16 = vunpack.i.l.bf16 %v7477_v12  ;;  %v7469_v31 = vunpack.i.h.bf16 %v7467_v10  ;;  %v7468_v47 = vunpack.i.l.bf16 %v7467_v10 }
 0x576   :  { %v2522_v54 = vsel %vm1307_vm2, %v10136_v19, %v7468_v47  ;;  %v2523_v23 = vsel %vm1307_vm2, %v10133_v9, %v7469_v31  ;;  %v2474_v19 = vsel %vm1307_vm2, %v1930_v55, %v7463_v24  ;;  %v2475_v9 = vsel %vm1307_vm2, %v1931_v35, %v7464_v14  ;;  %v13684_v35 = vld [vmem:[#allocation27_spill] sm:$0xff] }
 0x577   :  { %v2538_v43 = vsel %vm1324_vm3, %v2522_v54, %v7478_v16  ;;  %v2539_v5 = vsel %vm1324_vm3, %v2523_v23, %v7479_v56  ;;  %v2490_v8 = vsel %vm1324_vm3, %v2474_v19, %v7473_v41  ;;  %v2491_v48 = vsel %vm1324_vm3, %v2475_v9, %v7474_v25 }
 0x578   :  { %v2554_v37 = vsel %vm1341_vm4, %v2538_v43, %v7488_v26  ;;  %v2555_v22 = vsel %vm1341_vm4, %v2539_v5, %v7489_v63  ;;  %v7519_v26 = vunpack.i.h.bf16 %v7517_v46  ;;  %v7518_v14 = vunpack.i.l.bf16 %v7517_v46 }
 0x579   :  { %v2575_v0 = vpack.c.bf16 %v2555_v22, %v2554_v37  ;;  %v1932_v37 = vmul.f32 %v10241_v27, %v13684_v35  ;;  %v13685_v22 = vld [vmem:[#allocation26_spill] sm:$0xff]  ;;  %v7503_v41 = vunpack.i.l.bf16 %v10493_v33 }
 0x57a   :  { %v10515_v16 = vpop.permute.xlu2 %7531 }
 0x57b   :  { %v7492_v39 = vpop.permute.xlu0 %7491  ;;  %v7482_v42 = vpop.permute.xlu1 %7481  ;;  %2831 = vmatmul.bf16.gmra.mxu3 %v2575_v0  ;;  %v1933_v0 = vmul.f32 %v10232_v52, %v13685_v22 }
 0x57c   :  { %v7484_v1 = vunpack.i.h.bf16 %v7482_v42  ;;  %v7483_v51 = vunpack.i.l.bf16 %v7482_v42  ;;  %v7494_v24 = vunpack.i.h.bf16 %v7492_v39  ;;  %v7493_v54 = vunpack.i.l.bf16 %v7492_v39 }
 0x57e   :  { %v2506_v61 = vsel %vm1341_vm4, %v2490_v8, %v7483_v51  ;;  %v2507_v53 = vsel %vm1341_vm4, %v2491_v48, %v7484_v1  ;;  %v2476_v25 = vsel %vm1307_vm2, %v1932_v37, %v7493_v54  ;;  %v13687_v37 = vld [vmem:[#allocation31_spill] sm:$0xff] }
 0x57f   :  { %v2574_v12 = vpack.c.bf16 %v2507_v53, %v2506_v61  ;;  %v2492_v52 = vsel %vm1324_vm3, %v2476_v25, %v7503_v41  ;;  %v7534_v25 = vunpack.i.h.bf16 %v10515_v16 }
 0x581   :  { %2782 = vmatmul.bf16.gmra.mxu2 %v2574_v12 }
 0x582   :  { %v7547_v8 = vpop.permute.xlu2 %7546 }
 0x583   :  { %v7507_v10 = vpop.permute.xlu0 %7506  ;;  %v7497_v56 = vpop.permute.xlu1 %7496 }
 0x584   :  { %v7509_v58 = vunpack.i.h.bf16 %v7507_v10  ;;  %v7508_v31 = vunpack.i.l.bf16 %v7507_v10  ;;  %v7499_v47 = vunpack.i.h.bf16 %v7497_v56  ;;  %v7498_v63 = vunpack.i.l.bf16 %v7497_v56 }
 0x586   :  { %v2525_v23 = vsel %vm1307_vm2, %v10200_v34, %v7499_v47  ;;  %v2524_v43 = vsel %vm1307_vm2, %v10203_v20, %v7498_v63  ;;  %v2477_v34 = vsel %vm1307_vm2, %v1933_v0, %v7494_v24  ;;  %v7504_v20 = vunpack.i.h.bf16 %v10493_v33 }
 0x587   :  { %v2540_v5 = vsel %vm1324_vm3, %v2524_v43, %v7508_v31  ;;  %v2541_v55 = vsel %vm1324_vm3, %v2525_v23, %v7509_v58  ;;  %v7549_v47 = vunpack.i.h.bf16 %v7547_v8  ;;  %v7548_v63 = vunpack.i.l.bf16 %v7547_v8 }
 0x588   :  { %v2556_v46 = vsel %vm1341_vm4, %v2540_v5, %v7518_v14  ;;  %v2557_v19 = vsel %vm1341_vm4, %v2541_v55, %v7519_v26  ;;  %v2493_v51 = vsel %vm1324_vm3, %v2477_v34, %v7504_v20  ;;  %v13686_v5 = vld [vmem:[#allocation30_spill] sm:$0xff]  ;;  %v1935_v0 = vmul.f32 %v10291_v28, %v13687_v37 }
 0x589   :  { %v2578_v9 = vpack.c.bf16 %v2557_v19, %v2556_v46  ;;  %v1934_v55 = vmul.f32 %v10299_v62, %v13686_v5  ;;  %v7533_v20 = vunpack.i.l.bf16 %v10515_v16  ;;  %v13728_v5 = vld [vmem:[#allocation137_spill] sm:$0xff] }
 0x58a   :  { %v7562_v46 = vpop.permute.xlu2 %7561 }
 0x58b   :  { %v7522_v39 = vpop.permute.xlu0 %7521  ;;  %v7512_v42 = vpop.permute.xlu1 %7511  ;;  %2836 = vmatmul.bf16.gmra.mxu3 %v2578_v9 }
 0x58c   :  { %v7514_v27 = vunpack.i.h.bf16 %v7512_v42  ;;  %v7513_v1 = vunpack.i.l.bf16 %v7512_v42  ;;  %v7524_v26 = vunpack.i.h.bf16 %v7522_v39  ;;  %v7523_v14 = vunpack.i.l.bf16 %v7522_v39 }
 0x58e   :  { %v2508_v48 = vsel %vm1341_vm4, %v2492_v52, %v7513_v1  ;;  %v2509_v61 = vsel %vm1341_vm4, %v2493_v51, %v7514_v27 }
 0x58f   :  { %v2577_v53 = vpack.c.bf16 %v2509_v61, %v2508_v48 }
 0x591   :  { %2787 = vmatmul.bf16.gmra.mxu2 %v2577_v53 }
 0x592   :  { %v7577_v8 = vpop.permute.xlu2 %7576 }
 0x593   :  { %v7537_v12 = vpop.permute.xlu0 %7536  ;;  %v7527_v10 = vpop.permute.xlu1 %7526 }
 0x594   :  { %v7539_v56 = vunpack.i.h.bf16 %v7537_v12  ;;  %v7538_v33 = vunpack.i.l.bf16 %v7537_v12  ;;  %v7529_v58 = vunpack.i.h.bf16 %v7527_v10  ;;  %v7528_v31 = vunpack.i.l.bf16 %v7527_v10 }
 0x596   :  { %v2527_v24 = vsel %vm1307_vm2, %v10259_v36, %v7529_v58  ;;  %v2526_v54 = vsel %vm1307_vm2, %v10262_v45, %v7528_v31  ;;  %v2479_v36 = vsel %vm1307_vm2, %v1935_v0, %v7524_v26  ;;  %v2478_v45 = vsel %vm1307_vm2, %v1934_v55, %v7523_v14  ;;  %v2861_v55 = vpop.f32.mrf.mxu0 }
 0x597   :  { %v2542_v23 = vsel %vm1324_vm3, %v2526_v54, %v7538_v33  ;;  %v2543_v43 = vsel %vm1324_vm3, %v2527_v24, %v7539_v56  ;;  %v2494_v28 = vsel %vm1324_vm3, %v2478_v45, %v7533_v20  ;;  %v2495_v27 = vsel %vm1324_vm3, %v2479_v36, %v7534_v25  ;;  %v13688_v24 = vld [vmem:[#allocation29_spill] sm:$0xff] }
 0x598   :  { %v2558_v19 = vsel %vm1341_vm4, %v2542_v23, %v7548_v63  ;;  %v2559_v9 = vsel %vm1341_vm4, %v2543_v43, %v7549_v47  ;;  %v7579_v56 = vunpack.i.h.bf16 %v7577_v8  ;;  %v7578_v33 = vunpack.i.l.bf16 %v7577_v8  ;;  %v13689_v23 = vld [vmem:[#allocation33_spill] sm:$0xff] }
 0x599   :  { %v2581_v34 = vpack.c.bf16 %v2559_v9, %v2558_v19  ;;  %v1936_v54 = vmul.f32 %v10346_v38, %v13688_v24  ;;  %v1937_v43 = vmul.f32 %v10335_v57, %v13689_v23  ;;  %v7564_v36 = vunpack.i.h.bf16 %v7562_v46  ;;  %v13727_v24 = vld [vmem:[#allocation45_spill] sm:$0xff] }
 0x59a   :  { %v7563_v45 = vunpack.i.l.bf16 %v7562_v46  ;;  %v6900_v46 = vld [vmem:[%s12937_s5] sm:$0xff] }
 0x59b   :  { %v7552_v41 = vpop.permute.xlu0 %7551  ;;  %v7542_v39 = vpop.permute.xlu1 %7541  ;;  %2841 = vmatmul.bf16.gmra.mxu3 %v2581_v34 }
 0x59c   :  { %v7544_v62 = vunpack.i.h.bf16 %v7542_v39  ;;  %v7543_v42 = vunpack.i.l.bf16 %v7542_v39  ;;  %v7554_v58 = vunpack.i.h.bf16 %v7552_v41  ;;  %v7553_v31 = vunpack.i.l.bf16 %v7552_v41 }
 0x59e   :  { %v2510_v1 = vsel %vm1341_vm4, %v2494_v28, %v7543_v42  ;;  %v2511_v52 = vsel %vm1341_vm4, %v2495_v27, %v7544_v62  ;;  %v2480_v34 = vsel %vm1307_vm2, %v1936_v54, %v7553_v31  ;;  %v2863_v28 = vpop.f32.mrf.mxu0 }
 0x59f   :  { %v2580_v51 = vpack.c.bf16 %v2511_v52, %v2510_v1  ;;  %v2496_v20 = vsel %vm1324_vm3, %v2480_v34, %v7563_v45 }
 0x5a1   :  { %2792 = vmatmul.bf16.gmra.mxu2 %v2580_v51 }
 0x5a3   :  { %v7567_v48 = vpop.permute.xlu0 %7566  ;;  %v7557_v61 = vpop.permute.xlu1 %7556 }
 0x5a4   :  { %v7569_v53 = vunpack.i.h.bf16 %v7567_v48  ;;  %v7568_v16 = vunpack.i.l.bf16 %v7567_v48  ;;  %v7559_v12 = vunpack.i.h.bf16 %v7557_v61  ;;  %v7558_v10 = vunpack.i.l.bf16 %v7557_v61 }
 0x5a6   :  { %v2529_v47 = vsel %vm1307_vm2, %v13668_v6, %v7559_v12  ;;  %v2528_v63 = vsel %vm1307_vm2, %v9880_v4, %v7558_v10  ;;  %v6901_v4 = vld [vmem:[%s12937_s5 + $0x8] sm:$0xff]  ;;  %v2481_v6 = vsel %vm1307_vm2, %v1937_v43, %v7554_v58  ;;  %v2866_v27 = vpop.f32.mrf.mxu0 }
 0x5a7   :  { %v2544_v26 = vsel %vm1324_vm3, %v2528_v63, %v7568_v16  ;;  %v2545_v14 = vsel %vm1324_vm3, %v2529_v47, %v7569_v53  ;;  %2971 = vmatpush.bf16.msra.mxu1 %v6901_v4  ;;  %v2497_v41 = vsel %vm1324_vm3, %v2481_v6, %v7564_v36 }
 0x5a8   :  { %v2560_v0 = vsel %vm1341_vm4, %v2544_v26, %v7578_v33  ;;  %v2561_v19 = vsel %vm1341_vm4, %v2545_v14, %v7579_v56 }
 0x5a9   :  { %v2584_v9 = vpack.c.bf16 %v2561_v19, %v2560_v0 }
 0x5ab   :  { %v7572_v38 = vpop.permute.xlu1 %7571  ;;  %2846 = vmatmul.bf16.gmra.mxu3 %v2584_v9  ;;  %2972 = vmatpush.bf16.msra.mxu1 %v6900_v46 }
 0x5ac   :  { %v7574_v57 = vunpack.i.h.bf16 %v7572_v38  ;;  %v7573_v25 = vunpack.i.l.bf16 %v7572_v38 }
 0x5ae   :  { %v2512_v39 = vsel %vm1341_vm4, %v2496_v20, %v7573_v25  ;;  %v2513_v62 = vsel %vm1341_vm4, %v2497_v41, %v7574_v57  ;;  %v2868_v51 = vpop.f32.mrf.mxu0 }
 0x5af   :  { %v2583_v42 = vpack.c.bf16 %v2513_v62, %v2512_v39 }
 0x5b1   :  { %2797 = vmatmul.bf16.gmra.mxu2 %v2583_v42 }
 0x5b6   :  { %v2871_v56 = vpop.f32.mrf.mxu0 }
 0x5be   :  { %v2812_v1 = vpop.f32.mrf.mxu3  ;;  %v2873_v14 = vpop.f32.mrf.mxu0 }
 0x5c4   :  { %v2763_v52 = vpop.f32.mrf.mxu2 }
 0x5c5   :  { %v2813_v48 = vadd.f32 %v2812_v1, %v2763_v52 }
 0x5c6   :  { %v2814_v8 = vpop.f32.mrf.mxu3  ;;  %v2876_v34 = vpop.f32.mrf.mxu0 }
 0x5c7   :  { %v2862_v53 = vadd.f32 %v2861_v55, %v2813_v48 }
 0x5c9   :  { %v2901_v33 = vmax.f32 %v2862_v53, 0.0 }
 0x5cc   :  { %v2765_v61 = vpop.f32.mrf.mxu2 }
 0x5cd   :  { %v2815_v16 = vadd.f32 %v2814_v8, %v2765_v61 }
 0x5ce   :  { %v2817_v12 = vpop.f32.mrf.mxu3  ;;  %v2878_v41 = vpop.f32.mrf.mxu0 }
 0x5cf   :  { %v2864_v10 = vadd.f32 %v2863_v28, %v2815_v16 }
 0x5d1   :  { %v2902_v58 = vmax.f32 %v2864_v10, 0.0 }
 0x5d3   :  { %v2917_v31 = vpack.c.bf16 %v2902_v58, %v2901_v33 }
 0x5d4   :  { %v2768_v47 = vpop.f32.mrf.mxu2 }
 0x5d5   :  { %6542 = vmatmul.msk.bf16.vlgmr.msra.gmra.mxu1 %vm1307_vm2, %v2917_v31  ;;  %v2818_v26 = vadd.f32 %v2817_v12, %v2768_v47 }
 0x5d6   :  { %v2819_v63 = vpop.f32.mrf.mxu3  ;;  %v2881_v52 = vpop.f32.mrf.mxu0 }
 0x5d7   :  { %v2867_v43 = vadd.f32 %v2866_v27, %v2818_v26 }
 0x5d9   :  { %v2903_v4 = vmax.f32 %v2867_v43, 0.0 }
 0x5dc   :  { %v2770_v54 = vpop.f32.mrf.mxu2 }
 0x5dd   :  { %v2820_v0 = vadd.f32 %v2819_v63, %v2770_v54 }
 0x5de   :  { %v2822_v19 = vpop.f32.mrf.mxu3 }
 0x5df   :  { %v2869_v9 = vadd.f32 %v2868_v51, %v2820_v0 }
 0x5e1   :  { %v2904_v55 = vmax.f32 %v2869_v9, 0.0 }
 0x5e3   :  { %v2918_v6 = vpack.c.bf16 %v2904_v55, %v2903_v4 }
 0x5e4   :  { %v2773_v36 = vpop.f32.mrf.mxu2 }
 0x5e5   :  { %6543 = vmatmul.msk.bf16.gmra.mxu1 %vm1307_vm2, %v2918_v6  ;;  %v2823_v38 = vadd.f32 %v2822_v19, %v2773_v36 }
 0x5e6   :  { %v2824_v45 = vpop.f32.mrf.mxu3 }
 0x5e7   :  { %v2872_v25 = vadd.f32 %v2871_v56, %v2823_v38  ;;  %v2883_v56 = vpop.f32.mrf.mxu0 }
 0x5e9   :  { %v2905_v42 = vmax.f32 %v2872_v25, 0.0 }
 0x5ec   :  { %v2775_v57 = vpop.f32.mrf.mxu2 }
 0x5ed   :  { %v2825_v20 = vadd.f32 %v2824_v45, %v2775_v57 }
 0x5ee   :  { %v2827_v39 = vpop.f32.mrf.mxu3 }
 0x5ef   :  { %v2874_v62 = vadd.f32 %v2873_v14, %v2825_v20  ;;  %v2886_v63 = vpop.f32.mrf.mxu0 }
 0x5f1   :  { %v2906_v28 = vmax.f32 %v2874_v62, 0.0 }
 0x5f3   :  { %v2919_v46 = vpack.c.bf16 %v2906_v28, %v2905_v42 }
 0x5f4   :  { %v2778_v27 = vpop.f32.mrf.mxu2 }
 0x5f5   :  { %6544 = vmatmul.msk.bf16.gmra.mxu1 %vm1307_vm2, %v2919_v46  ;;  %v2828_v51 = vadd.f32 %v2827_v39, %v2778_v27 }
 0x5f6   :  { %v2829_v1 = vpop.f32.mrf.mxu3 }
 0x5f7   :  { %v2877_v48 = vadd.f32 %v2876_v34, %v2828_v51  ;;  %v2888_v6 = vpop.f32.mrf.mxu0 }
 0x5f9   :  { %v2907_v12 = vmax.f32 %v2877_v48, 0.0 }
 0x5fc   :  { %v2780_v8 = vpop.f32.mrf.mxu2 }
 0x5fd   :  { %v2830_v61 = vadd.f32 %v2829_v1, %v2780_v8 }
 0x5fe   :  { %v2832_v53 = vpop.f32.mrf.mxu3 }
 0x5ff   :  { %v2879_v16 = vadd.f32 %v2878_v41, %v2830_v61  ;;  %v2891_v41 = vpop.f32.mrf.mxu0 }
 0x601   :  { %v2908_v10 = vmax.f32 %v2879_v16, 0.0 }
 0x603   :  { %v2920_v33 = vpack.c.bf16 %v2908_v10, %v2907_v12 }
 0x604   :  { %v2783_v58 = vpop.f32.mrf.mxu2 }
 0x605   :  { %6545 = vmatmul.msk.bf16.gmra.mxu1 %vm1307_vm2, %v2920_v33  ;;  %v2833_v47 = vadd.f32 %v2832_v53, %v2783_v58 }
 0x606   :  { %v2834_v31 = vpop.f32.mrf.mxu3 }
 0x607   :  { %v2882_v14 = vadd.f32 %v2881_v52, %v2833_v47  ;;  %v2893_v1 = vpop.f32.mrf.mxu0 }
 0x609   :  { %v2909_v19 = vmax.f32 %v2882_v14, 0.0 }
 0x60c   :  { %v2785_v26 = vpop.f32.mrf.mxu2 }
 0x60d   :  { %v2835_v54 = vadd.f32 %v2834_v31, %v2785_v26 }
 0x60e   :  { %v2837_v43 = vpop.f32.mrf.mxu3 }
 0x60f   :  { %v2884_v0 = vadd.f32 %v2883_v56, %v2835_v54  ;;  %v2896_v10 = vpop.f32.mrf.mxu0 }
 0x611   :  { %v2910_v9 = vmax.f32 %v2884_v0, 0.0 }
 0x613   :  { %v2921_v4 = vpack.c.bf16 %v2910_v9, %v2909_v19  ;;  %v6919_v9 = vld [vmem:[#allocation9 + $0x88] sm:$0xff] }
 0x614   :  { %v2788_v55 = vpop.f32.mrf.mxu2  ;;  %4050 = vmatpush.bf16.msra.mxu0 %v6919_v9 }
 0x615   :  { %6546 = vmatmul.msk.bf16.gmra.mxu1 %vm1307_vm2, %v2921_v4  ;;  %v2838_v36 = vadd.f32 %v2837_v43, %v2788_v55  ;;  %v6918_v4 = vld [vmem:[#allocation9 + $0x80] sm:$0xff] }
 0x616   :  { %v2839_v34 = vpop.f32.mrf.mxu3 }
 0x617   :  { %v2887_v38 = vadd.f32 %v2886_v63, %v2838_v36  ;;  %v2898_v26 = vpop.f32.mrf.mxu0  ;;  %v13691_v36 = vld [vmem:[#allocation152_spill] sm:$0xff] }
 0x618   :  { %4051 = vmatpush.bf16.msra.mxu0 %v6918_v4  ;;  %v13700_v4 = vld [vmem:[#allocation77_spill] sm:$0xff] }
 0x619   :  { %v2911_v39 = vmax.f32 %v2887_v38, 0.0 }
 0x61c   :  { %v2790_v45 = vpop.f32.mrf.mxu2 }
 0x61d   :  { %v2840_v57 = vadd.f32 %v2839_v34, %v2790_v45 }
 0x61e   :  { %v2842_v25 = vpop.f32.mrf.mxu3 }
 0x61f   :  { %v2889_v20 = vadd.f32 %v2888_v6, %v2840_v57  ;;  %v13690_v6 = vld [vmem:[#allocation148_spill] sm:$0xff] }
 0x621   :  { %v2912_v62 = vmax.f32 %v2889_v20, 0.0 }
 0x623   :  { %v2922_v42 = vpack.c.bf16 %v2912_v62, %v2911_v39  ;;  %v13693_v39 = vld [vmem:[#allocation85_spill] sm:$0xff] }
 0x624   :  { %v2793_v28 = vpop.f32.mrf.mxu2 }
 0x625   :  { %6547 = vmatmul.msk.bf16.gmra.mxu1 %vm1307_vm2, %v2922_v42  ;;  %v2843_v27 = vadd.f32 %v2842_v25, %v2793_v28 }
 0x626   :  { %v2844_v46 = vpop.f32.mrf.mxu3 }
 0x627   :  { %v2892_v51 = vadd.f32 %v2891_v41, %v2843_v27 }
 0x629   :  { %v2913_v61 = vmax.f32 %v2892_v51, 0.0 }
 0x62c   :  { %v2795_v52 = vpop.f32.mrf.mxu2 }
 0x62d   :  { %v2845_v8 = vadd.f32 %v2844_v46, %v2795_v52 }
 0x62e   :  { %v2847_v16 = vpop.f32.mrf.mxu3 }
 0x62f   :  { %v2894_v48 = vadd.f32 %v2893_v1, %v2845_v8 }
 0x631   :  { %v2914_v53 = vmax.f32 %v2894_v48, 0.0  ;;  %v13694_v48 = vld [vmem:[#allocation89_spill] sm:$0xff] }
 0x633   :  { %v2923_v12 = vpack.c.bf16 %v2914_v53, %v2913_v61 }
 0x634   :  { %v2798_v56 = vpop.f32.mrf.mxu2 }
 0x635   :  { %6548 = vmatmul.msk.bf16.gmra.mxu1 %vm1307_vm2, %v2923_v12  ;;  %v2848_v33 = vadd.f32 %v2847_v16, %v2798_v56  ;;  %v13695_v16 = vld [vmem:[#allocation57_spill] sm:$0xff] }
 0x636   :  { %v2849_v58 = vpop.f32.mrf.mxu3 }
 0x637   :  { %v2897_v47 = vadd.f32 %v2896_v10, %v2848_v33 }
 0x639   :  { %v2915_v54 = vmax.f32 %v2897_v47, 0.0 }
 0x63c   :  { %v2800_v31 = vpop.f32.mrf.mxu2 }
 0x63d   :  { %v2850_v63 = vadd.f32 %v2849_v58, %v2800_v31  ;;  %v13696_v31 = vld [vmem:[#allocation64_spill] sm:$0xff] }
 0x63f   :  { %v2899_v14 = vadd.f32 %v2898_v26, %v2850_v63 }
 0x641   :  { %v2916_v43 = vmax.f32 %v2899_v14, 0.0  ;;  %v13697_v14 = vld [vmem:[#allocation146_spill] sm:$0xff] }
 0x643   :  { %v2924_v0 = vpack.c.bf16 %v2916_v43, %v2915_v54  ;;  %v13698_v43 = vld [vmem:[#allocation156_spill] sm:$0xff] }
 0x645   :  { %6549 = vmatmul.msk.bf16.gmra.mxu1 %vm1307_vm2, %v2924_v0 }
 0x652   :  { %v2974_v19 = vpop.f32.mrf.mxu1 }
 0x653   :  { %v3014_v34 = vadd.f32 %v2974_v19, %v13690_v6  ;;  %v13699_v19 = vld [vmem:[#allocation84_spill] sm:$0xff] }
 0x655   :  { %v3046_v57 = vmul.f32 0.01, %v3014_v34  ;;  %vm3030_vm6 = vcmp.gt.f32.partialorder %v3014_v34, 0.0 }
 0x657   :  { %v10593_v41 = vsel %vm3030_vm6, %v3014_v34, %v3046_v57 }
 0x658   :  { %13692 = vst [vmem:[#allocation155_spill] sm:$0xff] %v10593_v41  ;;  %v13273_v46 = vrot.slane %v10593_v41, 1  ;;  %v13749_v7 = vrot.slane %v10593_v41, 1 }
 0x65a   :  { %v2976_v55 = vpop.f32.mrf.mxu1 }
 0x65b   :  { %v3015_v45 = vadd.f32 %v2976_v55, %v13691_v36 }
 0x65d   :  { %v3047_v38 = vmul.f32 0.01, %v3015_v45  ;;  %vm3031_vm5 = vcmp.gt.f32.partialorder %v3015_v45, 0.0 }
 0x65f   :  { %v10591_v25 = vsel %vm3031_vm5, %v3015_v45, %v3047_v38 }
 0x660   :  { %v3143_v42 = vrot.slane %v10591_v25, 1 }
 0x662   :  { %v2979_v20 = vpop.f32.mrf.mxu1  ;;  %v10605_v52 = vsel %vm426_vm0, %v13273_v46, %v3143_v42 }
 0x663   :  { %v3016_v62 = vadd.f32 %v2979_v20, %v13693_v39  ;;  %v10612_v53 = vmul.f32 %v10605_v52, %v13566_v13  ;;  %v13701_v39 = vld [vmem:[#allocation157_spill] sm:$0xff]  ;;  %v3175_v15 = vmul.f32 %v10605_v52, %v13747_v32 }
 0x665   :  { %vm3032_vm7 = vcmp.gt.f32.partialorder %v3016_v62, 0.0  ;;  %v3048_v28 = vmul.f32 0.01, %v3016_v62 }
 0x667   :  { %v10598_v27 = vsel %vm3032_vm7, %v3016_v62, %v3048_v28 }
 0x668   :  { %v3144_v1 = vrot.slane %v10598_v27, 1  ;;  %v3080_v29 = vrot.slane %v10598_v27, 7 }
 0x66a   :  { %v3171_v51 = vsel %vm426_vm0, %v3143_v42, %v3144_v1  ;;  %v2981_v8 = vpop.f32.mrf.mxu1  ;;  %v13702_v42 = vld [vmem:[#allocation70_spill] sm:$0xff] }
 0x66b   :  { %v3017_v61 = vadd.f32 %v2981_v8, %v13694_v48  ;;  %v10615_v12 = vmul.f32 %v3171_v51, %v13695_v16  ;;  %v3254_v47 = vmul.f32 %v3171_v51, %v13696_v31  ;;  %v10628_v9 = vmul.f32 %v3171_v51, %v13699_v19  ;;  %v13721_v31 = vld [vmem:[#allocation131_spill] sm:$0xff] }
 0x66d   :  { %vm3033_vm8 = vcmp.gt.f32.partialorder %v3017_v61, 0.0  ;;  %v3049_v10 = vmul.f32 0.01, %v3017_v61 }
 0x66f   :  { %v10619_v33 = vsel %vm3033_vm8, %v3017_v61, %v3049_v10 }
 0x670   :  { %v3145_v58 = vrot.slane %v10619_v33, 1 }
 0x672   :  { %v3170_v63 = vsel %vm426_vm0, %v3144_v1, %v3145_v58  ;;  %v2984_v26 = vpop.f32.mrf.mxu1  ;;  %v13703_v1 = vld [vmem:[#allocation78_spill] sm:$0xff] }
 0x673   :  { %v3255_v54 = vmul.f32 %v3170_v63, %v13697_v14  ;;  %v3018_v0 = vadd.f32 %v2984_v26, %v13698_v43  ;;  %v10631_v55 = vmul.f32 %v3170_v63, %v13700_v4  ;;  %v10643_v28 = vmul.f32 %v3170_v63, %v13702_v42  ;;  %v13704_v26 = vld [vmem:[#allocation121_spill] sm:$0xff]  ;;  %v13705_v63 = vld [vmem:[#allocation159_spill] sm:$0xff] }
 0x674   :  { %v13715_v42 = vld [vmem:[#allocation115_spill] sm:$0xff] }
 0x675   :  { %vm3034_vm9 = vcmp.gt.f32.partialorder %v3018_v0, 0.0  ;;  %v3050_v6 = vmul.f32 0.01, %v3018_v0  ;;  %v3752_v34 = vpack.c.bf16 %v3255_v54, %v3254_v47 }
 0x677   :  { %v10635_v45 = vsel %vm3034_vm9, %v3018_v0, %v3050_v6  ;;  %6622 = vmatmul.msk.bf16.vlgmr.msra.gmra.mxu0 %vm1307_vm2, %v3752_v34  ;;  %v13706_v0 = vld [vmem:[#allocation109_spill] sm:$0xff]  ;;  %v13707_v34 = vld [vmem:[#allocation94_spill] sm:$0xff] }
 0x678   :  { %v3146_v38 = vrot.slane %v10635_v45, 1 }
 0x67a   :  { %v2986_v57 = vpop.f32.mrf.mxu1  ;;  %v3169_v20 = vsel %vm426_vm0, %v3145_v58, %v3146_v38 }
 0x67b   :  { %v3019_v62 = vadd.f32 %v2986_v57, %v13701_v39  ;;  %v10646_v51 = vmul.f32 %v3169_v20, %v13703_v1  ;;  %v3256_v54 = vmul.f32 %v3169_v20, %v13704_v26  ;;  %v10659_v57 = vmul.f32 %v3169_v20, %v13707_v34  ;;  %v13708_v39 = vld [vmem:[#allocation79_spill] sm:$0xff]  ;;  %v13714_v26 = vld [vmem:[#allocation126_spill] sm:$0xff] }
 0x67d   :  { %vm3035_vm10 = vcmp.gt.f32.partialorder %v3019_v62, 0.0  ;;  %v3051_v8 = vmul.f32 0.01, %v3019_v62 }
 0x67f   :  { %v10650_v61 = vsel %vm3035_vm10, %v3019_v62, %v3051_v8 }
 0x680   :  { %v3147_v10 = vrot.slane %v10650_v61, 1 }
 0x682   :  { %v2989_v47 = vpop.f32.mrf.mxu1  ;;  %v3168_v58 = vsel %vm426_vm0, %v3146_v38, %v3147_v10 }
 0x683   :  { %v3020_v43 = vadd.f32 %v2989_v47, %v13705_v63  ;;  %v3257_v6 = vmul.f32 %v3168_v58, %v13706_v0  ;;  %v10662_v36 = vmul.f32 %v3168_v58, %v13708_v39  ;;  %v13709_v63 = vld [vmem:[#allocation158_spill] sm:$0xff]  ;;  %v13710_v39 = vld [vmem:[#allocation81_spill] sm:$0xff] }
 0x684   :  { %v10674_v34 = vmul.f32 %v3168_v58, %v13710_v39  ;;  %v13711_v0 = vld [vmem:[#allocation98_spill] sm:$0xff]  ;;  %v13713_v58 = vld [vmem:[#allocation161_spill] sm:$0xff] }
 0x685   :  { %vm3036_vm11 = vcmp.gt.f32.partialorder %v3020_v43, 0.0  ;;  %v3052_v62 = vmul.f32 0.01, %v3020_v43  ;;  %v3755_v8 = vpack.c.bf16 %v3257_v6, %v3256_v54 }
 0x687   :  { %v10666_v56 = vsel %vm3036_vm11, %v3020_v43, %v3052_v62  ;;  %6623 = vmatmul.msk.bf16.gmra.mxu0 %vm1307_vm2, %v3755_v8 }
 0x688   :  { %v3148_v38 = vrot.slane %v10666_v56, 1 }
 0x68a   :  { %v2991_v47 = vpop.f32.mrf.mxu1  ;;  %v3167_v20 = vsel %vm426_vm0, %v3147_v10, %v3148_v38 }
 0x68b   :  { %v3021_v46 = vadd.f32 %v2991_v47, %v13709_v63  ;;  %v10677_v54 = vmul.f32 %v3167_v20, %v13711_v0  ;;  %v13712_v47 = vld [vmem:[#allocation37_spill] sm:$0xff]  ;;  %v10690_v1 = vmul.f32 %v3167_v20, %v13614_v40 }
 0x68c   :  { %v3258_v63 = vmul.f32 %v3167_v20, %v13712_v47  ;;  %v13720_v47 = vld [vmem:[#allocation120_spill] sm:$0xff] }
 0x68d   :  { %vm3037_vm12 = vcmp.gt.f32.partialorder %v3021_v46, 0.0  ;;  %v3053_v6 = vmul.f32 0.01, %v3021_v46 }
 0x68f   :  { %v10681_v62 = vsel %vm3037_vm12, %v3021_v46, %v3053_v6 }
 0x690   :  { %v3149_v8 = vrot.slane %v10681_v62, 1 }
 0x692   :  { %v2994_v48 = vpop.f32.mrf.mxu1  ;;  %v3166_v10 = vsel %vm426_vm0, %v3148_v38, %v3149_v8 }
 0x693   :  { %v3022_v39 = vadd.f32 %v2994_v48, %v13713_v58  ;;  %v3259_v0 = vmul.f32 %v3166_v10, %v13714_v26  ;;  %v10693_v4 = vmul.f32 %v3166_v10, %v13715_v42  ;;  %v13716_v58 = vld [vmem:[#allocation160_spill] sm:$0xff]  ;;  %v10705_v42 = vmul.f32 %v3166_v10, %v13616_v30  ;;  %v13717_v26 = vld [vmem:[#allocation106_spill] sm:$0xff]  ;;  %v13718_v10 = vld [vmem:[#allocation163_spill] sm:$0xff] }
 0x694   :  { %v13719_v30 = vld [vmem:[#allocation72_spill] sm:$0xff] }
 0x695   :  { %vm3038_vm13 = vcmp.gt.f32.partialorder %v3022_v39, 0.0  ;;  %v3054_v46 = vmul.f32 0.01, %v3022_v39  ;;  %v3758_v6 = vpack.c.bf16 %v3259_v0, %v3258_v63 }
 0x697   :  { %v10697_v19 = vsel %vm3038_vm13, %v3022_v39, %v3054_v46  ;;  %6624 = vmatmul.msk.bf16.gmra.mxu0 %vm1307_vm2, %v3758_v6 }
 0x698   :  { %v3150_v48 = vrot.slane %v10697_v19, 1 }
 0x69a   :  { %v2996_v38 = vpop.f32.mrf.mxu1  ;;  %v3165_v20 = vsel %vm426_vm0, %v3149_v8, %v3150_v48 }
 0x69b   :  { %v3023_v40 = vadd.f32 %v2996_v38, %v13716_v58  ;;  %v10708_v0 = vmul.f32 %v3165_v20, %v13717_v26  ;;  %v3260_v38 = vmul.f32 %v3165_v20, %v9649_v3  ;;  %v10721_v14 = vmul.f32 %v3165_v20, %v13720_v47  ;;  %v13724_v3 = vld [vmem:[#allocation123_spill] sm:$0xff] }
 0x69d   :  { %vm3039_vm14 = vcmp.gt.f32.partialorder %v3023_v40, 0.0  ;;  %v3055_v63 = vmul.f32 0.01, %v3023_v40 }
 0x69f   :  { %v10712_v46 = vsel %vm3039_vm14, %v3023_v40, %v3055_v63 }
 0x6a0   :  { %v3151_v6 = vrot.slane %v10712_v46, 1 }
 0x6a2   :  { %v2999_v43 = vpop.f32.mrf.mxu1  ;;  %v3164_v8 = vsel %vm426_vm0, %v3150_v48, %v3151_v6 }
 0x6a3   :  { %v3024_v58 = vadd.f32 %v2999_v43, %v13718_v10  ;;  %v3261_v26 = vmul.f32 %v3164_v8, %v13719_v30  ;;  %v10724_v16 = vmul.f32 %v3164_v8, %v13721_v31  ;;  %v13722_v10 = vld [vmem:[#allocation162_spill] sm:$0xff]  ;;  %v13723_v31 = vld [vmem:[#allocation124_spill] sm:$0xff] }
 0x6a4   :  { %v10736_v30 = vmul.f32 %v3164_v8, %v13723_v31  ;;  %v13726_v8 = vld [vmem:[#allocation165_spill] sm:$0xff] }
 0x6a5   :  { %vm3040_vm15 = vcmp.gt.f32.partialorder %v3024_v58, 0.0  ;;  %v3056_v40 = vmul.f32 0.01, %v3024_v58  ;;  %v3761_v63 = vpack.c.bf16 %v3261_v26, %v3260_v38 }
 0x6a7   :  { %v10728_v13 = vsel %vm3040_vm15, %v3024_v58, %v3056_v40  ;;  %6625 = vmatmul.msk.bf16.gmra.mxu0 %vm1307_vm2, %v3761_v63 }
 0x6a8   :  { %v3152_v43 = vrot.slane %v10728_v13, 1 }
 0x6aa   :  { %v3001_v48 = vpop.f32.mrf.mxu1  ;;  %v3163_v20 = vsel %vm426_vm0, %v3151_v6, %v3152_v43 }
 0x6ab   :  { %v3025_v47 = vadd.f32 %v3001_v48, %v13722_v10  ;;  %v10739_v26 = vmul.f32 %v3163_v20, %v13724_v3  ;;  %v13725_v48 = vld [vmem:[#allocation73_spill] sm:$0xff]  ;;  %v10752_v23 = vmul.f32 %v3163_v20, %v13636_v21  ;;  %v13729_v21 = vld [vmem:[#allocation164_spill] sm:$0xff] }
 0x6ac   :  { %v3262_v10 = vmul.f32 %v3163_v20, %v13725_v48  ;;  %v13730_v48 = vld [vmem:[#allocation127_spill] sm:$0xff] }
 0x6ad   :  { %vm3041_vm5 = vcmp.gt.f32.partialorder %v3025_v47, 0.0  ;;  %v3057_v38 = vmul.f32 0.01, %v3025_v47 }
 0x6af   :  { %v10743_v40 = vsel %vm3041_vm5, %v3025_v47, %v3057_v38  ;;  %v6909_v47 = vld [vmem:[#allocation9 + $0x38] sm:$0xff] }
 0x6b0   :  { %v3153_v63 = vrot.slane %v10743_v40, 1  ;;  %3946 = vmatpush.bf16.msra.mxu2 %v6909_v47 }
 0x6b2   :  { %v3004_v39 = vpop.f32.mrf.mxu1  ;;  %v3162_v6 = vsel %vm426_vm0, %v3152_v43, %v3153_v63 }
 0x6b3   :  { %v3026_v31 = vadd.f32 %v3004_v39, %v13726_v8  ;;  %v3263_v3 = vmul.f32 %v3162_v6, %v13727_v24  ;;  %v10755_v37 = vmul.f32 %v3162_v6, %v13728_v5  ;;  %v6917_v8 = vld [vmem:[#allocation9 + $0x78] sm:$0xff] }
 0x6b4   :  { %3995 = vmatpush.bf16.msra.mxu3 %v6917_v8 }
 0x6b5   :  { %vm3042_vm6 = vcmp.gt.f32.partialorder %v3026_v31, 0.0  ;;  %v3058_v38 = vmul.f32 0.01, %v3026_v31  ;;  %v3764_v58 = vpack.c.bf16 %v3263_v3, %v3262_v10  ;;  %v10767_v3 = vmul.f32 %v3162_v6, %v13730_v48  ;;  %v13732_v10 = vld [vmem:[#allocation136_spill] sm:$0xff]  ;;  %v13734_v6 = vld [vmem:[#allocation147_spill] sm:$0xff]  ;;  %v13735_v48 = vld [vmem:[#allocation62_spill] sm:$0xff] }
 0x6b7   :  { %v10759_v43 = vsel %vm3042_vm6, %v3026_v31, %v3058_v38  ;;  %6626 = vmatmul.msk.bf16.gmra.mxu0 %vm1307_vm2, %v3764_v58  ;;  %13731 = vst [vmem:[#allocation154_spill] sm:$0xff] %v10767_v3 }
 0x6b8   :  { %v3154_v39 = vrot.slane %v10759_v43, 1 }
 0x6ba   :  { %v3006_v20 = vpop.f32.mrf.mxu1  ;;  %v3161_v5 = vsel %vm426_vm0, %v3153_v63, %v3154_v39 }
 0x6bb   :  { %v3027_v24 = vadd.f32 %v3006_v20, %v13729_v21  ;;  %v10770_v35 = vmul.f32 %v3161_v5, %v13732_v10  ;;  %v13733_v21 = vld [vmem:[#allocation50_spill] sm:$0xff]  ;;  %v10783_v17 = vmul.f32 %v3161_v5, %v13651_v59 }
 0x6bc   :  { %v3264_v8 = vmul.f32 %v3161_v5, %v13733_v21  ;;  %v3079_v5 = vrot.slane %v10591_v25, 7 }
 0x6bd   :  { %vm3043_vm7 = vcmp.gt.f32.partialorder %v3027_v24, 0.0  ;;  %v3059_v31 = vmul.f32 0.01, %v3027_v24  ;;  %13736 = vst [vmem:[#allocation151_spill] sm:$0xff] %v10783_v17 }
 0x6bf   :  { %v10774_v47 = vsel %vm3043_vm7, %v3027_v24, %v3059_v31  ;;  %v6908_v24 = vld [vmem:[#allocation9 + $0x30] sm:$0xff] }
 0x6c0   :  { %v3155_v38 = vrot.slane %v10774_v47, 1  ;;  %3947 = vmatpush.bf16.msra.mxu2 %v6908_v24  ;;  %v13742_v24 = vld [vmem:[#allocation49_spill] sm:$0xff] }
 0x6c2   :  { %v3009_v22 = vpop.f32.mrf.mxu1  ;;  %v3160_v63 = vsel %vm426_vm0, %v3154_v39, %v3155_v38 }
 0x6c3   :  { %v3028_v20 = vadd.f32 %v3009_v22, %v13734_v6  ;;  %v3265_v10 = vmul.f32 %v3160_v63, %v13735_v48  ;;  %v10786_v60 = vmul.f32 %v3160_v63, %v13737_v18  ;;  %v6916_v6 = vld [vmem:[#allocation9 + $0x70] sm:$0xff]  ;;  %v13739_v48 = vld [vmem:[#allocation150_spill] sm:$0xff] }
 0x6c4   :  { %3996 = vmatpush.bf16.msra.mxu3 %v6916_v6 }
 0x6c5   :  { %13738 = vst [vmem:[#allocation149_spill] sm:$0xff] %v10786_v60  ;;  %vm3044_vm8 = vcmp.gt.f32.partialorder %v3028_v20, 0.0  ;;  %v3060_v31 = vmul.f32 0.01, %v3028_v20  ;;  %v3767_v58 = vpack.c.bf16 %v3265_v10, %v3264_v8  ;;  %v13740_v8 = vld [vmem:[#allocation129_spill] sm:$0xff] }
 0x6c6   :  { %v10799_v21 = vmul.f32 %v3160_v63, %v13740_v8  ;;  %v13745_v63 = vld [vmem:[#allocation34_spill] sm:$0xff] }
 0x6c7   :  { %v10790_v39 = vsel %vm3044_vm8, %v3028_v20, %v3060_v31  ;;  %6627 = vmatmul.msk.bf16.gmra.mxu0 %vm1307_vm2, %v3767_v58  ;;  %v3078_v58 = vrot.slane %v10593_v41, 7 }
 0x6c8   :  { %v3156_v22 = vrot.slane %v10790_v39, 1  ;;  %13741 = vst [vmem:[#allocation153_spill] sm:$0xff] %v10799_v21  ;;  %v13751_v21 = vld [vmem:[#allocation142_spill] sm:$0xff] }
 0x6c9   :  { %v10809_v44 = vsel %vm217_vm1, %v3078_v58, %v3079_v5 }
 0x6ca   :  { %v3011_v59 = vpop.f32.mrf.mxu1  ;;  %v3159_v18 = vsel %vm426_vm0, %v3155_v38, %v3156_v22 }
 0x6cb   :  { %v3029_v10 = vadd.f32 %v3011_v59, %v13739_v48  ;;  %v10802_v20 = vmul.f32 %v3159_v18, %v13742_v24  ;;  %v13746_v24 = vld [vmem:[#allocation61_spill] sm:$0xff]  ;;  %v3266_v32 = vmul.f32 %v3159_v18, %v13751_v21 }
 0x6cc   :  { %v3127_v8 = vmul.f32 %v10593_v41, %v13746_v24  ;;  %v13757_v21 = vld [vmem:[#allocation65_spill] sm:$0xff] }
 0x6cd   :  { %13743 = vst [vmem:[#allocation148_spill] sm:$0xff] %v10802_v20  ;;  %vm3045_vm9 = vcmp.gt.f32.partialorder %v3029_v10, 0.0  ;;  %v3061_v31 = vmul.f32 0.01, %v3029_v10  ;;  %v13752_v20 = vld [vmem:[#allocation143_spill] sm:$0xff] }
 0x6cf   :  { %v10811_v38 = vsel %vm3045_vm9, %v3029_v10, %v3061_v31  ;;  %v3191_v10 = vmul.f32 %v10809_v44, %v13748_v11  ;;  %v13753_v11 = vld [vmem:[#allocation68_spill] sm:$0xff] }
 0x6d0   :  { %13744 = vst [vmem:[#allocation152_spill] sm:$0xff] %v10811_v38  ;;  %v3093_v59 = vrot.slane %v10811_v38, 7  ;;  %v3157_v48 = vrot.slane %v10811_v38, 1  ;;  %v3126_v6 = vmul.f32 %v10811_v38, %v13745_v63 }
 0x6d2   :  { %v7580_v31 = vpack.i.bf16 %v3127_v8, %v3126_v6  ;;  %v3173_v2 = vsel %vm426_vm0, %v3157_v48, %v13749_v7  ;;  %v3158_v63 = vsel %vm426_vm0, %v3156_v22, %v3157_v48  ;;  %v10833_v24 = vsel %vm217_vm1, %v3093_v59, %v3078_v58  ;;  %v6907_v6 = vld [vmem:[#allocation9 + $0x28] sm:$0xff]  ;;  %v13755_v58 = vld [vmem:[#allocation47_spill] sm:$0xff] }
 0x6d3   :  { %v3174_v38 = vmul.f32 %v3173_v2, %v13750_v50  ;;  %v3267_v17 = vmul.f32 %v3158_v63, %v13752_v20  ;;  %v3190_v8 = vmul.f32 %v10833_v24, %v13753_v11  ;;  %v13754_v7 = vrot.slane %v10790_v39, 7  ;;  %v13756_v50 = vld [vmem:[#allocation75_spill] sm:$0xff]  ;;  %3948 = vmatpush.bf16.msra.mxu2 %v6907_v6 }
 0x6d4   :  { %7581 = vrot.lane.b32.xlu0 %v7580_v31, %s8478_s10  ;;  %v10848_v48 = vmul.f32 %v3159_v18, %v13755_v58  ;;  %v10851_v41 = vmul.f32 %v3158_v63, %v13756_v50  ;;  %v10854_v20 = vmul.f32 %v3158_v63, %v13757_v21  ;;  %v10858_v31 = vsel %vm217_vm1, %v3079_v5, %v3080_v29  ;;  %v13759_v63 = vld [vmem:[#allocation92_spill] sm:$0xff]  ;;  %v6915_v5 = vld [vmem:[#allocation9 + $0x68] sm:$0xff]  ;;  %v13763_v50 = vld [vmem:[#allocation67_spill] sm:$0xff] }
 0x6d5   :  { %v10845_v22 = vsel %vm217_vm1, %v13754_v7, %v3093_v59  ;;  %v7590_v60 = vpack.i.bf16 %v3175_v15, %v3174_v38  ;;  %v3770_v11 = vpack.c.bf16 %v3267_v17, %v3266_v32  ;;  %v7600_v3 = vpack.i.bf16 %v3191_v10, %v3190_v8  ;;  %v13758_v7 = vld [vmem:[#allocation55_spill] sm:$0xff]  ;;  %v13760_v32 = vld [vmem:[#allocation74_spill] sm:$0xff]  ;;  %3997 = vmatpush.bf16.msra.mxu3 %v6915_v5 }
 0x6d6   :  { %v10863_v18 = vmul.f32 %v3173_v2, %v13758_v7  ;;  %v10869_v15 = vmul.f32 %v10845_v22, %v13759_v63  ;;  %v10873_v17 = vmul.f32 %v10833_v24, %v13760_v32  ;;  %v13761_v10 = vld [vmem:[#allocation58_spill] sm:$0xff]  ;;  %v3081_v59 = vrot.slane %v10619_v33, 7  ;;  %v13765_v38 = vld [vmem:[#allocation59_spill] sm:$0xff] }
 0x6d7   :  { %7591 = vrot.lane.b32.xlu1 %v7590_v60, %s8464_s1  ;;  %6628 = vmatmul.msk.bf16.gmra.mxu0 %vm1307_vm2, %v3770_v11  ;;  %v3223_v8 = vmul.f32 %v10858_v31, %v13761_v10  ;;  %v13762_v60 = vld [vmem:[#allocation60_spill] sm:$0xff]  ;;  %v3222_v58 = vmul.f32 %v10809_v44, %v13763_v50  ;;  %v3238_v63 = vmul.f32 %v10591_v25, %v13765_v38  ;;  %v13766_v11 = vld [vmem:[#allocation82_spill] sm:$0xff]  ;;  %v13767_v10 = vld [vmem:[#allocation93_spill] sm:$0xff]  ;;  %v3082_v50 = vrot.slane %v10635_v45, 7 }
 0x6d8   :  { %7601 = vrot.lane.b32.xlu2 %v7600_v3, %s8479_s27  ;;  %v3239_v6 = vmul.f32 %v10598_v27, %v13762_v60  ;;  %v13764_v3 = vpack.i.bf16 %v10615_v12, %v10612_v53  ;;  %v3129_v21 = vmul.f32 %v10598_v27, %v13766_v11  ;;  %v10898_v5 = vsel %vm217_vm1, %v3080_v29, %v3081_v59  ;;  %v13768_v12 = vld [vmem:[#allocation144_spill] sm:$0xff]  ;;  %v13771_v29 = vld [vmem:[#allocation87_spill] sm:$0xff] }
 0x6d9   :  { %v7595_v32 = vpack.i.bf16 %v3223_v8, %v3222_v58  ;;  %v3128_v53 = vmul.f32 %v10591_v25, %v13767_v10  ;;  %v3192_v11 = vmul.f32 %v10858_v31, %v13771_v29  ;;  %v13780_v10 = vld [vmem:[#allocation105_spill] sm:$0xff] }
 0x6da   :  { %v7605_v7 = vpack.i.bf16 %v3239_v6, %v3238_v63  ;;  %v13769_v63 = vld [vmem:[#allocation96_spill] sm:$0xff]  ;;  %v13770_v6 = vld [vmem:[#allocation145_spill] sm:$0xff] }
 0x6db   :  { %v7610_v58 = vpack.i.bf16 %v3129_v21, %v3128_v53  ;;  %v3193_v8 = vmul.f32 %v10898_v5, %v13769_v63  ;;  %v13772_v21 = vpack.i.bf16 %v10631_v55, %v10628_v9  ;;  %v13773_v53 = vld [vmem:[#allocation71_spill] sm:$0xff]  ;;  %v13776_v9 = vpack.i.bf16 %v10646_v51, %v10643_v28  ;;  %v13777_v55 = vld [vmem:[#allocation80_spill] sm:$0xff] }
 0x6dc   :  { %7586 = vrot.lane.b32.xlu0 %v13764_v3, %s8478_s10  ;;  %v3268_v3 = vmul.f32 %v3173_v2, %v13768_v12  ;;  %v10914_v2 = vsel %vm217_vm1, %v3081_v59, %v3082_v50  ;;  %v3083_v59 = vrot.slane %v10650_v61, 7  ;;  %v13779_v12 = vld [vmem:[#allocation102_spill] sm:$0xff]  ;;  %v3084_v51 = vrot.slane %v10666_v56, 7 }
 0x6dd   :  { %v7620_v38 = vpack.i.bf16 %v3193_v8, %v3192_v11  ;;  %v13775_v8 = vld [vmem:[#allocation69_spill] sm:$0xff]  ;;  %v3130_v28 = vmul.f32 %v10619_v33, %v13779_v12  ;;  %v13788_v12 = vld [vmem:[#allocation110_spill] sm:$0xff] }
 0x6df   :  { %7596 = vrot.lane.b32.xlu1 %v7595_v32, %s8464_s1  ;;  %v3269_v32 = vmul.f32 %v10605_v52, %v13770_v6  ;;  %v6914_v52 = vld [vmem:[#allocation9 + $0x60] sm:$0xff] }
 0x6e0   :  { %7606 = vrot.lane.b32.xlu2 %v7605_v7, %s8479_s27  ;;  %v6906_v7 = vld [vmem:[#allocation9 + $0x20] sm:$0xff]  ;;  %3998 = vmatpush.bf16.msra.mxu3 %v6914_v52  ;;  %v10940_v52 = vsel %vm217_vm1, %v3082_v50, %v3083_v59  ;;  %v10953_v50 = vsel %vm217_vm1, %v3083_v59, %v3084_v51  ;;  %v13785_v59 = vld [vmem:[#allocation88_spill] sm:$0xff] }
 0x6e1   :  { %v3773_v60 = vpack.c.bf16 %v3269_v32, %v3268_v3  ;;  %3949 = vmatpush.bf16.msra.mxu2 %v6906_v7  ;;  %v13774_v3 = vld [vmem:[#allocation86_spill] sm:$0xff]  ;;  %v3224_v32 = vmul.f32 %v10898_v5, %v13775_v8 }
 0x6e2   :  { %v3241_v11 = vmul.f32 %v10635_v45, %v13774_v3 }
 0x6e4   :  { %7611 = vrot.lane.b32.xlu0 %v7610_v58, %s8478_s10  ;;  %v3225_v58 = vmul.f32 %v10914_v2, %v13773_v53 }
 0x6e7   :  { %7616 = vrot.lane.b32.xlu1 %v13772_v21, %s8464_s1  ;;  %6629 = vmatmul.msk.bf16.gmra.mxu0 %vm1307_vm2, %v3773_v60  ;;  %v7630_v60 = vpack.i.bf16 %v3225_v58, %v3224_v32  ;;  %v13778_v21 = vld [vmem:[#allocation91_spill] sm:$0xff]  ;;  %v3195_v58 = vmul.f32 %v10940_v52, %v13780_v10  ;;  %v13784_v10 = vld [vmem:[#allocation101_spill] sm:$0xff] }
 0x6e8   :  { %7621 = vrot.lane.b32.xlu2 %v7620_v38, %s8479_s27  ;;  %v3240_v38 = vmul.f32 %v10619_v33, %v13777_v55  ;;  %v3131_v6 = vmul.f32 %v10635_v45, %v13778_v21  ;;  %v3133_v21 = vmul.f32 %v10666_v56, %v13788_v12 }
 0x6ea   :  { %v7635_v7 = vpack.i.bf16 %v3241_v11, %v3240_v38  ;;  %v13781_v11 = vld [vmem:[#allocation95_spill] sm:$0xff]  ;;  %v6905_v38 = vld [vmem:[#allocation9 + $0x18] sm:$0xff] }
 0x6eb   :  { %v3194_v32 = vmul.f32 %v10914_v2, %v13781_v11  ;;  %3950 = vmatpush.bf16.msra.mxu2 %v6905_v38  ;;  %v3243_v11 = vmul.f32 %v10666_v56, %v13784_v10 }
 0x6ec   :  { %7626 = vrot.lane.b32.xlu0 %v13776_v9, %s8478_s10  ;;  %v7640_v9 = vpack.i.bf16 %v3131_v6, %v3130_v28  ;;  %v6913_v6 = vld [vmem:[#allocation9 + $0x58] sm:$0xff] }
 0x6ed   :  { %v13783_v28 = vld [vmem:[#allocation100_spill] sm:$0xff]  ;;  %3999 = vmatpush.bf16.msra.mxu3 %v6913_v6 }
 0x6ef   :  { %7631 = vrot.lane.b32.xlu1 %v7630_v60, %s8464_s1  ;;  %v7650_v60 = vpack.i.bf16 %v3195_v58, %v3194_v32  ;;  %v3085_v58 = vrot.slane %v10681_v62, 7  ;;  %v3226_v32 = vmul.f32 %v10940_v52, %v13785_v59  ;;  %v13789_v59 = vld [vmem:[#allocation103_spill] sm:$0xff] }
 0x6f0   :  { %7636 = vrot.lane.b32.xlu2 %v7635_v7, %s8479_s27  ;;  %v13782_v7 = vpack.i.bf16 %v10662_v36, %v10659_v57  ;;  %v13786_v36 = vpack.i.bf16 %v10677_v54, %v10674_v34  ;;  %v13787_v57 = vld [vmem:[#allocation90_spill] sm:$0xff]  ;;  %v3132_v34 = vmul.f32 %v10650_v61, %v13789_v59  ;;  %v3086_v54 = vrot.slane %v10697_v19, 7  ;;  %v13798_v59 = vld [vmem:[#allocation112_spill] sm:$0xff] }
 0x6f1   :  { %v3242_v38 = vmul.f32 %v10650_v61, %v13787_v57  ;;  %v10978_v6 = vsel %vm217_vm1, %v3084_v51, %v3085_v58  ;;  %v13790_v57 = vld [vmem:[#allocation118_spill] sm:$0xff]  ;;  %v3135_v12 = vmul.f32 %v10697_v19, %v13798_v59 }
 0x6f2   :  { %v10991_v51 = vsel %vm217_vm1, %v3085_v58, %v3086_v54  ;;  %v13795_v58 = vld [vmem:[#allocation97_spill] sm:$0xff] }
 0x6f4   :  { %7641 = vrot.lane.b32.xlu0 %v7640_v9, %s8478_s10  ;;  %v3227_v9 = vmul.f32 %v10953_v50, %v13783_v28 }
 0x6f7   :  { %7646 = vrot.lane.b32.xlu1 %v13782_v7, %s8464_s1  ;;  %v7665_v7 = vpack.i.bf16 %v3243_v11, %v3242_v38  ;;  %v3197_v11 = vmul.f32 %v10978_v6, %v13790_v57  ;;  %v6904_v38 = vld [vmem:[#allocation9 + $0x10] sm:$0xff] }
 0x6f8   :  { %7651 = vrot.lane.b32.xlu2 %v7650_v60, %s8479_s27  ;;  %v7660_v60 = vpack.i.bf16 %v3227_v9, %v3226_v32  ;;  %v13791_v9 = vld [vmem:[#allocation116_spill] sm:$0xff]  ;;  %3951 = vmatpush.bf16.msra.mxu2 %v6904_v38  ;;  %v13794_v57 = vld [vmem:[#allocation107_spill] sm:$0xff] }
 0x6f9   :  { %v3196_v32 = vmul.f32 %v10953_v50, %v13791_v9  ;;  %v3245_v9 = vmul.f32 %v10697_v19, %v13794_v57 }
 0x6fc   :  { %7656 = vrot.lane.b32.xlu0 %v13786_v36, %s8478_s10  ;;  %v7670_v36 = vpack.i.bf16 %v3133_v21, %v3132_v34  ;;  %v6912_v21 = vld [vmem:[#allocation9 + $0x50] sm:$0xff]  ;;  %v13793_v34 = vld [vmem:[#allocation108_spill] sm:$0xff] }
 0x6fd   :  { %4000 = vmatpush.bf16.msra.mxu3 %v6912_v21 }
 0x6ff   :  { %7661 = vrot.lane.b32.xlu1 %v7660_v60, %s8464_s1  ;;  %v7680_v60 = vpack.i.bf16 %v3197_v11, %v3196_v32  ;;  %v3087_v11 = vrot.slane %v10712_v46, 7  ;;  %v3228_v32 = vmul.f32 %v10978_v6, %v13795_v58  ;;  %v13799_v58 = vld [vmem:[#allocation117_spill] sm:$0xff] }
 0x700   :  { %7666 = vrot.lane.b32.xlu2 %v7665_v7, %s8479_s27  ;;  %v13792_v7 = vpack.i.bf16 %v10693_v4, %v10690_v1  ;;  %v13796_v4 = vpack.i.bf16 %v10708_v0, %v10705_v42  ;;  %v13797_v1 = vld [vmem:[#allocation99_spill] sm:$0xff]  ;;  %v3134_v42 = vmul.f32 %v10681_v62, %v13799_v58  ;;  %v3088_v0 = vrot.slane %v10728_v13, 7  ;;  %v13808_v58 = vld [vmem:[#allocation114_spill] sm:$0xff] }
 0x701   :  { %v3244_v38 = vmul.f32 %v10681_v62, %v13797_v1  ;;  %v11016_v21 = vsel %vm217_vm1, %v3086_v54, %v3087_v11  ;;  %v13800_v1 = vld [vmem:[#allocation133_spill] sm:$0xff]  ;;  %v3137_v59 = vmul.f32 %v10728_v13, %v13808_v58  ;;  %v13819_v58 = vld [vmem:[#allocation39_spill] sm:$0xff] }
 0x702   :  { %v11029_v54 = vsel %vm217_vm1, %v3087_v11, %v3088_v0  ;;  %v13805_v11 = vld [vmem:[#allocation111_spill] sm:$0xff] }
 0x704   :  { %7671 = vrot.lane.b32.xlu0 %v7670_v36, %s8478_s10  ;;  %v3229_v36 = vmul.f32 %v10991_v51, %v13793_v34 }
 0x707   :  { %7676 = vrot.lane.b32.xlu1 %v13792_v7, %s8464_s1  ;;  %v7695_v7 = vpack.i.bf16 %v3245_v9, %v3244_v38  ;;  %v3199_v9 = vmul.f32 %v11016_v21, %v13800_v1  ;;  %v6903_v38 = vld [vmem:[#allocation9 + $0x8] sm:$0xff]  ;;  %v13804_v1 = vld [vmem:[#allocation132_spill] sm:$0xff] }
 0x708   :  { %7681 = vrot.lane.b32.xlu2 %v7680_v60, %s8479_s27  ;;  %v7690_v60 = vpack.i.bf16 %v3229_v36, %v3228_v32  ;;  %v13801_v36 = vld [vmem:[#allocation119_spill] sm:$0xff]  ;;  %3952 = vmatpush.bf16.msra.mxu2 %v6903_v38 }
 0x709   :  { %v3198_v32 = vmul.f32 %v10991_v51, %v13801_v36  ;;  %v3247_v36 = vmul.f32 %v10728_v13, %v13804_v1  ;;  %v13833_v1 = vld [vmem:[#allocation138_spill] sm:$0xff] }
 0x70c   :  { %7686 = vrot.lane.b32.xlu0 %v13796_v4, %s8478_s10  ;;  %v7700_v4 = vpack.i.bf16 %v3135_v12, %v3134_v42  ;;  %v6911_v12 = vld [vmem:[#allocation9 + $0x48] sm:$0xff]  ;;  %v13803_v42 = vld [vmem:[#allocation125_spill] sm:$0xff] }
 0x70d   :  { %4001 = vmatpush.bf16.msra.mxu3 %v6911_v12 }
 0x70f   :  { %7691 = vrot.lane.b32.xlu1 %v7690_v60, %s8464_s1  ;;  %v7710_v60 = vpack.i.bf16 %v3199_v9, %v3198_v32  ;;  %v3089_v9 = vrot.slane %v10743_v40, 7  ;;  %v3230_v32 = vmul.f32 %v11016_v21, %v13805_v11  ;;  %v13809_v11 = vld [vmem:[#allocation36_spill] sm:$0xff] }
 0x710   :  { %7696 = vrot.lane.b32.xlu2 %v7695_v7, %s8479_s27  ;;  %v13802_v7 = vpack.i.bf16 %v10724_v16, %v10721_v14  ;;  %v13806_v16 = vpack.i.bf16 %v10739_v26, %v10736_v30  ;;  %v13807_v14 = vld [vmem:[#allocation113_spill] sm:$0xff]  ;;  %v3136_v30 = vmul.f32 %v10712_v46, %v13809_v11  ;;  %v3090_v26 = vrot.slane %v10759_v43, 7 }
 0x711   :  { %v3246_v38 = vmul.f32 %v10712_v46, %v13807_v14  ;;  %v11054_v12 = vsel %vm217_vm1, %v3088_v0, %v3089_v9  ;;  %v13810_v14 = vld [vmem:[#allocation139_spill] sm:$0xff] }
 0x712   :  { %v11067_v0 = vsel %vm217_vm1, %v3089_v9, %v3090_v26 }
 0x714   :  { %7701 = vrot.lane.b32.xlu0 %v7700_v4, %s8478_s10  ;;  %v3231_v4 = vmul.f32 %v11029_v54, %v13803_v42 }
 0x717   :  { %7706 = vrot.lane.b32.xlu1 %v13802_v7, %s8464_s1  ;;  %v7725_v7 = vpack.i.bf16 %v3247_v36, %v3246_v38  ;;  %v3201_v36 = vmul.f32 %v11054_v12, %v13810_v14  ;;  %v6902_v38 = vld [vmem:[#allocation9] sm:$0xff]  ;;  %v13814_v14 = vld [vmem:[#allocation134_spill] sm:$0xff] }
 0x718   :  { %7711 = vrot.lane.b32.xlu2 %v7710_v60, %s8479_s27  ;;  %v7720_v60 = vpack.i.bf16 %v3231_v4, %v3230_v32  ;;  %v13811_v4 = vld [vmem:[#allocation122_spill] sm:$0xff]  ;;  %3953 = vmatpush.bf16.msra.mxu2 %v6902_v38 }
 0x719   :  { %v3200_v32 = vmul.f32 %v11029_v54, %v13811_v4  ;;  %v3249_v4 = vmul.f32 %v10759_v43, %v13814_v14  ;;  %v13816_v38 = vld [vmem:[#allocation154_spill] sm:$0xff] }
 0x71c   :  { %7716 = vrot.lane.b32.xlu0 %v13806_v16, %s8478_s10  ;;  %v7730_v16 = vpack.i.bf16 %v3137_v59, %v3136_v30  ;;  %v13813_v59 = vld [vmem:[#allocation42_spill] sm:$0xff] }
 0x71d   :  { %v3233_v30 = vmul.f32 %v11067_v0, %v13813_v59  ;;  %v3139_v59 = vmul.f32 %v10759_v43, %v13819_v58 }
 0x71f   :  { %7721 = vrot.lane.b32.xlu1 %v7720_v60, %s8464_s1  ;;  %v7740_v60 = vpack.i.bf16 %v3201_v36, %v3200_v32  ;;  %v3091_v36 = vrot.slane %v10774_v47, 7  ;;  %v13815_v32 = vld [vmem:[#allocation128_spill] sm:$0xff] }
 0x720   :  { %7726 = vrot.lane.b32.xlu2 %v7725_v7, %s8479_s27  ;;  %v13812_v7 = vpack.i.bf16 %v10755_v37, %v10752_v23  ;;  %v3232_v9 = vmul.f32 %v11054_v12, %v13815_v32  ;;  %v13817_v37 = vpack.i.bf16 %v10770_v35, %v13816_v38  ;;  %v13818_v23 = vld [vmem:[#allocation130_spill] sm:$0xff]  ;;  %v13821_v32 = vld [vmem:[#allocation43_spill] sm:$0xff] }
 0x721   :  { %v11092_v14 = vsel %vm217_vm1, %v3090_v26, %v3091_v36 }
 0x724   :  { %7731 = vrot.lane.b32.xlu0 %v7730_v16, %s8478_s10  ;;  %v6910_v16 = vld [vmem:[#allocation9 + $0x40] sm:$0xff] }
 0x725   :  { %4002 = vmatpush.bf16.msra.mxu3 %v6910_v16  ;;  %v13820_v16 = vld [vmem:[#allocation32_spill] sm:$0xff] }
 0x726   :  { %v3138_v35 = vmul.f32 %v10743_v40, %v13820_v16  ;;  %v13825_v16 = vld [vmem:[#allocation151_spill] sm:$0xff] }
 0x727   :  { %7736 = vrot.lane.b32.xlu1 %v13812_v7, %s8464_s1  ;;  %v7750_v7 = vpack.i.bf16 %v3233_v30, %v3232_v9  ;;  %v3203_v30 = vmul.f32 %v11092_v14, %v13821_v32  ;;  %v13828_v32 = vld [vmem:[#allocation140_spill] sm:$0xff] }
 0x728   :  { %7741 = vrot.lane.b32.xlu2 %v7740_v60, %s8479_s27  ;;  %v3248_v60 = vmul.f32 %v10743_v40, %v13818_v23 }
 0x72a   :  { %v7755_v11 = vpack.i.bf16 %v3249_v4, %v3248_v60  ;;  %v13822_v4 = vld [vmem:[#allocation44_spill] sm:$0xff] }
 0x72b   :  { %v3202_v9 = vmul.f32 %v11067_v0, %v13822_v4 }
 0x72c   :  { %7746 = vrot.lane.b32.xlu0 %v13817_v37, %s8478_s10  ;;  %v7760_v37 = vpack.i.bf16 %v3139_v59, %v3138_v35  ;;  %v13827_v59 = vld [vmem:[#allocation141_spill] sm:$0xff] }
 0x72d   :  { %v7770_v60 = vpack.i.bf16 %v3203_v30, %v3202_v9  ;;  %v3251_v30 = vmul.f32 %v10790_v39, %v13828_v32  ;;  %v13829_v9 = vld [vmem:[#allocation46_spill] sm:$0xff]  ;;  %v13835_v32 = vld [vmem:[#allocation48_spill] sm:$0xff] }
 0x72e   :  { %v3234_v4 = vmul.f32 %v11092_v14, %v13829_v9  ;;  %v3140_v9 = vmul.f32 %v10774_v47, %v13835_v32 }
 0x72f   :  { %7751 = vrot.lane.b32.xlu1 %v7750_v7, %s8464_s1  ;;  %v13823_v7 = vrot.slane %v10790_v39, 7 }
 0x730   :  { %7756 = vrot.lane.b32.xlu2 %v7755_v11, %s8479_s27  ;;  %v13824_v11 = vld [vmem:[#allocation149_spill] sm:$0xff] }
 0x731   :  { %v11106_v26 = vsel %vm217_vm1, %v3091_v36, %v13823_v7  ;;  %v13826_v58 = vpack.i.bf16 %v13824_v11, %v13825_v16  ;;  %v13830_v36 = vld [vmem:[#allocation148_spill] sm:$0xff]  ;;  %v13831_v7 = vld [vmem:[#allocation153_spill] sm:$0xff]  ;;  %v13834_v11 = vld [vmem:[#allocation51_spill] sm:$0xff] }
 0x732   :  { %v7602_v38 = vpop.permute.xlu2 %7601  ;;  %v3235_v35 = vmul.f32 %v11106_v26, %v13827_v59  ;;  %v13832_v23 = vpack.i.bf16 %v13830_v36, %v13831_v7  ;;  %v3141_v59 = vmul.f32 %v10790_v39, %v13834_v11  ;;  %v13836_v36 = vld [vmem:[#allocation52_spill] sm:$0xff] }
 0x733   :  { %v7604_v34 = vunpack.i.h.bf16 %v7602_v38  ;;  %v7603_v10 = vunpack.i.l.bf16 %v7602_v38 }
 0x734   :  { %7761 = vrot.lane.b32.xlu0 %v7760_v37, %s8478_s10  ;;  %v7780_v16 = vpack.i.bf16 %v3235_v35, %v3234_v4  ;;  %v7790_v57 = vpack.i.bf16 %v3141_v59, %v3140_v9  ;;  %v13837_v4 = vld [vmem:[#allocation54_spill] sm:$0xff]  ;;  %v13839_v59 = vld [vmem:[#allocation20_spill] sm:$0xff] }
 0x735   :  { %v3204_v35 = vmul.f32 %v11106_v26, %v13837_v4  ;;  %v3110_v9 = vmul.f32 %v10845_v22, %v13839_v59 }
 0x737   :  { %7766 = vrot.lane.b32.xlu1 %v13826_v58, %s8464_s1  ;;  %v3250_v58 = vmul.f32 %v10774_v47, %v13833_v1 }
 0x738   :  { %7771 = vrot.lane.b32.xlu2 %v7770_v60, %s8479_s27 }
 0x739   :  { %v7785_v60 = vpack.i.bf16 %v3251_v30, %v3250_v58 }
 0x73a   :  { %v7607_v37 = vpop.permute.xlu2 %7606 }
 0x73c   :  { %7776 = vrot.lane.b32.xlu0 %v13832_v23, %s8478_s10  ;;  %v3205_v23 = vmul.f32 %v10845_v22, %v13836_v36  ;;  %v13840_v36 = vld [vmem:[#allocation23_spill] sm:$0xff] }
 0x73e   :  { %v7800_v7 = vpack.i.bf16 %v3205_v23, %v3204_v35  ;;  %v13841_v23 = vld [vmem:[#allocation41_spill] sm:$0xff]  ;;  %v13842_v35 = vld [vmem:[#allocation152_spill] sm:$0xff] }
 0x73f   :  { %7781 = vrot.lane.b32.xlu1 %v7780_v16, %s8464_s1 }
 0x740   :  { %7786 = vrot.lane.b32.xlu2 %v7785_v60, %s8479_s27  ;;  %v13838_v60 = vpack.i.bf16 %v10851_v41, %v10848_v48 }
 0x742   :  { %v11131_v42 = vpop.permute.xlu2 %7621 }
 0x744   :  { %7791 = vrot.lane.b32.xlu0 %v7790_v57, %s8478_s10  ;;  %v3111_v57 = vmul.f32 %v10833_v24, %v13840_v36  ;;  %v13843_v24 = vpack.i.bf16 %v10863_v18, %v10854_v20 }
 0x746   :  { %v7582_v30 = vpop.permute.xlu0 %7581 }
 0x747   :  { %v7584_v58 = vunpack.i.h.bf16 %v7582_v30  ;;  %v7583_v16 = vunpack.i.l.bf16 %v7582_v30  ;;  %7796 = vrot.lane.b32.xlu1 %v13838_v60, %s8464_s1  ;;  %v3252_v30 = vmul.f32 %v13842_v35, %v13841_v23  ;;  %v13845_v60 = vld [vmem:[#allocation155_spill] sm:$0xff] }
 0x748   :  { %7801 = vrot.lane.b32.xlu2 %v7800_v7, %s8479_s27 }
 0x749   :  { %v7592_v32 = vpop.permute.xlu1 %7591  ;;  %v3654_v41 = vsel %vm1307_vm2, %v3110_v9, %v7583_v16  ;;  %v3655_v48 = vsel %vm1307_vm2, %v3111_v57, %v7584_v58 }
 0x74a   :  { %v7594_v11 = vunpack.i.h.bf16 %v7592_v32  ;;  %v7593_v4 = vunpack.i.l.bf16 %v7592_v32  ;;  %v11147_v1 = vpop.permute.xlu2 %7636  ;;  %v13844_v32 = vld [vmem:[#allocation53_spill] sm:$0xff] }
 0x74b   :  { %v3253_v36 = vmul.f32 %v13845_v60, %v13844_v32  ;;  %v13904_v32 = vld [vmem:[#allocation62_spill] sm:$0xff] }
 0x74c   :  { %v3670_v7 = vsel %vm1324_vm3, %v3654_v41, %v7593_v4  ;;  %v3671_v22 = vsel %vm1324_vm3, %v3655_v48, %v7594_v11  ;;  %7806 = vrot.lane.b32.xlu0 %v13843_v24, %s8478_s10  ;;  %v13846_v11 = vpack.i.bf16 %v10873_v17, %v10869_v15 }
 0x74d   :  { %v3686_v59 = vsel %vm1341_vm4, %v3670_v7, %v7603_v10  ;;  %v3687_v38 = vsel %vm1341_vm4, %v3671_v22, %v7604_v34  ;;  %v7815_v9 = vpack.i.bf16 %v3253_v36, %v3252_v30  ;;  %v7609_v10 = vunpack.i.h.bf16 %v7607_v37 }
 0x74e   :  { %v3750_v23 = vpack.c.bf16 %v3687_v38, %v3686_v59  ;;  %v7587_v16 = vpop.permute.xlu0 %7586  ;;  %v7608_v34 = vunpack.i.l.bf16 %v7607_v37  ;;  %v13847_v37 = vld [vmem:[#allocation22_spill] sm:$0xff] }
 0x74f   :  { %v7589_v58 = vunpack.i.h.bf16 %v7587_v16  ;;  %v7588_v57 = vunpack.i.l.bf16 %v7587_v16  ;;  %7811 = vrot.lane.b32.xlu1 %v13846_v11, %s8464_s1  ;;  %v3113_v38 = vmul.f32 %v10858_v31, %v13847_v37  ;;  %v7623_v11 = vunpack.i.l.bf16 %v11131_v42 }
 0x750   :  { %7816 = vrot.lane.b32.xlu2 %v7815_v9, %s8479_s27  ;;  %3954 = vmatmul.bf16.vlgmr.msra.gmra.mxu2 %v3750_v23 }
 0x751   :  { %v7597_v20 = vpop.permute.xlu1 %7596  ;;  %v3703_v36 = vsel %vm1307_vm2, %v10591_v25, %v7589_v58  ;;  %v3702_v59 = vsel %vm1307_vm2, %v13845_v60, %v7588_v57  ;;  %v13848_v25 = vld [vmem:[#allocation19_spill] sm:$0xff]  ;;  %v7624_v57 = vunpack.i.h.bf16 %v11131_v42 }
 0x752   :  { %v7599_v18 = vunpack.i.h.bf16 %v7597_v20  ;;  %v7598_v4 = vunpack.i.l.bf16 %v7597_v20  ;;  %v11168_v41 = vpop.permute.xlu2 %7651  ;;  %v3112_v16 = vmul.f32 %v10809_v44, %v13848_v25 }
 0x754   :  { %v3718_v30 = vsel %vm1324_vm3, %v3702_v59, %v7598_v4  ;;  %v3719_v15 = vsel %vm1324_vm3, %v3703_v36, %v7599_v18 }
 0x755   :  { %v3734_v17 = vsel %vm1341_vm4, %v3718_v30, %v7608_v34  ;;  %v3735_v23 = vsel %vm1341_vm4, %v3719_v15, %v7609_v10 }
 0x756   :  { %v3751_v48 = vpack.c.bf16 %v3735_v23, %v3734_v17  ;;  %v7612_v7 = vpop.permute.xlu0 %7611 }
 0x757   :  { %v7614_v22 = vunpack.i.h.bf16 %v7612_v7  ;;  %v7613_v24 = vunpack.i.l.bf16 %v7612_v7  ;;  %v7638_v7 = vunpack.i.l.bf16 %v11147_v1 }
 0x758   :  { %4003 = vmatmul.bf16.vlgmr.msra.gmra.mxu3 %v3751_v48  ;;  %v7639_v48 = vunpack.i.h.bf16 %v11147_v1  ;;  %v13849_v1 = vld [vmem:[#allocation18_spill] sm:$0xff] }
 0x759   :  { %v7617_v60 = vpop.permute.xlu1 %7616  ;;  %v3657_v20 = vsel %vm1307_vm2, %v3113_v38, %v7614_v22  ;;  %v3656_v18 = vsel %vm1307_vm2, %v3112_v16, %v7613_v24 }
 0x75a   :  { %v7619_v9 = vunpack.i.h.bf16 %v7617_v60  ;;  %v7618_v58 = vunpack.i.l.bf16 %v7617_v60  ;;  %v7667_v34 = vpop.permute.xlu2 %7666 }
 0x75c   :  { %v3672_v4 = vsel %vm1324_vm3, %v3656_v18, %v7618_v58  ;;  %v3673_v10 = vsel %vm1324_vm3, %v3657_v20, %v7619_v9 }
 0x75d   :  { %v3688_v31 = vsel %vm1341_vm4, %v3672_v4, %v7623_v11  ;;  %v3689_v44 = vsel %vm1341_vm4, %v3673_v10, %v7624_v57  ;;  %v13850_v4 = vld [vmem:[#allocation17_spill] sm:$0xff] }
 0x75e   :  { %v7627_v36 = vpop.permute.xlu0 %7626  ;;  %v3753_v59 = vpack.c.bf16 %v3689_v44, %v3688_v31 }
 0x75f   :  { %v7629_v30 = vunpack.i.h.bf16 %v7627_v36  ;;  %v7628_v15 = vunpack.i.l.bf16 %v7627_v36  ;;  %v7654_v36 = vunpack.i.h.bf16 %v11168_v41 }
 0x760   :  { %3959 = vmatmul.bf16.gmra.mxu2 %v3753_v59  ;;  %v7653_v59 = vunpack.i.l.bf16 %v11168_v41 }
 0x761   :  { %v7632_v17 = vpop.permute.xlu1 %7631  ;;  %v3705_v22 = vsel %vm1307_vm2, %v10619_v33, %v7629_v30  ;;  %v3704_v24 = vsel %vm1307_vm2, %v10598_v27, %v7628_v15  ;;  %v3115_v33 = vmul.f32 %v10914_v2, %v13849_v1  ;;  %v3114_v27 = vmul.f32 %v10898_v5, %v13850_v4  ;;  %v13894_v4 = vld [vmem:[#allocation45_spill] sm:$0xff] }
 0x762   :  { %v7634_v42 = vunpack.i.h.bf16 %v7632_v17  ;;  %v7633_v23 = vunpack.i.l.bf16 %v7632_v17  ;;  %v7682_v58 = vpop.permute.xlu2 %7681  ;;  %v13897_v1 = vld [vmem:[#allocation137_spill] sm:$0xff] }
 0x764   :  { %v3720_v38 = vsel %vm1324_vm3, %v3704_v24, %v7633_v23  ;;  %v3721_v16 = vsel %vm1324_vm3, %v3705_v22, %v7634_v42 }
 0x765   :  { %v3736_v60 = vsel %vm1341_vm4, %v3720_v38, %v7638_v7  ;;  %v3737_v9 = vsel %vm1341_vm4, %v3721_v16, %v7639_v48 }
 0x766   :  { %v7642_v57 = vpop.permute.xlu0 %7641  ;;  %v3754_v11 = vpack.c.bf16 %v3737_v9, %v3736_v60  ;;  %v7669_v60 = vunpack.i.h.bf16 %v7667_v34  ;;  %v7668_v9 = vunpack.i.l.bf16 %v7667_v34  ;;  %v13851_v34 = vld [vmem:[#allocation24_spill] sm:$0xff] }
 0x767   :  { %v7644_v20 = vunpack.i.h.bf16 %v7642_v57  ;;  %v7643_v18 = vunpack.i.l.bf16 %v7642_v57 }
 0x768   :  { %4008 = vmatmul.bf16.gmra.mxu3 %v3754_v11 }
 0x769   :  { %v7647_v10 = vpop.permute.xlu1 %7646  ;;  %v3659_v30 = vsel %vm1307_vm2, %v3115_v33, %v7644_v20  ;;  %v3658_v15 = vsel %vm1307_vm2, %v3114_v27, %v7643_v18 }
 0x76a   :  { %v7649_v31 = vunpack.i.h.bf16 %v7647_v10  ;;  %v7648_v44 = vunpack.i.l.bf16 %v7647_v10  ;;  %v7697_v24 = vpop.permute.xlu2 %7696 }
 0x76c   :  { %v3674_v17 = vsel %vm1324_vm3, %v3658_v15, %v7648_v44  ;;  %v3675_v42 = vsel %vm1324_vm3, %v3659_v30, %v7649_v31 }
 0x76d   :  { %v3690_v2 = vsel %vm1341_vm4, %v3674_v17, %v7653_v59  ;;  %v3691_v23 = vsel %vm1341_vm4, %v3675_v42, %v7654_v36  ;;  %v3117_v59 = vmul.f32 %v10953_v50, %v13851_v34  ;;  %v13893_v34 = vld [vmem:[#allocation73_spill] sm:$0xff] }
 0x76e   :  { %v7657_v5 = vpop.permute.xlu0 %7656  ;;  %v3756_v48 = vpack.c.bf16 %v3691_v23, %v3690_v2  ;;  %v7684_v2 = vunpack.i.h.bf16 %v7682_v58  ;;  %v7683_v23 = vunpack.i.l.bf16 %v7682_v58 }
 0x76f   :  { %v7659_v7 = vunpack.i.h.bf16 %v7657_v5  ;;  %v7658_v22 = vunpack.i.l.bf16 %v7657_v5 }
 0x770   :  { %3964 = vmatmul.bf16.gmra.mxu2 %v3756_v48 }
 0x771   :  { %v7662_v38 = vpop.permute.xlu1 %7661  ;;  %v3707_v57 = vsel %vm1307_vm2, %v10650_v61, %v7659_v7  ;;  %v3706_v11 = vsel %vm1307_vm2, %v10635_v45, %v7658_v22  ;;  %v13852_v61 = vld [vmem:[#allocation25_spill] sm:$0xff] }
 0x772   :  { %v7664_v41 = vunpack.i.h.bf16 %v7662_v38  ;;  %v7663_v16 = vunpack.i.l.bf16 %v7662_v38  ;;  %v3116_v30 = vmul.f32 %v10940_v52, %v13852_v61  ;;  %v7712_v15 = vpop.permute.xlu2 %7711 }
 0x774   :  { %v3722_v20 = vsel %vm1324_vm3, %v3706_v11, %v7663_v16  ;;  %v3723_v18 = vsel %vm1324_vm3, %v3707_v57, %v7664_v41  ;;  %v7699_v11 = vunpack.i.h.bf16 %v7697_v24 }
 0x775   :  { %v3738_v33 = vsel %vm1341_vm4, %v3722_v20, %v7668_v9  ;;  %v3739_v27 = vsel %vm1341_vm4, %v3723_v18, %v7669_v60  ;;  %v7698_v20 = vunpack.i.l.bf16 %v7697_v24  ;;  %v13853_v24 = vld [vmem:[#allocation28_spill] sm:$0xff] }
 0x776   :  { %v7672_v10 = vpop.permute.xlu0 %7671  ;;  %v3757_v31 = vpack.c.bf16 %v3739_v27, %v3738_v33 }
 0x777   :  { %v7674_v44 = vunpack.i.h.bf16 %v7672_v10  ;;  %v7673_v36 = vunpack.i.l.bf16 %v7672_v10 }
 0x778   :  { %4013 = vmatmul.bf16.gmra.mxu3 %v3757_v31 }
 0x779   :  { %v7677_v45 = vpop.permute.xlu1 %7676  ;;  %v3661_v5 = vsel %vm1307_vm2, %v3117_v59, %v7674_v44  ;;  %v3660_v48 = vsel %vm1307_vm2, %v3116_v30, %v7673_v36 }
 0x77a   :  { %v7679_v17 = vunpack.i.h.bf16 %v7677_v45  ;;  %v7678_v42 = vunpack.i.l.bf16 %v7677_v45  ;;  %v7727_v27 = vpop.permute.xlu2 %7726 }
 0x77c   :  { %v3676_v7 = vsel %vm1324_vm3, %v3660_v48, %v7678_v42  ;;  %v3677_v22 = vsel %vm1324_vm3, %v3661_v5, %v7679_v17  ;;  %v13854_v42 = vld [vmem:[#allocation21_spill] sm:$0xff]  ;;  %v7714_v48 = vunpack.i.h.bf16 %v7712_v15 }
 0x77d   :  { %v3692_v38 = vsel %vm1341_vm4, %v3676_v7, %v7683_v23  ;;  %v3693_v50 = vsel %vm1341_vm4, %v3677_v22, %v7684_v2  ;;  %v7713_v7 = vunpack.i.l.bf16 %v7712_v15 }
 0x77e   :  { %v7687_v41 = vpop.permute.xlu0 %7686  ;;  %v3759_v52 = vpack.c.bf16 %v3693_v50, %v3692_v38 }
 0x77f   :  { %v7689_v16 = vunpack.i.h.bf16 %v7687_v41  ;;  %v7688_v60 = vunpack.i.l.bf16 %v7687_v41 }
 0x780   :  { %3969 = vmatmul.bf16.gmra.mxu2 %v3759_v52 }
 0x781   :  { %v7692_v9 = vpop.permute.xlu1 %7691  ;;  %v3709_v18 = vsel %vm1307_vm2, %v10681_v62, %v7689_v16  ;;  %v3708_v33 = vsel %vm1307_vm2, %v10666_v56, %v7688_v60  ;;  %v3119_v62 = vmul.f32 %v10991_v51, %v13853_v24  ;;  %v3118_v56 = vmul.f32 %v10978_v6, %v13854_v42 }
 0x782   :  { %v7694_v57 = vunpack.i.h.bf16 %v7692_v9  ;;  %v7693_v58 = vunpack.i.l.bf16 %v7692_v9  ;;  %v7742_v16 = vpop.permute.xlu2 %7741 }
 0x784   :  { %v3724_v10 = vsel %vm1324_vm3, %v3708_v33, %v7693_v58  ;;  %v3725_v31 = vsel %vm1324_vm3, %v3709_v18, %v7694_v57  ;;  %v7728_v18 = vunpack.i.l.bf16 %v7727_v27 }
 0x785   :  { %v3740_v44 = vsel %vm1341_vm4, %v3724_v10, %v7698_v20  ;;  %v3741_v36 = vsel %vm1341_vm4, %v3725_v31, %v7699_v11  ;;  %v7729_v20 = vunpack.i.h.bf16 %v7727_v27  ;;  %v13855_v27 = vld [vmem:[#allocation26_spill] sm:$0xff] }
 0x786   :  { %v7702_v59 = vpop.permute.xlu0 %7701  ;;  %v3760_v30 = vpack.c.bf16 %v3741_v36, %v3740_v44 }
 0x787   :  { %v7704_v45 = vunpack.i.h.bf16 %v7702_v59  ;;  %v7703_v17 = vunpack.i.l.bf16 %v7702_v59 }
 0x788   :  { %4018 = vmatmul.bf16.gmra.mxu3 %v3760_v30 }
 0x789   :  { %v7707_v2 = vpop.permute.xlu1 %7706  ;;  %v3663_v22 = vsel %vm1307_vm2, %v3119_v62, %v7704_v45  ;;  %v3662_v38 = vsel %vm1307_vm2, %v3118_v56, %v7703_v17 }
 0x78a   :  { %v7709_v23 = vunpack.i.h.bf16 %v7707_v2  ;;  %v7708_v5 = vunpack.i.l.bf16 %v7707_v2  ;;  %v7757_v56 = vpop.permute.xlu2 %7756  ;;  %v13856_v2 = vld [vmem:[#allocation27_spill] sm:$0xff] }
 0x78c   :  { %v3678_v50 = vsel %vm1324_vm3, %v3662_v38, %v7708_v5  ;;  %v3679_v41 = vsel %vm1324_vm3, %v3663_v22, %v7709_v23  ;;  %v7743_v22 = vunpack.i.l.bf16 %v7742_v16 }
 0x78d   :  { %v3694_v52 = vsel %vm1341_vm4, %v3678_v50, %v7713_v7  ;;  %v3695_v51 = vsel %vm1341_vm4, %v3679_v41, %v7714_v48  ;;  %v7744_v7 = vunpack.i.h.bf16 %v7742_v16 }
 0x78e   :  { %v7717_v60 = vpop.permute.xlu0 %7716  ;;  %v3762_v6 = vpack.c.bf16 %v3695_v51, %v3694_v52 }
 0x78f   :  { %v7719_v9 = vunpack.i.h.bf16 %v7717_v60  ;;  %v7718_v57 = vunpack.i.l.bf16 %v7717_v60 }
 0x790   :  { %3974 = vmatmul.bf16.gmra.mxu2 %v3762_v6 }
 0x791   :  { %v7722_v58 = vpop.permute.xlu1 %7721  ;;  %v3711_v33 = vsel %vm1307_vm2, %v10712_v46, %v7719_v9  ;;  %v3710_v10 = vsel %vm1307_vm2, %v10697_v19, %v7718_v57  ;;  %v3121_v46 = vmul.f32 %v11029_v54, %v13855_v27  ;;  %v3120_v19 = vmul.f32 %v11016_v21, %v13856_v2  ;;  %v13889_v27 = vld [vmem:[#allocation120_spill] sm:$0xff] }
 0x792   :  { %v7724_v15 = vunpack.i.h.bf16 %v7722_v58  ;;  %v7723_v11 = vunpack.i.l.bf16 %v7722_v58  ;;  %v7772_v58 = vpop.permute.xlu2 %7771 }
 0x794   :  { %v3726_v31 = vsel %vm1324_vm3, %v3710_v10, %v7723_v11  ;;  %v3727_v44 = vsel %vm1324_vm3, %v3711_v33, %v7724_v15  ;;  %v7759_v11 = vunpack.i.h.bf16 %v7757_v56 }
 0x795   :  { %v3742_v36 = vsel %vm1341_vm4, %v3726_v31, %v7728_v18  ;;  %v3743_v59 = vsel %vm1341_vm4, %v3727_v44, %v7729_v20  ;;  %v7758_v20 = vunpack.i.l.bf16 %v7757_v56 }
 0x796   :  { %v7732_v30 = vpop.permute.xlu0 %7731  ;;  %v3763_v45 = vpack.c.bf16 %v3743_v59, %v3742_v36 }
 0x797   :  { %v7734_v17 = vunpack.i.h.bf16 %v7732_v30  ;;  %v7733_v62 = vunpack.i.l.bf16 %v7732_v30 }
 0x798   :  { %4023 = vmatmul.bf16.gmra.mxu3 %v3763_v45 }
 0x799   :  { %v7737_v23 = vpop.permute.xlu1 %7736  ;;  %v3665_v38 = vsel %vm1307_vm2, %v3121_v46, %v7734_v17  ;;  %v3664_v50 = vsel %vm1307_vm2, %v3120_v19, %v7733_v62  ;;  %v13857_v62 = vld [vmem:[#allocation31_spill] sm:$0xff] }
 0x79a   :  { %v7739_v5 = vunpack.i.h.bf16 %v7737_v23  ;;  %v7738_v48 = vunpack.i.l.bf16 %v7737_v23  ;;  %v3123_v56 = vmul.f32 %v11067_v0, %v13857_v62  ;;  %v13888_v62 = vld [vmem:[#allocation72_spill] sm:$0xff] }
 0x79c   :  { %v3680_v41 = vsel %vm1324_vm3, %v3664_v50, %v7738_v48  ;;  %v3681_v52 = vsel %vm1324_vm3, %v3665_v38, %v7739_v5  ;;  %v7774_v5 = vunpack.i.h.bf16 %v7772_v58  ;;  %v7773_v48 = vunpack.i.l.bf16 %v7772_v58  ;;  %v7787_v38 = vpop.permute.xlu2 %7786 }
 0x79d   :  { %v3696_v51 = vsel %vm1341_vm4, %v3680_v41, %v7743_v22  ;;  %v3697_v54 = vsel %vm1341_vm4, %v3681_v52, %v7744_v7  ;;  %v7788_v58 = vunpack.i.l.bf16 %v7787_v38 }
 0x79e   :  { %v7747_v60 = vpop.permute.xlu0 %7746  ;;  %v3765_v6 = vpack.c.bf16 %v3697_v54, %v3696_v51 }
 0x79f   :  { %v7749_v21 = vunpack.i.h.bf16 %v7747_v60  ;;  %v7748_v9 = vunpack.i.l.bf16 %v7747_v60 }
 0x7a0   :  { %3979 = vmatmul.bf16.gmra.mxu2 %v3765_v6 }
 0x7a1   :  { %v7752_v57 = vpop.permute.xlu1 %7751  ;;  %v3713_v18 = vsel %vm1307_vm2, %v10743_v40, %v7749_v21  ;;  %v3712_v33 = vsel %vm1307_vm2, %v10728_v13, %v7748_v9  ;;  %v13858_v40 = vld [vmem:[#allocation30_spill] sm:$0xff] }
 0x7a2   :  { %v7754_v16 = vunpack.i.h.bf16 %v7752_v57  ;;  %v7753_v15 = vunpack.i.l.bf16 %v7752_v57  ;;  %v3122_v46 = vmul.f32 %v11054_v12, %v13858_v40  ;;  %v7789_v57 = vunpack.i.h.bf16 %v7787_v38  ;;  %v4053_v38 = vpop.f32.mrf.mxu0 }
 0x7a4   :  { %v3728_v10 = vsel %vm1324_vm3, %v3712_v33, %v7753_v15  ;;  %v3729_v31 = vsel %vm1324_vm3, %v3713_v18, %v7754_v16 }
 0x7a5   :  { %v3744_v44 = vsel %vm1341_vm4, %v3728_v10, %v7758_v20  ;;  %v3745_v36 = vsel %vm1341_vm4, %v3729_v31, %v7759_v11  ;;  %v7802_v10 = vpop.permute.xlu2 %7801 }
 0x7a6   :  { %v7762_v59 = vpop.permute.xlu0 %7761  ;;  %v3766_v30 = vpack.c.bf16 %v3745_v36, %v3744_v44 }
 0x7a7   :  { %v7764_v45 = vunpack.i.h.bf16 %v7762_v59  ;;  %v7763_v17 = vunpack.i.l.bf16 %v7762_v59 }
 0x7a8   :  { %4028 = vmatmul.bf16.gmra.mxu3 %v3766_v30  ;;  %v13859_v30 = vld [vmem:[#allocation33_spill] sm:$0xff] }
 0x7a9   :  { %v7767_v13 = vpop.permute.xlu1 %7766  ;;  %v3667_v7 = vsel %vm1307_vm2, %v3123_v56, %v7764_v45  ;;  %v3666_v22 = vsel %vm1307_vm2, %v3122_v46, %v7763_v17  ;;  %v13860_v45 = vld [vmem:[#allocation29_spill] sm:$0xff] }
 0x7aa   :  { %v7769_v19 = vunpack.i.h.bf16 %v7767_v13  ;;  %v7768_v23 = vunpack.i.l.bf16 %v7767_v13  ;;  %v7804_v13 = vunpack.i.h.bf16 %v7802_v10 }
 0x7ac   :  { %v3682_v50 = vsel %vm1324_vm3, %v3666_v22, %v7768_v23  ;;  %v3683_v41 = vsel %vm1324_vm3, %v3667_v7, %v7769_v19  ;;  %v7803_v19 = vunpack.i.l.bf16 %v7802_v10 }
 0x7ad   :  { %v3698_v52 = vsel %vm1341_vm4, %v3682_v50, %v7773_v48  ;;  %v3699_v0 = vsel %vm1341_vm4, %v3683_v41, %v7774_v5 }
 0x7ae   :  { %v7777_v51 = vpop.permute.xlu0 %7776  ;;  %v3768_v12 = vpack.c.bf16 %v3699_v0, %v3698_v52  ;;  %v7817_v0 = vpop.permute.xlu2 %7816 }
 0x7af   :  { %v7779_v54 = vunpack.i.h.bf16 %v7777_v51  ;;  %v7778_v60 = vunpack.i.l.bf16 %v7777_v51 }
 0x7b0   :  { %3984 = vmatmul.bf16.gmra.mxu2 %v3768_v12 }
 0x7b1   :  { %v7782_v6 = vpop.permute.xlu1 %7781  ;;  %v3715_v16 = vsel %vm1307_vm2, %v10774_v47, %v7779_v54  ;;  %v3714_v15 = vsel %vm1307_vm2, %v10759_v43, %v7778_v60  ;;  %v3125_v47 = vmul.f32 %v11106_v26, %v13859_v30  ;;  %v3124_v43 = vmul.f32 %v11092_v14, %v13860_v45 }
 0x7b2   :  { %v7784_v21 = vunpack.i.h.bf16 %v7782_v6  ;;  %v7783_v9 = vunpack.i.l.bf16 %v7782_v6  ;;  %v7819_v60 = vunpack.i.h.bf16 %v7817_v0  ;;  %v7818_v6 = vunpack.i.l.bf16 %v7817_v0 }
 0x7b4   :  { %v3730_v11 = vsel %vm1324_vm3, %v3714_v15, %v7783_v9  ;;  %v3731_v20 = vsel %vm1324_vm3, %v3715_v16, %v7784_v21 }
 0x7b5   :  { %v3746_v18 = vsel %vm1341_vm4, %v3730_v11, %v7788_v58  ;;  %v3747_v33 = vsel %vm1341_vm4, %v3731_v20, %v7789_v57  ;;  %v4055_v20 = vpop.f32.mrf.mxu0 }
 0x7b6   :  { %v7792_v31 = vpop.permute.xlu0 %7791  ;;  %v3769_v44 = vpack.c.bf16 %v3747_v33, %v3746_v18 }
 0x7b7   :  { %v7794_v36 = vunpack.i.h.bf16 %v7792_v31  ;;  %v7793_v59 = vunpack.i.l.bf16 %v7792_v31 }
 0x7b8   :  { %4033 = vmatmul.bf16.gmra.mxu3 %v3769_v44 }
 0x7b9   :  { %v7797_v17 = vpop.permute.xlu1 %7796  ;;  %v3669_v23 = vsel %vm1307_vm2, %v3125_v47, %v7794_v36  ;;  %v3668_v5 = vsel %vm1307_vm2, %v3124_v43, %v7793_v59 }
 0x7ba   :  { %v7799_v56 = vunpack.i.h.bf16 %v7797_v17  ;;  %v7798_v46 = vunpack.i.l.bf16 %v7797_v17  ;;  %v6937_v17 = vld [vmem:[#allocation10 + $0x88] sm:$0xff] }
 0x7bb   :  { %5113 = vmatpush.bf16.msrb.mxu3 %v6937_v17 }
 0x7bc   :  { %v3684_v48 = vsel %vm1324_vm3, %v3668_v5, %v7798_v46  ;;  %v3685_v7 = vsel %vm1324_vm3, %v3669_v23, %v7799_v56  ;;  %v6936_v46 = vld [vmem:[#allocation10 + $0x80] sm:$0xff] }
 0x7bd   :  { %v3700_v22 = vsel %vm1341_vm4, %v3684_v48, %v7803_v19  ;;  %v3701_v26 = vsel %vm1341_vm4, %v3685_v7, %v7804_v13  ;;  %v4058_v18 = vpop.f32.mrf.mxu0 }
 0x7be   :  { %v7807_v50 = vpop.permute.xlu0 %7806  ;;  %v3771_v14 = vpack.c.bf16 %v3701_v26, %v3700_v22 }
 0x7bf   :  { %v7809_v41 = vunpack.i.h.bf16 %v7807_v50  ;;  %v7808_v52 = vunpack.i.l.bf16 %v7807_v50  ;;  %5114 = vmatpush.bf16.msrb.mxu3 %v6936_v46 }
 0x7c0   :  { %3989 = vmatmul.bf16.gmra.mxu2 %v3771_v14 }
 0x7c1   :  { %v7812_v51 = vpop.permute.xlu1 %7811  ;;  %v3717_v21 = vsel %vm1307_vm2, %v13842_v35, %v7809_v41  ;;  %v3716_v9 = vsel %vm1307_vm2, %v10790_v39, %v7808_v52  ;;  %v11313_v39 = vld [vmem:[%s12939_s7] ss:$0 sm:$0xff] }
 0x7c2   :  { %v7814_v12 = vunpack.i.h.bf16 %v7812_v51  ;;  %v7813_v54 = vunpack.i.l.bf16 %v7812_v51 }
 0x7c4   :  { %v3733_v57 = vsel %vm1324_vm3, %v3717_v21, %v7814_v12  ;;  %v3732_v58 = vsel %vm1324_vm3, %v3716_v9, %v7813_v54  ;;  %v13861_v21 = vld [vmem:[#allocation59_spill] sm:$0xff] }
 0x7c5   :  { %v3748_v16 = vsel %vm1341_vm4, %v3732_v58, %v7818_v6  ;;  %v3749_v15 = vsel %vm1341_vm4, %v3733_v57, %v7819_v60  ;;  %v4060_v44 = vpop.f32.mrf.mxu0 }
 0x7c6   :  { %v3772_v11 = vpack.c.bf16 %v3749_v15, %v3748_v16 }
 0x7c8   :  { %4038 = vmatmul.bf16.gmra.mxu3 %v3772_v11  ;;  %v13862_v11 = vld [vmem:[#allocation60_spill] sm:$0xff] }
 0x7cd   :  { %v4063_v13 = vpop.f32.mrf.mxu0 }
 0x7d3   :  { %v3955_v33 = vpop.f32.mrf.mxu2 }
 0x7d4   :  { %v3956_v35 = vadd.f32 %v11313_v39, %v3955_v33 }
 0x7d5   :  { %v11323_v51 = vpop.f32.mrf.mxu0 }
 0x7db   :  { %v3957_v10 = vpop.f32.mrf.mxu2  ;;  %v4004_v31 = vpop.f32.mrf.mxu3 }
 0x7dc   :  { %v3958_v36 = vadd.f32 %v11313_v39, %v3957_v10  ;;  %v4005_v59 = vadd.f32 %v4004_v31, %v3956_v35 }
 0x7de   :  { %v4054_v19 = vadd.f32 %v4053_v38, %v4005_v59 }
 0x7e0   :  { %v4109_v48 = vmul.f32 0.01, %v4054_v19  ;;  %vm4093_vm11 = vcmp.gt.f32.partialorder %v4054_v19, 0.0 }
 0x7e2   :  { %v11320_v41 = vsel %vm4093_vm11, %v4054_v19, %v4109_v48  ;;  %v13867_v19 = vld [vmem:[#allocation67_spill] sm:$0xff] }
 0x7e3   :  { %v3960_v47 = vpop.f32.mrf.mxu2  ;;  %v4006_v43 = vpop.f32.mrf.mxu3  ;;  %v13292_v54 = vrot.slane %v11320_v41, 1  ;;  %v13291_v57 = vrot.slane %v11320_v41, 7 }
 0x7e4   :  { %v4007_v56 = vadd.f32 %v4006_v43, %v3958_v36  ;;  %v3961_v7 = vadd.f32 %v11313_v39, %v3960_v47  ;;  %v13865_v43 = vld [vmem:[#allocation56_spill] sm:$0xff] }
 0x7e6   :  { %v4056_v23 = vadd.f32 %v4055_v20, %v4007_v56  ;;  %v13866_v56 = vld [vmem:[#allocation57_spill] sm:$0xff] }
 0x7e8   :  { %v4110_v5 = vmul.f32 0.01, %v4056_v23  ;;  %vm4094_vm10 = vcmp.gt.f32.partialorder %v4056_v23, 0.0 }
 0x7ea   :  { %v11318_v50 = vsel %vm4094_vm10, %v4056_v23, %v4110_v5  ;;  %v13868_v5 = vld [vmem:[#allocation58_spill] sm:$0xff] }
 0x7eb   :  { %v3962_v22 = vpop.f32.mrf.mxu2  ;;  %v4009_v26 = vpop.f32.mrf.mxu3  ;;  %v4206_v0 = vrot.slane %v11318_v50, 1  ;;  %v4142_v12 = vrot.slane %v11318_v50, 7  ;;  %v4301_v9 = vmul.f32 %v11318_v50, %v13861_v21  ;;  %v13875_v21 = vld [vmem:[#allocation121_spill] sm:$0xff] }
 0x7ec   :  { %v4010_v14 = vadd.f32 %v4009_v26, %v3961_v7  ;;  %v3963_v60 = vadd.f32 %v11313_v39, %v3962_v22 }
 0x7ed   :  { %v11347_v31 = vsel %vm217_vm1, %v13291_v57, %v4142_v12 }
 0x7ee   :  { %v4059_v52 = vadd.f32 %v4058_v18, %v4010_v14  ;;  %v11340_v18 = vsel %vm426_vm0, %v13292_v54, %v4206_v0  ;;  %13863 = vst [vmem:[#allocation85_spill] sm:$0xff] %v11347_v31  ;;  %v4285_v23 = vmul.f32 %v11347_v31, %v13867_v19  ;;  %v4068_v14 = vpop.f32.mrf.mxu0 }
 0x7ef   :  { %v4269_v17 = vmul.f32 %v11340_v18, %v13865_v43 }
 0x7f0   :  { %vm4095_vm12 = vcmp.gt.f32.partialorder %v4059_v52, 0.0  ;;  %v4111_v38 = vmul.f32 0.01, %v4059_v52 }
 0x7f2   :  { %v11328_v6 = vsel %vm4095_vm12, %v4059_v52, %v4111_v38 }
 0x7f3   :  { %v4207_v58 = vrot.slane %v11328_v6, 1  ;;  %v3965_v16 = vpop.f32.mrf.mxu2  ;;  %v4011_v15 = vpop.f32.mrf.mxu3  ;;  %v4302_v20 = vmul.f32 %v11328_v6, %v13862_v11  ;;  %v4143_v33 = vrot.slane %v11328_v6, 7 }
 0x7f4   :  { %v4012_v10 = vadd.f32 %v4011_v15, %v3963_v60 }
 0x7f5   :  { %v7820_v35 = vpack.i.bf16 %v4302_v20, %v4301_v9  ;;  %v4234_v36 = vsel %vm426_vm0, %v4206_v0, %v4207_v58  ;;  %v11353_v59 = vsel %vm217_vm1, %v4142_v12, %v4143_v33  ;;  %v13869_v20 = vld [vmem:[#allocation64_spill] sm:$0xff] }
 0x7f6   :  { %13864 = vst [vmem:[#allocation89_spill] sm:$0xff] %v11353_v59  ;;  %v4061_v47 = vadd.f32 %v4060_v44, %v4012_v10  ;;  %v4270_v46 = vmul.f32 %v4234_v36, %v13866_v56  ;;  %v4286_v48 = vmul.f32 %v11353_v59, %v13868_v5  ;;  %v3966_v44 = vadd.f32 %v11313_v39, %v3965_v16  ;;  %v4070_v54 = vpop.f32.mrf.mxu0  ;;  %v13873_v5 = vld [vmem:[#allocation70_spill] sm:$0xff]  ;;  %v13879_v56 = vld [vmem:[#allocation81_spill] sm:$0xff] }
 0x7f7   :  { %7821 = vrot.lane.b32.xlu2 %v7820_v35, %s8479_s27  ;;  %v4317_v10 = vmul.f32 %v4234_v36, %v13869_v20  ;;  %v13870_v35 = vld [vmem:[#allocation146_spill] sm:$0xff]  ;;  %v13883_v20 = vld [vmem:[#allocation104_spill] sm:$0xff] }
 0x7f8   :  { %vm4096_vm13 = vcmp.gt.f32.partialorder %v4061_v47, 0.0  ;;  %v4112_v7 = vmul.f32 0.01, %v4061_v47  ;;  %v7825_v22 = vpack.i.bf16 %v4270_v46, %v4269_v17  ;;  %v7830_v26 = vpack.i.bf16 %v4286_v48, %v4285_v23  ;;  %v13871_v46 = vld [vmem:[#allocation84_spill] sm:$0xff]  ;;  %v13872_v48 = vld [vmem:[#allocation77_spill] sm:$0xff] }
 0x7f9   :  { %v11381_v23 = vmul.f32 %v4234_v36, %v13871_v46  ;;  %v13874_v36 = vld [vmem:[#allocation78_spill] sm:$0xff] }
 0x7fa   :  { %v11364_v52 = vsel %vm4096_vm13, %v4061_v47, %v4112_v7  ;;  %7826 = vrot.lane.b32.xlu0 %v7825_v22, %s8478_s10  ;;  %7831 = vrot.lane.b32.xlu1 %v7830_v26, %s8464_s1 }
 0x7fb   :  { %v4208_v0 = vrot.slane %v11364_v52, 1  ;;  %v3967_v38 = vpop.f32.mrf.mxu2  ;;  %v4014_v12 = vpop.f32.mrf.mxu3  ;;  %v13290_v60 = vrot.slane %v11364_v52, 7 }
 0x7fc   :  { %v4015_v9 = vadd.f32 %v4014_v12, %v3966_v44  ;;  %v3968_v44 = vadd.f32 %v11313_v39, %v3967_v38 }
 0x7fd   :  { %v4233_v15 = vsel %vm426_vm0, %v4207_v58, %v4208_v0  ;;  %v11376_v16 = vsel %vm217_vm1, %v4143_v33, %v13290_v60  ;;  %v11388_v58 = vmul.f32 %v11353_v59, %v13771_v29  ;;  %v13876_v29 = vld [vmem:[#allocation109_spill] sm:$0xff] }
 0x7fe   :  { %v4318_v47 = vmul.f32 %v4233_v15, %v13870_v35  ;;  %v4064_v17 = vadd.f32 %v4063_v13, %v4015_v9  ;;  %v11384_v7 = vmul.f32 %v4233_v15, %v13872_v48  ;;  %v11392_v22 = vmul.f32 %v11376_v16, %v13769_v63 }
 0x7ff   :  { %v11407_v19 = vmul.f32 %v4233_v15, %v13873_v5  ;;  %v13877_v5 = vld [vmem:[#allocation94_spill] sm:$0xff] }
 0x800   :  { %v4815_v33 = vpack.c.bf16 %v4318_v47, %v4317_v10  ;;  %vm4097_vm14 = vcmp.gt.f32.partialorder %v4064_v17, 0.0  ;;  %v4113_v26 = vmul.f32 0.01, %v4064_v17 }
 0x802   :  { %v11399_v12 = vsel %vm4097_vm14, %v4064_v17, %v4113_v26  ;;  %6702 = vmatmul.msk.bf16.vlgmr.msrb.gmra.mxu3 %vm1307_vm2, %v4815_v33 }
 0x803   :  { %v4209_v9 = vrot.slane %v11399_v12, 1  ;;  %v3970_v60 = vpop.f32.mrf.mxu2  ;;  %v4016_v57 = vpop.f32.mrf.mxu3 }
 0x804   :  { %v4017_v10 = vadd.f32 %v4016_v57, %v3968_v44  ;;  %v3971_v26 = vadd.f32 %v11313_v39, %v3970_v60  ;;  %v13878_v60 = vld [vmem:[#allocation79_spill] sm:$0xff] }
 0x805   :  { %v4232_v47 = vsel %vm426_vm0, %v4208_v0, %v4209_v9 }
 0x806   :  { %v4066_v13 = vadd.f32 %v11323_v51, %v4017_v10  ;;  %v11410_v38 = vmul.f32 %v4232_v47, %v13874_v36  ;;  %v4073_v10 = vpop.f32.mrf.mxu0  ;;  %v4319_v11 = vmul.f32 %v4232_v47, %v13875_v21  ;;  %v11423_v33 = vmul.f32 %v4232_v47, %v13877_v5  ;;  %v13882_v21 = vld [vmem:[#allocation126_spill] sm:$0xff] }
 0x808   :  { %vm4098_vm15 = vcmp.gt.f32.partialorder %v4066_v13, 0.0  ;;  %v4114_v17 = vmul.f32 0.01, %v4066_v13 }
 0x80a   :  { %v11415_v48 = vsel %vm4098_vm15, %v4066_v13, %v4114_v17 }
 0x80b   :  { %v4210_v57 = vrot.slane %v11415_v48, 1  ;;  %v3972_v0 = vpop.f32.mrf.mxu2  ;;  %v4019_v44 = vpop.f32.mrf.mxu3 }
 0x80c   :  { %v4020_v51 = vadd.f32 %v4019_v44, %v3971_v26 }
 0x80d   :  { %v4231_v15 = vsel %vm426_vm0, %v4209_v9, %v4210_v57  ;;  %v3973_v9 = vadd.f32 %v11313_v39, %v3972_v0 }
 0x80e   :  { %v4069_v46 = vadd.f32 %v4068_v14, %v4020_v51  ;;  %v4320_v63 = vmul.f32 %v4231_v15, %v13876_v29  ;;  %v11426_v13 = vmul.f32 %v4231_v15, %v13878_v60  ;;  %v4075_v0 = vpop.f32.mrf.mxu0 }
 0x810   :  { %vm4099_vm5 = vcmp.gt.f32.partialorder %v4069_v46, 0.0  ;;  %v4115_v17 = vmul.f32 0.01, %v4069_v46  ;;  %v4818_v36 = vpack.c.bf16 %v4320_v63, %v4319_v11  ;;  %v11438_v63 = vmul.f32 %v4231_v15, %v13879_v56  ;;  %v13880_v11 = vld [vmem:[#allocation98_spill] sm:$0xff]  ;;  %v13881_v56 = vld [vmem:[#allocation37_spill] sm:$0xff] }
 0x812   :  { %v11431_v44 = vsel %vm4099_vm5, %v4069_v46, %v4115_v17  ;;  %6703 = vmatmul.msk.bf16.gmra.mxu3 %vm1307_vm2, %v4818_v36  ;;  %v13884_v36 = vld [vmem:[#allocation115_spill] sm:$0xff] }
 0x813   :  { %v4211_v14 = vrot.slane %v11431_v44, 1  ;;  %v3975_v51 = vpop.f32.mrf.mxu2  ;;  %v4021_v47 = vpop.f32.mrf.mxu3 }
 0x814   :  { %v4022_v5 = vadd.f32 %v4021_v47, %v3973_v9  ;;  %v3976_v17 = vadd.f32 %v11313_v39, %v3975_v51 }
 0x815   :  { %v4230_v60 = vsel %vm426_vm0, %v4210_v57, %v4211_v14 }
 0x816   :  { %v4071_v43 = vadd.f32 %v4070_v54, %v4022_v5  ;;  %v11441_v26 = vmul.f32 %v4230_v60, %v13880_v11  ;;  %v4321_v11 = vmul.f32 %v4230_v60, %v13881_v56  ;;  %v11454_v45 = vmul.f32 %v4230_v60, %v13883_v20 }
 0x818   :  { %vm4100_vm6 = vcmp.gt.f32.partialorder %v4071_v43, 0.0  ;;  %v4116_v46 = vmul.f32 0.01, %v4071_v43 }
 0x81a   :  { %v11446_v29 = vsel %vm4100_vm6, %v4071_v43, %v4116_v46 }
 0x81b   :  { %v4212_v9 = vrot.slane %v11446_v29, 1  ;;  %v3977_v57 = vpop.f32.mrf.mxu2  ;;  %v4024_v54 = vpop.f32.mrf.mxu3 }
 0x81c   :  { %v4025_v5 = vadd.f32 %v4024_v54, %v3976_v17  ;;  %v4078_v54 = vpop.f32.mrf.mxu0  ;;  %v13886_v17 = vld [vmem:[#allocation106_spill] sm:$0xff] }
 0x81d   :  { %v4229_v15 = vsel %vm426_vm0, %v4211_v14, %v4212_v9  ;;  %v3978_v14 = vadd.f32 %v11313_v39, %v3977_v57 }
 0x81e   :  { %v4074_v47 = vadd.f32 %v4073_v10, %v4025_v5  ;;  %v4322_v35 = vmul.f32 %v4229_v15, %v13882_v21  ;;  %v11457_v51 = vmul.f32 %v4229_v15, %v13884_v36 }
 0x820   :  { %vm4101_vm7 = vcmp.gt.f32.partialorder %v4074_v47, 0.0  ;;  %v4117_v43 = vmul.f32 0.01, %v4074_v47  ;;  %v4821_v46 = vpack.c.bf16 %v4322_v35, %v4321_v11  ;;  %v13885_v35 = vld [vmem:[#allocation83_spill] sm:$0xff] }
 0x821   :  { %v11469_v11 = vmul.f32 %v4229_v15, %v13885_v35 }
 0x822   :  { %v11462_v10 = vsel %vm4101_vm7, %v4074_v47, %v4117_v43  ;;  %6704 = vmatmul.msk.bf16.gmra.mxu3 %vm1307_vm2, %v4821_v46 }
 0x823   :  { %v4213_v5 = vrot.slane %v11462_v10, 1  ;;  %v3980_v60 = vpop.f32.mrf.mxu2  ;;  %v4026_v20 = vpop.f32.mrf.mxu3 }
 0x824   :  { %v4027_v21 = vadd.f32 %v4026_v20, %v3978_v14  ;;  %v3981_v43 = vadd.f32 %v11313_v39, %v3980_v60  ;;  %v13890_v60 = vld [vmem:[#allocation131_spill] sm:$0xff] }
 0x825   :  { %v4228_v36 = vsel %vm426_vm0, %v4212_v9, %v4213_v5 }
 0x826   :  { %v4076_v56 = vadd.f32 %v4075_v0, %v4027_v21  ;;  %v11472_v30 = vmul.f32 %v4228_v36, %v13886_v17  ;;  %v4080_v0 = vpop.f32.mrf.mxu0  ;;  %v13887_v17 = vld [vmem:[#allocation38_spill] sm:$0xff]  ;;  %v11485_v47 = vmul.f32 %v4228_v36, %v13889_v27 }
 0x827   :  { %v4323_v40 = vmul.f32 %v4228_v36, %v13887_v17  ;;  %v13891_v17 = vld [vmem:[#allocation124_spill] sm:$0xff] }
 0x828   :  { %vm4102_vm8 = vcmp.gt.f32.partialorder %v4076_v56, 0.0  ;;  %v4118_v57 = vmul.f32 0.01, %v4076_v56 }
 0x82a   :  { %v11477_v46 = vsel %vm4102_vm8, %v4076_v56, %v4118_v57 }
 0x82b   :  { %v4214_v20 = vrot.slane %v11477_v46, 1  ;;  %v3982_v14 = vpop.f32.mrf.mxu2  ;;  %v4029_v9 = vpop.f32.mrf.mxu3 }
 0x82c   :  { %v4030_v21 = vadd.f32 %v4029_v9, %v3981_v43  ;;  %v3983_v9 = vadd.f32 %v11313_v39, %v3982_v14 }
 0x82d   :  { %v4227_v15 = vsel %vm426_vm0, %v4213_v5, %v4214_v20 }
 0x82e   :  { %v4079_v35 = vadd.f32 %v4078_v54, %v4030_v21  ;;  %v4324_v2 = vmul.f32 %v4227_v15, %v13888_v62  ;;  %v11488_v56 = vmul.f32 %v4227_v15, %v13890_v60  ;;  %v4083_v14 = vpop.f32.mrf.mxu0 }
 0x830   :  { %vm4103_vm9 = vcmp.gt.f32.partialorder %v4079_v35, 0.0  ;;  %v4119_v57 = vmul.f32 0.01, %v4079_v35  ;;  %v4824_v42 = vpack.c.bf16 %v4324_v2, %v4323_v40  ;;  %v11500_v2 = vmul.f32 %v4227_v15, %v13891_v17  ;;  %v13892_v40 = vld [vmem:[#allocation123_spill] sm:$0xff]  ;;  %v6927_v15 = vld [vmem:[#allocation10 + $0x38] sm:$0xff] }
 0x831   :  { %5009 = vmatpush.bf16.msrb.mxu1 %v6927_v15 }
 0x832   :  { %v11493_v5 = vsel %vm4103_vm9, %v4079_v35, %v4119_v57  ;;  %6705 = vmatmul.msk.bf16.gmra.mxu3 %vm1307_vm2, %v4824_v42 }
 0x833   :  { %v4215_v54 = vrot.slane %v11493_v5, 1  ;;  %v3985_v21 = vpop.f32.mrf.mxu2  ;;  %v4031_v36 = vpop.f32.mrf.mxu3 }
 0x834   :  { %v4032_v27 = vadd.f32 %v4031_v36, %v3983_v9  ;;  %v3986_v57 = vadd.f32 %v11313_v39, %v3985_v21 }
 0x835   :  { %v4226_v60 = vsel %vm426_vm0, %v4214_v20, %v4215_v54 }
 0x836   :  { %v4081_v62 = vadd.f32 %v4080_v0, %v4032_v27  ;;  %v11503_v43 = vmul.f32 %v4226_v60, %v13892_v40  ;;  %v6935_v0 = vld [vmem:[#allocation10 + $0x78] sm:$0xff]  ;;  %v6934_v40 = vld [vmem:[#allocation10 + $0x70] sm:$0xff]  ;;  %v4325_v42 = vmul.f32 %v4226_v60, %v13893_v34 }
 0x837   :  { %5058 = vmatpush.bf16.msrb.mxu2 %v6935_v0  ;;  %v13901_v0 = vld [vmem:[#allocation136_spill] sm:$0xff] }
 0x838   :  { %vm4104_vm10 = vcmp.gt.f32.partialorder %v4081_v62, 0.0  ;;  %v4120_v35 = vmul.f32 0.01, %v4081_v62 }
 0x83a   :  { %v11508_v24 = vsel %vm4104_vm10, %v4081_v62, %v4120_v35  ;;  %v13895_v62 = vld [vmem:[#allocation135_spill] sm:$0xff] }
 0x83b   :  { %v4216_v9 = vrot.slane %v11508_v24, 1  ;;  %v3987_v20 = vpop.f32.mrf.mxu2  ;;  %v4034_v27 = vpop.f32.mrf.mxu3  ;;  %v11516_v35 = vmul.f32 %v4226_v60, %v13895_v62  ;;  %5059 = vmatpush.bf16.msrb.mxu2 %v6934_v40  ;;  %v6932_v40 = vld [vmem:[#allocation10 + $0x60] sm:$0xff] }
 0x83c   :  { %v4035_v36 = vadd.f32 %v4034_v27, %v3986_v57  ;;  %v4085_v27 = vpop.f32.mrf.mxu0 }
 0x83d   :  { %v4225_v17 = vsel %vm426_vm0, %v4215_v54, %v4216_v9  ;;  %13896 = vst [vmem:[#allocation156_spill] sm:$0xff] %v11516_v35  ;;  %v6933_v54 = vld [vmem:[#allocation10 + $0x68] sm:$0xff] }
 0x83e   :  { %v4084_v61 = vadd.f32 %v4083_v14, %v4035_v36  ;;  %v4326_v21 = vmul.f32 %v4225_v17, %v13894_v4  ;;  %v11519_v25 = vmul.f32 %v4225_v17, %v13897_v1  ;;  %v3988_v14 = vadd.f32 %v11313_v39, %v3987_v20  ;;  %v13899_v4 = vld [vmem:[#allocation127_spill] sm:$0xff] }
 0x83f   :  { %5060 = vmatpush.bf16.msrb.mxu2 %v6933_v54  ;;  %v11531_v34 = vmul.f32 %v4225_v17, %v13899_v4  ;;  %v6926_v17 = vld [vmem:[#allocation10 + $0x30] sm:$0xff] }
 0x840   :  { %13898 = vst [vmem:[#allocation157_spill] sm:$0xff] %v11519_v25  ;;  %vm4105_vm11 = vcmp.gt.f32.partialorder %v4084_v61, 0.0  ;;  %v4121_v59 = vmul.f32 0.01, %v4084_v61  ;;  %v4827_v57 = vpack.c.bf16 %v4326_v21, %v4325_v42  ;;  %5010 = vmatpush.bf16.msrb.mxu1 %v6926_v17  ;;  %v13907_v25 = vld [vmem:[#allocation35_spill] sm:$0xff]  ;;  %v6929_v17 = vld [vmem:[#allocation10 + $0x48] sm:$0xff] }
 0x841   :  { %13900 = vst [vmem:[#allocation159_spill] sm:$0xff] %v11531_v34 }
 0x842   :  { %v11524_v15 = vsel %vm4105_vm11, %v4084_v61, %v4121_v59  ;;  %6706 = vmatmul.msk.bf16.gmra.mxu3 %vm1307_vm2, %v4827_v57  ;;  %v6931_v57 = vld [vmem:[#allocation10 + $0x58] sm:$0xff] }
 0x843   :  { %v4217_v60 = vrot.slane %v11524_v15, 1  ;;  %v4036_v36 = vpop.f32.mrf.mxu3  ;;  %v3990_v62 = vpop.f32.mrf.mxu2  ;;  %5061 = vmatpush.bf16.msrb.mxu2 %v6932_v40  ;;  %v13903_v59 = vld [vmem:[#allocation50_spill] sm:$0xff] }
 0x844   :  { %v4037_v1 = vadd.f32 %v4036_v36, %v3988_v14  ;;  %v3991_v14 = vadd.f32 %v11313_v39, %v3990_v62 }
 0x845   :  { %v4224_v42 = vsel %vm426_vm0, %v4216_v9, %v4217_v60  ;;  %v4088_v9 = vpop.f32.mrf.mxu0 }
 0x846   :  { %v4086_v21 = vadd.f32 %v4085_v27, %v4037_v1  ;;  %v11534_v20 = vmul.f32 %v4224_v42, %v13901_v0  ;;  %v6930_v0 = vld [vmem:[#allocation10 + $0x50] sm:$0xff]  ;;  %v4327_v40 = vmul.f32 %v4224_v42, %v13903_v59  ;;  %v13918_v59 = vld [vmem:[#allocation76_spill] sm:$0xff] }
 0x847   :  { %5062 = vmatpush.bf16.msrb.mxu2 %v6931_v57 }
 0x848   :  { %vm4106_vm12 = vcmp.gt.f32.partialorder %v4086_v21, 0.0  ;;  %v4122_v61 = vmul.f32 0.01, %v4086_v21 }
 0x84a   :  { %v11539_v36 = vsel %vm4106_vm12, %v4086_v21, %v4122_v61  ;;  %v13905_v21 = vld [vmem:[#allocation40_spill] sm:$0xff] }
 0x84b   :  { %13902 = vst [vmem:[#allocation158_spill] sm:$0xff] %v11539_v36  ;;  %v4218_v1 = vrot.slane %v11539_v36, 1  ;;  %v4039_v27 = vpop.f32.mrf.mxu3  ;;  %v3992_v62 = vpop.f32.mrf.mxu2  ;;  %v11547_v61 = vmul.f32 %v4224_v42, %v13905_v21  ;;  %5063 = vmatpush.bf16.msrb.mxu2 %v6930_v0 }
 0x84c   :  { %v4040_v54 = vadd.f32 %v4039_v27, %v3991_v14  ;;  %v3993_v57 = vadd.f32 %v11313_v39, %v3992_v62  ;;  %v13912_v39 = vld [vmem:[#allocation49_spill] sm:$0xff] }
 0x84d   :  { %v4223_v4 = vsel %vm426_vm0, %v4217_v60, %v4218_v1  ;;  %13906 = vst [vmem:[#allocation161_spill] sm:$0xff] %v11547_v61 }
 0x84e   :  { %v4089_v37 = vadd.f32 %v4088_v9, %v4040_v54  ;;  %v4328_v35 = vmul.f32 %v4223_v4, %v13904_v32  ;;  %v11550_v36 = vmul.f32 %v4223_v4, %v13907_v25  ;;  %v4090_v25 = vpop.f32.mrf.mxu0 }
 0x84f   :  { %5064 = vmatpush.bf16.msrb.mxu2 %v6929_v17  ;;  %v13915_v17 = vld [vmem:[#allocation34_spill] sm:$0xff] }
 0x850   :  { %13908 = vst [vmem:[#allocation160_spill] sm:$0xff] %v11550_v36  ;;  %vm4107_vm13 = vcmp.gt.f32.partialorder %v4089_v37, 0.0  ;;  %v4123_v14 = vmul.f32 0.01, %v4089_v37  ;;  %v4830_v27 = vpack.c.bf16 %v4328_v35, %v4327_v40  ;;  %v6928_v35 = vld [vmem:[#allocation10 + $0x40] sm:$0xff]  ;;  %v13910_v40 = vld [vmem:[#allocation129_spill] sm:$0xff] }
 0x851   :  { %v11562_v60 = vmul.f32 %v4223_v4, %v13910_v40  ;;  %v13916_v4 = vld [vmem:[#allocation61_spill] sm:$0xff]  ;;  %v13917_v40 = vld [vmem:[#allocation66_spill] sm:$0xff]  ;;  %v13924_v36 = vld [vmem:[#allocation68_spill] sm:$0xff] }
 0x852   :  { %v11555_v9 = vsel %vm4107_vm13, %v4089_v37, %v4123_v14  ;;  %6707 = vmatmul.msk.bf16.gmra.mxu3 %vm1307_vm2, %v4830_v27  ;;  %v4254_v14 = vmul.f32 %v11347_v31, %v13918_v59  ;;  %v13921_v59 = vld [vmem:[#allocation142_spill] sm:$0xff]  ;;  %v13922_v31 = vld [vmem:[#allocation143_spill] sm:$0xff] }
 0x853   :  { %13909 = vst [vmem:[#allocation163_spill] sm:$0xff] %v11555_v9  ;;  %v4219_v42 = vrot.slane %v11555_v9, 1  ;;  %v4041_v54 = vpop.f32.mrf.mxu3  ;;  %5065 = vmatpush.bf16.msrb.mxu2 %v6928_v35 }
 0x854   :  { %v4042_v21 = vadd.f32 %v4041_v54, %v3993_v57  ;;  %13911 = vst [vmem:[#allocation162_spill] sm:$0xff] %v11562_v60  ;;  %v6925_v54 = vld [vmem:[#allocation10 + $0x28] sm:$0xff]  ;;  %v13925_v60 = vld [vmem:[#allocation65_spill] sm:$0xff] }
 0x855   :  { %v4222_v32 = vsel %vm426_vm0, %v4218_v1, %v4219_v42  ;;  %5011 = vmatpush.bf16.msrb.mxu1 %v6925_v54 }
 0x856   :  { %v4091_v0 = vadd.f32 %v4090_v25, %v4042_v21  ;;  %v11565_v37 = vmul.f32 %v4222_v32, %v13912_v39  ;;  %v4190_v21 = vmul.f32 %v11320_v41, %v13916_v4  ;;  %v4238_v39 = vmul.f32 %v11340_v18, %v13917_v40 }
 0x857   :  { %v4329_v35 = vmul.f32 %v4222_v32, %v13921_v59 }
 0x858   :  { %13913 = vst [vmem:[#allocation165_spill] sm:$0xff] %v11565_v37  ;;  %vm4108_vm14 = vcmp.gt.f32.partialorder %v4091_v0, 0.0  ;;  %v4124_v62 = vmul.f32 0.01, %v4091_v0 }
 0x85a   :  { %v11569_v27 = vsel %vm4108_vm14, %v4091_v0, %v4124_v62 }
 0x85b   :  { %13914 = vst [vmem:[#allocation164_spill] sm:$0xff] %v11569_v27  ;;  %v4156_v57 = vrot.slane %v11569_v27, 7  ;;  %v4220_v1 = vrot.slane %v11569_v27, 1  ;;  %v4189_v25 = vmul.f32 %v11569_v27, %v13915_v17  ;;  %v13919_v17 = vrot.slane %v11320_v41, 1 }
 0x85c   :  { %v13920_v27 = vrot.slane %v11320_v41, 7 }
 0x85d   :  { %v7835_v62 = vpack.i.bf16 %v4190_v21, %v4189_v25  ;;  %v4221_v61 = vsel %vm426_vm0, %v4219_v42, %v4220_v1  ;;  %v4236_v4 = vsel %vm426_vm0, %v4220_v1, %v13919_v17  ;;  %v13923_v25 = vld [vmem:[#allocation63_spill] sm:$0xff] }
 0x85e   :  { %v11593_v40 = vsel %vm217_vm1, %v4156_v57, %v13920_v27  ;;  %v4330_v0 = vmul.f32 %v4221_v61, %v13922_v31  ;;  %v4237_v21 = vmul.f32 %v4236_v4, %v13923_v25  ;;  %v11602_v1 = vmul.f32 %v4221_v61, %v13925_v60  ;;  %v13926_v17 = vld [vmem:[#allocation55_spill] sm:$0xff]  ;;  %v13928_v31 = vld [vmem:[#allocation74_spill] sm:$0xff] }
 0x85f   :  { %v4253_v42 = vmul.f32 %v11593_v40, %v13924_v36  ;;  %7836 = vrot.lane.b32.xlu0 %v7835_v62, %s8478_s10  ;;  %v11605_v37 = vmul.f32 %v4236_v4, %v13926_v17  ;;  %v13927_v27 = vrot.slane %v11555_v9, 7  ;;  %v11615_v25 = vmul.f32 %v11593_v40, %v13928_v31 }
 0x860   :  { %v4833_v59 = vpack.c.bf16 %v4330_v0, %v4329_v35  ;;  %v7845_v36 = vpack.i.bf16 %v4238_v39, %v4237_v21  ;;  %v13929_v62 = vrot.slane %v11399_v12, 7  ;;  %v13930_v60 = vrot.slane %v11364_v52, 7  ;;  %v13932_v39 = vld [vmem:[#allocation47_spill] sm:$0xff] }
 0x861   :  { %v11611_v54 = vsel %vm217_vm1, %v13927_v27, %v4156_v57  ;;  %v7855_v34 = vpack.i.bf16 %v4254_v14, %v4253_v42  ;;  %v13931_v57 = vld [vmem:[#allocation92_spill] sm:$0xff]  ;;  %v11634_v14 = vmul.f32 %v4222_v32, %v13932_v39  ;;  %v13933_v35 = vld [vmem:[#allocation75_spill] sm:$0xff]  ;;  %v4287_v32 = vmul.f32 %v11376_v16, %v13775_v8  ;;  %v13936_v42 = vld [vmem:[#allocation93_spill] sm:$0xff] }
 0x862   :  { %v11623_v17 = vsel %vm217_vm1, %v13930_v60, %v13929_v62  ;;  %v11629_v27 = vmul.f32 %v11611_v54, %v13931_v57  ;;  %6708 = vmatmul.msk.bf16.gmra.mxu3 %vm1307_vm2, %v4833_v59  ;;  %7846 = vrot.lane.b32.xlu1 %v7845_v36, %s8464_s1  ;;  %v11637_v0 = vmul.f32 %v4221_v61, %v13933_v35  ;;  %v13935_v60 = vld [vmem:[#allocation82_spill] sm:$0xff]  ;;  %v6924_v57 = vld [vmem:[#allocation10 + $0x20] sm:$0xff]  ;;  %v7822_v35 = vpop.permute.xlu2 %7821 }
 0x863   :  { %7856 = vrot.lane.b32.xlu2 %v7855_v34, %s8479_s27  ;;  %v4288_v21 = vmul.f32 %v11623_v17, %v13773_v53  ;;  %v4304_v59 = vmul.f32 %v11399_v12, %v13774_v3  ;;  %v13934_v36 = vpack.i.bf16 %v11410_v38, %v11407_v19  ;;  %v4303_v34 = vmul.f32 %v11364_v52, %v13777_v55  ;;  %v13937_v19 = vld [vmem:[#allocation144_spill] sm:$0xff] }
 0x864   :  { %v4192_v9 = vmul.f32 %v11328_v6, %v13935_v60  ;;  %v4191_v31 = vmul.f32 %v11318_v50, %v13936_v42  ;;  %v4331_v38 = vmul.f32 %v4236_v4, %v13937_v19  ;;  %5012 = vmatpush.bf16.msrb.mxu1 %v6924_v57  ;;  %v4146_v55 = vrot.slane %v11415_v48, 7 }
 0x865   :  { %v7850_v61 = vpack.i.bf16 %v4288_v21, %v4287_v32  ;;  %v7860_v62 = vpack.i.bf16 %v4304_v59, %v4303_v34  ;;  %v4147_v59 = vrot.slane %v11431_v44, 7  ;;  %v7824_v3 = vunpack.i.h.bf16 %v7822_v35 }
 0x866   :  { %v7865_v21 = vpack.i.bf16 %v4192_v9, %v4191_v31  ;;  %v7823_v60 = vunpack.i.l.bf16 %v7822_v35 }
 0x867   :  { %7841 = vrot.lane.b32.xlu0 %v13934_v36, %s8478_s10 }
 0x86a   :  { %7851 = vrot.lane.b32.xlu1 %v7850_v61, %s8464_s1  ;;  %v13938_v61 = vld [vmem:[#allocation145_spill] sm:$0xff] }
 0x86b   :  { %7861 = vrot.lane.b32.xlu2 %v7860_v62, %s8479_s27  ;;  %v4332_v62 = vmul.f32 %v11340_v18, %v13938_v61 }
 0x86c   :  { %v7827_v39 = vpop.permute.xlu0 %7826  ;;  %v7832_v8 = vpop.permute.xlu1 %7831 }
 0x86d   :  { %v7829_v36 = vunpack.i.h.bf16 %v7827_v39  ;;  %v7828_v53 = vunpack.i.l.bf16 %v7827_v39  ;;  %v7834_v32 = vunpack.i.h.bf16 %v7832_v8  ;;  %v7833_v34 = vunpack.i.l.bf16 %v7832_v8 }
 0x86e   :  { %v4836_v8 = vpack.c.bf16 %v4332_v62, %v4331_v38  ;;  %v11678_v39 = vsel %vm217_vm1, %v4146_v55, %v4147_v59  ;;  %v13942_v38 = vld [vmem:[#allocation101_spill] sm:$0xff] }
 0x86f   :  { %v4766_v42 = vsel %vm1307_vm2, %v11318_v50, %v7829_v36  ;;  %v4765_v4 = vsel %vm1307_vm2, %v11320_v41, %v7828_v53  ;;  %7866 = vrot.lane.b32.xlu0 %v7865_v21, %s8478_s10  ;;  %v13939_v53 = vpack.i.bf16 %v11384_v7, %v11381_v23  ;;  %v13940_v50 = vpack.i.bf16 %v11392_v22, %v11388_v58  ;;  %v13943_v23 = vld [vmem:[#allocation88_spill] sm:$0xff]  ;;  %v13945_v22 = vld [vmem:[#allocation90_spill] sm:$0xff] }
 0x870   :  { %v4782_v31 = vsel %vm1324_vm3, %v4766_v42, %v7834_v32  ;;  %v4781_v9 = vsel %vm1324_vm3, %v4765_v4, %v7833_v34  ;;  %v4290_v42 = vmul.f32 %v11678_v39, %v13783_v28  ;;  %v4306_v36 = vmul.f32 %v11431_v44, %v13942_v38  ;;  %v13946_v34 = vld [vmem:[#allocation91_spill] sm:$0xff]  ;;  %v13947_v4 = vld [vmem:[#allocation102_spill] sm:$0xff]  ;;  %v6921_v28 = vld [vmem:[#allocation10 + $0x8] sm:$0xff] }
 0x871   :  { %v4798_v57 = vsel %vm1341_vm4, %v4782_v31, %v7824_v3  ;;  %v4797_v18 = vsel %vm1341_vm4, %v4781_v9, %v7823_v60  ;;  %v13941_v3 = vrot.slane %v11399_v12, 7  ;;  %v13944_v58 = vpack.i.bf16 %v11441_v26, %v11438_v63  ;;  %v6923_v9 = vld [vmem:[#allocation10 + $0x18] sm:$0xff]  ;;  %v13990_v38 = vld [vmem:[#allocation165_spill] sm:$0xff] }
 0x872   :  { %v4814_v35 = vpack.c.bf16 %v4798_v57, %v4797_v18  ;;  %6709 = vmatmul.msk.bf16.gmra.mxu3 %vm1307_vm2, %v4836_v8  ;;  %7871 = vrot.lane.b32.xlu1 %v13939_v53, %s8464_s1  ;;  %v4305_v21 = vmul.f32 %v11415_v48, %v13945_v22  ;;  %v4194_v62 = vmul.f32 %v11399_v12, %v13946_v34  ;;  %v13948_v57 = vld [vmem:[#allocation105_spill] sm:$0xff]  ;;  %v4149_v63 = vrot.slane %v11462_v10, 7  ;;  %v13949_v18 = vld [vmem:[#allocation95_spill] sm:$0xff] }
 0x873   :  { %7876 = vrot.lane.b32.xlu2 %v13940_v50, %s8479_s27  ;;  %v11693_v60 = vsel %vm217_vm1, %v13941_v3, %v4146_v55  ;;  %v4193_v31 = vmul.f32 %v11364_v52, %v13947_v4  ;;  %5013 = vmatpush.bf16.msrb.mxu1 %v6923_v9  ;;  %v4148_v53 = vrot.slane %v11446_v29, 7  ;;  %v13979_v22 = vld [vmem:[#allocation139_spill] sm:$0xff] }
 0x874   :  { %5066 = vmatmul.bf16.vlgmr.msrb.gmra.mxu2 %v4814_v35  ;;  %v4289_v7 = vmul.f32 %v11693_v60, %v13943_v23  ;;  %v7890_v32 = vpack.i.bf16 %v4306_v36, %v4305_v21  ;;  %v4258_v26 = vmul.f32 %v11693_v60, %v13948_v57  ;;  %v4257_v35 = vmul.f32 %v11623_v17, %v13949_v18  ;;  %v13952_v21 = vld [vmem:[#allocation107_spill] sm:$0xff] }
 0x875   :  { %v7895_v8 = vpack.i.bf16 %v4194_v62, %v4193_v31  ;;  %v11722_v3 = vsel %vm217_vm1, %v4148_v53, %v4149_v63  ;;  %v11731_v36 = vsel %vm217_vm1, %v4147_v59, %v4148_v53 }
 0x876   :  { %v7885_v55 = vpack.i.bf16 %v4290_v42, %v4289_v7  ;;  %v7905_v50 = vpack.i.bf16 %v4258_v26, %v4257_v35  ;;  %v13950_v42 = vpack.i.bf16 %v11426_v13, %v11423_v33  ;;  %v13951_v7 = vld [vmem:[#allocation108_spill] sm:$0xff]  ;;  %v13954_v33 = vpack.i.bf16 %v11472_v30, %v11469_v11  ;;  %v13955_v13 = vld [vmem:[#allocation99_spill] sm:$0xff] }
 0x877   :  { %7881 = vrot.lane.b32.xlu0 %v13944_v58, %s8478_s10  ;;  %v4292_v58 = vmul.f32 %v11722_v3, %v13951_v7  ;;  %v4307_v31 = vmul.f32 %v11446_v29, %v13955_v13  ;;  %v13957_v35 = vld [vmem:[#allocation103_spill] sm:$0xff]  ;;  %v13958_v7 = vld [vmem:[#allocation118_spill] sm:$0xff]  ;;  %v4151_v11 = vrot.slane %v11493_v5, 7 }
 0x878   :  { %v4195_v53 = vmul.f32 %v11415_v48, %v13957_v35  ;;  %v4260_v30 = vmul.f32 %v11731_v36, %v13958_v7  ;;  %v13996_v7 = vld [vmem:[#allocation43_spill] sm:$0xff] }
 0x87a   :  { %7886 = vrot.lane.b32.xlu1 %v7885_v55, %s8464_s1  ;;  %v4308_v55 = vmul.f32 %v11462_v10, %v13952_v21 }
 0x87b   :  { %7891 = vrot.lane.b32.xlu2 %v7890_v32, %s8479_s27  ;;  %v13953_v32 = vld [vmem:[#allocation97_spill] sm:$0xff] }
 0x87c   :  { %v4291_v62 = vmul.f32 %v11731_v36, %v13953_v32  ;;  %v7920_v59 = vpack.i.bf16 %v4308_v55, %v4307_v31 }
 0x87e   :  { %v7915_v9 = vpack.i.bf16 %v4292_v58, %v4291_v62  ;;  %v13959_v58 = vld [vmem:[#allocation116_spill] sm:$0xff]  ;;  %v4150_v62 = vrot.slane %v11477_v46, 7 }
 0x87f   :  { %7896 = vrot.lane.b32.xlu0 %v7895_v8, %s8478_s10  ;;  %v13956_v8 = vld [vmem:[#allocation110_spill] sm:$0xff]  ;;  %v4259_v55 = vmul.f32 %v11678_v39, %v13959_v58 }
 0x880   :  { %v4196_v26 = vmul.f32 %v11431_v44, %v13956_v8  ;;  %v11760_v31 = vsel %vm217_vm1, %v4150_v62, %v4151_v11 }
 0x882   :  { %7901 = vrot.lane.b32.xlu1 %v13950_v42, %s8464_s1  ;;  %v7925_v42 = vpack.i.bf16 %v4196_v26, %v4195_v53  ;;  %v13961_v26 = vld [vmem:[#allocation125_spill] sm:$0xff] }
 0x883   :  { %7906 = vrot.lane.b32.xlu2 %v7905_v50, %s8479_s27  ;;  %v6922_v50 = vld [vmem:[#allocation10 + $0x10] sm:$0xff]  ;;  %v4294_v53 = vmul.f32 %v11760_v31, %v13961_v26 }
 0x884   :  { %5014 = vmatpush.bf16.msrb.mxu1 %v6922_v50  ;;  %v13962_v50 = vld [vmem:[#allocation132_spill] sm:$0xff]  ;;  %v13967_v26 = vld [vmem:[#allocation117_spill] sm:$0xff] }
 0x887   :  { %7911 = vrot.lane.b32.xlu0 %v13954_v33, %s8478_s10  ;;  %v7935_v33 = vpack.i.bf16 %v4260_v30, %v4259_v55  ;;  %v13963_v30 = vld [vmem:[#allocation111_spill] sm:$0xff] }
 0x888   :  { %5015 = vmatpush.bf16.msrb.mxu1 %v6921_v28 }
 0x88a   :  { %7916 = vrot.lane.b32.xlu1 %v7915_v9, %s8464_s1  ;;  %v13960_v9 = vpack.i.bf16 %v11457_v51, %v11454_v45  ;;  %v13964_v45 = vpack.i.bf16 %v11503_v43, %v11500_v2  ;;  %v13965_v51 = vld [vmem:[#allocation113_spill] sm:$0xff]  ;;  %v4153_v2 = vrot.slane %v11524_v15, 7 }
 0x88b   :  { %7921 = vrot.lane.b32.xlu2 %v7920_v59, %s8479_s27  ;;  %v11769_v59 = vsel %vm217_vm1, %v4149_v63, %v4150_v62  ;;  %v13966_v62 = vld [vmem:[#allocation112_spill] sm:$0xff] }
 0x88c   :  { %v4293_v55 = vmul.f32 %v11769_v59, %v13963_v30  ;;  %v4198_v32 = vmul.f32 %v11462_v10, %v13966_v62  ;;  %v4197_v30 = vmul.f32 %v11446_v29, %v13967_v26 }
 0x88e   :  { %v7955_v23 = vpack.i.bf16 %v4198_v32, %v4197_v30  ;;  %v13970_v32 = vpack.i.bf16 %v11488_v56, %v11485_v47  ;;  %v13976_v56 = vld [vmem:[#allocation130_spill] sm:$0xff] }
 0x88f   :  { %7926 = vrot.lane.b32.xlu0 %v7925_v42, %s8478_s10  ;;  %v4310_v42 = vmul.f32 %v11493_v5, %v13962_v50  ;;  %v13968_v50 = vld [vmem:[#allocation133_spill] sm:$0xff] }
 0x890   :  { %v4262_v43 = vmul.f32 %v11769_v59, %v13968_v50 }
 0x892   :  { %7931 = vrot.lane.b32.xlu1 %v13960_v9, %s8464_s1  ;;  %v7945_v9 = vpack.i.bf16 %v4294_v53, %v4293_v55  ;;  %v13969_v53 = vld [vmem:[#allocation119_spill] sm:$0xff]  ;;  %v4152_v55 = vrot.slane %v11508_v24, 7 }
 0x893   :  { %7936 = vrot.lane.b32.xlu2 %v7935_v33, %s8479_s27  ;;  %v4309_v33 = vmul.f32 %v11477_v46, %v13965_v51  ;;  %v13974_v51 = vld [vmem:[#allocation159_spill] sm:$0xff] }
 0x894   :  { %v11807_v28 = vsel %vm217_vm1, %v4151_v11, %v4152_v55  ;;  %v13975_v47 = vpack.i.bf16 %v11534_v20, %v13974_v51  ;;  %v13980_v51 = vld [vmem:[#allocation122_spill] sm:$0xff] }
 0x895   :  { %v7950_v63 = vpack.i.bf16 %v4310_v42, %v4309_v33  ;;  %v4261_v42 = vmul.f32 %v11722_v3, %v13969_v53  ;;  %v11798_v33 = vsel %vm217_vm1, %v4152_v55, %v4153_v2  ;;  %v13977_v55 = vld [vmem:[#allocation114_spill] sm:$0xff]  ;;  %v4264_v20 = vmul.f32 %v11807_v28, %v13979_v22 }
 0x896   :  { %v4200_v13 = vmul.f32 %v11493_v5, %v13977_v55  ;;  %v13989_v22 = vld [vmem:[#allocation46_spill] sm:$0xff] }
 0x897   :  { %7941 = vrot.lane.b32.xlu0 %v13964_v45, %s8478_s10  ;;  %v7965_v45 = vpack.i.bf16 %v4262_v43, %v4261_v42  ;;  %v13973_v43 = vld [vmem:[#allocation128_spill] sm:$0xff]  ;;  %v13991_v53 = vld [vmem:[#allocation162_spill] sm:$0xff] }
 0x898   :  { %v4295_v42 = vmul.f32 %v11807_v28, %v13973_v43 }
 0x89a   :  { %7946 = vrot.lane.b32.xlu1 %v7945_v9, %s8464_s1  ;;  %v13972_v9 = vld [vmem:[#allocation134_spill] sm:$0xff] }
 0x89b   :  { %7951 = vrot.lane.b32.xlu2 %v7950_v63, %s8479_s27  ;;  %v4312_v63 = vmul.f32 %v11524_v15, %v13972_v9  ;;  %v6920_v9 = vld [vmem:[#allocation10] sm:$0xff] }
 0x89c   :  { %5016 = vmatpush.bf16.msrb.mxu1 %v6920_v9  ;;  %v13987_v9 = vld [vmem:[#allocation141_spill] sm:$0xff] }
 0x89f   :  { %7956 = vrot.lane.b32.xlu0 %v7955_v23, %s8478_s10  ;;  %v13971_v23 = vld [vmem:[#allocation42_spill] sm:$0xff] }
 0x8a0   :  { %v4296_v30 = vmul.f32 %v11798_v33, %v13971_v23  ;;  %v13978_v23 = vld [vmem:[#allocation36_spill] sm:$0xff] }
 0x8a1   :  { %v4199_v43 = vmul.f32 %v11477_v46, %v13978_v23 }
 0x8a2   :  { %7961 = vrot.lane.b32.xlu1 %v13970_v32, %s8464_s1  ;;  %v7975_v32 = vpack.i.bf16 %v4296_v30, %v4295_v42  ;;  %v4263_v30 = vmul.f32 %v11760_v31, %v13980_v51 }
 0x8a3   :  { %7966 = vrot.lane.b32.xlu2 %v7965_v45, %s8479_s27  ;;  %v4311_v45 = vmul.f32 %v11508_v24, %v13976_v56  ;;  %v7985_v21 = vpack.i.bf16 %v4200_v13, %v4199_v43  ;;  %v13984_v13 = vld [vmem:[#allocation157_spill] sm:$0xff]  ;;  %v13985_v43 = vld [vmem:[#allocation156_spill] sm:$0xff] }
 0x8a4   :  { %v13986_v56 = vpack.i.bf16 %v13984_v13, %v13985_v43  ;;  %v13992_v13 = vpack.i.bf16 %v13990_v38, %v13991_v53  ;;  %v13997_v53 = vld [vmem:[#allocation44_spill] sm:$0xff] }
 0x8a5   :  { %v7980_v11 = vpack.i.bf16 %v4312_v63, %v4311_v45  ;;  %v13981_v63 = vld [vmem:[#allocation158_spill] sm:$0xff]  ;;  %v13982_v45 = vld [vmem:[#allocation163_spill] sm:$0xff] }
 0x8a6   :  { %v4154_v42 = vrot.slane %v13981_v63, 7 }
 0x8a7   :  { %7971 = vrot.lane.b32.xlu0 %v13975_v47, %s8478_s10  ;;  %v7995_v47 = vpack.i.bf16 %v4264_v20, %v4263_v30  ;;  %v13988_v30 = vld [vmem:[#allocation140_spill] sm:$0xff] }
 0x8a8   :  { %v4314_v51 = vmul.f32 %v13982_v45, %v13988_v30 }
 0x8aa   :  { %7976 = vrot.lane.b32.xlu1 %v7975_v32, %s8464_s1  ;;  %v13983_v32 = vrot.slane %v13982_v45, 7 }
 0x8ab   :  { %7981 = vrot.lane.b32.xlu2 %v7980_v11, %s8479_s27 }
 0x8ac   :  { %v11837_v11 = vsel %vm217_vm1, %v4154_v42, %v13983_v32 }
 0x8ad   :  { %v4298_v20 = vmul.f32 %v11837_v11, %v13987_v9  ;;  %v13995_v9 = vld [vmem:[#allocation32_spill] sm:$0xff] }
 0x8af   :  { %7986 = vrot.lane.b32.xlu0 %v7985_v21, %s8478_s10  ;;  %v11846_v21 = vsel %vm217_vm1, %v4153_v2, %v4154_v42  ;;  %v13994_v42 = vld [vmem:[#allocation39_spill] sm:$0xff] }
 0x8b0   :  { %v4297_v32 = vmul.f32 %v11846_v21, %v13989_v22  ;;  %v4202_v50 = vmul.f32 %v11524_v15, %v13994_v42  ;;  %v4201_v22 = vmul.f32 %v11508_v24, %v13995_v9  ;;  %v4266_v38 = vmul.f32 %v11846_v21, %v13996_v7 }
 0x8b2   :  { %7991 = vrot.lane.b32.xlu1 %v13986_v56, %s8464_s1  ;;  %v13993_v56 = vld [vmem:[#allocation138_spill] sm:$0xff]  ;;  %v8005_v43 = vpack.i.bf16 %v4298_v20, %v4297_v32  ;;  %v8015_v58 = vpack.i.bf16 %v4202_v50, %v4201_v22  ;;  %v13998_v32 = vld [vmem:[#allocation160_spill] sm:$0xff]  ;;  %v14003_v50 = vpack.i.bf16 %v11605_v37, %v11602_v1 }
 0x8b3   :  { %7996 = vrot.lane.b32.xlu2 %v7995_v47, %s8479_s27  ;;  %v4313_v47 = vmul.f32 %v13981_v63, %v13993_v56  ;;  %v14002_v56 = vld [vmem:[#allocation164_spill] sm:$0xff] }
 0x8b4   :  { %v14008_v1 = vld [vmem:[#allocation52_spill] sm:$0xff] }
 0x8b5   :  { %v8010_v2 = vpack.i.bf16 %v4314_v51, %v4313_v47  ;;  %v4265_v51 = vmul.f32 %v11798_v33, %v13997_v53 }
 0x8b7   :  { %8001 = vrot.lane.b32.xlu0 %v13992_v13, %s8478_s10  ;;  %v8025_v20 = vpack.i.bf16 %v4266_v38, %v4265_v51  ;;  %v13999_v13 = vld [vmem:[#allocation161_spill] sm:$0xff]  ;;  %v14005_v51 = vld [vmem:[#allocation51_spill] sm:$0xff] }
 0x8b8   :  { %v14000_v47 = vpack.i.bf16 %v13998_v32, %v13999_v13  ;;  %v4204_v7 = vmul.f32 %v13982_v45, %v14005_v51  ;;  %v14007_v32 = vld [vmem:[#allocation48_spill] sm:$0xff] }
 0x8b9   :  { %v4203_v13 = vmul.f32 %v13981_v63, %v14007_v32 }
 0x8ba   :  { %8006 = vrot.lane.b32.xlu1 %v8005_v43, %s8464_s1 }
 0x8bb   :  { %8011 = vrot.lane.b32.xlu2 %v8010_v2, %s8479_s27  ;;  %v14001_v2 = vld [vmem:[#allocation41_spill] sm:$0xff]  ;;  %v8040_v37 = vpack.i.bf16 %v4204_v7, %v4203_v13  ;;  %v14011_v7 = vld [vmem:[#allocation20_spill] sm:$0xff] }
 0x8bc   :  { %v4315_v22 = vmul.f32 %v14002_v56, %v14001_v2 }
 0x8bd   :  { %v7857_v30 = vpop.permute.xlu2 %7856 }
 0x8bf   :  { %8016 = vrot.lane.b32.xlu0 %v8015_v58, %s8478_s10  ;;  %v14004_v58 = vld [vmem:[#allocation53_spill] sm:$0xff] }
 0x8c0   :  { %v4316_v53 = vmul.f32 %v11320_v41, %v14004_v58  ;;  %v14009_v41 = vld [vmem:[#allocation54_spill] sm:$0xff] }
 0x8c2   :  { %8021 = vrot.lane.b32.xlu1 %v14000_v47, %s8464_s1  ;;  %v8030_v38 = vpack.i.bf16 %v4316_v53, %v4315_v22  ;;  %v4267_v53 = vmul.f32 %v11837_v11, %v14009_v41 }
 0x8c3   :  { %8026 = vrot.lane.b32.xlu2 %v8025_v20, %s8479_s27  ;;  %v14006_v20 = vpack.i.bf16 %v11615_v25, %v11629_v27  ;;  %v14010_v27 = vpack.i.bf16 %v11637_v0, %v11634_v14 }
 0x8c5   :  { %v7862_v43 = vpop.permute.xlu2 %7861 }
 0x8c6   :  { %v7864_v42 = vunpack.i.h.bf16 %v7862_v43 }
 0x8c7   :  { %8036 = vrot.lane.b32.xlu0 %v14003_v50, %s8478_s10  ;;  %v4268_v50 = vmul.f32 %v11611_v54, %v14008_v1 }
 0x8c9   :  { %v8055_v58 = vpack.i.bf16 %v4268_v50, %v4267_v53  ;;  %v7859_v50 = vunpack.i.h.bf16 %v7857_v30  ;;  %v7858_v53 = vunpack.i.l.bf16 %v7857_v30 }
 0x8ca   :  { %8046 = vrot.lane.b32.xlu1 %v14006_v20, %s8464_s1  ;;  %v14012_v20 = vld [vmem:[#allocation23_spill] sm:$0xff] }
 0x8cb   :  { %8031 = vrot.lane.b32.xlu2 %v8030_v38, %s8479_s27  ;;  %v4173_v38 = vmul.f32 %v11611_v54, %v14011_v7  ;;  %v4174_v13 = vmul.f32 %v11593_v40, %v14012_v20 }
 0x8cd   :  { %v7877_v47 = vpop.permute.xlu2 %7876 }
 0x8cf   :  { %8041 = vrot.lane.b32.xlu0 %v8040_v37, %s8478_s10 }
 0x8d1   :  { %v7837_v22 = vpop.permute.xlu0 %7836 }
 0x8d2   :  { %v7839_v2 = vunpack.i.h.bf16 %v7837_v22  ;;  %v7838_v25 = vunpack.i.l.bf16 %v7837_v22  ;;  %8051 = vrot.lane.b32.xlu1 %v14010_v27, %s8464_s1 }
 0x8d3   :  { %8056 = vrot.lane.b32.xlu2 %v8055_v58, %s8479_s27 }
 0x8d4   :  { %v7847_v37 = vpop.permute.xlu1 %7846  ;;  %v4717_v22 = vsel %vm1307_vm2, %v4173_v38, %v7838_v25  ;;  %v4718_v57 = vsel %vm1307_vm2, %v4174_v13, %v7839_v2  ;;  %v7863_v25 = vunpack.i.l.bf16 %v7862_v43  ;;  %v14013_v43 = vld [vmem:[#allocation22_spill] sm:$0xff] }
 0x8d5   :  { %v7849_v1 = vunpack.i.h.bf16 %v7847_v37  ;;  %v7848_v41 = vunpack.i.l.bf16 %v7847_v37  ;;  %v7892_v18 = vpop.permute.xlu2 %7891 }
 0x8d7   :  { %v4734_v14 = vsel %vm1324_vm3, %v4718_v57, %v7849_v1  ;;  %v4733_v0 = vsel %vm1324_vm3, %v4717_v22, %v7848_v41 }
 0x8d8   :  { %v4749_v58 = vsel %vm1341_vm4, %v4733_v0, %v7858_v53  ;;  %v4750_v54 = vsel %vm1341_vm4, %v4734_v14, %v7859_v50 }
 0x8d9   :  { %v4813_v27 = vpack.c.bf16 %v4750_v54, %v4749_v58  ;;  %v7842_v40 = vpop.permute.xlu0 %7841  ;;  %v14014_v58 = vld [vmem:[#allocation89_spill] sm:$0xff] }
 0x8da   :  { %v7844_v7 = vunpack.i.h.bf16 %v7842_v40  ;;  %v7843_v20 = vunpack.i.l.bf16 %v7842_v40  ;;  %v14016_v54 = vld [vmem:[#allocation85_spill] sm:$0xff]  ;;  %v7879_v40 = vunpack.i.h.bf16 %v7877_v47 }
 0x8db   :  { %5017 = vmatmul.bf16.vlgmr.msrb.gmra.mxu1 %v4813_v27 }
 0x8dc   :  { %v7852_v37 = vpop.permute.xlu1 %7851  ;;  %v4768_v2 = vsel %vm1307_vm2, %v11364_v52, %v7844_v7  ;;  %v4767_v57 = vsel %vm1307_vm2, %v11328_v6, %v7843_v20  ;;  %v4176_v52 = vmul.f32 %v14014_v58, %v14013_v43  ;;  %v14015_v7 = vld [vmem:[#allocation19_spill] sm:$0xff] }
 0x8dd   :  { %v7854_v9 = vunpack.i.h.bf16 %v7852_v37  ;;  %v7853_v30 = vunpack.i.l.bf16 %v7852_v37  ;;  %v7907_v38 = vpop.permute.xlu2 %7906  ;;  %v4175_v6 = vmul.f32 %v14016_v54, %v14015_v7  ;;  %v7878_v37 = vunpack.i.l.bf16 %v7877_v47 }
 0x8df   :  { %v4784_v1 = vsel %vm1324_vm3, %v4768_v2, %v7854_v9  ;;  %v4783_v41 = vsel %vm1324_vm3, %v4767_v57, %v7853_v30 }
 0x8e0   :  { %v4799_v13 = vsel %vm1341_vm4, %v4783_v41, %v7863_v25  ;;  %v4800_v50 = vsel %vm1341_vm4, %v4784_v1, %v7864_v42 }
 0x8e1   :  { %v7867_v53 = vpop.permute.xlu0 %7866  ;;  %v4817_v22 = vpack.c.bf16 %v4800_v50, %v4799_v13 }
 0x8e2   :  { %v7869_v14 = vunpack.i.h.bf16 %v7867_v53  ;;  %v7868_v0 = vunpack.i.l.bf16 %v7867_v53 }
 0x8e3   :  { %5071 = vmatmul.bf16.gmra.mxu2 %v4817_v22 }
 0x8e4   :  { %v7872_v20 = vpop.permute.xlu1 %7871  ;;  %v4720_v30 = vsel %vm1307_vm2, %v4176_v52, %v7869_v14  ;;  %v4719_v42 = vsel %vm1307_vm2, %v4175_v6, %v7868_v0  ;;  %v7894_v14 = vunpack.i.h.bf16 %v7892_v18  ;;  %v7893_v52 = vunpack.i.l.bf16 %v7892_v18  ;;  %v14017_v18 = vld [vmem:[#allocation18_spill] sm:$0xff] }
 0x8e5   :  { %v7874_v9 = vunpack.i.h.bf16 %v7872_v20  ;;  %v7873_v27 = vunpack.i.l.bf16 %v7872_v20  ;;  %v7922_v41 = vpop.permute.xlu2 %7921 }
 0x8e7   :  { %v4736_v25 = vsel %vm1324_vm3, %v4720_v30, %v7874_v9  ;;  %v4735_v2 = vsel %vm1324_vm3, %v4719_v42, %v7873_v27 }
 0x8e8   :  { %v4751_v57 = vsel %vm1341_vm4, %v4735_v2, %v7878_v37  ;;  %v4752_v1 = vsel %vm1341_vm4, %v4736_v25, %v7879_v40 }
 0x8e9   :  { %v7882_v13 = vpop.permute.xlu0 %7881  ;;  %v4816_v50 = vpack.c.bf16 %v4752_v1, %v4751_v57  ;;  %v14018_v57 = vld [vmem:[#allocation17_spill] sm:$0xff] }
 0x8ea   :  { %v7884_v53 = vunpack.i.h.bf16 %v7882_v13  ;;  %v7883_v22 = vunpack.i.l.bf16 %v7882_v13 }
 0x8eb   :  { %5022 = vmatmul.bf16.gmra.mxu1 %v4816_v50 }
 0x8ec   :  { %v7887_v58 = vpop.permute.xlu1 %7886  ;;  %v4770_v0 = vsel %vm1307_vm2, %v11415_v48, %v7884_v53  ;;  %v4769_v6 = vsel %vm1307_vm2, %v11399_v12, %v7883_v22  ;;  %v4178_v48 = vmul.f32 %v11623_v17, %v14017_v18  ;;  %v4177_v12 = vmul.f32 %v11376_v16, %v14018_v57 }
 0x8ed   :  { %v7889_v47 = vunpack.i.h.bf16 %v7887_v58  ;;  %v7888_v54 = vunpack.i.l.bf16 %v7887_v58  ;;  %v7937_v2 = vpop.permute.xlu2 %7936  ;;  %v7909_v53 = vunpack.i.h.bf16 %v7907_v38  ;;  %v7908_v22 = vunpack.i.l.bf16 %v7907_v38 }
 0x8ef   :  { %v4786_v20 = vsel %vm1324_vm3, %v4770_v0, %v7889_v47  ;;  %v4785_v9 = vsel %vm1324_vm3, %v4769_v6, %v7888_v54 }
 0x8f0   :  { %v4801_v27 = vsel %vm1341_vm4, %v4785_v9, %v7893_v52  ;;  %v4802_v40 = vsel %vm1341_vm4, %v4786_v20, %v7894_v14 }
 0x8f1   :  { %v7897_v37 = vpop.permute.xlu0 %7896  ;;  %v4820_v30 = vpack.c.bf16 %v4802_v40, %v4801_v27 }
 0x8f2   :  { %v7899_v42 = vunpack.i.h.bf16 %v7897_v37  ;;  %v7898_v25 = vunpack.i.l.bf16 %v7897_v37  ;;  %v7924_v37 = vunpack.i.h.bf16 %v7922_v41 }
 0x8f3   :  { %5076 = vmatmul.bf16.gmra.mxu2 %v4820_v30  ;;  %v7923_v30 = vunpack.i.l.bf16 %v7922_v41  ;;  %v14019_v41 = vld [vmem:[#allocation24_spill] sm:$0xff] }
 0x8f4   :  { %v7902_v1 = vpop.permute.xlu1 %7901  ;;  %v4722_v58 = vsel %vm1307_vm2, %v4178_v48, %v7899_v42  ;;  %v4721_v47 = vsel %vm1307_vm2, %v4177_v12, %v7898_v25 }
 0x8f5   :  { %v7904_v13 = vunpack.i.h.bf16 %v7902_v1  ;;  %v7903_v50 = vunpack.i.l.bf16 %v7902_v1  ;;  %v7952_v27 = vpop.permute.xlu2 %7951 }
 0x8f7   :  { %v4738_v54 = vsel %vm1324_vm3, %v4722_v58, %v7904_v13  ;;  %v4737_v14 = vsel %vm1324_vm3, %v4721_v47, %v7903_v50  ;;  %v4180_v47 = vmul.f32 %v11678_v39, %v14019_v41 }
 0x8f8   :  { %v4753_v52 = vsel %vm1341_vm4, %v4737_v14, %v7908_v22  ;;  %v4754_v17 = vsel %vm1341_vm4, %v4738_v54, %v7909_v53 }
 0x8f9   :  { %v7912_v0 = vpop.permute.xlu0 %7911  ;;  %v4819_v6 = vpack.c.bf16 %v4754_v17, %v4753_v52  ;;  %v7939_v17 = vunpack.i.h.bf16 %v7937_v2 }
 0x8fa   :  { %v7914_v16 = vunpack.i.h.bf16 %v7912_v0  ;;  %v7913_v20 = vunpack.i.l.bf16 %v7912_v0  ;;  %v7938_v0 = vunpack.i.l.bf16 %v7937_v2 }
 0x8fb   :  { %5027 = vmatmul.bf16.gmra.mxu1 %v4819_v6 }
 0x8fc   :  { %v7917_v9 = vpop.permute.xlu1 %7916  ;;  %v4772_v42 = vsel %vm1307_vm2, %v11446_v29, %v7914_v16  ;;  %v4771_v25 = vsel %vm1307_vm2, %v11431_v44, %v7913_v20  ;;  %v14020_v29 = vld [vmem:[#allocation25_spill] sm:$0xff] }
 0x8fd   :  { %v7919_v38 = vunpack.i.h.bf16 %v7917_v9  ;;  %v7918_v40 = vunpack.i.l.bf16 %v7917_v9  ;;  %v4179_v54 = vmul.f32 %v11693_v60, %v14020_v29  ;;  %v7967_v20 = vpop.permute.xlu2 %7966 }
 0x8ff   :  { %v4788_v48 = vsel %vm1324_vm3, %v4772_v42, %v7919_v38  ;;  %v4787_v12 = vsel %vm1324_vm3, %v4771_v25, %v7918_v40 }
 0x900   :  { %v4803_v1 = vsel %vm1341_vm4, %v4787_v12, %v7923_v30  ;;  %v4804_v13 = vsel %vm1341_vm4, %v4788_v48, %v7924_v37  ;;  %v7954_v12 = vunpack.i.h.bf16 %v7952_v27 }
 0x901   :  { %v7927_v50 = vpop.permute.xlu0 %7926  ;;  %v4823_v53 = vpack.c.bf16 %v4804_v13, %v4803_v1  ;;  %v7953_v1 = vunpack.i.l.bf16 %v7952_v27  ;;  %v14021_v27 = vld [vmem:[#allocation28_spill] sm:$0xff] }
 0x902   :  { %v7929_v22 = vunpack.i.h.bf16 %v7927_v50  ;;  %v7928_v58 = vunpack.i.l.bf16 %v7927_v50 }
 0x903   :  { %5081 = vmatmul.bf16.gmra.mxu2 %v4823_v53 }
 0x904   :  { %v7932_v44 = vpop.permute.xlu1 %7931  ;;  %v4724_v6 = vsel %vm1307_vm2, %v4180_v47, %v7929_v22  ;;  %v4723_v16 = vsel %vm1307_vm2, %v4179_v54, %v7928_v58 }
 0x905   :  { %v7934_v14 = vunpack.i.h.bf16 %v7932_v44  ;;  %v7933_v52 = vunpack.i.l.bf16 %v7932_v44  ;;  %v7982_v54 = vpop.permute.xlu2 %7981 }
 0x907   :  { %v4740_v9 = vsel %vm1324_vm3, %v4724_v6, %v7934_v14  ;;  %v4739_v38 = vsel %vm1324_vm3, %v4723_v16, %v7933_v52 }
 0x908   :  { %v4755_v40 = vsel %vm1341_vm4, %v4739_v38, %v7938_v0  ;;  %v4756_v39 = vsel %vm1341_vm4, %v4740_v9, %v7939_v17  ;;  %v14022_v0 = vld [vmem:[#allocation21_spill] sm:$0xff]  ;;  %v7969_v38 = vunpack.i.h.bf16 %v7967_v20 }
 0x909   :  { %v7942_v37 = vpop.permute.xlu0 %7941  ;;  %v4822_v60 = vpack.c.bf16 %v4756_v39, %v4755_v40  ;;  %v7968_v40 = vunpack.i.l.bf16 %v7967_v20 }
 0x90a   :  { %v7944_v30 = vunpack.i.h.bf16 %v7942_v37  ;;  %v7943_v42 = vunpack.i.l.bf16 %v7942_v37 }
 0x90b   :  { %5032 = vmatmul.bf16.gmra.mxu1 %v4822_v60 }
 0x90c   :  { %v7947_v25 = vpop.permute.xlu1 %7946  ;;  %v4774_v13 = vsel %vm1307_vm2, %v11477_v46, %v7944_v30  ;;  %v4773_v50 = vsel %vm1307_vm2, %v11462_v10, %v7943_v42  ;;  %v4182_v46 = vmul.f32 %v11722_v3, %v14021_v27  ;;  %v4181_v10 = vmul.f32 %v11731_v36, %v14022_v0 }
 0x90d   :  { %v7949_v2 = vunpack.i.h.bf16 %v7947_v25  ;;  %v7948_v48 = vunpack.i.l.bf16 %v7947_v25 }
 0x90f   :  { %v4790_v53 = vsel %vm1324_vm3, %v4774_v13, %v7949_v2  ;;  %v4789_v22 = vsel %vm1324_vm3, %v4773_v50, %v7948_v48  ;;  %v7984_v50 = vunpack.i.h.bf16 %v7982_v54 }
 0x910   :  { %v4805_v58 = vsel %vm1341_vm4, %v4789_v22, %v7953_v1  ;;  %v4806_v47 = vsel %vm1341_vm4, %v4790_v53, %v7954_v12  ;;  %v7997_v12 = vpop.permute.xlu2 %7996  ;;  %v7983_v53 = vunpack.i.l.bf16 %v7982_v54  ;;  %v14023_v54 = vld [vmem:[#allocation26_spill] sm:$0xff] }
 0x911   :  { %v7957_v44 = vpop.permute.xlu0 %7956  ;;  %v4826_v14 = vpack.c.bf16 %v4806_v47, %v4805_v58 }
 0x912   :  { %v7959_v52 = vunpack.i.h.bf16 %v7957_v44  ;;  %v7958_v17 = vunpack.i.l.bf16 %v7957_v44 }
 0x913   :  { %5086 = vmatmul.bf16.gmra.mxu2 %v4826_v14 }
 0x914   :  { %v7962_v6 = vpop.permute.xlu1 %7961  ;;  %v4726_v39 = vsel %vm1307_vm2, %v4182_v46, %v7959_v52  ;;  %v4725_v37 = vsel %vm1307_vm2, %v4181_v10, %v7958_v17 }
 0x915   :  { %v7964_v16 = vunpack.i.h.bf16 %v7962_v6  ;;  %v7963_v9 = vunpack.i.l.bf16 %v7962_v6 }
 0x917   :  { %v4742_v60 = vsel %vm1324_vm3, %v4726_v39, %v7964_v16  ;;  %v4741_v30 = vsel %vm1324_vm3, %v4725_v37, %v7963_v9  ;;  %v4184_v16 = vmul.f32 %v11760_v31, %v14023_v54  ;;  %v7999_v37 = vunpack.i.h.bf16 %v7997_v12 }
 0x918   :  { %v4757_v42 = vsel %vm1341_vm4, %v4741_v30, %v7968_v40  ;;  %v4758_v3 = vsel %vm1341_vm4, %v4742_v60, %v7969_v38  ;;  %v8012_v38 = vpop.permute.xlu2 %8011  ;;  %v7998_v60 = vunpack.i.l.bf16 %v7997_v12 }
 0x919   :  { %v7972_v25 = vpop.permute.xlu0 %7971  ;;  %v4825_v2 = vpack.c.bf16 %v4758_v3, %v4757_v42 }
 0x91a   :  { %v7974_v36 = vunpack.i.h.bf16 %v7972_v25  ;;  %v7973_v48 = vunpack.i.l.bf16 %v7972_v25 }
 0x91b   :  { %5037 = vmatmul.bf16.gmra.mxu1 %v4825_v2 }
 0x91c   :  { %v7977_v1 = vpop.permute.xlu1 %7976  ;;  %v4776_v22 = vsel %vm1307_vm2, %v11508_v24, %v7974_v36  ;;  %v4775_v58 = vsel %vm1307_vm2, %v11493_v5, %v7973_v48  ;;  %v14024_v24 = vld [vmem:[#allocation27_spill] sm:$0xff] }
 0x91d   :  { %v7979_v20 = vunpack.i.h.bf16 %v7977_v1  ;;  %v7978_v13 = vunpack.i.l.bf16 %v7977_v1  ;;  %v4183_v9 = vmul.f32 %v11769_v59, %v14024_v24 }
 0x91f   :  { %v4792_v47 = vsel %vm1324_vm3, %v4776_v22, %v7979_v20  ;;  %v4791_v44 = vsel %vm1324_vm3, %v4775_v58, %v7978_v13 }
 0x920   :  { %v4807_v14 = vsel %vm1341_vm4, %v4791_v44, %v7983_v53  ;;  %v4808_v52 = vsel %vm1341_vm4, %v4792_v47, %v7984_v50  ;;  %v8014_v50 = vunpack.i.h.bf16 %v8012_v38  ;;  %v8013_v53 = vunpack.i.l.bf16 %v8012_v38  ;;  %v8027_v47 = vpop.permute.xlu2 %8026 }
 0x921   :  { %v7987_v17 = vpop.permute.xlu0 %7986  ;;  %v4829_v46 = vpack.c.bf16 %v4808_v52, %v4807_v14 }
 0x922   :  { %v7989_v10 = vunpack.i.h.bf16 %v7987_v17  ;;  %v7988_v6 = vunpack.i.l.bf16 %v7987_v17 }
 0x923   :  { %5091 = vmatmul.bf16.gmra.mxu2 %v4829_v46 }
 0x924   :  { %v7992_v5 = vpop.permute.xlu1 %7991  ;;  %v4728_v30 = vsel %vm1307_vm2, %v4184_v16, %v7989_v10  ;;  %v4727_v42 = vsel %vm1307_vm2, %v4183_v9, %v7988_v6  ;;  %v14025_v9 = vld [vmem:[#allocation31_spill] sm:$0xff] }
 0x925   :  { %v7994_v40 = vunpack.i.h.bf16 %v7992_v5  ;;  %v7993_v39 = vunpack.i.l.bf16 %v7992_v5  ;;  %v14026_v5 = vld [vmem:[#allocation30_spill] sm:$0xff] }
 0x927   :  { %v4744_v3 = vsel %vm1324_vm3, %v4728_v30, %v7994_v40  ;;  %v4743_v25 = vsel %vm1324_vm3, %v4727_v42, %v7993_v39 }
 0x928   :  { %v4759_v2 = vsel %vm1341_vm4, %v4743_v25, %v7998_v60  ;;  %v4760_v31 = vsel %vm1341_vm4, %v4744_v3, %v7999_v37  ;;  %v8029_v37 = vunpack.i.h.bf16 %v8027_v47  ;;  %v8028_v60 = vunpack.i.l.bf16 %v8027_v47 }
 0x929   :  { %v8002_v36 = vpop.permute.xlu0 %8001  ;;  %v4828_v59 = vpack.c.bf16 %v4760_v31, %v4759_v2  ;;  %v8032_v31 = vpop.permute.xlu2 %8031 }
 0x92a   :  { %v8004_v48 = vunpack.i.h.bf16 %v8002_v36  ;;  %v8003_v1 = vunpack.i.l.bf16 %v8002_v36 }
 0x92b   :  { %5042 = vmatmul.bf16.gmra.mxu1 %v4828_v59 }
 0x92c   :  { %v8007_v20 = vpop.permute.xlu1 %8006  ;;  %v4778_v22 = vsel %vm1307_vm2, %v13981_v63, %v8004_v48  ;;  %v4777_v58 = vsel %vm1307_vm2, %v11524_v15, %v8003_v1  ;;  %v4186_v63 = vmul.f32 %v11798_v33, %v14025_v9  ;;  %v4185_v15 = vmul.f32 %v11807_v28, %v14026_v5 }
 0x92d   :  { %v8009_v13 = vunpack.i.h.bf16 %v8007_v20  ;;  %v8008_v12 = vunpack.i.l.bf16 %v8007_v20 }
 0x92f   :  { %v4794_v44 = vsel %vm1324_vm3, %v4778_v22, %v8009_v13  ;;  %v4793_v14 = vsel %vm1324_vm3, %v4777_v58, %v8008_v12  ;;  %v12021_v12 = vpop.f32.mrf.mxu3 }
 0x930   :  { %v4809_v52 = vsel %vm1341_vm4, %v4793_v14, %v8013_v53  ;;  %v4810_v17 = vsel %vm1341_vm4, %v4794_v44, %v8014_v50  ;;  %v8034_v50 = vunpack.i.h.bf16 %v8032_v31  ;;  %v8033_v53 = vunpack.i.l.bf16 %v8032_v31 }
 0x931   :  { %v8017_v46 = vpop.permute.xlu0 %8016  ;;  %v4832_v10 = vpack.c.bf16 %v4810_v17, %v4809_v52 }
 0x932   :  { %v8019_v6 = vunpack.i.h.bf16 %v8017_v46  ;;  %v8018_v16 = vunpack.i.l.bf16 %v8017_v46 }
 0x933   :  { %5096 = vmatmul.bf16.gmra.mxu2 %v4832_v10 }
 0x934   :  { %v8022_v38 = vpop.permute.xlu1 %8021  ;;  %v4730_v30 = vsel %vm1307_vm2, %v4186_v63, %v8019_v6  ;;  %v4729_v42 = vsel %vm1307_vm2, %v4185_v15, %v8018_v16  ;;  %v8057_v16 = vpop.permute.xlu2 %8056  ;;  %v14027_v63 = vld [vmem:[#allocation33_spill] sm:$0xff] }
 0x935   :  { %v8024_v40 = vunpack.i.h.bf16 %v8022_v38  ;;  %v8023_v39 = vunpack.i.l.bf16 %v8022_v38  ;;  %v14028_v15 = vld [vmem:[#allocation29_spill] sm:$0xff] }
 0x937   :  { %v4746_v3 = vsel %vm1324_vm3, %v4730_v30, %v8024_v40  ;;  %v4745_v25 = vsel %vm1324_vm3, %v4729_v42, %v8023_v39 }
 0x938   :  { %v4761_v2 = vsel %vm1341_vm4, %v4745_v25, %v8028_v60  ;;  %v4762_v33 = vsel %vm1341_vm4, %v4746_v3, %v8029_v37  ;;  %v8059_v37 = vunpack.i.h.bf16 %v8057_v16  ;;  %v8058_v60 = vunpack.i.l.bf16 %v8057_v16 }
 0x939   :  { %v8037_v36 = vpop.permute.xlu0 %8036  ;;  %v4831_v28 = vpack.c.bf16 %v4762_v33, %v4761_v2  ;;  %v5118_v2 = vpop.f32.mrf.mxu3 }
 0x93a   :  { %v8039_v59 = vunpack.i.h.bf16 %v8037_v36  ;;  %v8038_v48 = vunpack.i.l.bf16 %v8037_v36  ;;  %v12041_v36 = vpop.f32.mrf.mxu2 }
 0x93b   :  { %5047 = vmatmul.bf16.gmra.mxu1 %v4831_v28 }
 0x93c   :  { %v8047_v1 = vpop.permute.xlu1 %8046  ;;  %v4780_v22 = vsel %vm1307_vm2, %v14002_v56, %v8039_v59  ;;  %v4779_v58 = vsel %vm1307_vm2, %v13982_v45, %v8038_v48  ;;  %v4188_v56 = vmul.f32 %v11837_v11, %v14027_v63  ;;  %v4187_v45 = vmul.f32 %v11846_v21, %v14028_v15 }
 0x93d   :  { %v8049_v20 = vunpack.i.h.bf16 %v8047_v1  ;;  %v8048_v13 = vunpack.i.l.bf16 %v8047_v1  ;;  %v12048_v1 = vld [vmem:[%s12941_s9] ss:$0 sm:$0xff] }
 0x93f   :  { %v4796_v47 = vsel %vm1324_vm3, %v4780_v22, %v8049_v20  ;;  %v4795_v44 = vsel %vm1324_vm3, %v4779_v58, %v8048_v13 }
 0x940   :  { %v4811_v14 = vsel %vm1341_vm4, %v4795_v44, %v8033_v53  ;;  %v4812_v52 = vsel %vm1341_vm4, %v4796_v47, %v8034_v50 }
 0x941   :  { %v8042_v17 = vpop.permute.xlu0 %8041  ;;  %v4835_v46 = vpack.c.bf16 %v4812_v52, %v4811_v14  ;;  %v5121_v21 = vpop.f32.mrf.mxu3 }
 0x942   :  { %v8044_v10 = vunpack.i.h.bf16 %v8042_v17  ;;  %v8043_v6 = vunpack.i.l.bf16 %v8042_v17  ;;  %v5069_v48 = vpop.f32.mrf.mxu2 }
 0x943   :  { %5101 = vmatmul.bf16.gmra.mxu2 %v4835_v46 }
 0x944   :  { %v8052_v38 = vpop.permute.xlu1 %8051  ;;  %v4732_v30 = vsel %vm1307_vm2, %v4188_v56, %v8044_v10  ;;  %v4731_v42 = vsel %vm1307_vm2, %v4187_v45, %v8043_v6 }
 0x945   :  { %v8054_v40 = vunpack.i.h.bf16 %v8052_v38  ;;  %v8053_v39 = vunpack.i.l.bf16 %v8052_v38 }
 0x947   :  { %v4748_v3 = vsel %vm1324_vm3, %v4732_v30, %v8054_v40  ;;  %v4747_v25 = vsel %vm1324_vm3, %v4731_v42, %v8053_v39  ;;  %v14029_v40 = vld [vmem:[#allocation93_spill] sm:$0xff] }
 0x948   :  { %v4763_v33 = vsel %vm1341_vm4, %v4747_v25, %v8058_v60  ;;  %v4764_v11 = vsel %vm1341_vm4, %v4748_v3, %v8059_v37  ;;  %v14030_v37 = vld [vmem:[#allocation82_spill] sm:$0xff] }
 0x949   :  { %v4834_v31 = vpack.c.bf16 %v4764_v11, %v4763_v33  ;;  %v5123_v59 = vpop.f32.mrf.mxu3 }
 0x94b   :  { %5052 = vmatmul.bf16.gmra.mxu1 %v4834_v31 }
 0x951   :  { %v5126_v53 = vpop.f32.mrf.mxu3 }
 0x958   :  { %v12043_v28 = vpop.f32.mrf.mxu1 }
 0x959   :  { %v5128_v16 = vpop.f32.mrf.mxu3 }
 0x960   :  { %v5020_v20 = vpop.f32.mrf.mxu1 }
 0x961   :  { %v5021_v13 = vadd.f32 %v12048_v1, %v5020_v20  ;;  %v5131_v20 = vpop.f32.mrf.mxu3 }
 0x963   :  { %v5070_v50 = vadd.f32 %v5069_v48, %v5021_v13 }
 0x965   :  { %v5119_v58 = vadd.f32 %v5118_v2, %v5070_v50 }
 0x966   :  { %v5072_v22 = vpop.f32.mrf.mxu2 }
 0x967   :  { %v5173_v14 = vmul.f32 0.01, %v5119_v58  ;;  %vm5157_vm2 = vcmp.gt.f32.partialorder %v5119_v58, 0.0 }
 0x968   :  { %v5023_v47 = vpop.f32.mrf.mxu1 }
 0x969   :  { %v5024_v44 = vadd.f32 %v12048_v1, %v5023_v47  ;;  %v12052_v10 = vsel %vm5157_vm2, %v5119_v58, %v5173_v14  ;;  %v14031_v47 = vld [vmem:[#allocation64_spill] sm:$0xff]  ;;  %v14033_v14 = vld [vmem:[#allocation146_spill] sm:$0xff] }
 0x96a   :  { %v5254_v39 = vmul.f32 %v12052_v10, %v14029_v40  ;;  %v13315_v31 = vrot.slane %v12052_v10, 1 }
 0x96b   :  { %v5073_v52 = vadd.f32 %v5072_v22, %v5024_v44 }
 0x96d   :  { %v5122_v17 = vadd.f32 %v5121_v21, %v5073_v52 }
 0x96e   :  { %v5074_v46 = vpop.f32.mrf.mxu2 }
 0x96f   :  { %vm5158_vm4 = vcmp.gt.f32.partialorder %v5122_v17, 0.0  ;;  %v5174_v6 = vmul.f32 0.01, %v5122_v17 }
 0x970   :  { %v5025_v56 = vpop.f32.mrf.mxu1 }
 0x971   :  { %v12054_v45 = vsel %vm5158_vm4, %v5122_v17, %v5174_v6  ;;  %v5026_v38 = vadd.f32 %v12048_v1, %v5025_v56 }
 0x972   :  { %v5255_v60 = vmul.f32 %v12054_v45, %v14030_v37  ;;  %v5270_v2 = vrot.slane %v12054_v45, 1 }
 0x973   :  { %v5075_v30 = vadd.f32 %v5074_v46, %v5026_v38 }
 0x974   :  { %v8065_v42 = vpack.i.bf16 %v5255_v60, %v5254_v39  ;;  %v5133_v60 = vpop.f32.mrf.mxu3 }
 0x975   :  { %v5124_v3 = vadd.f32 %v5123_v59, %v5075_v30  ;;  %v12071_v59 = vsel %vm426_vm0, %v13315_v31, %v5270_v2 }
 0x976   :  { %v5077_v25 = vpop.f32.mrf.mxu2  ;;  %8066 = vrot.lane.b32.xlu1 %v8065_v42, %s8464_s1  ;;  %v12080_v44 = vmul.f32 %v12071_v59, %v14031_v47 }
 0x977   :  { %vm5159_vm15 = vcmp.gt.f32.partialorder %v5124_v3, 0.0  ;;  %v5175_v33 = vmul.f32 0.01, %v5124_v3 }
 0x978   :  { %v5028_v11 = vpop.f32.mrf.mxu1  ;;  %14032 = vst [vmem:[#allocation147_spill] sm:$0xff] %v12080_v44 }
 0x979   :  { %v12064_v21 = vsel %vm5159_vm15, %v5124_v3, %v5175_v33  ;;  %v5029_v48 = vadd.f32 %v12048_v1, %v5028_v11 }
 0x97a   :  { %v5271_v13 = vrot.slane %v12064_v21, 1 }
 0x97b   :  { %v5078_v50 = vadd.f32 %v5077_v25, %v5029_v48 }
 0x97c   :  { %v12076_v22 = vsel %vm426_vm0, %v5270_v2, %v5271_v13  ;;  %v5136_v47 = vpop.f32.mrf.mxu3 }
 0x97d   :  { %v5127_v58 = vadd.f32 %v5126_v53, %v5078_v50  ;;  %v12084_v52 = vmul.f32 %v12076_v22, %v14033_v14  ;;  %v5256_v53 = vmul.f32 %v12064_v21, %v13947_v4 }
 0x97e   :  { %v5079_v17 = vpop.f32.mrf.mxu2 }
 0x97f   :  { %14034 = vst [vmem:[#allocation150_spill] sm:$0xff] %v12084_v52  ;;  %vm5160_vm5 = vcmp.gt.f32.partialorder %v5127_v58, 0.0  ;;  %v5176_v46 = vmul.f32 0.01, %v5127_v58 }
 0x980   :  { %v5030_v56 = vpop.f32.mrf.mxu1 }
 0x981   :  { %v12088_v38 = vsel %vm5160_vm5, %v5127_v58, %v5176_v46  ;;  %v5031_v40 = vadd.f32 %v12048_v1, %v5030_v56  ;;  %v14039_v56 = vld [vmem:[#allocation109_spill] sm:$0xff] }
 0x982   :  { %v5257_v39 = vmul.f32 %v12088_v38, %v13946_v34  ;;  %v5272_v2 = vrot.slane %v12088_v38, 1 }
 0x983   :  { %v5080_v37 = vadd.f32 %v5079_v17, %v5031_v40  ;;  %v14037_v17 = vld [vmem:[#allocation121_spill] sm:$0xff] }
 0x984   :  { %v8070_v30 = vpack.i.bf16 %v5257_v39, %v5256_v53  ;;  %v12103_v34 = vsel %vm426_vm0, %v5271_v13, %v5272_v2 }
 0x985   :  { %v5129_v42 = vadd.f32 %v5128_v16, %v5080_v37  ;;  %14035 = vst [vmem:[#allocation154_spill] sm:$0xff] %v12103_v34  ;;  %v12111_v46 = vmul.f32 %v12103_v34, %v14037_v17 }
 0x986   :  { %v5082_v3 = vpop.f32.mrf.mxu2  ;;  %8071 = vrot.lane.b32.xlu2 %v8070_v30, %s8464_s1 }
 0x987   :  { %vm5161_vm6 = vcmp.gt.f32.partialorder %v5129_v42, 0.0  ;;  %v5177_v25 = vmul.f32 0.01, %v5129_v42  ;;  %14038 = vst [vmem:[#allocation151_spill] sm:$0xff] %v12111_v46 }
 0x988   :  { %v5033_v33 = vpop.f32.mrf.mxu1 }
 0x989   :  { %v12097_v11 = vsel %vm5161_vm6, %v5129_v42, %v5177_v25  ;;  %v5034_v48 = vadd.f32 %v12048_v1, %v5033_v33  ;;  %v5138_v33 = vpop.f32.mrf.mxu3 }
 0x98a   :  { %v5273_v4 = vrot.slane %v12097_v11, 1 }
 0x98b   :  { %v5083_v50 = vadd.f32 %v5082_v3, %v5034_v48 }
 0x98c   :  { %v12107_v16 = vsel %vm426_vm0, %v5272_v2, %v5273_v4 }
 0x98d   :  { %14036 = vst [vmem:[#allocation149_spill] sm:$0xff] %v12107_v16  ;;  %v5132_v58 = vadd.f32 %v5131_v20, %v5083_v50  ;;  %v12115_v40 = vmul.f32 %v12107_v16, %v14039_v56 }
 0x98e   :  { %v5084_v14 = vpop.f32.mrf.mxu2 }
 0x98f   :  { %14040 = vst [vmem:[#allocation148_spill] sm:$0xff] %v12115_v40  ;;  %v5178_v53 = vmul.f32 0.01, %v5132_v58  ;;  %vm5162_vm7 = vcmp.gt.f32.partialorder %v5132_v58, 0.0 }
 0x990   :  { %v5035_v39 = vpop.f32.mrf.mxu1 }
 0x991   :  { %v5036_v37 = vadd.f32 %v12048_v1, %v5035_v39  ;;  %v12120_v20 = vsel %vm5162_vm7, %v5132_v58, %v5178_v53  ;;  %v14043_v39 = vld [vmem:[#allocation37_spill] sm:$0xff] }
 0x992   :  { %v5274_v2 = vrot.slane %v12120_v20, 1 }
 0x993   :  { %v5085_v30 = vadd.f32 %v5084_v14, %v5036_v37 }
 0x994   :  { %v12129_v14 = vsel %vm426_vm0, %v5273_v4, %v5274_v2 }
 0x995   :  { %v5134_v42 = vadd.f32 %v5133_v60, %v5085_v30  ;;  %14041 = vst [vmem:[#allocation153_spill] sm:$0xff] %v12129_v14  ;;  %v12137_v37 = vmul.f32 %v12129_v14, %v14043_v39  ;;  %v14045_v30 = vld [vmem:[#allocation126_spill] sm:$0xff] }
 0x996   :  { %v5087_v3 = vpop.f32.mrf.mxu2 }
 0x997   :  { %vm5163_vm8 = vcmp.gt.f32.partialorder %v5134_v42, 0.0  ;;  %v5179_v25 = vmul.f32 0.01, %v5134_v42  ;;  %14044 = vst [vmem:[#allocation155_spill] sm:$0xff] %v12137_v37 }
 0x998   :  { %v5038_v48 = vpop.f32.mrf.mxu1 }
 0x999   :  { %v12123_v50 = vsel %vm5163_vm8, %v5134_v42, %v5179_v25  ;;  %v5039_v17 = vadd.f32 %v12048_v1, %v5038_v48 }
 0x99a   :  { %v5275_v56 = vrot.slane %v12123_v50, 1 }
 0x99b   :  { %v5088_v13 = vadd.f32 %v5087_v3, %v5039_v17  ;;  %v5260_v17 = vmul.f32 %v12123_v50, %v13967_v26 }
 0x99c   :  { %v12133_v60 = vsel %vm426_vm0, %v5274_v2, %v5275_v56 }
 0x99d   :  { %14042 = vst [vmem:[#allocation152_spill] sm:$0xff] %v12133_v60  ;;  %v5137_v58 = vadd.f32 %v5136_v47, %v5088_v13  ;;  %v12141_v42 = vmul.f32 %v12133_v60, %v14045_v30  ;;  %v5141_v47 = vpop.f32.mrf.mxu3  ;;  %v5019_v13 = vadd.f32 %v12048_v1, %v12043_v28 }
 0x99e   :  { %v5089_v53 = vpop.f32.mrf.mxu2 }
 0x99f   :  { %14046 = vst [vmem:[#allocation144_spill] sm:$0xff] %v12141_v42  ;;  %vm5164_vm9 = vcmp.gt.f32.partialorder %v5137_v58, 0.0  ;;  %v5180_v3 = vmul.f32 0.01, %v5137_v58  ;;  %v5068_v46 = vadd.f32 %v12041_v36, %v5019_v13 }
 0x9a0   :  { %v5040_v25 = vpop.f32.mrf.mxu1 }
 0x9a1   :  { %v12145_v48 = vsel %vm5164_vm9, %v5137_v58, %v5180_v3  ;;  %v5041_v2 = vadd.f32 %v12048_v1, %v5040_v25  ;;  %v5117_v37 = vadd.f32 %v12021_v12, %v5068_v46  ;;  %v14051_v12 = vld [vmem:[#allocation72_spill] sm:$0xff] }
 0x9a2   :  { %v5261_v39 = vmul.f32 %v12145_v48, %v13966_v62  ;;  %v5276_v3 = vrot.slane %v12145_v48, 1 }
 0x9a3   :  { %v5090_v30 = vadd.f32 %v5089_v53, %v5041_v2  ;;  %v5172_v13 = vmul.f32 0.01, %v5117_v37  ;;  %vm5156_vm11 = vcmp.gt.f32.partialorder %v5117_v37, 0.0 }
 0x9a4   :  { %v8080_v6 = vpack.i.bf16 %v5261_v39, %v5260_v17  ;;  %v12164_v36 = vsel %vm426_vm0, %v5275_v56, %v5276_v3  ;;  %v14049_v17 = vld [vmem:[#allocation38_spill] sm:$0xff] }
 0x9a5   :  { %v5139_v31 = vadd.f32 %v5138_v33, %v5090_v30  ;;  %14047 = vst [vmem:[#allocation145_spill] sm:$0xff] %v12164_v36  ;;  %v5143_v33 = vpop.f32.mrf.mxu3  ;;  %v12172_v39 = vmul.f32 %v12164_v36, %v14049_v17 }
 0x9a6   :  { %v5092_v4 = vpop.f32.mrf.mxu2  ;;  %8081 = vrot.lane.b32.xlu1 %v8080_v6, %s8464_s1 }
 0x9a7   :  { %vm5165_vm10 = vcmp.gt.f32.partialorder %v5139_v31, 0.0  ;;  %v5181_v58 = vmul.f32 0.01, %v5139_v31  ;;  %14050 = vst [vmem:[#allocation102_spill] sm:$0xff] %v12172_v39 }
 0x9a8   :  { %v5043_v25 = vpop.f32.mrf.mxu1 }
 0x9a9   :  { %v12157_v28 = vsel %vm5165_vm10, %v5139_v31, %v5181_v58  ;;  %v5044_v26 = vadd.f32 %v12048_v1, %v5043_v25 }
 0x9aa   :  { %v5277_v62 = vrot.slane %v12157_v28, 1  ;;  %v5262_v25 = vmul.f32 %v12157_v28, %v13978_v23 }
 0x9ab   :  { %v5093_v53 = vadd.f32 %v5092_v4, %v5044_v26 }
 0x9ac   :  { %v12168_v6 = vsel %vm426_vm0, %v5276_v3, %v5277_v62  ;;  %v12183_v3 = vsel %vm5156_vm11, %v5117_v37, %v5172_v13  ;;  %v14053_v37 = vrot.slane %v12052_v10, 1 }
 0x9ad   :  { %14048 = vst [vmem:[#allocation91_spill] sm:$0xff] %v12168_v6  ;;  %v5142_v2 = vadd.f32 %v5141_v47, %v5093_v53  ;;  %v12176_v46 = vmul.f32 %v12168_v6, %v14051_v12  ;;  %v13321_v42 = vrot.slane %v12183_v3, 1  ;;  %v5146_v40 = vpop.f32.mrf.mxu3 }
 0x9ae   :  { %v5094_v31 = vpop.f32.mrf.mxu2 }
 0x9af   :  { %14052 = vst [vmem:[#allocation110_spill] sm:$0xff] %v12176_v46  ;;  %vm5166_vm12 = vcmp.gt.f32.partialorder %v5142_v2, 0.0  ;;  %v5182_v56 = vmul.f32 0.01, %v5142_v2  ;;  %v12197_v23 = vsel %vm426_vm0, %v13321_v42, %v14053_v37  ;;  %v14060_v42 = vld [vmem:[#allocation45_spill] sm:$0xff] }
 0x9b0   :  { %v5045_v4 = vpop.f32.mrf.mxu1 }
 0x9b1   :  { %v12180_v58 = vsel %vm5166_vm12, %v5142_v2, %v5182_v56  ;;  %v5046_v47 = vadd.f32 %v12048_v1, %v5045_v4 }
 0x9b2   :  { %v5263_v26 = vmul.f32 %v12180_v58, %v13977_v55  ;;  %v5278_v55 = vrot.slane %v12180_v58, 1 }
 0x9b3   :  { %v5095_v53 = vadd.f32 %v5094_v31, %v5046_v47  ;;  %v6945_v47 = vld [vmem:[#allocation12 + $0x38] sm:$0xff] }
 0x9b4   :  { %v8085_v17 = vpack.i.bf16 %v5263_v26, %v5262_v25  ;;  %v14055_v25 = vld [vmem:[#allocation56_spill] sm:$0xff]  ;;  %6072 = vmatpush.bf16.msrb.mxu0 %v6945_v47  ;;  %v12210_v37 = vsel %vm426_vm0, %v5277_v62, %v5278_v55 }
 0x9b5   :  { %v5144_v12 = vadd.f32 %v5143_v33, %v5095_v53  ;;  %v14054_v33 = vld [vmem:[#allocation57_spill] sm:$0xff]  ;;  %v5332_v26 = vmul.f32 %v12197_v23, %v14055_v25  ;;  %14056 = vst [vmem:[#allocation103_spill] sm:$0xff] %v12210_v37 }
 0x9b6   :  { %v5097_v44 = vpop.f32.mrf.mxu2  ;;  %8086 = vrot.lane.b32.xlu2 %v8085_v17, %s8464_s1  ;;  %v5333_v31 = vmul.f32 %v12071_v59, %v14054_v33 }
 0x9b7   :  { %vm5167_vm13 = vcmp.gt.f32.partialorder %v5144_v12, 0.0  ;;  %v5183_v2 = vmul.f32 0.01, %v5144_v12 }
 0x9b8   :  { %v5048_v13 = vpop.f32.mrf.mxu1  ;;  %v8100_v30 = vpack.i.bf16 %v5333_v31, %v5332_v26  ;;  %v14062_v31 = vld [vmem:[#allocation78_spill] sm:$0xff] }
 0x9b9   :  { %v12202_v56 = vsel %vm5167_vm13, %v5144_v12, %v5183_v2  ;;  %v5049_v4 = vadd.f32 %v12048_v1, %v5048_v13  ;;  %v14058_v13 = vld [vmem:[#allocation73_spill] sm:$0xff]  ;;  %v5335_v26 = vmul.f32 %v12103_v34, %v14062_v31 }
 0x9ba   :  { %v5279_v53 = vrot.slane %v12202_v56, 1  ;;  %v12219_v25 = vmul.f32 %v12210_v37, %v14058_v13 }
 0x9bb   :  { %v5098_v17 = vadd.f32 %v5097_v44, %v5049_v4  ;;  %v5148_v4 = vpop.f32.mrf.mxu3 }
 0x9bc   :  { %v12214_v33 = vsel %vm426_vm0, %v5278_v55, %v5279_v53  ;;  %14059 = vst [vmem:[#allocation117_spill] sm:$0xff] %v12219_v25  ;;  %v6944_v55 = vld [vmem:[#allocation12 + $0x30] sm:$0xff] }
 0x9bd   :  { %14057 = vst [vmem:[#allocation112_spill] sm:$0xff] %v12214_v33  ;;  %v5147_v12 = vadd.f32 %v5146_v40, %v5098_v17  ;;  %v12223_v44 = vmul.f32 %v12214_v33, %v14060_v42  ;;  %v14063_v17 = vld [vmem:[#allocation70_spill] sm:$0xff]  ;;  %6073 = vmatpush.bf16.msrb.mxu0 %v6944_v55 }
 0x9be   :  { %v5099_v2 = vpop.f32.mrf.mxu2  ;;  %8101 = vrot.lane.b32.xlu2 %v8100_v30, %s8464_s1  ;;  %v5334_v13 = vmul.f32 %v12076_v22, %v14063_v17  ;;  %v14069_v17 = vld [vmem:[#allocation62_spill] sm:$0xff] }
 0x9bf   :  { %14061 = vst [vmem:[#allocation159_spill] sm:$0xff] %v12223_v44  ;;  %v5184_v62 = vmul.f32 0.01, %v5147_v12  ;;  %vm5168_vm14 = vcmp.gt.f32.partialorder %v5147_v12, 0.0  ;;  %v14064_v44 = vld [vmem:[#allocation98_spill] sm:$0xff] }
 0x9c0   :  { %v5050_v47 = vpop.f32.mrf.mxu1  ;;  %v8115_v46 = vpack.i.bf16 %v5335_v26, %v5334_v13 }
 0x9c1   :  { %v5051_v30 = vadd.f32 %v12048_v1, %v5050_v47  ;;  %v12232_v42 = vsel %vm5168_vm14, %v5147_v12, %v5184_v62  ;;  %v5337_v47 = vmul.f32 %v12129_v14, %v14064_v44  ;;  %v14065_v12 = vld [vmem:[#allocation81_spill] sm:$0xff] }
 0x9c2   :  { %v5280_v34 = vrot.slane %v12232_v42, 1  ;;  %v5336_v62 = vmul.f32 %v12107_v16, %v14065_v12  ;;  %v6943_v12 = vld [vmem:[#allocation12 + $0x28] sm:$0xff]  ;;  %v6942_v16 = vld [vmem:[#allocation12 + $0x20] sm:$0xff] }
 0x9c3   :  { %v5100_v39 = vadd.f32 %v5099_v2, %v5051_v30  ;;  %v5151_v30 = vpop.f32.mrf.mxu3  ;;  %6074 = vmatpush.bf16.msrb.mxu0 %v6943_v12 }
 0x9c4   :  { %v8130_v26 = vpack.i.bf16 %v5337_v47, %v5336_v62 }
 0x9c5   :  { %v5149_v52 = vadd.f32 %v5148_v4, %v5100_v39  ;;  %v12246_v4 = vsel %vm426_vm0, %v5279_v53, %v5280_v34 }
 0x9c6   :  { %8116 = vrot.lane.b32.xlu2 %v8115_v46, %s8464_s1  ;;  %v5102_v40 = vpop.f32.mrf.mxu2  ;;  %14066 = vst [vmem:[#allocation114_spill] sm:$0xff] %v12246_v4 }
 0x9c7   :  { %vm5169_vm2 = vcmp.gt.f32.partialorder %v5149_v52, 0.0  ;;  %v5185_v31 = vmul.f32 0.01, %v5149_v52  ;;  %6075 = vmatpush.bf16.msrb.mxu0 %v6942_v16 }
 0x9c8   :  { %v5053_v25 = vpop.f32.mrf.mxu1 }
 0x9c9   :  { %v12238_v9 = vsel %vm5169_vm2, %v5149_v52, %v5185_v31  ;;  %v5054_v2 = vadd.f32 %v12048_v1, %v5053_v25  ;;  %v14067_v25 = vld [vmem:[#allocation50_spill] sm:$0xff] }
 0x9ca   :  { %v5281_v39 = vrot.slane %v12238_v9, 1  ;;  %v12255_v44 = vmul.f32 %v12246_v4, %v14067_v25  ;;  %v14071_v31 = vld [vmem:[#allocation106_spill] sm:$0xff]  ;;  %v5266_v25 = vmul.f32 %v12238_v9, %v14007_v32  ;;  %v14073_v32 = vld [vmem:[#allocation61_spill] sm:$0xff] }
 0x9cb   :  { %v5103_v46 = vadd.f32 %v5102_v40, %v5054_v2  ;;  %v5339_v47 = vmul.f32 %v12164_v36, %v14071_v31  ;;  %v5153_v31 = vpop.f32.mrf.mxu3 }
 0x9cc   :  { %v12250_v55 = vsel %vm426_vm0, %v5280_v34, %v5281_v39  ;;  %14068 = vst [vmem:[#allocation36_spill] sm:$0xff] %v12255_v44 }
 0x9cd   :  { %v5152_v52 = vadd.f32 %v5151_v30, %v5103_v46  ;;  %v12259_v13 = vmul.f32 %v12250_v55, %v14069_v17  ;;  %v14072_v46 = vld [vmem:[#allocation83_spill] sm:$0xff] }
 0x9ce   :  { %8131 = vrot.lane.b32.xlu2 %v8130_v26, %s8464_s1  ;;  %v5104_v62 = vpop.f32.mrf.mxu2  ;;  %v5338_v26 = vmul.f32 %v12133_v60, %v14072_v46  ;;  %v5253_v46 = vmul.f32 %v12183_v3, %v14073_v32  ;;  %v14084_v60 = vld [vmem:[#allocation142_spill] sm:$0xff] }
 0x9cf   :  { %14070 = vst [vmem:[#allocation158_spill] sm:$0xff] %v12259_v13  ;;  %vm5170_vm4 = vcmp.gt.f32.partialorder %v5152_v52, 0.0  ;;  %v5186_v40 = vmul.f32 0.01, %v5152_v52 }
 0x9d0   :  { %v5055_v53 = vpop.f32.mrf.mxu1  ;;  %v8145_v36 = vpack.i.bf16 %v5339_v47, %v5338_v26  ;;  %v14075_v26 = vld [vmem:[#allocation34_spill] sm:$0xff] }
 0x9d1   :  { %v12265_v2 = vsel %vm5170_vm4, %v5152_v52, %v5186_v40  ;;  %v5056_v30 = vadd.f32 %v12048_v1, %v5055_v53  ;;  %v5205_v52 = vrot.slane %v12052_v10, 7  ;;  %v5204_v1 = vrot.slane %v12183_v3, 7 }
 0x9d2   :  { %v5267_v17 = vmul.f32 %v12265_v2, %v14005_v51  ;;  %v14074_v51 = vld [vmem:[#allocation123_spill] sm:$0xff] }
 0x9d3   :  { %v5105_v14 = vadd.f32 %v5104_v62, %v5056_v30  ;;  %v5341_v30 = vmul.f32 %v12210_v37, %v14074_v51  ;;  %v12284_v47 = vsel %vm217_vm1, %v5204_v1, %v5205_v52  ;;  %v5208_v62 = vrot.slane %v12088_v38, 7 }
 0x9d4   :  { %v8095_v34 = vpack.i.bf16 %v5267_v17, %v5266_v25  ;;  %v14076_v17 = vld [vmem:[#allocation124_spill] sm:$0xff] }
 0x9d5   :  { %v5154_v40 = vadd.f32 %v5153_v31, %v5105_v14  ;;  %v5207_v14 = vrot.slane %v12064_v21, 7  ;;  %v5340_v31 = vmul.f32 %v12168_v6, %v14076_v17  ;;  %v14078_v17 = vld [vmem:[#allocation76_spill] sm:$0xff] }
 0x9d6   :  { %8146 = vrot.lane.b32.xlu2 %v8145_v36, %s8464_s1  ;;  %8096 = vrot.lane.b32.xlu1 %v8095_v34, %s8464_s1  ;;  %v5206_v36 = vrot.slane %v12054_v45, 7  ;;  %v5282_v34 = vrot.slane %v12265_v2, 1  ;;  %v5317_v6 = vmul.f32 %v12284_v47, %v14078_v17  ;;  %v14083_v17 = vld [vmem:[#allocation136_spill] sm:$0xff] }
 0x9d7   :  { %vm5171_vm15 = vcmp.gt.f32.partialorder %v5154_v40, 0.0  ;;  %v5187_v53 = vmul.f32 0.01, %v5154_v40  ;;  %v8160_v13 = vpack.i.bf16 %v5341_v30, %v5340_v31 }
 0x9d9   :  { %v12287_v12 = vsel %vm5171_vm15, %v5154_v40, %v5187_v53  ;;  %v12306_v53 = vsel %vm217_vm1, %v5206_v36, %v5207_v14 }
 0x9da   :  { %v5252_v25 = vmul.f32 %v12287_v12, %v14075_v26  ;;  %v13334_v32 = vrot.slane %v12287_v12, 7  ;;  %v5283_v51 = vrot.slane %v12287_v12, 1  ;;  %v14077_v26 = vld [vmem:[#allocation68_spill] sm:$0xff] }
 0x9dc   :  { %v8060_v44 = vpack.i.bf16 %v5253_v46, %v5252_v25  ;;  %v12302_v40 = vsel %vm217_vm1, %v13334_v32, %v5204_v1  ;;  %v12314_v46 = vsel %vm426_vm0, %v5281_v39, %v5282_v34  ;;  %v12318_v30 = vsel %vm426_vm0, %v5282_v34, %v5283_v51  ;;  %v6961_v39 = vld [vmem:[#allocation12 + $0xb8] sm:$0xff] }
 0x9dd   :  { %v5316_v37 = vmul.f32 %v12302_v40, %v14077_v26  ;;  %14079 = vst [vmem:[#allocation163_spill] sm:$0xff] %v12314_v46  ;;  %v12324_v1 = vsel %vm217_vm1, %v5207_v14, %v5208_v62  ;;  %v14081_v25 = vrot.slane %v12183_v3, 1  ;;  %v5240_v34 = vmul.f32 %v12306_v53, %v14018_v57  ;;  %6170 = vmatpush.bf16.msra.mxu2 %v6961_v39 }
 0x9de   :  { %14080 = vst [vmem:[#allocation157_spill] sm:$0xff] %v12318_v30  ;;  %8061 = vrot.lane.b32.xlu0 %v8060_v44, %s8464_s1  ;;  %8161 = vrot.lane.b32.xlu2 %v8160_v13, %s8464_s1  ;;  %v12336_v44 = vmul.f32 %v12197_v23, %v13938_v61  ;;  %v5259_v14 = vmul.f32 %v12120_v20, %v13956_v8  ;;  %v6960_v61 = vld [vmem:[#allocation12 + $0xb0] sm:$0xff] }
 0x9df   :  { %v12330_v31 = vsel %vm426_vm0, %v5283_v51, %v14081_v25  ;;  %v8110_v26 = vpack.i.bf16 %v5317_v6, %v5316_v37  ;;  %v5343_v32 = vmul.f32 %v12246_v4, %v14083_v17  ;;  %v12344_v51 = vmul.f32 %v12314_v46, %v14084_v60  ;;  %v14086_v6 = vld [vmem:[#allocation143_spill] sm:$0xff]  ;;  %v14090_v4 = vld [vmem:[#allocation96_spill] sm:$0xff] }
 0x9e0   :  { %14082 = vst [vmem:[#allocation156_spill] sm:$0xff] %v12336_v44  ;;  %v8072_v13 = vpop.permute.xlu2 %8071  ;;  %v12348_v37 = vmul.f32 %v12318_v30, %v14086_v6  ;;  %v5241_v8 = vmul.f32 %v12324_v1, %v14017_v18  ;;  %v12355_v39 = vmul.f32 %v12330_v31, %v13937_v19  ;;  %v5258_v60 = vmul.f32 %v12097_v11, %v13957_v35  ;;  %v14089_v17 = vld [vmem:[#allocation127_spill] sm:$0xff]  ;;  %v14104_v44 = vld [vmem:[#allocation86_spill] sm:$0xff] }
 0x9e1   :  { %14085 = vst [vmem:[#allocation165_spill] sm:$0xff] %v12344_v51  ;;  %v8074_v57 = vunpack.i.h.bf16 %v8072_v13  ;;  %v8073_v25 = vunpack.i.l.bf16 %v8072_v13  ;;  %8111 = vrot.lane.b32.xlu1 %v8110_v26, %s8464_s1  ;;  %v5342_v6 = vmul.f32 %v12214_v33, %v14089_v17  ;;  %v12363_v13 = vsel %vm217_vm1, %v5205_v52, %v5206_v36  ;;  %6171 = vmatpush.bf16.msra.mxu2 %v6960_v61  ;;  %v14091_v26 = vld [vmem:[#allocation87_spill] sm:$0xff] }
 0x9e2   :  { %14087 = vst [vmem:[#allocation162_spill] sm:$0xff] %v12348_v37  ;;  %v5319_v18 = vmul.f32 %v12306_v53, %v14090_v4  ;;  %v8075_v17 = vpack.i.bf16 %v5259_v14, %v5258_v60  ;;  %v5209_v52 = vrot.slane %v12097_v11, 7  ;;  %v5318_v16 = vmul.f32 %v12363_v13, %v14091_v26  ;;  %v6959_v4 = vld [vmem:[#allocation12 + $0xa8] sm:$0xff]  ;;  %v6958_v26 = vld [vmem:[#allocation12 + $0xa0] sm:$0xff] }
 0x9e3   :  { %14088 = vst [vmem:[#allocation160_spill] sm:$0xff] %v12355_v39  ;;  %v12370_v19 = vsel %vm1324_vm3, %v5240_v34, %v8073_v25  ;;  %v12373_v5 = vsel %vm1324_vm3, %v5241_v8, %v8074_v57  ;;  %v8175_v33 = vpack.i.bf16 %v5343_v32, %v5342_v6  ;;  %v14092_v25 = vld [vmem:[#allocation39_spill] sm:$0xff]  ;;  %v14093_v32 = vld [vmem:[#allocation49_spill] sm:$0xff]  ;;  %v5211_v36 = vrot.slane %v12123_v50, 7 }
 0x9e4   :  { %v8125_v34 = vpack.i.bf16 %v5319_v18, %v5318_v16  ;;  %v5265_v14 = vmul.f32 %v12232_v42, %v14092_v25  ;;  %v5345_v8 = vmul.f32 %v12314_v46, %v14093_v32  ;;  %v12390_v61 = vsel %vm217_vm1, %v5208_v62, %v5209_v52  ;;  %v14095_v25 = vld [vmem:[#allocation129_spill] sm:$0xff] }
 0x9e5   :  { %6172 = vmatpush.bf16.msra.mxu2 %v6959_v4  ;;  %v5239_v18 = vmul.f32 %v12363_v13, %v14013_v43  ;;  %v5344_v32 = vmul.f32 %v12250_v55, %v14095_v25  ;;  %v14096_v62 = vld [vmem:[#allocation105_spill] sm:$0xff]  ;;  %v5213_v39 = vrot.slane %v12157_v28, 7  ;;  %v14118_v46 = vrot.slane %v12287_v12, 7 }
 0x9e6   :  { %8076 = vrot.lane.b32.xlu0 %v8075_v17, %s8464_s1  ;;  %8176 = vrot.lane.b32.xlu2 %v8175_v33, %s8464_s1  ;;  %v5238_v33 = vmul.f32 %v12284_v47, %v14015_v7  ;;  %v14094_v17 = vld [vmem:[#allocation32_spill] sm:$0xff]  ;;  %v5321_v4 = vmul.f32 %v12390_v61, %v14096_v62  ;;  %vm6333_vm0 = vcmask 392192  }
 0x9e7   :  { %v5264_v16 = vmul.f32 %v12202_v56, %v14094_v17  ;;  %v8190_v7 = vpack.i.bf16 %v5345_v8, %v5344_v32  ;;  %v14097_v17 = vld [vmem:[#allocation95_spill] sm:$0xff]  ;;  %v14099_v8 = vld [vmem:[#allocation65_spill] sm:$0xff] }
 0x9e8   :  { %v8067_v57 = vpop.permute.xlu1 %8066  ;;  %v5320_v25 = vmul.f32 %v12324_v1, %v14097_v17  ;;  %v14101_v17 = vld [vmem:[#allocation59_spill] sm:$0xff] }
 0x9e9   :  { %v8069_v60 = vunpack.i.h.bf16 %v8067_v57  ;;  %v8068_v6 = vunpack.i.l.bf16 %v8067_v57  ;;  %8126 = vrot.lane.b32.xlu1 %v8125_v34, %s8464_s1  ;;  %v8090_v35 = vpack.i.bf16 %v5265_v14, %v5264_v16  ;;  %6173 = vmatpush.bf16.msra.mxu2 %v6958_v26  ;;  %v5346_v26 = vmul.f32 %v12318_v30, %v14099_v8  ;;  %v14100_v16 = vld [vmem:[#allocation55_spill] sm:$0xff]  ;;  %v14117_v30 = vld [vmem:[#allocation132_spill] sm:$0xff] }
 0x9ea   :  { %v5347_v32 = vmul.f32 %v12330_v31, %v14100_v16 }
 0x9eb   :  { %v12404_v57 = vsel %vm1324_vm3, %v5238_v33, %v8068_v6  ;;  %v12407_v34 = vsel %vm1324_vm3, %v5239_v18, %v8069_v60  ;;  %v5210_v6 = vrot.slane %v12120_v20, 7  ;;  %v6957_v33 = vld [vmem:[#allocation12 + $0x98] sm:$0xff]  ;;  %v8140_v60 = vpack.i.bf16 %v5321_v4, %v5320_v25 }
 0x9ec   :  { %v14098_v18 = vld [vmem:[#allocation60_spill] sm:$0xff]  ;;  %v5364_v4 = vmul.f32 %v12052_v10, %v14101_v17  ;;  %v8205_v43 = vpack.i.bf16 %v5347_v32, %v5346_v26  ;;  %v5212_v17 = vrot.slane %v12145_v48, 7 }
 0x9ed   :  { %v5365_v14 = vmul.f32 %v12054_v45, %v14098_v18  ;;  %v12425_v62 = vsel %vm217_vm1, %v5210_v6, %v5211_v36  ;;  %6174 = vmatpush.bf16.msra.mxu2 %v6957_v33  ;;  %v12432_v25 = vsel %vm217_vm1, %v5209_v52, %v5210_v6  ;;  %v14102_v18 = vld [vmem:[#allocation118_spill] sm:$0xff]  ;;  %v14103_v33 = vld [vmem:[#allocation116_spill] sm:$0xff] }
 0x9ee   :  { %8091 = vrot.lane.b32.xlu0 %v8090_v35, %s8464_s1  ;;  %8191 = vrot.lane.b32.xlu2 %v8190_v7, %s8464_s1  ;;  %v6956_v35 = vld [vmem:[#allocation12 + $0x90] sm:$0xff]  ;;  %v6941_v7 = vld [vmem:[#allocation12 + $0x18] sm:$0xff]  ;;  %v5323_v8 = vmul.f32 %v12425_v62, %v14102_v18  ;;  %v6955_v52 = vld [vmem:[#allocation12 + $0x88] sm:$0xff]  ;;  %v5367_v18 = vmul.f32 %v12088_v38, %v14104_v44  ;;  %v5215_v44 = vrot.slane %v12202_v56, 7 }
 0x9ef   :  { %6076 = vmatpush.bf16.msrb.mxu0 %v6941_v7  ;;  %v8105_v16 = vpack.i.bf16 %v5365_v14, %v5364_v4  ;;  %v12446_v14 = vsel %vm217_vm1, %v5212_v17, %v5213_v39  ;;  %v14105_v26 = vld [vmem:[#allocation80_spill] sm:$0xff] }
 0x9f0   :  { %v5366_v32 = vmul.f32 %v12064_v21, %v14105_v26  ;;  %v14109_v26 = vld [vmem:[#allocation90_spill] sm:$0xff] }
 0x9f1   :  { %8141 = vrot.lane.b32.xlu1 %v8140_v60, %s8464_s1  ;;  %6175 = vmatpush.bf16.msra.mxu2 %v6956_v35  ;;  %v5322_v60 = vmul.f32 %v12432_v25, %v14103_v33  ;;  %v14106_v35 = vld [vmem:[#allocation133_spill] sm:$0xff] }
 0x9f2   :  { %v5325_v7 = vmul.f32 %v12446_v14, %v14106_v35  ;;  %v8120_v4 = vpack.i.bf16 %v5367_v18, %v5366_v32  ;;  %v6940_v18 = vld [vmem:[#allocation12 + $0x10] sm:$0xff]  ;;  %v5368_v32 = vmul.f32 %v12097_v11, %v14109_v26 }
 0x9f3   :  { %v8155_v6 = vpack.i.bf16 %v5323_v8, %v5322_v60  ;;  %v6954_v8 = vld [vmem:[#allocation12 + $0x80] sm:$0xff]  ;;  %v5214_v60 = vrot.slane %v12180_v58, 7  ;;  %6077 = vmatpush.bf16.msrb.mxu0 %v6940_v18  ;;  %v14113_v26 = vld [vmem:[#allocation107_spill] sm:$0xff] }
 0x9f4   :  { %v5371_v37 = vmul.f32 %v12145_v48, %v14113_v26 }
 0x9f5   :  { %6176 = vmatpush.bf16.msra.mxu2 %v6955_v52  ;;  %v12473_v35 = vsel %vm217_vm1, %v5213_v39, %v5214_v60 }
 0x9f6   :  { %8106 = vrot.lane.b32.xlu0 %v8105_v16, %s8464_s1  ;;  %8206 = vrot.lane.b32.xlu2 %v8205_v43, %s8464_s1  ;;  %v12453_v43 = vsel %vm217_vm1, %v5211_v36, %v5212_v17  ;;  %v14107_v16 = vld [vmem:[#allocation119_spill] sm:$0xff]  ;;  %v12466_v17 = vsel %vm217_vm1, %v5214_v60, %v5215_v44  ;;  %14110 = vst [vmem:[#allocation161_spill] sm:$0xff] %v12473_v35 }
 0x9f7   :  { %v5324_v33 = vmul.f32 %v12453_v43, %v14107_v16  ;;  %v5217_v16 = vrot.slane %v12238_v9, 7  ;;  %v14114_v60 = vld [vmem:[#allocation99_spill] sm:$0xff] }
 0x9f9   :  { %8156 = vrot.lane.b32.xlu1 %v8155_v6, %s8464_s1  ;;  %6177 = vmatpush.bf16.msra.mxu2 %v6954_v8  ;;  %v8170_v52 = vpack.i.bf16 %v5325_v7, %v5324_v33  ;;  %v14108_v6 = vld [vmem:[#allocation101_spill] sm:$0xff]  ;;  %v14112_v33 = vld [vmem:[#allocation122_spill] sm:$0xff] }
 0x9fa   :  { %v5369_v36 = vmul.f32 %v12120_v20, %v14108_v6  ;;  %v5326_v6 = vmul.f32 %v12473_v35, %v14112_v33 }
 0x9fc   :  { %v8135_v8 = vpack.i.bf16 %v5369_v36, %v5368_v32  ;;  %v5370_v36 = vmul.f32 %v12123_v50, %v14114_v60  ;;  %v14115_v32 = vld [vmem:[#allocation43_spill] sm:$0xff]  ;;  %v5373_v60 = vmul.f32 %v12180_v58, %v14117_v30 }
 0x9fe   :  { %8121 = vrot.lane.b32.xlu0 %v8120_v4, %s8464_s1  ;;  %v14111_v4 = vld [vmem:[#allocation139_spill] sm:$0xff] }
 0x9ff   :  { %v5327_v7 = vmul.f32 %v12466_v17, %v14111_v4 }
 0xa01   :  { %8171 = vrot.lane.b32.xlu1 %v8170_v52, %s8464_s1  ;;  %v5216_v52 = vrot.slane %v12232_v42, 7  ;;  %v8185_v51 = vpack.i.bf16 %v5327_v7, %v5326_v6  ;;  %v8150_v7 = vpack.i.bf16 %v5371_v37, %v5370_v36  ;;  %v5218_v6 = vrot.slane %v12265_v2, 7  ;;  %v6939_v36 = vld [vmem:[#allocation12 + $0x8] sm:$0xff] }
 0xa02   :  { %6078 = vmatpush.bf16.msrb.mxu0 %v6939_v36 }
 0xa03   :  { %v12486_v39 = vsel %vm217_vm1, %v5216_v52, %v5217_v16  ;;  %v12493_v18 = vsel %vm217_vm1, %v5215_v44, %v5216_v52  ;;  %v12507_v44 = vsel %vm217_vm1, %v5218_v6, %v14118_v46  ;;  %v14120_v46 = vld [vmem:[#allocation52_spill] sm:$0xff] }
 0xa04   :  { %v5329_v4 = vmul.f32 %v12486_v39, %v14115_v32  ;;  %v5246_v32 = vmul.f32 %v12446_v14, %v14024_v24 }
 0xa06   :  { %8136 = vrot.lane.b32.xlu0 %v8135_v8, %s8464_s1  ;;  %v14116_v8 = vld [vmem:[#allocation44_spill] sm:$0xff] }
 0xa07   :  { %v5328_v33 = vmul.f32 %v12493_v18, %v14116_v8  ;;  %v12518_v8 = vsel %vm217_vm1, %v5217_v16, %v5218_v6 }
 0xa09   :  { %8186 = vrot.lane.b32.xlu1 %v8185_v51, %s8464_s1  ;;  %v8200_v26 = vpack.i.bf16 %v5329_v4, %v5328_v33  ;;  %v5247_v4 = vmul.f32 %v12473_v35, %v14023_v54  ;;  %v5331_v33 = vmul.f32 %v12507_v44, %v14120_v46  ;;  %v14121_v35 = vld [vmem:[#allocation54_spill] sm:$0xff] }
 0xa0a   :  { %v14122_v46 = vld [vmem:[#allocation134_spill] sm:$0xff] }
 0xa0b   :  { %v5375_v36 = vmul.f32 %v12232_v42, %v14122_v46 }
 0xa0e   :  { %8151 = vrot.lane.b32.xlu0 %v8150_v7, %s8464_s1  ;;  %v14119_v7 = vld [vmem:[#allocation113_spill] sm:$0xff] }
 0xa0f   :  { %v5372_v30 = vmul.f32 %v12157_v28, %v14119_v7  ;;  %v5330_v7 = vmul.f32 %v12518_v8, %v14121_v35  ;;  %v6953_v35 = vld [vmem:[#allocation12 + $0x78] sm:$0xff] }
 0xa10   :  { %v8087_v51 = vpop.permute.xlu2 %8086  ;;  %6121 = vmatpush.bf16.msra.mxu1 %v6953_v35  ;;  %v6938_v35 = vld [vmem:[#allocation12] sm:$0xff] }
 0xa11   :  { %v8089_v52 = vunpack.i.h.bf16 %v8087_v51  ;;  %v8088_v37 = vunpack.i.l.bf16 %v8087_v51  ;;  %8201 = vrot.lane.b32.xlu1 %v8200_v26, %s8464_s1  ;;  %v8165_v24 = vpack.i.bf16 %v5373_v60, %v5372_v30  ;;  %v8215_v49 = vpack.i.bf16 %v5331_v33, %v5330_v7  ;;  %6079 = vmatpush.bf16.msrb.mxu0 %v6938_v35 }
 0xa12   :  { %v5245_v60 = vmul.f32 %v12453_v43, %v14021_v27 }
 0xa13   :  { %v12523_v26 = vsel %vm1324_vm3, %v5246_v32, %v8088_v37  ;;  %v12526_v51 = vsel %vm1324_vm3, %v5247_v4, %v8089_v52  ;;  %v5244_v37 = vmul.f32 %v12425_v62, %v14022_v0  ;;  %v6952_v0 = vld [vmem:[#allocation12 + $0x70] sm:$0xff] }
 0xa14   :  { %6122 = vmatpush.bf16.msra.mxu1 %v6952_v0 }
 0xa16   :  { %8166 = vrot.lane.b32.xlu0 %v8165_v24, %s8464_s1  ;;  %v14123_v24 = vld [vmem:[#allocation130_spill] sm:$0xff] }
 0xa17   :  { %v5374_v33 = vmul.f32 %v12202_v56, %v14123_v24 }
 0xa18   :  { %v8102_v16 = vpop.permute.xlu2 %8101  ;;  %v8082_v6 = vpop.permute.xlu1 %8081 }
 0xa19   :  { %v8104_v52 = vunpack.i.h.bf16 %v8102_v16  ;;  %v8103_v32 = vunpack.i.l.bf16 %v8102_v16  ;;  %v8084_v4 = vunpack.i.h.bf16 %v8082_v6  ;;  %v8083_v30 = vunpack.i.l.bf16 %v8082_v6  ;;  %8216 = vrot.lane.b32.xlu1 %v8215_v49, %s8464_s1 }
 0xa1a   :  { %v8180_v49 = vpack.i.bf16 %v5375_v36, %v5374_v33 }
 0xa1b   :  { %v5685_v7 = vsel %vm1324_vm3, %v12052_v10, %v8104_v52  ;;  %v5684_v46 = vsel %vm1324_vm3, %v12183_v3, %v8103_v32  ;;  %v12547_v27 = vsel %vm1324_vm3, %v5244_v37, %v8083_v30  ;;  %v12550_v16 = vsel %vm1324_vm3, %v5245_v60, %v8084_v4  ;;  %v14124_v10 = vld [vmem:[#allocation140_spill] sm:$0xff]  ;;  %v6951_v32 = vld [vmem:[#allocation12 + $0x68] sm:$0xff]  ;;  %v6950_v60 = vld [vmem:[#allocation12 + $0x60] sm:$0xff] }
 0xa1c   :  { %v5718_v6 = vpack.c.bf16 %v5685_v7, %v5684_v46  ;;  %v5736_v54 = vpack.c.bf16 %v12550_v16, %v12547_v27  ;;  %v5377_v52 = vmul.f32 %v12265_v2, %v14124_v10  ;;  %v14125_v37 = vld [vmem:[#allocation138_spill] sm:$0xff]  ;;  %6123 = vmatpush.bf16.msra.mxu1 %v6951_v32  ;;  %v14126_v7 = vld [vmem:[#allocation41_spill] sm:$0xff] }
 0xa1d   :  { %v5376_v30 = vmul.f32 %v12238_v9, %v14125_v37  ;;  %v5378_v46 = vmul.f32 %v12287_v12, %v14126_v7  ;;  %v14127_v10 = vld [vmem:[#allocation53_spill] sm:$0xff]  ;;  %v6969_v37 = vld [vmem:[#allocation12 + $0xf8] sm:$0xff] }
 0xa1e   :  { %8181 = vrot.lane.b32.xlu0 %v8180_v49, %s8464_s1  ;;  %6178 = vmatmul.bf16.vlgmr.msra.gmra.mxu2 %v5718_v6  ;;  %v6949_v49 = vld [vmem:[#allocation12 + $0x58] sm:$0xff]  ;;  %v5379_v32 = vmul.f32 %v12183_v3, %v14127_v10  ;;  %v6967_v3 = vld [vmem:[#allocation12 + $0xe8] sm:$0xff] }
 0xa1f   :  { %v8195_v36 = vpack.i.bf16 %v5377_v52, %v5376_v30  ;;  %v6948_v52 = vld [vmem:[#allocation12 + $0x50] sm:$0xff]  ;;  %6219 = vmatpush.bf16.msra.mxu3 %v6969_v37 }
 0xa20   :  { %v8117_v24 = vpop.permute.xlu2 %8116  ;;  %6124 = vmatpush.bf16.msra.mxu1 %v6950_v60  ;;  %v8210_v35 = vpack.i.bf16 %v5379_v32, %v5378_v46  ;;  %v6947_v60 = vld [vmem:[#allocation12 + $0x48] sm:$0xff]  ;;  %v6964_v32 = vld [vmem:[#allocation12 + $0xd0] sm:$0xff] }
 0xa21   :  { %v8119_v4 = vunpack.i.h.bf16 %v8117_v24  ;;  %v8118_v33 = vunpack.i.l.bf16 %v8117_v24 }
 0xa23   :  { %v5686_v0 = vsel %vm1324_vm3, %v12054_v45, %v8118_v33  ;;  %v5687_v6 = vsel %vm1324_vm3, %v12064_v21, %v8119_v4  ;;  %v6968_v45 = vld [vmem:[#allocation12 + $0xf0] sm:$0xff]  ;;  %v6946_v21 = vld [vmem:[#allocation12 + $0x40] sm:$0xff]  ;;  %v6973_v4 = vld [vmem:[#allocation12 + $0x118] sm:$0xff] }
 0xa24   :  { %6125 = vmatpush.bf16.msra.mxu1 %v6949_v49  ;;  %v5723_v24 = vpack.c.bf16 %v5687_v6, %v5686_v0  ;;  %6220 = vmatpush.bf16.msra.mxu3 %v6968_v45  ;;  %v6966_v0 = vld [vmem:[#allocation12 + $0xe0] sm:$0xff]  ;;  %v6965_v49 = vld [vmem:[#allocation12 + $0xd8] sm:$0xff] }
 0xa25   :  { %6272 = vmatpush.bf16.msra.mxu0 %v6973_v4 }
 0xa26   :  { %8196 = vrot.lane.b32.xlu0 %v8195_v36, %s8464_s1 }
 0xa28   :  { %6126 = vmatpush.bf16.msra.mxu1 %v6948_v52  ;;  %v8132_v30 = vpop.permute.xlu2 %8131  ;;  %6221 = vmatpush.bf16.msra.mxu3 %v6967_v3 }
 0xa29   :  { %v8134_v36 = vunpack.i.h.bf16 %v8132_v30  ;;  %v8133_v33 = vunpack.i.l.bf16 %v8132_v30 }
 0xa2b   :  { %v5688_v7 = vsel %vm1324_vm3, %v12088_v38, %v8133_v33  ;;  %v5689_v46 = vsel %vm1324_vm3, %v12097_v11, %v8134_v36  ;;  %v5250_v38 = vmul.f32 %v12486_v39, %v14028_v15  ;;  %v5251_v11 = vmul.f32 %v12518_v8, %v14027_v63  ;;  %v6962_v15 = vld [vmem:[#allocation12 + $0xc0] sm:$0xff] }
 0xa2c   :  { %6127 = vmatpush.bf16.msra.mxu1 %v6947_v60  ;;  %v5728_v6 = vpack.c.bf16 %v5689_v46, %v5688_v7  ;;  %6222 = vmatpush.bf16.msra.mxu3 %v6966_v0  ;;  %v14128_v7 = vld [vmem:[#allocation23_spill] sm:$0xff]  ;;  %v14129_v46 = vld [vmem:[#allocation20_spill] sm:$0xff] }
 0xa2e   :  { %8211 = vrot.lane.b32.xlu0 %v8210_v35, %s8464_s1  ;;  %6183 = vmatmul.bf16.gmra.mxu2 %v5723_v24  ;;  %v6963_v24 = vld [vmem:[#allocation12 + $0xc8] sm:$0xff] }
 0xa30   :  { %6128 = vmatpush.bf16.msra.mxu1 %v6946_v21  ;;  %v8147_v10 = vpop.permute.xlu2 %8146  ;;  %6223 = vmatpush.bf16.msra.mxu3 %v6965_v49 }
 0xa31   :  { %v8149_v52 = vunpack.i.h.bf16 %v8147_v10  ;;  %v8148_v35 = vunpack.i.l.bf16 %v8147_v10  ;;  %v14130_v10 = vld [vmem:[#allocation66_spill] sm:$0xff] }
 0xa33   :  { %v5690_v45 = vsel %vm1324_vm3, %v12120_v20, %v8148_v35  ;;  %v5691_v36 = vsel %vm1324_vm3, %v12123_v50, %v8149_v52  ;;  %v5237_v20 = vmul.f32 %v12302_v40, %v14128_v7  ;;  %v5236_v50 = vmul.f32 %v12507_v44, %v14129_v46 }
 0xa34   :  { %6224 = vmatpush.bf16.msra.mxu3 %v6964_v32  ;;  %v5733_v4 = vpack.c.bf16 %v5691_v36, %v5690_v45  ;;  %v5301_v32 = vmul.f32 %v12197_v23, %v14130_v10  ;;  %v14132_v10 = vld [vmem:[#allocation84_spill] sm:$0xff] }
 0xa38   :  { %6225 = vmatpush.bf16.msra.mxu3 %v6963_v24  ;;  %v8162_v49 = vpop.permute.xlu2 %8161 }
 0xa39   :  { %v8164_v45 = vunpack.i.h.bf16 %v8162_v49  ;;  %v8163_v36 = vunpack.i.l.bf16 %v8162_v49 }
 0xa3c   :  { %6226 = vmatpush.bf16.msra.mxu3 %v6962_v15 }
 0xa3e   :  { %6188 = vmatmul.bf16.gmra.mxu2 %v5728_v6 }
 0xa48   :  { %v8097_v37 = vpop.permute.xlu1 %8096 }
 0xa49   :  { %v8099_v30 = vunpack.i.h.bf16 %v8097_v37  ;;  %v8098_v60 = vunpack.i.l.bf16 %v8097_v37  ;;  %v14131_v37 = vld [vmem:[#allocation63_spill] sm:$0xff] }
 0xa4b   :  { %v12582_v33 = vsel %vm1324_vm3, %v5250_v38, %v8098_v60  ;;  %v12585_v21 = vsel %vm1324_vm3, %v5251_v11, %v8099_v30  ;;  %v5300_v38 = vmul.f32 %v12330_v31, %v14131_v37  ;;  %v5243_v31 = vmul.f32 %v12432_v25, %v14019_v41 }
 0xa4c   :  { %v5751_v63 = vpack.c.bf16 %v12585_v21, %v12582_v33  ;;  %v14185_v33 = vld [vmem:[#allocation144_spill] sm:$0xff]  ;;  %v14186_v21 = vld [vmem:[#allocation155_spill] sm:$0xff] }
 0xa4e   :  { %6193 = vmatmul.bf16.gmra.mxu2 %v5733_v4 }
 0xa50   :  { %v8062_v3 = vpop.permute.xlu0 %8061 }
 0xa51   :  { %v8064_v0 = vunpack.i.h.bf16 %v8062_v3  ;;  %v8063_v6 = vunpack.i.l.bf16 %v8062_v3  ;;  %v6972_v3 = vld [vmem:[#allocation12 + $0x110] sm:$0xff] }
 0xa52   :  { %6273 = vmatpush.bf16.msra.mxu0 %v6972_v3  ;;  %v8177_v3 = vpop.permute.xlu2 %8176 }
 0xa53   :  { %v5652_v52 = vsel %vm1324_vm3, %v5236_v50, %v8063_v6  ;;  %v5653_v35 = vsel %vm1324_vm3, %v5237_v20, %v8064_v0  ;;  %v8112_v24 = vpop.permute.xlu1 %8111  ;;  %v5242_v20 = vmul.f32 %v12390_v61, %v14020_v29  ;;  %v5692_v0 = vsel %vm1324_vm3, %v12145_v48, %v8163_v36 }
 0xa54   :  { %v5716_v11 = vpack.c.bf16 %v5653_v35, %v5652_v52  ;;  %v8114_v30 = vunpack.i.h.bf16 %v8112_v24  ;;  %v8113_v60 = vunpack.i.l.bf16 %v8112_v24  ;;  %v5693_v6 = vsel %vm1324_vm3, %v12157_v28, %v8164_v45  ;;  %v14133_v52 = vld [vmem:[#allocation77_spill] sm:$0xff]  ;;  %v14134_v45 = vld [vmem:[#allocation30_spill] sm:$0xff] }
 0xa55   :  { %v5303_v35 = vmul.f32 %v12076_v22, %v14133_v52  ;;  %v5248_v36 = vmul.f32 %v12466_v17, %v14134_v45 }
 0xa56   :  { %v5669_v4 = vsel %vm1324_vm3, %v5301_v32, %v8114_v30  ;;  %v5668_v15 = vsel %vm1324_vm3, %v5300_v38, %v8113_v60  ;;  %6080 = vmatmul.bf16.vlgmr.msrb.gmra.mxu0 %v5716_v11  ;;  %v5302_v32 = vmul.f32 %v12071_v59, %v14132_v10  ;;  %v5738_v38 = vpack.c.bf16 %v5693_v6, %v5692_v0  ;;  %v14139_v10 = vld [vmem:[#allocation149_spill] sm:$0xff] }
 0xa57   :  { %v5717_v23 = vpack.c.bf16 %v5669_v4, %v5668_v15  ;;  %v14135_v4 = vld [vmem:[#allocation31_spill] sm:$0xff] }
 0xa58   :  { %v8077_v7 = vpop.permute.xlu0 %8076  ;;  %v5249_v15 = vmul.f32 %v12493_v18, %v14135_v4 }
 0xa59   :  { %v8079_v46 = vunpack.i.h.bf16 %v8077_v7  ;;  %v8078_v50 = vunpack.i.l.bf16 %v8077_v7  ;;  %6129 = vmatmul.bf16.vlgmr.msra.gmra.mxu1 %v5717_v23  ;;  %v14136_v7 = vld [vmem:[#allocation94_spill] sm:$0xff] }
 0xa5b   :  { %v8127_v49 = vpop.permute.xlu1 %8126  ;;  %v12614_v29 = vsel %vm1324_vm3, %v5242_v20, %v8078_v50  ;;  %v12617_v41 = vsel %vm1324_vm3, %v5243_v31, %v8079_v46  ;;  %v14137_v20 = vld [vmem:[#allocation154_spill] sm:$0xff] }
 0xa5c   :  { %v8129_v24 = vunpack.i.h.bf16 %v8127_v49  ;;  %v8128_v37 = vunpack.i.l.bf16 %v8127_v49  ;;  %v5731_v48 = vpack.c.bf16 %v12617_v41, %v12614_v29  ;;  %v5304_v31 = vmul.f32 %v14137_v20, %v14136_v7  ;;  %v14138_v49 = vld [vmem:[#allocation79_spill] sm:$0xff]  ;;  %v14143_v20 = vld [vmem:[#allocation104_spill] sm:$0xff] }
 0xa5e   :  { %6198 = vmatmul.bf16.gmra.mxu2 %v5738_v38  ;;  %v5670_v28 = vsel %vm1324_vm3, %v5302_v32, %v8128_v37  ;;  %v5671_v59 = vsel %vm1324_vm3, %v5303_v35, %v8129_v24  ;;  %v5305_v32 = vmul.f32 %v14139_v10, %v14138_v49  ;;  %v8179_v35 = vunpack.i.h.bf16 %v8177_v3 }
 0xa5f   :  { %v5722_v11 = vpack.c.bf16 %v5671_v59, %v5670_v28  ;;  %v8178_v24 = vunpack.i.l.bf16 %v8177_v3  ;;  %v14140_v37 = vpack.c.bf16 %v12407_v34, %v12404_v57 }
 0xa60   :  { %v8092_v30 = vpop.permute.xlu0 %8091  ;;  %v5695_v57 = vsel %vm1324_vm3, %v12202_v56, %v8179_v35 }
 0xa61   :  { %v8094_v22 = vunpack.i.h.bf16 %v8092_v30  ;;  %v8093_v60 = vunpack.i.l.bf16 %v8092_v30  ;;  %v14141_v30 = vld [vmem:[#allocation67_spill] sm:$0xff]  ;;  %v5694_v3 = vsel %vm1324_vm3, %v12180_v58, %v8178_v24 }
 0xa63   :  { %v8142_v23 = vpop.permute.xlu1 %8141  ;;  %v12630_v46 = vsel %vm1324_vm3, %v5248_v36, %v8093_v60  ;;  %v12633_v50 = vsel %vm1324_vm3, %v5249_v15, %v8094_v22  ;;  %v5348_v22 = vmul.f32 %v12284_v47, %v14141_v30  ;;  %v14142_v60 = vld [vmem:[#allocation58_spill] sm:$0xff]  ;;  %v14144_v47 = vld [vmem:[#allocation153_spill] sm:$0xff] }
 0xa64   :  { %v8144_v0 = vunpack.i.h.bf16 %v8142_v23  ;;  %v8143_v6 = vunpack.i.l.bf16 %v8142_v23  ;;  %v5746_v52 = vpack.c.bf16 %v12633_v50, %v12630_v46  ;;  %v5349_v45 = vmul.f32 %v12363_v13, %v14142_v60  ;;  %v14146_v13 = vld [vmem:[#allocation152_spill] sm:$0xff]  ;;  %v14183_v46 = vld [vmem:[#allocation151_spill] sm:$0xff] }
 0xa66   :  { %6085 = vmatmul.bf16.gmra.mxu0 %v14140_v37  ;;  %v5672_v38 = vsel %vm1324_vm3, %v5304_v31, %v8143_v6  ;;  %v5673_v28 = vsel %vm1324_vm3, %v5305_v32, %v8144_v0  ;;  %v5306_v31 = vmul.f32 %v14144_v47, %v14143_v20  ;;  %v14145_v0 = vld [vmem:[#allocation115_spill] sm:$0xff]  ;;  %v5743_v32 = vpack.c.bf16 %v5695_v57, %v5694_v3  ;;  %v14149_v3 = vld [vmem:[#allocation120_spill] sm:$0xff]  ;;  %v14150_v57 = vld [vmem:[#allocation145_spill] sm:$0xff] }
 0xa67   :  { %v5727_v59 = vpack.c.bf16 %v5673_v28, %v5672_v38  ;;  %v5307_v6 = vmul.f32 %v14146_v13, %v14145_v0  ;;  %v14147_v28 = vld [vmem:[#allocation69_spill] sm:$0xff]  ;;  %v14151_v47 = vld [vmem:[#allocation131_spill] sm:$0xff] }
 0xa68   :  { %v8107_v36 = vpop.permute.xlu0 %8106  ;;  %v5350_v30 = vmul.f32 %v12306_v53, %v14147_v28 }
 0xa69   :  { %v8109_v4 = vunpack.i.h.bf16 %v8107_v36  ;;  %v8108_v15 = vunpack.i.l.bf16 %v8107_v36  ;;  %6134 = vmatmul.bf16.gmra.mxu1 %v5722_v11 }
 0xa6b   :  { %v5700_v34 = vsel %vm1324_vm3, %v5348_v22, %v8108_v15  ;;  %v5701_v23 = vsel %vm1324_vm3, %v5349_v45, %v8109_v4  ;;  %v8157_v7 = vpop.permute.xlu1 %8156  ;;  %v14148_v22 = vld [vmem:[#allocation71_spill] sm:$0xff]  ;;  %v8192_v45 = vpop.permute.xlu2 %8191 }
 0xa6c   :  { %v5719_v49 = vpack.c.bf16 %v5701_v23, %v5700_v34  ;;  %v8159_v10 = vunpack.i.h.bf16 %v8157_v7  ;;  %v8158_v11 = vunpack.i.l.bf16 %v8157_v7  ;;  %v5351_v60 = vmul.f32 %v12324_v1, %v14148_v22 }
 0xa6d   :  { %v5308_v34 = vmul.f32 %v14150_v57, %v14149_v3  ;;  %v8194_v13 = vunpack.i.h.bf16 %v8192_v45  ;;  %v8193_v53 = vunpack.i.l.bf16 %v8192_v45  ;;  %v14153_v1 = vpack.c.bf16 %v12373_v5, %v12370_v19  ;;  %v14158_v3 = vld [vmem:[#allocation137_spill] sm:$0xff] }
 0xa6e   :  { %6203 = vmatmul.bf16.gmra.mxu2 %v5743_v32  ;;  %6227 = vmatmul.bf16.vlgmr.msra.gmra.mxu3 %v5719_v49  ;;  %v12659_v58 = vsel %vm1324_vm3, %v5306_v31, %v8158_v11  ;;  %v12662_v56 = vsel %vm1324_vm3, %v5307_v6, %v8159_v10  ;;  %v14152_v31 = vld [vmem:[#allocation91_spill] sm:$0xff]  ;;  %v6971_v6 = vld [vmem:[#allocation12 + $0x108] sm:$0xff] }
 0xa6f   :  { %v5732_v35 = vpack.c.bf16 %v12662_v56, %v12659_v58  ;;  %v5309_v0 = vmul.f32 %v14152_v31, %v14151_v47  ;;  %6274 = vmatpush.bf16.msra.mxu0 %v6971_v6  ;;  %v5697_v22 = vsel %vm1324_vm3, %v12238_v9, %v8194_v13  ;;  %v14161_v6 = vld [vmem:[#allocation108_spill] sm:$0xff] }
 0xa70   :  { %v8122_v24 = vpop.permute.xlu0 %8121 }
 0xa71   :  { %v8124_v37 = vunpack.i.h.bf16 %v8122_v24  ;;  %v8123_v38 = vunpack.i.l.bf16 %v8122_v24  ;;  %v14154_v24 = vld [vmem:[#allocation88_spill] sm:$0xff] }
 0xa73   :  { %v8172_v36 = vpop.permute.xlu1 %8171  ;;  %v5702_v4 = vsel %vm1324_vm3, %v5350_v30, %v8123_v38  ;;  %v5703_v15 = vsel %vm1324_vm3, %v5351_v60, %v8124_v37  ;;  %v5352_v37 = vmul.f32 %v12390_v61, %v14154_v24  ;;  %v14155_v38 = vld [vmem:[#allocation100_spill] sm:$0xff]  ;;  %v5696_v30 = vsel %vm1324_vm3, %v12232_v42, %v8193_v53  ;;  %v14157_v61 = vld [vmem:[#allocation103_spill] sm:$0xff]  ;;  %v14160_v53 = vld [vmem:[#allocation97_spill] sm:$0xff]  ;;  %v8207_v24 = vpop.permute.xlu2 %8206 }
 0xa74   :  { %v8174_v23 = vunpack.i.h.bf16 %v8172_v36  ;;  %v8173_v7 = vunpack.i.l.bf16 %v8172_v36  ;;  %v5724_v20 = vpack.c.bf16 %v5703_v15, %v5702_v4  ;;  %v5353_v28 = vmul.f32 %v12432_v25, %v14155_v38  ;;  %v14156_v4 = vld [vmem:[#allocation135_spill] sm:$0xff]  ;;  %v14159_v25 = vld [vmem:[#allocation112_spill] sm:$0xff] }
 0xa75   :  { %v5310_v15 = vmul.f32 %v14157_v61, %v14156_v4  ;;  %v5311_v57 = vmul.f32 %v14159_v25, %v14158_v3  ;;  %v8209_v4 = vunpack.i.h.bf16 %v8207_v24  ;;  %v14165_v25 = vld [vmem:[#allocation111_spill] sm:$0xff] }
 0xa76   :  { %6090 = vmatmul.bf16.gmra.mxu0 %v14153_v1  ;;  %v12680_v49 = vsel %vm1324_vm3, %v5308_v34, %v8173_v7  ;;  %v12683_v10 = vsel %vm1324_vm3, %v5309_v0, %v8174_v23  ;;  %v5354_v1 = vmul.f32 %v12425_v62, %v14160_v53  ;;  %v8208_v62 = vunpack.i.l.bf16 %v8207_v24  ;;  %v14169_v53 = vld [vmem:[#allocation163_spill] sm:$0xff] }
 0xa77   :  { %v5737_v11 = vpack.c.bf16 %v12683_v10, %v12680_v49  ;;  %v5699_v41 = vsel %vm1324_vm3, %v12287_v12, %v8209_v4  ;;  %v14177_v49 = vld [vmem:[#allocation74_spill] sm:$0xff] }
 0xa78   :  { %v8137_v32 = vpop.permute.xlu0 %8136  ;;  %v5698_v29 = vsel %vm1324_vm3, %v12265_v2, %v8208_v62  ;;  %v5363_v10 = vmul.f32 %v12302_v40, %v14177_v49 }
 0xa79   :  { %v8139_v5 = vunpack.i.h.bf16 %v8137_v32  ;;  %v8138_v19 = vunpack.i.l.bf16 %v8137_v32  ;;  %6139 = vmatmul.bf16.gmra.mxu1 %v5727_v59  ;;  %v5748_v59 = vpack.c.bf16 %v5697_v22, %v5696_v30  ;;  %v5355_v32 = vmul.f32 %v12453_v43, %v14161_v6  ;;  %v14170_v6 = vld [vmem:[#allocation75_spill] sm:$0xff] }
 0xa7a   :  { %v5753_v56 = vpack.c.bf16 %v5699_v41, %v5698_v29  ;;  %v14178_v29 = vpack.c.bf16 %v12526_v51, %v12523_v26  ;;  %v14180_v26 = vld [vmem:[#allocation147_spill] sm:$0xff] }
 0xa7b   :  { %v8187_v60 = vpop.permute.xlu1 %8186  ;;  %v5704_v45 = vsel %vm1324_vm3, %v5352_v37, %v8138_v19  ;;  %v5705_v36 = vsel %vm1324_vm3, %v5353_v28, %v8139_v5  ;;  %v14162_v28 = vld [vmem:[#allocation40_spill] sm:$0xff]  ;;  %v14163_v5 = vld [vmem:[#allocation114_spill] sm:$0xff] }
 0xa7c   :  { %v8189_v34 = vunpack.i.h.bf16 %v8187_v60  ;;  %v8188_v23 = vunpack.i.l.bf16 %v8187_v60  ;;  %v5729_v7 = vpack.c.bf16 %v5705_v36, %v5704_v45  ;;  %v5312_v19 = vmul.f32 %v14163_v5, %v14162_v28  ;;  %v14164_v45 = vld [vmem:[#allocation35_spill] sm:$0xff] }
 0xa7d   :  { %v5313_v36 = vmul.f32 %v12250_v55, %v14164_v45 }
 0xa7e   :  { %6208 = vmatmul.bf16.gmra.mxu2 %v5748_v59  ;;  %6232 = vmatmul.bf16.gmra.mxu3 %v5724_v20  ;;  %v12702_v42 = vsel %vm1324_vm3, %v5310_v15, %v8188_v23  ;;  %v12705_v9 = vsel %vm1324_vm3, %v5311_v57, %v8189_v34  ;;  %v5356_v57 = vmul.f32 %v12446_v14, %v14165_v25  ;;  %v14166_v34 = vld [vmem:[#allocation125_spill] sm:$0xff] }
 0xa7f   :  { %v5742_v47 = vpack.c.bf16 %v12705_v9, %v12702_v42  ;;  %v14167_v23 = vld [vmem:[#allocation161_spill] sm:$0xff] }
 0xa80   :  { %v8152_v31 = vpop.permute.xlu0 %8151  ;;  %v5357_v59 = vmul.f32 %v14167_v23, %v14166_v34  ;;  %v14175_v25 = vld [vmem:[#allocation141_spill] sm:$0xff] }
 0xa81   :  { %v8154_v0 = vunpack.i.h.bf16 %v8152_v31  ;;  %v8153_v13 = vunpack.i.l.bf16 %v8152_v31 }
 0xa83   :  { %v8202_v20 = vpop.permute.xlu1 %8201  ;;  %v5706_v37 = vsel %vm1324_vm3, %v5354_v1, %v8153_v13  ;;  %v5707_v38 = vsel %vm1324_vm3, %v5355_v32, %v8154_v0  ;;  %v14168_v13 = vld [vmem:[#allocation47_spill] sm:$0xff]  ;;  %v14171_v32 = vld [vmem:[#allocation157_spill] sm:$0xff] }
 0xa84   :  { %v8204_v30 = vunpack.i.h.bf16 %v8202_v20  ;;  %v8203_v22 = vunpack.i.l.bf16 %v8202_v20  ;;  %v5734_v60 = vpack.c.bf16 %v5707_v38, %v5706_v37  ;;  %v5314_v1 = vmul.f32 %v14169_v53, %v14168_v13 }
 0xa85   :  { %v5315_v24 = vmul.f32 %v14171_v32, %v14170_v6  ;;  %v14192_v6 = vld [vmem:[#allocation117_spill] sm:$0xff] }
 0xa86   :  { %6095 = vmatmul.bf16.gmra.mxu0 %v5731_v48  ;;  %v5680_v43 = vsel %vm1324_vm3, %v5312_v19, %v8203_v22  ;;  %v5681_v61 = vsel %vm1324_vm3, %v5313_v36, %v8204_v30  ;;  %v14172_v19 = vld [vmem:[#allocation128_spill] sm:$0xff]  ;;  %v14173_v22 = vld [vmem:[#allocation42_spill] sm:$0xff] }
 0xa87   :  { %v5747_v15 = vpack.c.bf16 %v5681_v61, %v5680_v43  ;;  %v5358_v30 = vmul.f32 %v12466_v17, %v14172_v19  ;;  %v5359_v45 = vmul.f32 %v12493_v18, %v14173_v22  ;;  %v14174_v17 = vld [vmem:[#allocation46_spill] sm:$0xff] }
 0xa88   :  { %v8167_v3 = vpop.permute.xlu0 %8166  ;;  %v5360_v18 = vmul.f32 %v12486_v39, %v14174_v17  ;;  %v14197_v19 = vld [vmem:[#allocation162_spill] sm:$0xff]  ;;  %v14200_v17 = vld [vmem:[#allocation156_spill] sm:$0xff] }
 0xa89   :  { %v8169_v31 = vunpack.i.h.bf16 %v8167_v3  ;;  %v8168_v55 = vunpack.i.l.bf16 %v8167_v3  ;;  %6144 = vmatmul.bf16.gmra.mxu1 %v5732_v35 }
 0xa8b   :  { %v8217_v48 = vpop.permute.xlu1 %8216  ;;  %v5708_v0 = vsel %vm1324_vm3, %v5356_v57, %v8168_v55  ;;  %v5709_v14 = vsel %vm1324_vm3, %v5357_v59, %v8169_v31  ;;  %v5361_v57 = vmul.f32 %v12518_v8, %v14175_v25  ;;  %v14176_v31 = vld [vmem:[#allocation92_spill] sm:$0xff] }
 0xa8c   :  { %v8219_v20 = vunpack.i.h.bf16 %v8217_v48  ;;  %v8218_v58 = vunpack.i.l.bf16 %v8217_v48  ;;  %v5739_v35 = vpack.c.bf16 %v5709_v14, %v5708_v0  ;;  %v5362_v55 = vmul.f32 %v12507_v44, %v14176_v31  ;;  %v14179_v44 = vld [vmem:[#allocation150_spill] sm:$0xff] }
 0xa8d   :  { %v14181_v51 = vpack.c.bf16 %v14179_v44, %v14180_v26  ;;  %v14188_v48 = vld [vmem:[#allocation110_spill] sm:$0xff] }
 0xa8e   :  { %6213 = vmatmul.bf16.gmra.mxu2 %v5753_v56  ;;  %6237 = vmatmul.bf16.gmra.mxu3 %v5729_v7  ;;  %v5682_v2 = vsel %vm1324_vm3, %v5314_v1, %v8218_v58  ;;  %v5683_v12 = vsel %vm1324_vm3, %v5315_v24, %v8219_v20  ;;  %v6970_v7 = vld [vmem:[#allocation12 + $0x100] sm:$0xff]  ;;  %v14189_v0 = vld [vmem:[#allocation102_spill] sm:$0xff]  ;;  %v14191_v1 = vld [vmem:[#allocation159_spill] sm:$0xff] }
 0xa8f   :  { %v5752_v37 = vpack.c.bf16 %v5683_v12, %v5682_v2  ;;  %6275 = vmatpush.bf16.msra.mxu0 %v6970_v7  ;;  %v14190_v14 = vpack.c.bf16 %v14188_v48, %v14189_v0  ;;  %v14193_v32 = vpack.c.bf16 %v14191_v1, %v14192_v6  ;;  %v14194_v58 = vld [vmem:[#allocation158_spill] sm:$0xff]  ;;  %v14195_v56 = vld [vmem:[#allocation36_spill] sm:$0xff] }
 0xa90   :  { %v8182_v38 = vpop.permute.xlu0 %8181 }
 0xa91   :  { %v8184_v28 = vunpack.i.h.bf16 %v8182_v38  ;;  %v8183_v5 = vunpack.i.l.bf16 %v8182_v38 }
 0xa93   :  { %v5710_v36 = vsel %vm1324_vm3, %v5358_v30, %v8183_v5  ;;  %v5711_v4 = vsel %vm1324_vm3, %v5359_v45, %v8184_v28  ;;  %v14198_v30 = vld [vmem:[#allocation165_spill] sm:$0xff] }
 0xa94   :  { %v5744_v62 = vpack.c.bf16 %v5711_v4, %v5710_v36  ;;  %v14199_v22 = vpack.c.bf16 %v14197_v19, %v14198_v30 }
 0xa96   :  { %6100 = vmatmul.bf16.gmra.mxu0 %v5736_v54 }
 0xa98   :  { %v8197_v43 = vpop.permute.xlu0 %8196 }
 0xa99   :  { %v8199_v61 = vunpack.i.h.bf16 %v8197_v43  ;;  %v8198_v3 = vunpack.i.l.bf16 %v8197_v43  ;;  %6149 = vmatmul.bf16.gmra.mxu1 %v5737_v11 }
 0xa9b   :  { %v5712_v34 = vsel %vm1324_vm3, %v5360_v18, %v8198_v3  ;;  %v5713_v27 = vsel %vm1324_vm3, %v5361_v57, %v8199_v61  ;;  %v12832_v61 = vld [vmem:[%s12943_s11] ss:$0 sm:$0xff]  ;;  %v14201_v18 = vld [vmem:[#allocation160_spill] sm:$0xff] }
 0xa9c   :  { %v5749_v54 = vpack.c.bf16 %v5713_v27, %v5712_v34  ;;  %v14202_v25 = vpack.c.bf16 %v14200_v17, %v14201_v18 }
 0xa9e   :  { %6242 = vmatmul.bf16.gmra.mxu3 %v5734_v60 }
 0xaa0   :  { %v8212_v16 = vpop.permute.xlu0 %8211 }
 0xaa1   :  { %v8214_v23 = vunpack.i.h.bf16 %v8212_v16  ;;  %v8213_v59 = vunpack.i.l.bf16 %v8212_v16 }
 0xaa3   :  { %v5714_v39 = vsel %vm1324_vm3, %v5362_v55, %v8213_v59  ;;  %v5715_v11 = vsel %vm1324_vm3, %v5363_v10, %v8214_v23 }
 0xaa4   :  { %v5754_v8 = vpack.c.bf16 %v5715_v11, %v5714_v39 }
 0xaa6   :  { %6105 = vmatmul.bf16.gmra.mxu0 %v14178_v29 }
 0xaa9   :  { %6154 = vmatmul.bf16.gmra.mxu1 %v5742_v47  ;;  %v14182_v47 = vld [vmem:[#allocation148_spill] sm:$0xff] }
 0xaaa   :  { %v14184_v50 = vpack.c.bf16 %v14182_v47, %v14183_v46 }
 0xaae   :  { %6247 = vmatmul.bf16.gmra.mxu3 %v5739_v35  ;;  %v14196_v35 = vpack.c.bf16 %v14194_v58, %v14195_v56 }
 0xab6   :  { %6110 = vmatmul.bf16.gmra.mxu0 %v5746_v52 }
 0xab9   :  { %6159 = vmatmul.bf16.gmra.mxu1 %v5747_v15 }
 0xabe   :  { %6252 = vmatmul.bf16.gmra.mxu3 %v5744_v62 }
 0xac6   :  { %6115 = vmatmul.bf16.gmra.mxu0 %v5751_v63  ;;  %v14187_v63 = vpack.c.bf16 %v14185_v33, %v14186_v21 }
 0xac9   :  { %6164 = vmatmul.bf16.gmra.mxu1 %v5752_v37  ;;  %v6179_v37 = vpop.f32.mrf.mxu2 }
 0xace   :  { %6257 = vmatmul.bf16.gmra.mxu3 %v5749_v54 }
 0xad1   :  { %v6181_v45 = vpop.f32.mrf.mxu2 }
 0xad3   :  { %v6081_v40 = vpop.f32.mrf.mxu0 }
 0xad4   :  { %v6082_v57 = vadd.f32 %v12832_v61, %v6081_v40 }
 0xad6   :  { %6854 = vmatmul.msk.bf16.vlgmr.msra.gmra.mxu0 %vm1324_vm3, %v14181_v51  ;;  %v6130_v2 = vpop.f32.mrf.mxu1 }
 0xad7   :  { %v6131_v54 = vadd.f32 %v6130_v2, %v6082_v57 }
 0xad9   :  { %v6184_v43 = vpop.f32.mrf.mxu2  ;;  %v6180_v31 = vadd.f32 %v6179_v37, %v6131_v54 }
 0xadb   :  { %v6083_v42 = vpop.f32.mrf.mxu0 }
 0xadc   :  { %v6084_v59 = vadd.f32 %v12832_v61, %v6083_v42 }
 0xade   :  { %6262 = vmatmul.bf16.gmra.mxu3 %v5754_v8  ;;  %v6132_v5 = vpop.f32.mrf.mxu1 }
 0xadf   :  { %v6133_v39 = vadd.f32 %v6132_v5, %v6084_v59 }
 0xae1   :  { %v6186_v16 = vpop.f32.mrf.mxu2  ;;  %v6182_v44 = vadd.f32 %v6181_v45, %v6133_v39 }
 0xae3   :  { %v6086_v9 = vpop.f32.mrf.mxu0 }
 0xae4   :  { %v6087_v29 = vadd.f32 %v12832_v61, %v6086_v9 }
 0xae6   :  { %6855 = vmatmul.msk.bf16.gmra.mxu0 %vm1324_vm3, %v14184_v50  ;;  %v6135_v62 = vpop.f32.mrf.mxu1 }
 0xae7   :  { %v6136_v46 = vadd.f32 %v6135_v62, %v6087_v29 }
 0xae9   :  { %v6189_v8 = vpop.f32.mrf.mxu2  ;;  %v6185_v21 = vadd.f32 %v6184_v43, %v6136_v46 }
 0xaeb   :  { %v6088_v52 = vpop.f32.mrf.mxu0 }
 0xaec   :  { %v6089_v42 = vadd.f32 %v12832_v61, %v6088_v52 }
 0xaee   :  { %v6137_v34 = vpop.f32.mrf.mxu1 }
 0xaef   :  { %v6138_v1 = vadd.f32 %v6137_v34, %v6089_v42 }
 0xaf1   :  { %v6228_v38 = vpop.f32.mrf.mxu3  ;;  %v6187_v56 = vadd.f32 %v6186_v16, %v6138_v1 }
 0xaf2   :  { %v6229_v55 = vadd.f32 %v6228_v38, %v6180_v31 }
 0xaf3   :  { %v12787_v60 = vpop.f32.mrf.mxu0 }
 0xaf4   :  { %v6092_v58 = vadd.f32 %v12832_v61, %v12787_v60 }
 0xaf6   :  { %6856 = vmatmul.msk.bf16.gmra.mxu0 %vm1324_vm3, %v14187_v63  ;;  %v6140_v49 = vpop.f32.mrf.mxu1  ;;  %v6191_v63 = vpop.f32.mrf.mxu2 }
 0xaf7   :  { %v6141_v38 = vadd.f32 %v6140_v49, %v6092_v58 }
 0xaf9   :  { %v6230_v36 = vpop.f32.mrf.mxu3 }
 0xafa   :  { %v6231_v26 = vadd.f32 %v6230_v36, %v6182_v44 }
 0xafb   :  { %v12793_v15 = vpop.f32.mrf.mxu0 }
 0xafc   :  { %v6094_v30 = vadd.f32 %v12832_v61, %v12793_v15 }
 0xafe   :  { %v6142_v33 = vpop.f32.mrf.mxu1  ;;  %v6194_v37 = vpop.f32.mrf.mxu2 }
 0xaff   :  { %v6143_v43 = vadd.f32 %v6142_v33, %v6094_v30 }
 0xb01   :  { %v6233_v3 = vpop.f32.mrf.mxu3  ;;  %v6192_v57 = vadd.f32 %v6191_v63, %v6143_v43 }
 0xb02   :  { %v6234_v9 = vadd.f32 %v6233_v3, %v6185_v21 }
 0xb03   :  { %v12795_v41 = vpop.f32.mrf.mxu0 }
 0xb06   :  { %6857 = vmatmul.msk.bf16.gmra.mxu0 %vm1324_vm3, %v14190_v14  ;;  %v6196_v17 = vpop.f32.mrf.mxu2 }
 0xb09   :  { %v6235_v23 = vpop.f32.mrf.mxu3 }
 0xb0a   :  { %v6236_v52 = vadd.f32 %v6235_v23, %v6187_v56 }
 0xb0b   :  { %v12801_v13 = vpop.f32.mrf.mxu0 }
 0xb0e   :  { %v6199_v31 = vpop.f32.mrf.mxu2 }
 0xb11   :  { %v6238_v40 = vpop.f32.mrf.mxu3 }
 0xb13   :  { %v12803_v53 = vpop.f32.mrf.mxu0 }
 0xb16   :  { %6858 = vmatmul.msk.bf16.gmra.mxu0 %vm1324_vm3, %v14193_v32  ;;  %v6145_v32 = vpop.f32.mrf.mxu1 }
 0xb19   :  { %v6240_v48 = vpop.f32.mrf.mxu3 }
 0xb1a   :  { %v6241_v15 = vadd.f32 %v6240_v48, %v6192_v57 }
 0xb1b   :  { %v12809_v24 = vpop.f32.mrf.mxu0 }
 0xb1c   :  { %v6104_v63 = vadd.f32 %v12832_v61, %v12809_v24 }
 0xb1e   :  { %v6147_v45 = vpop.f32.mrf.mxu1 }
 0xb21   :  { %v6243_v19 = vpop.f32.mrf.mxu3 }
 0xb23   :  { %v12811_v20 = vpop.f32.mrf.mxu0 }
 0xb24   :  { %v6107_v58 = vadd.f32 %v12832_v61, %v12811_v20 }
 0xb26   :  { %6859 = vmatmul.msk.bf16.gmra.mxu0 %vm1324_vm3, %v14196_v35  ;;  %v6150_v34 = vpop.f32.mrf.mxu1 }
 0xb29   :  { %v6245_v18 = vpop.f32.mrf.mxu3 }
 0xb2b   :  { %v12817_v12 = vpop.f32.mrf.mxu0 }
 0xb2c   :  { %v6109_v30 = vadd.f32 %v12832_v61, %v12817_v12 }
 0xb2e   :  { %v6152_v44 = vpop.f32.mrf.mxu1 }
 0xb2f   :  { %v6153_v1 = vadd.f32 %v6152_v44, %v6104_v63 }
 0xb33   :  { %v12819_v28 = vpop.f32.mrf.mxu0 }
 0xb36   :  { %6860 = vmatmul.msk.bf16.gmra.mxu0 %vm1324_vm3, %v14199_v22  ;;  %v6190_v22 = vadd.f32 %v6189_v8, %v6141_v38  ;;  %v6155_v21 = vpop.f32.mrf.mxu1 }
 0xb38   :  { %v6239_v60 = vadd.f32 %v6238_v40, %v6190_v22  ;;  %v6102_v40 = vadd.f32 %v12832_v61, %v12803_v53 }
 0xb3a   :  { %v6151_v33 = vadd.f32 %v6150_v34, %v6102_v40 }
 0xb3b   :  { %v12825_v4 = vpop.f32.mrf.mxu0 }
 0xb43   :  { %v12827_v7 = vpop.f32.mrf.mxu0 }
 0xb46   :  { %6861 = vmatmul.msk.bf16.gmra.mxu0 %vm1324_vm3, %v14202_v25  ;;  %v6097_v25 = vadd.f32 %v12832_v61, %v12795_v41 }
 0xb48   :  { %v6146_v23 = vadd.f32 %v6145_v32, %v6097_v25 }
 0xb4a   :  { %v6195_v49 = vadd.f32 %v6194_v37, %v6146_v23  ;;  %v6156_v37 = vadd.f32 %v6155_v21, %v6107_v58  ;;  %v6114_v23 = vadd.f32 %v12832_v61, %v12825_v4 }
 0xb4b   :  { %v12839_v27 = vpop.f32.mrf.mxu0 }
 0xb4c   :  { %v6244_v41 = vadd.f32 %v6243_v19, %v6195_v49 }
 0xb53   :  { %v6277_v10 = vpop.f32.mrf.mxu0 }
 0xb54   :  { %v6278_v11 = vadd.f32 %v6277_v10, %v6229_v55  ;;  %v6099_v55 = vadd.f32 %v12832_v61, %v12801_v13  ;;  %v6248_v10 = vpop.f32.mrf.mxu3 }
 0xb56   :  { %8223 = vtanh.f32 %v6278_v11  ;;  %v6148_v8 = vadd.f32 %v6147_v45, %v6099_v55 }
 0xb5b   :  { %v6279_v51 = vpop.f32.mrf.mxu0 }
 0xb5c   :  { %v8224_v47 = vpop.eup %8223  ;;  %v6280_v50 = vadd.f32 %v6279_v51, %v6231_v26  ;;  %v6197_v26 = vadd.f32 %v6196_v17, %v6148_v8  ;;  %v6201_v51 = vpop.f32.mrf.mxu2  ;;  %v6112_v17 = vadd.f32 %v12832_v61, %v12819_v28  ;;  %v6117_v8 = vadd.f32 %v12832_v61, %v12827_v7 }
 0xb5d   :  { %6334 = vst.msk [vmem:[%s12944_s12] sm:$0xff] %vm6333_vm0, %v8224_v47  ;;  %v6250_v47 = vpop.f32.mrf.mxu3  ;;  %v6202_v56 = vadd.f32 %v6201_v51, %v6153_v1 }
 0xb5e   :  { %8225 = vtanh.f32 %v6280_v50  ;;  %v6246_v13 = vadd.f32 %v6245_v18, %v6197_v26 }
 0xb5f   :  { %v6251_v24 = vadd.f32 %v6250_v47, %v6202_v56 }
 0xb63   :  { %v6282_v0 = vpop.f32.mrf.mxu0 }
 0xb64   :  { %v8226_v14 = vpop.eup %8225  ;;  %v6283_v6 = vadd.f32 %v6282_v0, %v6234_v9  ;;  %v6200_v9 = vadd.f32 %v6199_v31, %v6151_v33 }
 0xb65   :  { %6335 = vst.msk [vmem:[%s12944_s12 + $0x8] sm:$0xff] %vm6333_vm0, %v8226_v14  ;;  %v6204_v14 = vpop.f32.mrf.mxu2  ;;  %v6253_v32 = vpop.f32.mrf.mxu3 }
 0xb66   :  { %8227 = vtanh.f32 %v6283_v6  ;;  %v6249_v53 = vadd.f32 %v6248_v10, %v6200_v9  ;;  %v6205_v22 = vadd.f32 %v6204_v14, %v6156_v37 }
 0xb68   :  { %v6254_v20 = vadd.f32 %v6253_v32, %v6205_v22 }
 0xb6b   :  { %v6284_v35 = vpop.f32.mrf.mxu0 }
 0xb6c   :  { %v8228_v2 = vpop.eup %8227  ;;  %v6285_v5 = vadd.f32 %v6284_v35, %v6236_v52  ;;  %v6157_v52 = vpop.f32.mrf.mxu1 }
 0xb6d   :  { %6336 = vst.msk [vmem:[%s12944_s12 + $0x10] sm:$0xff] %vm6333_vm0, %v8228_v2  ;;  %v6255_v19 = vpop.f32.mrf.mxu3 }
 0xb6e   :  { %8229 = vtanh.f32 %v6285_v5  ;;  %v6206_v5 = vpop.f32.mrf.mxu2 }
 0xb73   :  { %v6287_v36 = vpop.f32.mrf.mxu0 }
 0xb74   :  { %v8230_v62 = vpop.eup %8229  ;;  %v6288_v3 = vadd.f32 %v6287_v36, %v6239_v60  ;;  %v6160_v45 = vpop.f32.mrf.mxu1 }
 0xb75   :  { %6337 = vst.msk [vmem:[%s12944_s12 + $0x18] sm:$0xff] %vm6333_vm0, %v8230_v62  ;;  %v6158_v62 = vadd.f32 %v6157_v52, %v6109_v30  ;;  %v6258_v25 = vpop.f32.mrf.mxu3  ;;  %v6161_v34 = vadd.f32 %v6160_v45, %v6112_v17 }
 0xb76   :  { %8231 = vtanh.f32 %v6288_v3  ;;  %v6209_v3 = vpop.f32.mrf.mxu2 }
 0xb77   :  { %v6207_v18 = vadd.f32 %v6206_v5, %v6158_v62 }
 0xb79   :  { %v6256_v12 = vadd.f32 %v6255_v19, %v6207_v18 }
 0xb7b   :  { %v6289_v54 = vpop.f32.mrf.mxu0 }
 0xb7c   :  { %v8232_v16 = vpop.eup %8231  ;;  %v6290_v59 = vadd.f32 %v6289_v54, %v6241_v15 }
 0xb7d   :  { %6338 = vst.msk [vmem:[%s12944_s12 + $0x20] sm:$0xff] %vm6333_vm0, %v8232_v16  ;;  %v6162_v16 = vpop.f32.mrf.mxu1  ;;  %v6260_v55 = vpop.f32.mrf.mxu3 }
 0xb7e   :  { %8233 = vtanh.f32 %v6290_v59  ;;  %v6210_v59 = vadd.f32 %v6209_v3, %v6161_v34  ;;  %v6211_v31 = vpop.f32.mrf.mxu2 }
 0xb80   :  { %v6259_v28 = vadd.f32 %v6258_v25, %v6210_v59 }
 0xb83   :  { %v6292_v39 = vpop.f32.mrf.mxu0 }
 0xb84   :  { %v8234_v11 = vpop.eup %8233  ;;  %v6293_v29 = vadd.f32 %v6292_v39, %v6244_v41  ;;  %v6163_v41 = vadd.f32 %v6162_v16, %v6114_v23 }
 0xb85   :  { %6339 = vst.msk [vmem:[%s12944_s12 + $0x28] sm:$0xff] %vm6333_vm0, %v8234_v11  ;;  %v6165_v11 = vpop.f32.mrf.mxu1  ;;  %v6263_v47 = vpop.f32.mrf.mxu3 }
 0xb86   :  { %8235 = vtanh.f32 %v6293_v29  ;;  %v6212_v29 = vadd.f32 %v6211_v31, %v6163_v41  ;;  %v6166_v26 = vadd.f32 %v6165_v11, %v6117_v8 }
 0xb88   :  { %v6261_v4 = vadd.f32 %v6260_v55, %v6212_v29 }
 0xb8b   :  { %v6294_v46 = vpop.f32.mrf.mxu0 }
 0xb8c   :  { %v8236_v50 = vpop.eup %8235  ;;  %v6295_v42 = vadd.f32 %v6294_v46, %v6246_v13  ;;  %v6214_v13 = vpop.f32.mrf.mxu2  ;;  %v6119_v46 = vadd.f32 %v12832_v61, %v12839_v27 }
 0xb8d   :  { %6340 = vst.msk [vmem:[%s12944_s12 + $0x30] sm:$0xff] %vm6333_vm0, %v8236_v50  ;;  %v6215_v50 = vadd.f32 %v6214_v13, %v6166_v26  ;;  %v6167_v33 = vpop.f32.mrf.mxu1 }
 0xb8e   :  { %8237 = vtanh.f32 %v6295_v42  ;;  %v6168_v63 = vadd.f32 %v6167_v33, %v6119_v46 }
 0xb8f   :  { %v6264_v7 = vadd.f32 %v6263_v47, %v6215_v50 }
 0xb93   :  { %v6297_v48 = vpop.f32.mrf.mxu0 }
 0xb94   :  { %v8238_v0 = vpop.eup %8237  ;;  %v6298_v6 = vadd.f32 %v6297_v48, %v6249_v53  ;;  %v6216_v53 = vpop.f32.mrf.mxu2 }
 0xb95   :  { %6341 = vst.msk [vmem:[%s12944_s12 + $0x38] sm:$0xff] %vm6333_vm0, %v8238_v0  ;;  %v6265_v48 = vpop.f32.mrf.mxu3  ;;  %v6217_v0 = vadd.f32 %v6216_v53, %v6168_v63 }
 0xb96   :  { %8239 = vtanh.f32 %v6298_v6 }
 0xb97   :  { %v6266_v14 = vadd.f32 %v6265_v48, %v6217_v0 }
 0xb9b   :  { %v6299_v35 = vpop.f32.mrf.mxu0 }
 0xb9c   :  { %v8240_v2 = vpop.eup %8239  ;;  %v6300_v38 = vadd.f32 %v6299_v35, %v6251_v24 }
 0xb9d   :  { %6342 = vst.msk [vmem:[%s12944_s12 + $0x40] sm:$0xff] %vm6333_vm0, %v8240_v2 }
 0xb9e   :  { %8241 = vtanh.f32 %v6300_v38 }
 0xba3   :  { %v6302_v60 = vpop.f32.mrf.mxu0 }
 0xba4   :  { %v8242_v36 = vpop.eup %8241  ;;  %v6303_v43 = vadd.f32 %v6302_v60, %v6254_v20 }
 0xba5   :  { %6343 = vst.msk [vmem:[%s12944_s12 + $0x48] sm:$0xff] %vm6333_vm0, %v8242_v36 }
 0xba6   :  { %8243 = vtanh.f32 %v6303_v43 }
 0xbab   :  { %v6304_v57 = vpop.f32.mrf.mxu0 }
 0xbac   :  { %v8244_v15 = vpop.eup %8243  ;;  %v6305_v54 = vadd.f32 %v6304_v57, %v6256_v12 }
 0xbad   :  { %6344 = vst.msk [vmem:[%s12944_s12 + $0x50] sm:$0xff] %vm6333_vm0, %v8244_v15 }
 0xbae   :  { %8245 = vtanh.f32 %v6305_v54 }
 0xbb3   :  { %v6307_v49 = vpop.f32.mrf.mxu0 }
 0xbb4   :  { %v8246_v10 = vpop.eup %8245  ;;  %v6308_v39 = vadd.f32 %v6307_v49, %v6259_v28 }
 0xbb5   :  { %6345 = vst.msk [vmem:[%s12944_s12 + $0x58] sm:$0xff] %vm6333_vm0, %v8246_v10 }
 0xbb6   :  { %8247 = vtanh.f32 %v6308_v39 }
 0xbbb   :  { %v6309_v44 = vpop.f32.mrf.mxu0 }
 0xbbc   :  { %v8248_v40 = vpop.eup %8247  ;;  %v6310_v51 = vadd.f32 %v6309_v44, %v6261_v4 }
 0xbbd   :  { %6346 = vst.msk [vmem:[%s12944_s12 + $0x60] sm:$0xff] %vm6333_vm0, %v8248_v40 }
 0xbbe   :  { %8249 = vtanh.f32 %v6310_v51 }
 0xbc3   :  { %v6312_v42 = vpop.f32.mrf.mxu0 }
 0xbc4   :  { %v8250_v21 = vpop.eup %8249  ;;  %v6313_v9 = vadd.f32 %v6312_v42, %v6264_v7 }
 0xbc5   :  { %6347 = vst.msk [vmem:[%s12944_s12 + $0x68] sm:$0xff] %vm6333_vm0, %v8250_v21 }
 0xbc6   :  { %8251 = vtanh.f32 %v6313_v9 }
 0xbcb   :  { %v6314_v1 = vpop.f32.mrf.mxu0 }
 0xbcc   :  { %v8252_v6 = vpop.eup %8251  ;;  %v6315_v61 = vadd.f32 %v6314_v1, %v6266_v14 }
 0xbcd   :  { %6348 = vst.msk [vmem:[%s12944_s12 + $0x70] sm:$0xff] %vm6333_vm0, %v8252_v6 }
 0xbce   :  { %8253 = vtanh.f32 %v6315_v61 }
 0xbd4   :  { %v8254_v27 = vpop.eup %8253 }
 0xbd5   :  { %6349 = vst.msk [vmem:[%s12944_s12 + $0x78] sm:$0xff] %vm6333_vm0, %v8254_v27 }
 0xbd6   :  { %6354 = vsyncpa [#allocation3], 1 }
 0xbd7   :  { %6355 = vsyncpa [#allocation5], 1 }
 0xbd8   :  { %6356 = vsyncpa [#allocation8], 1 }
 0xbd9   :  { %6357 = vsyncpa [#allocation11], 1 }

</bundles_post_ra>
